<compile_context>
chip_gen: v6e
topology: v6e:2x2x1
jax: 0.10.0
libtpu: 0.0.40
codegen_flags: <defaults>
</compile_context>

<pallas_src>
import math
import jax
import jax.numpy as jnp
from jax import lax
from jax.experimental import pallas as pl
from jax.experimental.pallas import tpu as pltpu

TILE_N = 128      # nodes per grid tile (fills MXU rows / vreg sublanes)
OUT_PAD = 128     # lane-dense padded output width (real out_dim sliced in JAX)


def _elu(x):
    return jnp.where(x > 0, x, jnp.exp(jnp.minimum(x, 0.0)) - 1.0)


# ---------------------------------------------------------------------------
# Fused per-tile kernel: 4x (TransformerConv + ELU) -> GlobalAttention -> fc
# ---------------------------------------------------------------------------
def _fused_net_kernel(x_ref, adj_ref, member_ref,
                      w0_ref, b0_ref, w1_ref, b1_ref,
                      w2_ref, b2_ref, w3_ref, b3_ref,
                      gw_ref, gb_ref, fw_ref, fb_ref,
                      o_ref):
    adj = adj_ref[...]                           # [T, T] f32, adj[i,j]=1 iff edge j->i
    h = x_ref[...]                               # [T, Fin] f32

    for w_ref, b_ref in ((w0_ref, b0_ref), (w1_ref, b1_ref),
                         (w2_ref, b2_ref), (w3_ref, b3_ref)):
        fout = w_ref.shape[1] // 4
        # single wide bf16 matmul for q|k|v|skip (f32 accumulation), static lane slices
        qkvs = lax.dot_general(h.astype(jnp.bfloat16), w_ref[...],
                               (((1,), (0,)), ((), ())),
                               preferred_element_type=jnp.float32) + b_ref[...]
        q = qkvs[:, 0 * fout:1 * fout]
        k = qkvs[:, 1 * fout:2 * fout]
        v = qkvs[:, 2 * fout:3 * fout]
        skip = qkvs[:, 3 * fout:4 * fout]

        scale = 1.0 / math.sqrt(fout)            # heads=1 -> C = Fout
        s = lax.dot_general(q.astype(jnp.bfloat16), k.astype(jnp.bfloat16),
                            (((1,), (1,)), ((), ())),
                            preferred_element_type=jnp.float32) * scale
        s = jnp.where(adj > 0, s, -1e30)
        m = jnp.max(s, axis=-1, keepdims=True)
        e = jnp.exp(s - m) * adj                 # * adj zeroes rows with no in-edges (PyG)
        denom = jnp.sum(e, axis=-1, keepdims=True)
        inv = pl.reciprocal(jnp.where(denom > 0, denom, 1.0), approx=True)
        alpha = e * inv
        out = lax.dot_general(alpha.astype(jnp.bfloat16), v.astype(jnp.bfloat16),
                              (((1,), (0,)), ((), ())),
                              preferred_element_type=jnp.float32) + skip
        h = _elu(out)                            # fused F.elu

    # GlobalAttention pooling (transposed / lane-dense) + final Linear
    member = member_ref[...]                     # [Gpt, T], member[g,n]=1 iff node n in graph g
    hb = h.astype(jnp.bfloat16)
    # gate computed transposed so the result is lane-dense [8, T]; row 0 is the real gate
    gate_t = lax.dot_general(gw_ref[...], hb, (((1,), (1,)), ((), ())),
                             preferred_element_type=jnp.float32) + gb_ref[...]
    gate_row = gate_t[0:1, :]                    # [1, T]
    s = jnp.where(member > 0, gate_row, -1e30)   # broadcast gate across graphs
    m = jnp.max(s, axis=-1, keepdims=True)       # lane-axis reduction
    e = jnp.exp(s - m) * member
    denom = jnp.sum(e, axis=-1, keepdims=True)
    inv = pl.reciprocal(jnp.where(denom > 0, denom, 1.0), approx=True)
    a = e * inv                                  # per-graph softmax weights [Gpt, T]
    pooled = lax.dot_general(a.astype(jnp.bfloat16), hb,
                             (((1,), (0,)), ((), ())),
                             preferred_element_type=jnp.float32)            # [Gpt, F]
    o_ref[...] = lax.dot_general(pooled.astype(jnp.bfloat16), fw_ref[...],
                                 (((1,), (0,)), ((), ())),
                                 preferred_element_type=jnp.float32) + fb_ref[...]


# ---------------------------------------------------------------------------
# One-time weight packing (hoisted out of the per-call path)
# ---------------------------------------------------------------------------
def pack_params(conv_params, gate_w, gate_b, fc_w, fc_b, out_dim):
    packed = []
    for p in conv_params:
        packed.append(jnp.concatenate([p["wq"], p["wk"], p["wv"], p["ws"]],
                                      axis=1).astype(jnp.bfloat16))
        packed.append(jnp.concatenate([p["bq"], p["bk"], p["bv"], p["bs"]],
                                      axis=1).astype(jnp.float32))
    fin = fc_w.shape[0]
    # gate weight stored transposed & sublane-padded -> lane-dense [8, T] gate result
    gwt = jnp.zeros((8, fin), jnp.float32).at[0, :].set(gate_w[:, 0]).astype(jnp.bfloat16)
    gbp = jnp.asarray(gate_b, jnp.float32).reshape(1, 1)
    fwp = jnp.zeros((fin, OUT_PAD), jnp.float32).at[:, :out_dim].set(fc_w).astype(jnp.bfloat16)
    fbp = jnp.zeros((1, OUT_PAD), jnp.float32).at[:, :out_dim].set(fc_b.reshape(1, -1))
    return tuple(packed) + (gwt, gbp, fwp, fbp)


def _const_spec(shape):
    nd = len(shape)
    return pl.BlockSpec(shape, lambda t, _nd=nd: (0,) * _nd)   # VMEM-resident weight


# ---------------------------------------------------------------------------
# Forward wrapper
# ---------------------------------------------------------------------------
def transformer_net_forward(x, adj_tiles, member_tiles, packed, num_graphs, out_dim):
    n, fin = x.shape
    num_tiles, gpt, _ = member_tiles.shape
    assert n == num_tiles * TILE_N, "nodes must be padded to a multiple of TILE_N"

    # advisory cost estimate (FLOPs / transcendentals / bytes) for the XLA scheduler
    layer_fouts = [packed[2 * i].shape[1] // 4 for i in range(4)]
    flops = 0
    f_in = fin
    for f_out in layer_fouts:
        flops += 2 * TILE_N * f_in * 4 * f_out          # fused q|k|v|skip matmul
        flops += 2 * TILE_N * TILE_N * f_out            # q . k^T
        flops += 2 * TILE_N * TILE_N * f_out            # alpha @ v
        f_in = f_out
    flops += 2 * TILE_N * f_in * 8                      # gate
    flops += 2 * gpt * TILE_N * f_in                    # pooling
    flops += 2 * gpt * f_in * OUT_PAD                   # fc
    flops *= num_tiles
    trans = num_tiles * (4 * TILE_N * TILE_N + gpt * TILE_N)
    bytes_accessed = (sum(int(a.size) * a.dtype.itemsize for a in packed)
                      + int(x.size) * 4 + int(adj_tiles.size) * 4
                      + int(member_tiles.size) * 4 + num_tiles * gpt * OUT_PAD * 4)

    out = pl.pallas_call(
        _fused_net_kernel,
        out_shape=jax.ShapeDtypeStruct((num_tiles * gpt, OUT_PAD), jnp.float32),
        grid=(num_tiles,),
        in_specs=[
            pl.BlockSpec((TILE_N, fin), lambda t: (t, 0)),                 # node features
            pl.BlockSpec((None, TILE_N, TILE_N), lambda t: (t, 0, 0)),     # per-tile adjacency
            pl.BlockSpec((None, gpt, TILE_N), lambda t: (t, 0, 0)),        # per-tile membership
            *[_const_spec(a.shape) for a in packed],                       # resident weights
        ],
        out_specs=pl.BlockSpec((gpt, OUT_PAD), lambda t: (t, 0)),
        compiler_params=pltpu.CompilerParams(dimension_semantics=("parallel",)),
        cost_estimate=pl.CostEstimate(flops=flops, transcendentals=trans,
                                      bytes_accessed=bytes_accessed),
    )(x, adj_tiles, member_tiles, *packed)
    return out[:num_graphs, :out_dim]


# ---------------------------------------------------------------------------
if __name__ == "__main__":
    key = jax.random.PRNGKey(0)
    num_node_features = 16
    out_dim = 9
    nodes_per_graph = 8
    G = 32                                   # 32 graphs x 8 nodes -> N = 256 -> 2 grid tiles
    N = nodes_per_graph * G
    GPT = TILE_N // nodes_per_graph          # 16 graphs per 128-node tile
    num_tiles = N // TILE_N

    # head_dim1*8, head_dim2*8, head_dim3*4, head_dim4*4 -> 512, 256, 64, 32
    dims = [num_node_features, 64 * 8, 32 * 8, 16 * 4, 8 * 4]

    keys = iter(jax.random.split(key, 64))

    def lin(fin, fout):
        w = jax.random.normal(next(keys), (fin, fout), jnp.float32) / math.sqrt(fin)
        b = 0.01 * jax.random.normal(next(keys), (1, fout), jnp.float32)
        return w, b

    conv_params = []
    for layer in range(4):
        fin, fout = dims[layer], dims[layer + 1]
        p = {}
        for name in ("q", "k", "v", "s"):
            w, b = lin(fin, fout)
            p["w" + name], p["b" + name] = w, b
        conv_params.append(p)

    gate_w, gate_b = lin(dims[-1], 1)        # att_pool gate_nn: Linear(32, 1)
    fc_w, fc_b = lin(dims[-1], out_dim)      # fc: Linear(32, 9)

    packed = pack_params(conv_params, gate_w, gate_b, fc_w, fc_b, out_dim)   # one-time

    # deterministic synthetic batch: G ring graphs of 8 nodes, edges both directions
    x = jax.random.normal(next(keys), (N, num_node_features), jnp.float32)
    local = jnp.arange(nodes_per_graph, dtype=jnp.int32)
    src_l = jnp.concatenate([local, (local + 1) % nodes_per_graph])
    dst_l = jnp.concatenate([(local + 1) % nodes_per_graph, local])
    offs = (jnp.arange(G, dtype=jnp.int32) * nodes_per_graph)[:, None]
    src = (src_l[None, :] + offs).reshape(-1)
    dst = (dst_l[None, :] + offs).reshape(-1)
    batch = jnp.repeat(jnp.arange(G, dtype=jnp.int32), nodes_per_graph)  # node -> graph id

    # glue: sparse edges -> per-tile dense adjacency (graphs never cross tile boundaries);
    # batch vector -> per-tile membership matrices [num_tiles, GPT, TILE_N]
    adj_tiles = jnp.zeros((num_tiles, TILE_N, TILE_N), jnp.float32)
    adj_tiles = adj_tiles.at[dst // TILE_N, dst % TILE_N, src % TILE_N].set(1.0)
    node_ids = jnp.arange(N, dtype=jnp.int32)
    member_tiles = jnp.zeros((num_tiles, GPT, TILE_N), jnp.float32)
    member_tiles = member_tiles.at[node_ids // TILE_N, batch % GPT, node_ids % TILE_N].set(1.0)

    fwd = jax.jit(transformer_net_forward, static_argnums=(4, 5))
    out = fwd(x, adj_tiles, member_tiles, packed, G, out_dim)
    out = jax.block_until_ready(out)
    assert out.shape == (G, out_dim) and out.dtype == jnp.float32
    assert bool(jnp.all(jnp.isfinite(out)))
    print("KERNEL_OK")
</pallas_src>

<mosaic_0001>
module attributes {stable_mosaic.version = 11 : i64} {
  func.func @_fused_net_kernel(%arg0: i32, %arg1: memref<128x16xf32, #tpu.memory_space<vmem>>, %arg2: memref<1x128x128xf32, #tpu.memory_space<vmem>>, %arg3: memref<1x16x128xf32, #tpu.memory_space<vmem>>, %arg4: memref<16x2048xbf16, #tpu.memory_space<vmem>>, %arg5: memref<1x2048xf32, #tpu.memory_space<vmem>>, %arg6: memref<512x1024xbf16, #tpu.memory_space<vmem>>, %arg7: memref<1x1024xf32, #tpu.memory_space<vmem>>, %arg8: memref<256x256xbf16, #tpu.memory_space<vmem>>, %arg9: memref<1x256xf32, #tpu.memory_space<vmem>>, %arg10: memref<64x128xbf16, #tpu.memory_space<vmem>>, %arg11: memref<1x128xf32, #tpu.memory_space<vmem>>, %arg12: memref<8x32xbf16, #tpu.memory_space<vmem>>, %arg13: memref<1x1xf32, #tpu.memory_space<vmem>>, %arg14: memref<32x128xbf16, #tpu.memory_space<vmem>>, %arg15: memref<1x128xf32, #tpu.memory_space<vmem>>, %arg16: memref<16x128xf32, #tpu.memory_space<vmem>>) attributes {dimension_semantics = [#tpu.dimension_semantics<parallel>], iteration_bounds = array<i64: 2>, scalar_prefetch = 0 : i64, scratch_operands = 0 : i64, tpu.core_type = #tpu.core_type<tc>, window_params = [{transform_indices = @transform_0, window_bounds = array<i64: 128, 16>}, {transform_indices = @transform_1, window_bounds = array<i64: 1, 128, 128>}, {transform_indices = @transform_2, window_bounds = array<i64: 1, 16, 128>}, {pipeline_mode = #tpu.pipeline_mode<synchronous>, transform_indices = @transform_3, window_bounds = array<i64: 16, 2048>}, {pipeline_mode = #tpu.pipeline_mode<synchronous>, transform_indices = @transform_4, window_bounds = array<i64: 1, 2048>}, {pipeline_mode = #tpu.pipeline_mode<synchronous>, transform_indices = @transform_5, window_bounds = array<i64: 512, 1024>}, {pipeline_mode = #tpu.pipeline_mode<synchronous>, transform_indices = @transform_6, window_bounds = array<i64: 1, 1024>}, {pipeline_mode = #tpu.pipeline_mode<synchronous>, transform_indices = @transform_7, window_bounds = array<i64: 256, 256>}, {pipeline_mode = #tpu.pipeline_mode<synchronous>, transform_indices = @transform_8, window_bounds = array<i64: 1, 256>}, {pipeline_mode = #tpu.pipeline_mode<synchronous>, transform_indices = @transform_9, window_bounds = array<i64: 64, 128>}, {pipeline_mode = #tpu.pipeline_mode<synchronous>, transform_indices = @transform_10, window_bounds = array<i64: 1, 128>}, {pipeline_mode = #tpu.pipeline_mode<synchronous>, transform_indices = @transform_11, window_bounds = array<i64: 8, 32>}, {pipeline_mode = #tpu.pipeline_mode<synchronous>, transform_indices = @transform_12, window_bounds = array<i64: 1, 1>}, {pipeline_mode = #tpu.pipeline_mode<synchronous>, transform_indices = @transform_13, window_bounds = array<i64: 32, 128>}, {pipeline_mode = #tpu.pipeline_mode<synchronous>, transform_indices = @transform_14, window_bounds = array<i64: 1, 128>}, {transform_indices = @transform_15, window_bounds = array<i64: 16, 128>}]} {
    %c0 = arith.constant 0 : index
    %c0_0 = arith.constant 0 : index
    %c0_1 = arith.constant 0 : index
    %0 = vector.load %arg2[%c0, %c0_0, %c0_1] : memref<1x128x128xf32, #tpu.memory_space<vmem>>, vector<1x128x128xf32>
    %1 = vector.shape_cast %0 : vector<1x128x128xf32> to vector<128x128xf32>
    %c0_2 = arith.constant 0 : index
    %c0_3 = arith.constant 0 : index
    %2 = vector.load %arg1[%c0_2, %c0_3] : memref<128x16xf32, #tpu.memory_space<vmem>>, vector<128x16xf32>
    %3 = arith.truncf %2 : vector<128x16xf32> to vector<128x16xbf16>
    %c0_4 = arith.constant 0 : index
    %c0_5 = arith.constant 0 : index
    %4 = vector.load %arg4[%c0_4, %c0_5] : memref<16x2048xbf16, #tpu.memory_space<vmem>>, vector<16x2048xbf16>
    %cst = arith.constant dense<0.000000e+00> : vector<128x2048xf32>
    %5 = tpu.matmul %3, %4, %cst {dimension_numbers = #tpu.dot_dimension_numbers<[1], [0], [0], [1], [0, 0, 1, 1], [], []>} : vector<128x16xbf16>, vector<16x2048xbf16>, vector<128x2048xf32> -> vector<128x2048xf32>
    %c0_6 = arith.constant 0 : index
    %c0_7 = arith.constant 0 : index
    %6 = vector.load %arg5[%c0_6, %c0_7] : memref<1x2048xf32, #tpu.memory_space<vmem>>, vector<1x2048xf32>
    %7 = vector.broadcast %6 : vector<1x2048xf32> to vector<128x2048xf32>
    %8 = arith.addf %5, %7 : vector<128x2048xf32>
    %9 = vector.extract_strided_slice %8 {offsets = [0, 0], sizes = [128, 512], strides = [1, 1]} : vector<128x2048xf32> to vector<128x512xf32>
    %10 = vector.extract_strided_slice %8 {offsets = [0, 512], sizes = [128, 512], strides = [1, 1]} : vector<128x2048xf32> to vector<128x512xf32>
    %11 = vector.extract_strided_slice %8 {offsets = [0, 1024], sizes = [128, 512], strides = [1, 1]} : vector<128x2048xf32> to vector<128x512xf32>
    %12 = vector.extract_strided_slice %8 {offsets = [0, 1536], sizes = [128, 512], strides = [1, 1]} : vector<128x2048xf32> to vector<128x512xf32>
    %13 = arith.truncf %9 : vector<128x512xf32> to vector<128x512xbf16>
    %14 = arith.truncf %10 : vector<128x512xf32> to vector<128x512xbf16>
    %cst_8 = arith.constant dense<0.000000e+00> : vector<128x128xf32>
    %15 = tpu.matmul %13, %14, %cst_8 {dimension_numbers = #tpu.dot_dimension_numbers<[1], [1], [0], [0], [0, 0, 1, 0], [], []>} : vector<128x512xbf16>, vector<128x512xbf16>, vector<128x128xf32> -> vector<128x128xf32>
    %cst_9 = arith.constant 0.0441941731 : f32
    %16 = vector.broadcast %cst_9 : f32 to vector<128x128xf32>
    %17 = arith.mulf %15, %16 : vector<128x128xf32>
    %cst_10 = arith.constant 0.000000e+00 : f32
    %18 = vector.broadcast %cst_10 : f32 to vector<128x128xf32>
    %19 = arith.cmpf ogt, %1, %18 : vector<128x128xf32>
    %cst_11 = arith.constant -1.000000e+30 : f32
    %20 = vector.broadcast %cst_11 : f32 to vector<128x128xf32>
    %21 = arith.select %19, %17, %20 : vector<128x128xi1>, vector<128x128xf32>
    %cst_12 = arith.constant dense<0xFF800000> : vector<128xf32>
    %22 = vector.multi_reduction <maximumf>, %21, %cst_12 [1] : vector<128x128xf32> to vector<128xf32>
    %23 = vector.shape_cast %22 : vector<128xf32> to vector<128x1xf32>
    %24 = vector.broadcast %23 : vector<128x1xf32> to vector<128x128xf32>
    %25 = arith.subf %21, %24 : vector<128x128xf32>
    %26 = math.exp %25 : vector<128x128xf32>
    %27 = arith.mulf %26, %1 : vector<128x128xf32>
    %cst_13 = arith.constant dense<0.000000e+00> : vector<128xf32>
    %28 = vector.multi_reduction <add>, %27, %cst_13 [1] : vector<128x128xf32> to vector<128xf32>
    %29 = vector.shape_cast %28 : vector<128xf32> to vector<128x1xf32>
    %cst_14 = arith.constant 0.000000e+00 : f32
    %30 = vector.broadcast %cst_14 : f32 to vector<128x1xf32>
    %31 = arith.cmpf ogt, %29, %30 : vector<128x1xf32>
    %cst_15 = arith.constant 1.000000e+00 : f32
    %32 = vector.broadcast %cst_15 : f32 to vector<128x1xf32>
    %33 = arith.select %31, %29, %32 : vector<128x1xi1>, vector<128x1xf32>
    %34 = tpu.reciprocal %33 {approx = true} : vector<128x1xf32> -> vector<128x1xf32>
    %35 = vector.broadcast %34 : vector<128x1xf32> to vector<128x128xf32>
    %36 = arith.mulf %27, %35 : vector<128x128xf32>
    %37 = arith.truncf %36 : vector<128x128xf32> to vector<128x128xbf16>
    %38 = arith.truncf %11 : vector<128x512xf32> to vector<128x512xbf16>
    %cst_16 = arith.constant dense<0.000000e+00> : vector<128x512xf32>
    %39 = tpu.matmul %37, %38, %cst_16 {dimension_numbers = #tpu.dot_dimension_numbers<[1], [0], [0], [1], [0, 0, 1, 1], [], []>} : vector<128x128xbf16>, vector<128x512xbf16>, vector<128x512xf32> -> vector<128x512xf32>
    %40 = arith.addf %39, %12 : vector<128x512xf32>
    %cst_17 = arith.constant 0.000000e+00 : f32
    %41 = vector.broadcast %cst_17 : f32 to vector<128x512xf32>
    %42 = arith.cmpf ogt, %40, %41 : vector<128x512xf32>
    %cst_18 = arith.constant 0.000000e+00 : f32
    %43 = vector.broadcast %cst_18 : f32 to vector<128x512xf32>
    %44 = arith.minimumf %40, %43 : vector<128x512xf32>
    %45 = math.exp %44 : vector<128x512xf32>
    %cst_19 = arith.constant 1.000000e+00 : f32
    %46 = vector.broadcast %cst_19 : f32 to vector<128x512xf32>
    %47 = arith.subf %45, %46 : vector<128x512xf32>
    %48 = arith.select %42, %40, %47 : vector<128x512xi1>, vector<128x512xf32>
    %49 = arith.truncf %48 : vector<128x512xf32> to vector<128x512xbf16>
    %c0_20 = arith.constant 0 : index
    %c0_21 = arith.constant 0 : index
    %50 = vector.load %arg6[%c0_20, %c0_21] : memref<512x1024xbf16, #tpu.memory_space<vmem>>, vector<512x1024xbf16>
    %cst_22 = arith.constant dense<0.000000e+00> : vector<128x1024xf32>
    %51 = tpu.matmul %49, %50, %cst_22 {dimension_numbers = #tpu.dot_dimension_numbers<[1], [0], [0], [1], [0, 0, 1, 1], [], []>} : vector<128x512xbf16>, vector<512x1024xbf16>, vector<128x1024xf32> -> vector<128x1024xf32>
    %c0_23 = arith.constant 0 : index
    %c0_24 = arith.constant 0 : index
    %52 = vector.load %arg7[%c0_23, %c0_24] : memref<1x1024xf32, #tpu.memory_space<vmem>>, vector<1x1024xf32>
    %53 = vector.broadcast %52 : vector<1x1024xf32> to vector<128x1024xf32>
    %54 = arith.addf %51, %53 : vector<128x1024xf32>
    %55 = vector.extract_strided_slice %54 {offsets = [0, 0], sizes = [128, 256], strides = [1, 1]} : vector<128x1024xf32> to vector<128x256xf32>
    %56 = vector.extract_strided_slice %54 {offsets = [0, 256], sizes = [128, 256], strides = [1, 1]} : vector<128x1024xf32> to vector<128x256xf32>
    %57 = vector.extract_strided_slice %54 {offsets = [0, 512], sizes = [128, 256], strides = [1, 1]} : vector<128x1024xf32> to vector<128x256xf32>
    %58 = vector.extract_strided_slice %54 {offsets = [0, 768], sizes = [128, 256], strides = [1, 1]} : vector<128x1024xf32> to vector<128x256xf32>
    %59 = arith.truncf %55 : vector<128x256xf32> to vector<128x256xbf16>
    %60 = arith.truncf %56 : vector<128x256xf32> to vector<128x256xbf16>
    %cst_25 = arith.constant dense<0.000000e+00> : vector<128x128xf32>
    %61 = tpu.matmul %59, %60, %cst_25 {dimension_numbers = #tpu.dot_dimension_numbers<[1], [1], [0], [0], [0, 0, 1, 0], [], []>} : vector<128x256xbf16>, vector<128x256xbf16>, vector<128x128xf32> -> vector<128x128xf32>
    %cst_26 = arith.constant 6.250000e-02 : f32
    %62 = vector.broadcast %cst_26 : f32 to vector<128x128xf32>
    %63 = arith.mulf %61, %62 : vector<128x128xf32>
    %cst_27 = arith.constant 0.000000e+00 : f32
    %64 = vector.broadcast %cst_27 : f32 to vector<128x128xf32>
    %65 = arith.cmpf ogt, %1, %64 : vector<128x128xf32>
    %cst_28 = arith.constant -1.000000e+30 : f32
    %66 = vector.broadcast %cst_28 : f32 to vector<128x128xf32>
    %67 = arith.select %65, %63, %66 : vector<128x128xi1>, vector<128x128xf32>
    %cst_29 = arith.constant dense<0xFF800000> : vector<128xf32>
    %68 = vector.multi_reduction <maximumf>, %67, %cst_29 [1] : vector<128x128xf32> to vector<128xf32>
    %69 = vector.shape_cast %68 : vector<128xf32> to vector<128x1xf32>
    %70 = vector.broadcast %69 : vector<128x1xf32> to vector<128x128xf32>
    %71 = arith.subf %67, %70 : vector<128x128xf32>
    %72 = math.exp %71 : vector<128x128xf32>
    %73 = arith.mulf %72, %1 : vector<128x128xf32>
    %cst_30 = arith.constant dense<0.000000e+00> : vector<128xf32>
    %74 = vector.multi_reduction <add>, %73, %cst_30 [1] : vector<128x128xf32> to vector<128xf32>
    %75 = vector.shape_cast %74 : vector<128xf32> to vector<128x1xf32>
    %cst_31 = arith.constant 0.000000e+00 : f32
    %76 = vector.broadcast %cst_31 : f32 to vector<128x1xf32>
    %77 = arith.cmpf ogt, %75, %76 : vector<128x1xf32>
    %cst_32 = arith.constant 1.000000e+00 : f32
    %78 = vector.broadcast %cst_32 : f32 to vector<128x1xf32>
    %79 = arith.select %77, %75, %78 : vector<128x1xi1>, vector<128x1xf32>
    %80 = tpu.reciprocal %79 {approx = true} : vector<128x1xf32> -> vector<128x1xf32>
    %81 = vector.broadcast %80 : vector<128x1xf32> to vector<128x128xf32>
    %82 = arith.mulf %73, %81 : vector<128x128xf32>
    %83 = arith.truncf %82 : vector<128x128xf32> to vector<128x128xbf16>
    %84 = arith.truncf %57 : vector<128x256xf32> to vector<128x256xbf16>
    %cst_33 = arith.constant dense<0.000000e+00> : vector<128x256xf32>
    %85 = tpu.matmul %83, %84, %cst_33 {dimension_numbers = #tpu.dot_dimension_numbers<[1], [0], [0], [1], [0, 0, 1, 1], [], []>} : vector<128x128xbf16>, vector<128x256xbf16>, vector<128x256xf32> -> vector<128x256xf32>
    %86 = arith.addf %85, %58 : vector<128x256xf32>
    %cst_34 = arith.constant 0.000000e+00 : f32
    %87 = vector.broadcast %cst_34 : f32 to vector<128x256xf32>
    %88 = arith.cmpf ogt, %86, %87 : vector<128x256xf32>
    %cst_35 = arith.constant 0.000000e+00 : f32
    %89 = vector.broadcast %cst_35 : f32 to vector<128x256xf32>
    %90 = arith.minimumf %86, %89 : vector<128x256xf32>
    %91 = math.exp %90 : vector<128x256xf32>
    %cst_36 = arith.constant 1.000000e+00 : f32
    %92 = vector.broadcast %cst_36 : f32 to vector<128x256xf32>
    %93 = arith.subf %91, %92 : vector<128x256xf32>
    %94 = arith.select %88, %86, %93 : vector<128x256xi1>, vector<128x256xf32>
    %95 = arith.truncf %94 : vector<128x256xf32> to vector<128x256xbf16>
    %c0_37 = arith.constant 0 : index
    %c0_38 = arith.constant 0 : index
    %96 = vector.load %arg8[%c0_37, %c0_38] : memref<256x256xbf16, #tpu.memory_space<vmem>>, vector<256x256xbf16>
    %cst_39 = arith.constant dense<0.000000e+00> : vector<128x256xf32>
    %97 = tpu.matmul %95, %96, %cst_39 {dimension_numbers = #tpu.dot_dimension_numbers<[1], [0], [0], [1], [0, 0, 1, 1], [], []>} : vector<128x256xbf16>, vector<256x256xbf16>, vector<128x256xf32> -> vector<128x256xf32>
    %c0_40 = arith.constant 0 : index
    %c0_41 = arith.constant 0 : index
    %98 = vector.load %arg9[%c0_40, %c0_41] : memref<1x256xf32, #tpu.memory_space<vmem>>, vector<1x256xf32>
    %99 = vector.broadcast %98 : vector<1x256xf32> to vector<128x256xf32>
    %100 = arith.addf %97, %99 : vector<128x256xf32>
    %101 = vector.extract_strided_slice %100 {offsets = [0, 0], sizes = [128, 64], strides = [1, 1]} : vector<128x256xf32> to vector<128x64xf32>
    %102 = vector.extract_strided_slice %100 {offsets = [0, 64], sizes = [128, 64], strides = [1, 1]} : vector<128x256xf32> to vector<128x64xf32>
    %103 = vector.extract_strided_slice %100 {offsets = [0, 128], sizes = [128, 64], strides = [1, 1]} : vector<128x256xf32> to vector<128x64xf32>
    %104 = vector.extract_strided_slice %100 {offsets = [0, 192], sizes = [128, 64], strides = [1, 1]} : vector<128x256xf32> to vector<128x64xf32>
    %105 = arith.truncf %101 : vector<128x64xf32> to vector<128x64xbf16>
    %106 = arith.truncf %102 : vector<128x64xf32> to vector<128x64xbf16>
    %cst_42 = arith.constant dense<0.000000e+00> : vector<128x128xf32>
    %107 = tpu.matmul %105, %106, %cst_42 {dimension_numbers = #tpu.dot_dimension_numbers<[1], [1], [0], [0], [0, 0, 1, 0], [], []>} : vector<128x64xbf16>, vector<128x64xbf16>, vector<128x128xf32> -> vector<128x128xf32>
    %cst_43 = arith.constant 1.250000e-01 : f32
    %108 = vector.broadcast %cst_43 : f32 to vector<128x128xf32>
    %109 = arith.mulf %107, %108 : vector<128x128xf32>
    %cst_44 = arith.constant 0.000000e+00 : f32
    %110 = vector.broadcast %cst_44 : f32 to vector<128x128xf32>
    %111 = arith.cmpf ogt, %1, %110 : vector<128x128xf32>
    %cst_45 = arith.constant -1.000000e+30 : f32
    %112 = vector.broadcast %cst_45 : f32 to vector<128x128xf32>
    %113 = arith.select %111, %109, %112 : vector<128x128xi1>, vector<128x128xf32>
    %cst_46 = arith.constant dense<0xFF800000> : vector<128xf32>
    %114 = vector.multi_reduction <maximumf>, %113, %cst_46 [1] : vector<128x128xf32> to vector<128xf32>
    %115 = vector.shape_cast %114 : vector<128xf32> to vector<128x1xf32>
    %116 = vector.broadcast %115 : vector<128x1xf32> to vector<128x128xf32>
    %117 = arith.subf %113, %116 : vector<128x128xf32>
    %118 = math.exp %117 : vector<128x128xf32>
    %119 = arith.mulf %118, %1 : vector<128x128xf32>
    %cst_47 = arith.constant dense<0.000000e+00> : vector<128xf32>
    %120 = vector.multi_reduction <add>, %119, %cst_47 [1] : vector<128x128xf32> to vector<128xf32>
    %121 = vector.shape_cast %120 : vector<128xf32> to vector<128x1xf32>
    %cst_48 = arith.constant 0.000000e+00 : f32
    %122 = vector.broadcast %cst_48 : f32 to vector<128x1xf32>
    %123 = arith.cmpf ogt, %121, %122 : vector<128x1xf32>
    %cst_49 = arith.constant 1.000000e+00 : f32
    %124 = vector.broadcast %cst_49 : f32 to vector<128x1xf32>
    %125 = arith.select %123, %121, %124 : vector<128x1xi1>, vector<128x1xf32>
    %126 = tpu.reciprocal %125 {approx = true} : vector<128x1xf32> -> vector<128x1xf32>
    %127 = vector.broadcast %126 : vector<128x1xf32> to vector<128x128xf32>
    %128 = arith.mulf %119, %127 : vector<128x128xf32>
    %129 = arith.truncf %128 : vector<128x128xf32> to vector<128x128xbf16>
    %130 = arith.truncf %103 : vector<128x64xf32> to vector<128x64xbf16>
    %cst_50 = arith.constant dense<0.000000e+00> : vector<128x64xf32>
    %131 = tpu.matmul %129, %130, %cst_50 {dimension_numbers = #tpu.dot_dimension_numbers<[1], [0], [0], [1], [0, 0, 1, 1], [], []>} : vector<128x128xbf16>, vector<128x64xbf16>, vector<128x64xf32> -> vector<128x64xf32>
    %132 = arith.addf %131, %104 : vector<128x64xf32>
    %cst_51 = arith.constant 0.000000e+00 : f32
    %133 = vector.broadcast %cst_51 : f32 to vector<128x64xf32>
    %134 = arith.cmpf ogt, %132, %133 : vector<128x64xf32>
    %cst_52 = arith.constant 0.000000e+00 : f32
    %135 = vector.broadcast %cst_52 : f32 to vector<128x64xf32>
    %136 = arith.minimumf %132, %135 : vector<128x64xf32>
    %137 = math.exp %136 : vector<128x64xf32>
    %cst_53 = arith.constant 1.000000e+00 : f32
    %138 = vector.broadcast %cst_53 : f32 to vector<128x64xf32>
    %139 = arith.subf %137, %138 : vector<128x64xf32>
    %140 = arith.select %134, %132, %139 : vector<128x64xi1>, vector<128x64xf32>
    %141 = arith.truncf %140 : vector<128x64xf32> to vector<128x64xbf16>
    %c0_54 = arith.constant 0 : index
    %c0_55 = arith.constant 0 : index
    %142 = vector.load %arg10[%c0_54, %c0_55] : memref<64x128xbf16, #tpu.memory_space<vmem>>, vector<64x128xbf16>
    %cst_56 = arith.constant dense<0.000000e+00> : vector<128x128xf32>
    %143 = tpu.matmul %141, %142, %cst_56 {dimension_numbers = #tpu.dot_dimension_numbers<[1], [0], [0], [1], [0, 0, 1, 1], [], []>} : vector<128x64xbf16>, vector<64x128xbf16>, vector<128x128xf32> -> vector<128x128xf32>
    %c0_57 = arith.constant 0 : index
    %c0_58 = arith.constant 0 : index
    %144 = vector.load %arg11[%c0_57, %c0_58] : memref<1x128xf32, #tpu.memory_space<vmem>>, vector<1x128xf32>
    %145 = vector.broadcast %144 : vector<1x128xf32> to vector<128x128xf32>
    %146 = arith.addf %143, %145 : vector<128x128xf32>
    %147 = vector.extract_strided_slice %146 {offsets = [0, 0], sizes = [128, 32], strides = [1, 1]} : vector<128x128xf32> to vector<128x32xf32>
    %148 = vector.extract_strided_slice %146 {offsets = [0, 32], sizes = [128, 32], strides = [1, 1]} : vector<128x128xf32> to vector<128x32xf32>
    %149 = vector.extract_strided_slice %146 {offsets = [0, 64], sizes = [128, 32], strides = [1, 1]} : vector<128x128xf32> to vector<128x32xf32>
    %150 = vector.extract_strided_slice %146 {offsets = [0, 96], sizes = [128, 32], strides = [1, 1]} : vector<128x128xf32> to vector<128x32xf32>
    %151 = arith.truncf %147 : vector<128x32xf32> to vector<128x32xbf16>
    %152 = arith.truncf %148 : vector<128x32xf32> to vector<128x32xbf16>
    %cst_59 = arith.constant dense<0.000000e+00> : vector<128x128xf32>
    %153 = tpu.matmul %151, %152, %cst_59 {dimension_numbers = #tpu.dot_dimension_numbers<[1], [1], [0], [0], [0, 0, 1, 0], [], []>} : vector<128x32xbf16>, vector<128x32xbf16>, vector<128x128xf32> -> vector<128x128xf32>
    %cst_60 = arith.constant 0.176776692 : f32
    %154 = vector.broadcast %cst_60 : f32 to vector<128x128xf32>
    %155 = arith.mulf %153, %154 : vector<128x128xf32>
    %cst_61 = arith.constant 0.000000e+00 : f32
    %156 = vector.broadcast %cst_61 : f32 to vector<128x128xf32>
    %157 = arith.cmpf ogt, %1, %156 : vector<128x128xf32>
    %cst_62 = arith.constant -1.000000e+30 : f32
    %158 = vector.broadcast %cst_62 : f32 to vector<128x128xf32>
    %159 = arith.select %157, %155, %158 : vector<128x128xi1>, vector<128x128xf32>
    %cst_63 = arith.constant dense<0xFF800000> : vector<128xf32>
    %160 = vector.multi_reduction <maximumf>, %159, %cst_63 [1] : vector<128x128xf32> to vector<128xf32>
    %161 = vector.shape_cast %160 : vector<128xf32> to vector<128x1xf32>
    %162 = vector.broadcast %161 : vector<128x1xf32> to vector<128x128xf32>
    %163 = arith.subf %159, %162 : vector<128x128xf32>
    %164 = math.exp %163 : vector<128x128xf32>
    %165 = arith.mulf %164, %1 : vector<128x128xf32>
    %cst_64 = arith.constant dense<0.000000e+00> : vector<128xf32>
    %166 = vector.multi_reduction <add>, %165, %cst_64 [1] : vector<128x128xf32> to vector<128xf32>
    %167 = vector.shape_cast %166 : vector<128xf32> to vector<128x1xf32>
    %cst_65 = arith.constant 0.000000e+00 : f32
    %168 = vector.broadcast %cst_65 : f32 to vector<128x1xf32>
    %169 = arith.cmpf ogt, %167, %168 : vector<128x1xf32>
    %cst_66 = arith.constant 1.000000e+00 : f32
    %170 = vector.broadcast %cst_66 : f32 to vector<128x1xf32>
    %171 = arith.select %169, %167, %170 : vector<128x1xi1>, vector<128x1xf32>
    %172 = tpu.reciprocal %171 {approx = true} : vector<128x1xf32> -> vector<128x1xf32>
    %173 = vector.broadcast %172 : vector<128x1xf32> to vector<128x128xf32>
    %174 = arith.mulf %165, %173 : vector<128x128xf32>
    %175 = arith.truncf %174 : vector<128x128xf32> to vector<128x128xbf16>
    %176 = arith.truncf %149 : vector<128x32xf32> to vector<128x32xbf16>
    %cst_67 = arith.constant dense<0.000000e+00> : vector<128x32xf32>
    %177 = tpu.matmul %175, %176, %cst_67 {dimension_numbers = #tpu.dot_dimension_numbers<[1], [0], [0], [1], [0, 0, 1, 1], [], []>} : vector<128x128xbf16>, vector<128x32xbf16>, vector<128x32xf32> -> vector<128x32xf32>
    %178 = arith.addf %177, %150 : vector<128x32xf32>
    %cst_68 = arith.constant 0.000000e+00 : f32
    %179 = vector.broadcast %cst_68 : f32 to vector<128x32xf32>
    %180 = arith.cmpf ogt, %178, %179 : vector<128x32xf32>
    %cst_69 = arith.constant 0.000000e+00 : f32
    %181 = vector.broadcast %cst_69 : f32 to vector<128x32xf32>
    %182 = arith.minimumf %178, %181 : vector<128x32xf32>
    %183 = math.exp %182 : vector<128x32xf32>
    %cst_70 = arith.constant 1.000000e+00 : f32
    %184 = vector.broadcast %cst_70 : f32 to vector<128x32xf32>
    %185 = arith.subf %183, %184 : vector<128x32xf32>
    %186 = arith.select %180, %178, %185 : vector<128x32xi1>, vector<128x32xf32>
    %c0_71 = arith.constant 0 : index
    %c0_72 = arith.constant 0 : index
    %c0_73 = arith.constant 0 : index
    %187 = vector.load %arg3[%c0_71, %c0_72, %c0_73] : memref<1x16x128xf32, #tpu.memory_space<vmem>>, vector<1x16x128xf32>
    %188 = vector.shape_cast %187 : vector<1x16x128xf32> to vector<16x128xf32>
    %189 = arith.truncf %186 : vector<128x32xf32> to vector<128x32xbf16>
    %c0_74 = arith.constant 0 : index
    %c0_75 = arith.constant 0 : index
    %190 = vector.load %arg12[%c0_74, %c0_75] : memref<8x32xbf16, #tpu.memory_space<vmem>>, vector<8x32xbf16>
    %cst_76 = arith.constant dense<0.000000e+00> : vector<8x128xf32>
    %191 = tpu.matmul %190, %189, %cst_76 {dimension_numbers = #tpu.dot_dimension_numbers<[1], [1], [0], [0], [0, 0, 1, 0], [], []>} : vector<8x32xbf16>, vector<128x32xbf16>, vector<8x128xf32> -> vector<8x128xf32>
    %c0_77 = arith.constant 0 : index
    %c0_78 = arith.constant 0 : index
    %192 = vector.load %arg13[%c0_77, %c0_78] : memref<1x1xf32, #tpu.memory_space<vmem>>, vector<1x1xf32>
    %193 = vector.broadcast %192 : vector<1x1xf32> to vector<8x128xf32>
    %194 = arith.addf %191, %193 : vector<8x128xf32>
    %195 = vector.extract_strided_slice %194 {offsets = [0, 0], sizes = [1, 128], strides = [1, 1]} : vector<8x128xf32> to vector<1x128xf32>
    %cst_79 = arith.constant 0.000000e+00 : f32
    %196 = vector.broadcast %cst_79 : f32 to vector<16x128xf32>
    %197 = arith.cmpf ogt, %188, %196 : vector<16x128xf32>
    %cst_80 = arith.constant -1.000000e+30 : f32
    %198 = vector.shape_cast %195 : vector<1x128xf32> to vector<1x128xf32>
    %199 = vector.broadcast %198 : vector<1x128xf32> to vector<16x128xf32>
    %200 = vector.broadcast %cst_80 : f32 to vector<16x128xf32>
    %201 = arith.select %197, %199, %200 : vector<16x128xi1>, vector<16x128xf32>
    %cst_81 = arith.constant dense<0xFF800000> : vector<16xf32>
    %202 = vector.multi_reduction <maximumf>, %201, %cst_81 [1] : vector<16x128xf32> to vector<16xf32>
    %203 = vector.shape_cast %202 : vector<16xf32> to vector<16x1xf32>
    %204 = vector.broadcast %203 : vector<16x1xf32> to vector<16x128xf32>
    %205 = arith.subf %201, %204 : vector<16x128xf32>
    %206 = math.exp %205 : vector<16x128xf32>
    %207 = arith.mulf %206, %188 : vector<16x128xf32>
    %cst_82 = arith.constant dense<0.000000e+00> : vector<16xf32>
    %208 = vector.multi_reduction <add>, %207, %cst_82 [1] : vector<16x128xf32> to vector<16xf32>
    %209 = vector.shape_cast %208 : vector<16xf32> to vector<16x1xf32>
    %cst_83 = arith.constant 0.000000e+00 : f32
    %210 = vector.broadcast %cst_83 : f32 to vector<16x1xf32>
    %211 = arith.cmpf ogt, %209, %210 : vector<16x1xf32>
    %cst_84 = arith.constant 1.000000e+00 : f32
    %212 = vector.broadcast %cst_84 : f32 to vector<16x1xf32>
    %213 = arith.select %211, %209, %212 : vector<16x1xi1>, vector<16x1xf32>
    %214 = tpu.reciprocal %213 {approx = true} : vector<16x1xf32> -> vector<16x1xf32>
    %215 = vector.broadcast %214 : vector<16x1xf32> to vector<16x128xf32>
    %216 = arith.mulf %207, %215 : vector<16x128xf32>
    %217 = arith.truncf %216 : vector<16x128xf32> to vector<16x128xbf16>
    %cst_85 = arith.constant dense<0.000000e+00> : vector<16x32xf32>
    %218 = tpu.matmul %217, %189, %cst_85 {dimension_numbers = #tpu.dot_dimension_numbers<[1], [0], [0], [1], [0, 0, 1, 1], [], []>} : vector<16x128xbf16>, vector<128x32xbf16>, vector<16x32xf32> -> vector<16x32xf32>
    %219 = arith.truncf %218 : vector<16x32xf32> to vector<16x32xbf16>
    %c0_86 = arith.constant 0 : index
    %c0_87 = arith.constant 0 : index
    %220 = vector.load %arg14[%c0_86, %c0_87] : memref<32x128xbf16, #tpu.memory_space<vmem>>, vector<32x128xbf16>
    %cst_88 = arith.constant dense<0.000000e+00> : vector<16x128xf32>
    %221 = tpu.matmul %219, %220, %cst_88 {dimension_numbers = #tpu.dot_dimension_numbers<[1], [0], [0], [1], [0, 0, 1, 1], [], []>} : vector<16x32xbf16>, vector<32x128xbf16>, vector<16x128xf32> -> vector<16x128xf32>
    %c0_89 = arith.constant 0 : index
    %c0_90 = arith.constant 0 : index
    %222 = vector.load %arg15[%c0_89, %c0_90] : memref<1x128xf32, #tpu.memory_space<vmem>>, vector<1x128xf32>
    %223 = vector.broadcast %222 : vector<1x128xf32> to vector<16x128xf32>
    %224 = arith.addf %221, %223 : vector<16x128xf32>
    %c0_91 = arith.constant 0 : index
    %c0_92 = arith.constant 0 : index
    %225 = vector.load %arg16[%c0_91, %c0_92] : memref<16x128xf32, #tpu.memory_space<vmem>>, vector<16x128xf32>
    tpu.vector_store %arg16[%c0_91, %c0_92], %224 {strides = array<i32>} : memref<16x128xf32, #tpu.memory_space<vmem>>, vector<16x128xf32>,
    return
  }
  func.func @transform_0(%arg0: i32) -> (i32, i32) {
    %c0_i32 = arith.constant 0 : i32
    %c0_i32_0 = arith.constant 0 : i32
    return %arg0, %c0_i32 : i32, i32
  }
  func.func @transform_1(%arg0: i32) -> (i32, i32, i32) {
    %c0_i32 = arith.constant 0 : i32
    %c0_i32_0 = arith.constant 0 : i32
    %c0_i32_1 = arith.constant 0 : i32
    return %arg0, %c0_i32, %c0_i32_0 : i32, i32, i32
  }
  func.func @transform_2(%arg0: i32) -> (i32, i32, i32) {
    %c0_i32 = arith.constant 0 : i32
    %c0_i32_0 = arith.constant 0 : i32
    %c0_i32_1 = arith.constant 0 : i32
    return %arg0, %c0_i32, %c0_i32_0 : i32, i32, i32
  }
  func.func @transform_3(%arg0: i32) -> (i32, i32) {
    %c0_i32 = arith.constant 0 : i32
    %c0_i32_0 = arith.constant 0 : i32
    %c0_i32_1 = arith.constant 0 : i32
    return %c0_i32, %c0_i32_0 : i32, i32
  }
  func.func @transform_4(%arg0: i32) -> (i32, i32) {
    %c0_i32 = arith.constant 0 : i32
    %c0_i32_0 = arith.constant 0 : i32
    %c0_i32_1 = arith.constant 0 : i32
    return %c0_i32, %c0_i32_0 : i32, i32
  }
  func.func @transform_5(%arg0: i32) -> (i32, i32) {
    %c0_i32 = arith.constant 0 : i32
    %c0_i32_0 = arith.constant 0 : i32
    %c0_i32_1 = arith.constant 0 : i32
    return %c0_i32, %c0_i32_0 : i32, i32
  }
  func.func @transform_6(%arg0: i32) -> (i32, i32) {
    %c0_i32 = arith.constant 0 : i32
    %c0_i32_0 = arith.constant 0 : i32
    %c0_i32_1 = arith.constant 0 : i32
    return %c0_i32, %c0_i32_0 : i32, i32
  }
  func.func @transform_7(%arg0: i32) -> (i32, i32) {
    %c0_i32 = arith.constant 0 : i32
    %c0_i32_0 = arith.constant 0 : i32
    %c0_i32_1 = arith.constant 0 : i32
    return %c0_i32, %c0_i32_0 : i32, i32
  }
  func.func @transform_8(%arg0: i32) -> (i32, i32) {
    %c0_i32 = arith.constant 0 : i32
    %c0_i32_0 = arith.constant 0 : i32
    %c0_i32_1 = arith.constant 0 : i32
    return %c0_i32, %c0_i32_0 : i32, i32
  }
  func.func @transform_9(%arg0: i32) -> (i32, i32) {
    %c0_i32 = arith.constant 0 : i32
    %c0_i32_0 = arith.constant 0 : i32
    %c0_i32_1 = arith.constant 0 : i32
    return %c0_i32, %c0_i32_0 : i32, i32
  }
  func.func @transform_10(%arg0: i32) -> (i32, i32) {
    %c0_i32 = arith.constant 0 : i32
    %c0_i32_0 = arith.constant 0 : i32
    %c0_i32_1 = arith.constant 0 : i32
    return %c0_i32, %c0_i32_0 : i32, i32
  }
  func.func @transform_11(%arg0: i32) -> (i32, i32) {
    %c0_i32 = arith.constant 0 : i32
    %c0_i32_0 = arith.constant 0 : i32
    %c0_i32_1 = arith.constant 0 : i32
    return %c0_i32, %c0_i32_0 : i32, i32
  }
  func.func @transform_12(%arg0: i32) -> (i32, i32) {
    %c0_i32 = arith.constant 0 : i32
    %c0_i32_0 = arith.constant 0 : i32
    %c0_i32_1 = arith.constant 0 : i32
    return %c0_i32, %c0_i32_0 : i32, i32
  }
  func.func @transform_13(%arg0: i32) -> (i32, i32) {
    %c0_i32 = arith.constant 0 : i32
    %c0_i32_0 = arith.constant 0 : i32
    %c0_i32_1 = arith.constant 0 : i32
    return %c0_i32, %c0_i32_0 : i32, i32
  }
  func.func @transform_14(%arg0: i32) -> (i32, i32) {
    %c0_i32 = arith.constant 0 : i32
    %c0_i32_0 = arith.constant 0 : i32
    %c0_i32_1 = arith.constant 0 : i32
    return %c0_i32, %c0_i32_0 : i32, i32
  }
  func.func @transform_15(%arg0: i32) -> (i32, i32) {
    %c0_i32 = arith.constant 0 : i32
    %c0_i32_0 = arith.constant 0 : i32
    return %arg0, %c0_i32 : i32, i32
  }
}

</mosaic_0001>

<bundles_post_ra>
// kernel: transformer_net_forward.1
= control target key start
LH: loop header
LB: loop body
LE: loop exit
PB: predicated region body
PF: predicated region fallthrough
CT: control target
= control target key end

     0   :  { %s15077_s0 = inlined_call_operand.vmem [shape: f32[256,16], index: 0, kind: input, shape index: {}]   ;;  %s15078_s1 = inlined_call_operand.vmem [shape: f32[2,128,128], index: 1, kind: input, shape index: {}]   ;;  %s15079_s2 = inlined_call_operand.vmem [shape: f32[2,16,128], index: 2, kind: input, shape index: {}]   ;;  %s15080_s3 = inlined_call_operand.hbm [shape: bf16[16,2048], index: 3, kind: input, shape index: {}]   ;;  %s15081_s4 = inlined_call_operand.hbm [shape: f32[1,2048], index: 4, kind: input, shape index: {}]   ;;  %s15082_s5 = inlined_call_operand.hbm [shape: bf16[512,1024], index: 5, kind: input, shape index: {}]   ;;  %s15083_s6 = inlined_call_operand.hbm [shape: f32[1,1024], index: 6, kind: input, shape index: {}]   ;;  %s15084_s7 = inlined_call_operand.hbm [shape: bf16[256,256], index: 7, kind: input, shape index: {}]   ;;  %s15085_s8 = inlined_call_operand.vmem [shape: f32[1,256], index: 8, kind: input, shape index: {}]   ;;  %s15086_s9 = inlined_call_operand.hbm [shape: bf16[64,128], index: 9, kind: input, shape index: {}]   ;;  %s15087_s10 = inlined_call_operand.hbm [shape: f32[1,128], index: 10, kind: input, shape index: {}]   ;;  %s15088_s11 = inlined_call_operand.vmem [shape: bf16[8,32], index: 11, kind: input, shape index: {}]   ;;  %s15089_s12 = inlined_call_operand.<no memory space> [shape: f32[1,1], index: 12, kind: input, shape index: {}]   ;;  %s15090_s13 = inlined_call_operand.vmem [shape: bf16[32,128], index: 13, kind: input, shape index: {}]   ;;  %s15091_s14 = inlined_call_operand.vmem [shape: f32[1,128], index: 14, kind: input, shape index: {}]   ;;  %s15092_s15 = inlined_call_operand.vmem [shape: f32[32,128], index: 15, kind: output, shape index: {}]  }
   0x1   :  { %v20_v0 = vstv %s15089_s12 }
   0x2   :  { %21 = vst [vmem:[#allocation2] sm:$0x1] %v20_v0 }
   0x3   :  { %22 = vsyncpa [#allocation4], 0 }
   0x4   :  { %23 = vsyncpa [#allocation6], 0 }
   0x5   :  { %24 = vsyncpa [#allocation9], 0 }
   0x6   :  { %25 = vsyncpa [#allocation12], 0  ;;  %s10280_s20 = smov 0  }
   0x7 LB: > { %s10177_s21 = smov [#allocation5]   ;;  %s10286_s23 = sadd.s32 4294967295, %s10175_s20   ;;  %s10175_s20 = sphi %s10280_s20, %s31_s20  }
   0x8   : > { %s418_s22 = sshll.u32 %s10177_s21, 4  ;;  %p8380_p0 = scmp.ge.s32.totalorder %s10175_s20, 1  ;;  %s419_s22 = int_to_ptr.vmem [resolvable:$true] %s418_s22 }
   0x9   : > { %p392_p1 = scmp.lt.s32.totalorder %s10175_s20, 3  ;;  %p15093_p2 = scmp.eq.s32.totalorder %s10286_s23, 0 }
   0xa   : > { %s10178_s24 = smov [#allocation8]   ;;  %s10179_s27 = smov [#allocation11]  }
   0xb   : > { %p10291_p3 = pnand %p8380_p0, %p392_p1  ;;  %s442_s25 = sshll.u32 %s10178_s24, 4  ;;  %s443_s25 = int_to_ptr.vmem [resolvable:$true] %s442_s25 }
   0xc   : > { %s468_s28 = sshll.u32 %s10179_s27, 4  ;;  %s10180_s29 = smov [#allocation3]   ;;  %s10303_s28 = int_to_ptr.vmem [resolvable:$true] %s468_s28 }
   0xd   : > { %s15330_s12 = scalar_select %p10291_p3, 1, 0 }
   0xe   : > { %p9283_p4 = pneg %p10291_p3  ;;  %s10305_s30 = sshll.u32 %s10180_s29, 4  ;;  %s405_s30 = int_to_ptr.vmem [resolvable:$true] %s10305_s30 }
   0xf   : > { %s9982_s17 = scalar_lea.vmem %s419_s22, 256  ;;  %p9990_p10 = scmp.lt.s32.totalorder %s419_s22, %s419_s22 }
  0x10   : > { %p10299_p5 = pnand %p15093_p2, %p9283_p4  ;;  %p9983_p7 = scmp.ne.s32.totalorder %s419_s22, %s9982_s17 }
  0x11   : > { %p9991_p11 = scmp.lt.s32.totalorder %s9982_s17, %s9982_s17 }
  0x12   : > { %p10309_p6 = pneg %p10299_p5 }
  0x13   : > { %p9992_p12 = por %p9991_p11, %p9990_p10 }
  0x14   : > { %p9985_p8 = pnand %p9983_p7, %p10309_p6 }
  0x16   : > { %p9986_p9 = pneg %p9985_p8 }
  0x18   : > { %p9993_p13 = pnand %p9992_p12, %p9986_p9 }
  0x1a   : > { %9996 = shalt.err (!%p9993_p13)
}
  0x1b   : > { %9289 = dma.hbm_to_vmem [thread:$0]  (!%p10299_p5), %s15081_s4, 256, %s419_s22, [#allocation6]  }
  0x1c   : > { %s10008_s21 = scalar_lea.vmem %s443_s25, 128  ;;  %p10016_p2 = scmp.lt.s32.totalorder %s443_s25, %s443_s25 }
  0x1d   : > { %p10009_p0 = scmp.ne.s32.totalorder %s443_s25, %s10008_s21  ;;  %p10017_p7 = scmp.lt.s32.totalorder %s10008_s21, %s10008_s21 }
  0x1f   : > { %p10011_p1 = pnand %p10009_p0, %p10309_p6  ;;  %p10018_p8 = por %p10017_p7, %p10016_p2 }
  0x21   : > { %p10012_p4 = pneg %p10011_p1 }
  0x23   : > { %p10019_p3 = pnand %p10018_p8, %p10012_p4 }
  0x25   : > { %10022 = shalt.err (!%p10019_p3)
}
  0x26   : > { %9295 = dma.hbm_to_vmem [thread:$0]  (!%p10299_p5), %s15083_s6, 128, %s443_s25, [#allocation9]  }
  0x27   : > { %s10034_s22 = scalar_lea.vmem %s10303_s28, 512  ;;  %p10042_p12 = scmp.lt.s32.totalorder %s10303_s28, %s10303_s28 }
  0x28   : > { %p10035_p9 = scmp.ne.s32.totalorder %s10303_s28, %s10034_s22  ;;  %p10043_p2 = scmp.lt.s32.totalorder %s10034_s22, %s10034_s22 }
  0x2a   : > { %p10037_p10 = pnand %p10035_p9, %p10309_p6  ;;  %p10044_p13 = por %p10043_p2, %p10042_p12 }
  0x2c   : > { %p10038_p11 = pneg %p10037_p10 }
  0x2e   : > { %p10045_p3 = pnand %p10044_p13, %p10038_p11 }
  0x30   : > { %10048 = shalt.err (!%p10045_p3)
}
  0x31   : > { %s10181_s29 = smov 64   ;;  %s10182_s17 = smov 4  }
  0x32   : > { %9301 = dma.hbm_to_vmem [thread:$0]  (!%p10299_p5), %s15086_s9, 512, %s10303_s28, [#allocation12], %s10181_s29, %s10181_s29, %s10182_s17  }
  0x33   : > { %s10060_s19 = scalar_lea.vmem %s405_s30, 2048  ;;  %p10068_p7 = scmp.lt.s32.totalorder %s405_s30, %s405_s30 }
  0x34   : > { %p10061_p0 = scmp.ne.s32.totalorder %s405_s30, %s10060_s19  ;;  %p10069_p8 = scmp.lt.s32.totalorder %s10060_s19, %s10060_s19 }
  0x36   : > { %p10063_p1 = pnand %p10061_p0, %p10309_p6  ;;  %p10070_p9 = por %p10069_p8, %p10068_p7 }
  0x38   : > { %p10064_p4 = pneg %p10063_p1 }
  0x3a   : > { %p10071_p10 = pnand %p10070_p9, %p10064_p4 }
  0x3c   : > { %10074 = shalt.err (!%p10071_p10)
}
  0x3d   : > { %s10183_s21 = smov 1024   ;;  %s10184_s28 = smov [#allocation7]  }
  0x3e   : > { %9286 = dma.hbm_to_vmem [thread:$0]  (!%p10299_p5), %s15080_s3, 2048, %s405_s30, [#allocation4], %s10183_s21, %s10183_s21, %s10181_s29  }
  0x3f   : > { %s428_s22 = sshll.u32 %s10184_s28, 4  ;;  %s429_s22 = int_to_ptr.vmem [resolvable:$true] %s428_s22 }
  0x40   : > { %s10086_s17 = scalar_lea.vmem %s429_s22, 32768  ;;  %p10094_p13 = scmp.lt.s32.totalorder %s429_s22, %s429_s22 }
  0x41   : > { %p10087_p11 = scmp.ne.s32.totalorder %s429_s22, %s10086_s17  ;;  %p10095_p3 = scmp.lt.s32.totalorder %s10086_s17, %s10086_s17 }
  0x43   : > { %p10089_p12 = pnand %p10087_p11, %p10309_p6  ;;  %p10096_p0 = por %p10095_p3, %p10094_p13 }
  0x45   : > { %p10090_p2 = pneg %p10089_p12 }
  0x47   : > { %p10097_p1 = pnand %p10096_p0, %p10090_p2 }
  0x49   : > { %10100 = shalt.err (!%p10097_p1)
}
  0x4a   : > { %s10185_s18 = smov 512   ;;  %s10186_s25 = smov 32  }
  0x4b   : > { %9292 = dma.hbm_to_vmem [thread:$0]  (!%p10299_p5), %s15082_s5, 32768, %s429_s22, [#allocation6], %s10185_s18, %s10185_s18, %s10186_s25  }
  0x4c   : > { %s10187_s29 = smov [#allocation10]  }
  0x4d   : > { %s452_s21 = sshll.u32 %s10187_s29, 4  ;;  %s453_s21 = int_to_ptr.vmem [resolvable:$true] %s452_s21 }
  0x4e   : > { %s10112_s24 = scalar_lea.vmem %s453_s21, 4096  ;;  %p10120_p9 = scmp.lt.s32.totalorder %s453_s21, %s453_s21 }
  0x4f   : > { %p10113_p4 = scmp.ne.s32.totalorder %s453_s21, %s10112_s24  ;;  %p10121_p10 = scmp.lt.s32.totalorder %s10112_s24, %s10112_s24 }
  0x51   : > { %p10115_p7 = pnand %p10113_p4, %p10309_p6  ;;  %p10122_p11 = por %p10121_p10, %p10120_p9 }
  0x53   : > { %p10116_p8 = pneg %p10115_p7 }
  0x55   : > { %p10123_p12 = pnand %p10122_p11, %p10116_p8 }
  0x57   : > { %10126 = shalt.err (!%p10123_p12)
}
  0x58   : > { %s10188_s27 = smov 128   ;;  %s10189_s28 = smov 8  }
  0x59   : > { %9298 = dma.hbm_to_vmem [thread:$0]  (!%p10299_p5), %s15084_s7, 4096, %s453_s21, [#allocation9], %s10188_s27, %s10188_s27, %s10189_s28  }
  0x5a   : > { %s10190_s18 = smov [#allocation13]  }
  0x5b   : > { %s482_s25 = sshll.u32 %s10190_s18, 4  ;;  %s483_s25 = int_to_ptr.vmem [resolvable:$true] %s482_s25 }
  0x5c   : > { %s10138_s19 = scalar_lea.vmem %s483_s25, 16  ;;  %s10145_s30 = scalar_lea.vmem %s483_s25, 32 }
  0x5d   : > { %p10139_p2 = scmp.ne.s32.totalorder %s483_s25, %s10138_s19  ;;  %p10146_p0 = scmp.lt.s32.totalorder %s483_s25, %s483_s25 }
  0x5e   : > { %p10147_p1 = scmp.lt.s32.totalorder %s10145_s30, %s10138_s19 }
  0x5f   : > { %p10141_p13 = pnand %p10139_p2, %p10309_p6 }
  0x60   : > { %p10148_p4 = por %p10147_p1, %p10146_p0 }
  0x61   : > { %p10142_p3 = pneg %p10141_p13 }
  0x63   : > { %p10149_p7 = pnand %p10148_p4, %p10142_p3 }
  0x65   : > { %10152 = shalt.err (!%p10149_p7)
}
  0x66   : > { %9304 = dma.hbm_to_vmem [thread:$0]  (!%p10299_p5), %s15087_s10, 16, %s483_s25, [#allocation12]  }
  0x67   : > { %p15333_p8 = scmp.ne.s32.totalorder %s15330_s12, 0 }
  0x69   : > { %532 = sbr.rel (%p15333_p8) target bundleno = 5813 (0x16b5), region = 80 }
  0x6e   : > { %p15334_p9 = scmp.eq.s32.totalorder %s10286_s23, 0 }
  0x70   : > { %10158 = dma.done.wait (%p15334_p9), [#allocation4], 2048   ;;  %p15335_p6 = pmov %p15334_p9 }
  0x72   : > { %10160 = vsyncadd (%p15335_p6), [#allocation4], 4294965248  ;;  %p15336_p10 = pmov %p15335_p6 }
  0x73   : > { %p15337_p11 = pmov %p15335_p6 }
  0x74   : > { %10162 = dma.done.wait (%p15336_p10), [#allocation6], 33024  }
  0x75   : > { %10164 = vsyncadd (%p15337_p11), [#allocation6], 4294934272  ;;  %p15338_p12 = pmov %p15335_p6 }
  0x76   : > { %p15339_p5 = pmov %p15335_p6 }
  0x77   : > { %10166 = dma.done.wait (%p15338_p12), [#allocation9], 4224  }
  0x78   : > { %10168 = vsyncadd (%p15339_p5), [#allocation9], 4294963072  ;;  %p15340_p2 = pmov %p15339_p5 }
  0x7a   : > { %10170 = dma.done.wait (%p15340_p2), [#allocation12], 528   ;;  %p15341_p13 = pmov %p15340_p2 }
  0x7b   : > { %s8397_s12 = sshll.u32 %s10286_s23, 4  ;;  %v15097_v1 = vmov 0   ;;  %v677_v2 = vld [vmem:[#allocation3] sm:$0xff]  ;;  %v678_v10 = vld [vmem:[#allocation3 + $0x8] sm:$0xff]  ;;  %v680_v15 = vld [vmem:[#allocation3 + $0x18] sm:$0xff]  ;;  %vm857_vm0 = vcmask 130048   ;;  %v697_v58 = vlaneseq }
  0x7c   : > { %10172 = vsyncadd (%p15341_p13), [#allocation12], 4294966768  ;;  %914 = vmatprep.mubr.bf16.mxu0 %v15097_v1  ;;  %984 = vmatprep.mubr.bf16.mxu1 %v15097_v1  ;;  %p615_p3 = scmp.lt.s32.totalorder %s8397_s12, 31  ;;  %v685_v3 = vld [vmem:[#allocation3 + $0x40] sm:$0xff]  ;;  %v686_v11 = vld [vmem:[#allocation3 + $0x48] sm:$0xff]  ;;  %p620_p0 = scmp.lt.s32.totalorder %s10286_s23, 1 }
  0x7d   : > { %9347 = vset.pattern.permute.xlu0 %v15097_v1  ;;  %v8406_v5 = vcombine.high %v677_v2, %v685_v3  ;;  %v8405_v6 = vcombine.low %v677_v2, %v685_v3  ;;  %v8408_v14 = vcombine.high %v678_v10, %v686_v11  ;;  %v688_v16 = vld [vmem:[#allocation3 + $0x58] sm:$0xff]  ;;  %v8407_v17 = vcombine.low %v678_v10, %v686_v11  ;;  %v679_v18 = vld [vmem:[#allocation3 + $0x10] sm:$0xff]  ;;  %v10410_v25 = vld [vmem:[#allocation3 + $0x20] sm:$0xff]  ;;  %s10192_s29 = smov 64   ;;  %s10193_s24 = smov 96  }
  0x7e   : > { %s16061_s12 = smov (!%p615_p3, %s8397_s12), 31  ;;  %v8412_v19 = vcombine.high %v680_v15, %v688_v16  ;;  %v687_v20 = vld [vmem:[#allocation3 + $0x50] sm:$0xff]  ;;  %v689_v26 = vld [vmem:[#allocation3 + $0x60] sm:$0xff]  ;;  %v10412_v27 = vld [vmem:[#allocation3 + $0x28] sm:$0xff]  ;;  %v8411_v32 = vcombine.low %v680_v15, %v688_v16  ;;  %v10586_v59 = vshrl.u32 %v697_v58, 7  ;;  %s8403_s30 = sshll.u32 %s10286_s23, 1 }
  0x7f   : > { %s8398_s26 = sshll.u32 %s16061_s12, 3  ;;  %896 = vmatprep.subr.bf16.mxu0 %v8406_v5  ;;  %9237 = vmatprep.subr.bf16.mxu1 %v8406_v5  ;;  %v8410_v21 = vcombine.high %v679_v18, %v687_v20  ;;  %v8409_v24 = vcombine.low %v679_v18, %v687_v20  ;;  %v8414_v28 = vcombine.high %v10410_v25, %v689_v26  ;;  %v10416_v29 = vld [vmem:[#allocation3 + $0x68] sm:$0xff]  ;;  %v683_v49 = vld [vmem:[#allocation3 + $0x30] sm:$0xff]  ;;  %v684_v53 = vld [vmem:[#allocation3 + $0x38] sm:$0xff]  ;;  %s10194_s12 = smov 32  }
  0x80   : > { %s10393_s27 = scalar_lea.vmem %s15077_s0, %s8398_s26  ;;  %897 = vmatpush1.bf16.msra.mxu0 %v8405_v6  ;;  %9238 = vmatpush1.bf16.msra.mxu1 %v8405_v6  ;;  %v8415_v30 = vcombine.low %v10412_v27, %v10416_v29  ;;  %v8416_v33 = vcombine.high %v10412_v27, %v10416_v29  ;;  %v691_v50 = vld [vmem:[#allocation3 + $0x70] sm:$0xff]  ;;  %v8413_v51 = vcombine.low %v10410_v25, %v689_v26  ;;  %v692_v54 = vld [vmem:[#allocation3 + $0x78] sm:$0xff]  ;;  %v10589_v60 = vsub.s32 1, %v10586_v59  ;;  %v10594_v62 = vld [vmem:[#allocation5] sm:$0xff]  ;;  %p631_p1 = scmp.lt.s32.totalorder %s8403_s30, 3 }
  0x81   : > { %v653_v4 = vld [vmem:[%s10393_s27] sm:$0xff]  ;;  %v654_v7 = vld [vmem:[%s10393_s27 + $0x8] sm:$0xff]  ;;  %v667_v8 = vld [vmem:[%s10393_s27 + $0x70] sm:$0xff]  ;;  %1009 = vmatprep.subr.bf16.mxu1 %v8408_v14  ;;  %1122 = vmatprep.subr.bf16.mxu0 %v8410_v21  ;;  %v8418_v52 = vcombine.high %v683_v49, %v691_v50  ;;  %v8420_v55 = vcombine.high %v684_v53, %v692_v54  ;;  %v8417_v56 = vcombine.low %v683_v49, %v691_v50  ;;  %v10592_v61 = vsub.s32 0, %v10586_v59  ;;  %s11672_s28 = scalar_select %p620_p0, %s10286_s23, 1 }
  0x82   : > { %v668_v9 = vld [vmem:[%s10393_s27 + $0x78] sm:$0xff]  ;;  %v10399_v12 = vpack.c.bf16 %v654_v7, %v653_v4  ;;  %v655_v22 = vld [vmem:[%s10393_s27 + $0x10] sm:$0xff]  ;;  %v657_v34 = vld [vmem:[%s10393_s27 + $0x20] sm:$0xff]  ;;  %v8419_v57 = vcombine.low %v684_v53, %v692_v54  ;;  %15342 = vst [vmem:[#allocation18_spill] sm:$0xff] %v10589_v60  ;;  %v10598_v63 = vrot.slane %v10594_v62, %v10589_v60  ;;  %v10628_v15 = vsub.s32 2, %v10586_v59  ;;  %s16063_s30 = smov (!%p631_p1, %s8403_s30), 3 }
  0x83   : > { %v10401_v13 = vpack.c.bf16 %v668_v9, %v667_v8  ;;  %v656_v23 = vld [vmem:[%s10393_s27 + $0x18] sm:$0xff]  ;;  %v658_v35 = vld [vmem:[%s10393_s27 + $0x28] sm:$0xff]  ;;  %v659_v37 = vld [vmem:[%s10393_s27 + $0x30] sm:$0xff]  ;;  %15343 = vst [vmem:[#allocation19_spill] sm:$0xff] %v10592_v61  ;;  %v10606_v3 = vrot.slane %v10594_v62, %v10592_v61  ;;  %s8938_s17 = sshll.u32 %s11672_s28, 7  ;;  %s8939_s21 = sshll.u32 %s11672_s28, 4 }
  0x84   : > { %8421 = vmatmul.mubr.msk.bf16.vlgmr.msra.gmra.mxu0 %vm857_vm0, %v10399_v12  ;;  %v10420_v31 = vpack.c.bf16 %v656_v23, %v655_v22  ;;  %v10432_v36 = vpack.c.bf16 %v658_v35, %v657_v34  ;;  %v660_v38 = vld [vmem:[%s10393_s27 + $0x38] sm:$0xff]  ;;  %v661_v40 = vld [vmem:[%s10393_s27 + $0x40] sm:$0xff]  ;;  %v662_v41 = vld [vmem:[%s10393_s27 + $0x48] sm:$0xff]  ;;  %15349 = vst [vmem:[#allocation25_spill] sm:$0xff] %v10628_v15  ;;  %s11678_s25 = scalar_lea.vmem %s15078_s1, %s8938_s17  ;;  %s629_s22 = scalar_lea.vmem %s15079_s2, %s8939_s21 }
  0x85   : > { %8428 = vmatmul.mubr.msk.bf16.vlgmr.msra.gmra.mxu1 %vm857_vm0, %v10401_v13  ;;  %924 = vmatprep.mubr.bf16.mxu0 %v15097_v1  ;;  %v10442_v39 = vpack.c.bf16 %v660_v38, %v659_v37  ;;  %v10452_v42 = vpack.c.bf16 %v662_v41, %v661_v40  ;;  %v663_v43 = vld [vmem:[%s10393_s27 + $0x50] sm:$0xff]  ;;  %v664_v44 = vld [vmem:[%s10393_s27 + $0x58] sm:$0xff]  ;;  %v665_v46 = vld [vmem:[%s10393_s27 + $0x60] sm:$0xff] }
  0x86   : > { %1010 = vmatpush1.bf16.msra.mxu1 %v8407_v17  ;;  %1027 = vmatprep.mubr.bf16.mxu1 %v15097_v1  ;;  %v10462_v45 = vpack.c.bf16 %v664_v44, %v663_v43  ;;  %v666_v47 = vld [vmem:[%s10393_s27 + $0x68] sm:$0xff] }
  0x87   : > { %1235 = vmatprep.subr.bf16.mxu1 %v8412_v19  ;;  %1123 = vmatpush1.bf16.msra.mxu0 %v8409_v24  ;;  %v10472_v48 = vpack.c.bf16 %v666_v47, %v665_v46  ;;  %v10647_v24 = vrot.slane %v10594_v62, %v10628_v15 }
  0x88   : > { %1348 = vmatprep.subr.bf16.mxu0 %v8414_v28 }
  0x8c   : > { %8422 = vmatmul.mubr.msk.bf16.gmra.mxu0 %vm857_vm0, %v10420_v31 }
  0x8d   : > { %8429 = vmatmul.mubr.msk.bf16.vlgmr.msra.gmra.mxu1 %vm857_vm0, %v10399_v12  ;;  %934 = vmatprep.mubr.bf16.mxu0 %v15097_v1 }
  0x8e   : > { %1236 = vmatpush1.bf16.msra.mxu1 %v8411_v32  ;;  %1037 = vmatprep.mubr.bf16.mxu1 %v15097_v1  ;;  %v10663_v32 = vsub.s32 3, %v10586_v59 }
  0x8f   : > { %1461 = vmatprep.subr.bf16.mxu1 %v8416_v33 }
  0x90   : > { %15354 = vst [vmem:[#allocation30_spill] sm:$0xff] %v10663_v32  ;;  %v10686_v46 = vrot.slane %v10594_v62, %v10663_v32 }
  0x94   : > { %8423 = vmatmul.mubr.msk.bf16.gmra.mxu0 %vm857_vm0, %v10432_v36 }
  0x95   : > { %8430 = vmatmul.mubr.msk.bf16.gmra.mxu1 %vm857_vm0, %v10420_v31  ;;  %944 = vmatprep.mubr.bf16.mxu0 %v15097_v1 }
  0x96   : > { %1047 = vmatprep.mubr.bf16.mxu1 %v15097_v1 }
  0x9c   : > { %8424 = vmatmul.mubr.msk.bf16.gmra.mxu0 %vm857_vm0, %v10442_v39 }
  0x9d   : > { %8431 = vmatmul.mubr.msk.bf16.gmra.mxu1 %vm857_vm0, %v10432_v36  ;;  %954 = vmatprep.mubr.bf16.mxu0 %v15097_v1 }
  0x9e   : > { %1057 = vmatprep.mubr.bf16.mxu1 %v15097_v1 }
  0xa4   : > { %8425 = vmatmul.mubr.msk.bf16.gmra.mxu0 %vm857_vm0, %v10452_v42 }
  0xa5   : > { %8432 = vmatmul.mubr.msk.bf16.gmra.mxu1 %vm857_vm0, %v10442_v39  ;;  %964 = vmatprep.mubr.bf16.mxu0 %v15097_v1 }
  0xa6   : > { %1067 = vmatprep.mubr.bf16.mxu1 %v15097_v1 }
  0xac   : > { %8426 = vmatmul.mubr.msk.bf16.gmra.mxu0 %vm857_vm0, %v10462_v45 }
  0xad   : > { %8433 = vmatmul.mubr.msk.bf16.gmra.mxu1 %vm857_vm0, %v10452_v42  ;;  %974 = vmatprep.mubr.bf16.mxu0 %v15097_v1 }
  0xae   : > { %1077 = vmatprep.mubr.bf16.mxu1 %v15097_v1 }
  0xb4   : > { %8427 = vmatmul.mubr.msk.bf16.gmra.mxu0 %vm857_vm0, %v10472_v48 }
  0xb5   : > { %8434 = vmatmul.mubr.msk.bf16.gmra.mxu1 %vm857_vm0, %v10462_v45  ;;  %1140 = vmatprep.mubr.bf16.mxu0 %v15097_v1 }
  0xb6   : > { %1087 = vmatprep.mubr.bf16.mxu1 %v15097_v1 }
  0xbc   : > { %8437 = vmatmul.mubr.msk.bf16.vlgmr.msra.gmra.mxu0 %vm857_vm0, %v10399_v12 }
  0xbd   : > { %8435 = vmatmul.mubr.msk.bf16.gmra.mxu1 %vm857_vm0, %v10472_v48  ;;  %1150 = vmatprep.mubr.bf16.mxu0 %v15097_v1 }
  0xbe   : > { %1097 = vmatprep.mubr.bf16.mxu1 %v15097_v1  ;;  %1349 = vmatpush1.bf16.msra.mxu0 %v8413_v51 }
  0xbf   : > { %1574 = vmatprep.subr.bf16.mxu0 %v8418_v52 }
  0xc4   : > { %8438 = vmatmul.mubr.msk.bf16.gmra.mxu0 %vm857_vm0, %v10420_v31 }
  0xc5   : > { %8436 = vmatmul.mubr.msk.bf16.gmra.mxu1 %vm857_vm0, %v10401_v13  ;;  %1160 = vmatprep.mubr.bf16.mxu0 %v15097_v1 }
  0xc6   : > { %1253 = vmatprep.mubr.bf16.mxu1 %v15097_v1 }
  0xcc   : > { %8439 = vmatmul.mubr.msk.bf16.gmra.mxu0 %vm857_vm0, %v10432_v36 }
  0xcd   : > { %8445 = vmatmul.mubr.msk.bf16.vlgmr.msra.gmra.mxu1 %vm857_vm0, %v10399_v12  ;;  %1170 = vmatprep.mubr.bf16.mxu0 %v15097_v1 }
  0xce   : > { %1263 = vmatprep.mubr.bf16.mxu1 %v15097_v1  ;;  %1462 = vmatpush1.bf16.msra.mxu1 %v8415_v30 }
  0xcf   : > { %1687 = vmatprep.subr.bf16.mxu1 %v8420_v55 }
  0xd4   : > { %8440 = vmatmul.mubr.msk.bf16.gmra.mxu0 %vm857_vm0, %v10442_v39 }
  0xd5   : > { %8446 = vmatmul.mubr.msk.bf16.gmra.mxu1 %vm857_vm0, %v10420_v31  ;;  %1180 = vmatprep.mubr.bf16.mxu0 %v15097_v1 }
  0xd6   : > { %1273 = vmatprep.mubr.bf16.mxu1 %v15097_v1 }
  0xdc   : > { %8441 = vmatmul.mubr.msk.bf16.gmra.mxu0 %vm857_vm0, %v10452_v42 }
  0xdd   : > { %8447 = vmatmul.mubr.msk.bf16.gmra.mxu1 %vm857_vm0, %v10432_v36  ;;  %1190 = vmatprep.mubr.bf16.mxu0 %v15097_v1 }
  0xde   : > { %1283 = vmatprep.mubr.bf16.mxu1 %v15097_v1 }
  0xe4   : > { %8442 = vmatmul.mubr.msk.bf16.gmra.mxu0 %vm857_vm0, %v10462_v45 }
  0xe5   : > { %8448 = vmatmul.mubr.msk.bf16.gmra.mxu1 %vm857_vm0, %v10442_v39  ;;  %1200 = vmatprep.mubr.bf16.mxu0 %v15097_v1 }
  0xe6   : > { %1293 = vmatprep.mubr.bf16.mxu1 %v15097_v1 }
  0xec   : > { %8443 = vmatmul.mubr.msk.bf16.gmra.mxu0 %vm857_vm0, %v10472_v48 }
  0xed   : > { %8449 = vmatmul.mubr.msk.bf16.gmra.mxu1 %vm857_vm0, %v10452_v42  ;;  %1210 = vmatprep.mubr.bf16.mxu0 %v15097_v1 }
  0xee   : > { %1303 = vmatprep.mubr.bf16.mxu1 %v15097_v1 }
  0xf4   : > { %8444 = vmatmul.mubr.msk.bf16.gmra.mxu0 %vm857_vm0, %v10401_v13 }
  0xf5   : > { %8450 = vmatmul.mubr.msk.bf16.gmra.mxu1 %vm857_vm0, %v10462_v45  ;;  %1366 = vmatprep.mubr.bf16.mxu0 %v15097_v1 }
  0xf6   : > { %1313 = vmatprep.mubr.bf16.mxu1 %v15097_v1 }
  0xfc   : > { %8453 = vmatmul.mubr.msk.bf16.vlgmr.msra.gmra.mxu0 %vm857_vm0, %v10399_v12 }
  0xfd   : > { %8451 = vmatmul.mubr.msk.bf16.gmra.mxu1 %vm857_vm0, %v10472_v48  ;;  %1376 = vmatprep.mubr.bf16.mxu0 %v15097_v1 }
  0xfe   : > { %1323 = vmatprep.mubr.bf16.mxu1 %v15097_v1  ;;  %1575 = vmatpush1.bf16.msra.mxu0 %v8417_v56 }
 0x104   : > { %8454 = vmatmul.mubr.msk.bf16.gmra.mxu0 %vm857_vm0, %v10420_v31 }
 0x105   : > { %8452 = vmatmul.mubr.msk.bf16.gmra.mxu1 %vm857_vm0, %v10401_v13  ;;  %1386 = vmatprep.mubr.bf16.mxu0 %v15097_v1 }
 0x106   : > { %1479 = vmatprep.mubr.bf16.mxu1 %v15097_v1 }
 0x10c   : > { %8455 = vmatmul.mubr.msk.bf16.gmra.mxu0 %vm857_vm0, %v10432_v36 }
 0x10d   : > { %8461 = vmatmul.mubr.msk.bf16.vlgmr.msra.gmra.mxu1 %vm857_vm0, %v10399_v12  ;;  %1396 = vmatprep.mubr.bf16.mxu0 %v15097_v1 }
 0x10e   : > { %1489 = vmatprep.mubr.bf16.mxu1 %v15097_v1  ;;  %1688 = vmatpush1.bf16.msra.mxu1 %v8419_v57 }
 0x114   : > { %8456 = vmatmul.mubr.msk.bf16.gmra.mxu0 %vm857_vm0, %v10442_v39 }
 0x115   : > { %8462 = vmatmul.mubr.msk.bf16.gmra.mxu1 %vm857_vm0, %v10420_v31  ;;  %1406 = vmatprep.mubr.bf16.mxu0 %v15097_v1 }
 0x116   : > { %1499 = vmatprep.mubr.bf16.mxu1 %v15097_v1 }
 0x11c   : > { %8457 = vmatmul.mubr.msk.bf16.gmra.mxu0 %vm857_vm0, %v10452_v42 }
 0x11d   : > { %8463 = vmatmul.mubr.msk.bf16.gmra.mxu1 %vm857_vm0, %v10432_v36  ;;  %1416 = vmatprep.mubr.bf16.mxu0 %v15097_v1 }
 0x11e   : > { %1509 = vmatprep.mubr.bf16.mxu1 %v15097_v1 }
 0x124   : > { %8458 = vmatmul.mubr.msk.bf16.gmra.mxu0 %vm857_vm0, %v10462_v45 }
 0x125   : > { %8464 = vmatmul.mubr.msk.bf16.gmra.mxu1 %vm857_vm0, %v10442_v39  ;;  %1426 = vmatprep.mubr.bf16.mxu0 %v15097_v1 }
 0x126   : > { %1519 = vmatprep.mubr.bf16.mxu1 %v15097_v1 }
 0x12c   : > { %8459 = vmatmul.mubr.msk.bf16.gmra.mxu0 %vm857_vm0, %v10472_v48 }
 0x12d   : > { %8465 = vmatmul.mubr.msk.bf16.gmra.mxu1 %vm857_vm0, %v10452_v42  ;;  %1436 = vmatprep.mubr.bf16.mxu0 %v15097_v1 }
 0x12e   : > { %1529 = vmatprep.mubr.bf16.mxu1 %v15097_v1 }
 0x134   : > { %8460 = vmatmul.mubr.msk.bf16.gmra.mxu0 %vm857_vm0, %v10401_v13 }
 0x135   : > { %8466 = vmatmul.mubr.msk.bf16.gmra.mxu1 %vm857_vm0, %v10462_v45  ;;  %1592 = vmatprep.mubr.bf16.mxu0 %v15097_v1 }
 0x136   : > { %1539 = vmatprep.mubr.bf16.mxu1 %v15097_v1 }
 0x13c   : > { %8469 = vmatmul.mubr.msk.bf16.vlgmr.msra.gmra.mxu0 %vm857_vm0, %v10399_v12 }
 0x13d   : > { %8467 = vmatmul.mubr.msk.bf16.gmra.mxu1 %vm857_vm0, %v10472_v48  ;;  %1602 = vmatprep.mubr.bf16.mxu0 %v15097_v1 }
 0x13e   : > { %1549 = vmatprep.mubr.bf16.mxu1 %v15097_v1 }
 0x144   : > { %v916_v0 = vpop.f32.mrf.mxu0  ;;  %8470 = vmatmul.mubr.msk.bf16.gmra.mxu0 %vm857_vm0, %v10420_v31 }
 0x145   : > { %v986_v2 = vpop.f32.mrf.mxu1  ;;  %8468 = vmatmul.mubr.msk.bf16.gmra.mxu1 %vm857_vm0, %v10401_v13  ;;  %1612 = vmatprep.mubr.bf16.mxu0 %v15097_v1  ;;  %v10613_v6 = vadd.f32 %v916_v0, %v10606_v3 }
 0x146   : > { %1705 = vmatprep.mubr.bf16.mxu1 %v15097_v1  ;;  %v10610_v4 = vpop.f32.mrf.mxu0  ;;  %v10619_v10 = vadd.f32 %v986_v2, %v10606_v3 }
 0x147   : > { %v988_v5 = vpop.f32.mrf.mxu1  ;;  %15344 = vst [vmem:[#allocation20_spill] sm:$0xff] %v10613_v6 }
 0x148   : > { %v10616_v7 = vadd.f32 %v988_v5, %v10598_v63  ;;  %v920_v8 = vpop.f32.mrf.mxu0  ;;  %15346 = vst [vmem:[#allocation22_spill] sm:$0xff] %v10619_v10 }
 0x149   : > { %v990_v9 = vpop.f32.mrf.mxu1  ;;  %v10622_v11 = vadd.f32 %v920_v8, %v10606_v3 }
 0x14a   : > { %15345 = vst [vmem:[#allocation21_spill] sm:$0xff] %v10616_v7  ;;  %v10625_v14 = vadd.f32 %v990_v9, %v10606_v3  ;;  %v10630_v16 = vpop.f32.mrf.mxu0 }
 0x14b   : > { %15347 = vst [vmem:[#allocation23_spill] sm:$0xff] %v10622_v11  ;;  %v992_v17 = vpop.f32.mrf.mxu1 }
 0x14c   : > { %15348 = vst [vmem:[#allocation24_spill] sm:$0xff] %v10625_v14  ;;  %v10637_v20 = vadd.f32 %v992_v17, %v10598_v63  ;;  %v926_v21 = vpop.f32.mrf.mxu0  ;;  %8471 = vmatmul.mubr.msk.bf16.gmra.mxu0 %vm857_vm0, %v10432_v36 }
 0x14d   : > { %v1029_v22 = vpop.f32.mrf.mxu1  ;;  %8477 = vmatmul.mubr.msk.bf16.vlgmr.msra.gmra.mxu1 %vm857_vm0, %v10399_v12  ;;  %1622 = vmatprep.mubr.bf16.mxu0 %v15097_v1  ;;  %v10654_v27 = vadd.f32 %v926_v21, %v10606_v3 }
 0x14e   : > { %15350 = vst [vmem:[#allocation26_spill] sm:$0xff] %v10637_v20  ;;  %v928_v25 = vpop.f32.mrf.mxu0  ;;  %1715 = vmatprep.mubr.bf16.mxu1 %v15097_v1  ;;  %v10660_v30 = vadd.f32 %v1029_v22, %v10647_v24 }
 0x14f   : > { %v10650_v26 = vpop.f32.mrf.mxu1  ;;  %15351 = vst [vmem:[#allocation27_spill] sm:$0xff] %v10654_v27  ;;  %v10657_v28 = vadd.f32 %v928_v25, %v10598_v63 }
 0x150   : > { %v930_v12 = vpop.f32.mrf.mxu0  ;;  %15353 = vst [vmem:[#allocation29_spill] sm:$0xff] %v10660_v30 }
 0x151   : > { %15352 = vst [vmem:[#allocation28_spill] sm:$0xff] %v10657_v28  ;;  %v1033_v29 = vpop.f32.mrf.mxu1  ;;  %v10666_v33 = vadd.f32 %v930_v12, %v10606_v3 }
 0x152   : > { %v10669_v34 = vadd.f32 %v1033_v29, %v10647_v24  ;;  %v932_v35 = vpop.f32.mrf.mxu0 }
 0x153   : > { %15355 = vst [vmem:[#allocation31_spill] sm:$0xff] %v10666_v33  ;;  %v10671_v37 = vpop.f32.mrf.mxu1  ;;  %v10678_v41 = vadd.f32 %v932_v35, %v10598_v63 }
 0x154   : > { %15356 = vst [vmem:[#allocation32_spill] sm:$0xff] %v10669_v34  ;;  %v936_v43 = vpop.f32.mrf.mxu0  ;;  %8472 = vmatmul.mubr.msk.bf16.gmra.mxu0 %vm857_vm0, %v10442_v39 }
 0x155   : > { %15357 = vst [vmem:[#allocation33_spill] sm:$0xff] %v10678_v41  ;;  %v1039_v44 = vpop.f32.mrf.mxu1  ;;  %8478 = vmatmul.mubr.msk.bf16.gmra.mxu1 %vm857_vm0, %v10420_v31  ;;  %1632 = vmatprep.mubr.bf16.mxu0 %v15097_v1  ;;  %v10693_v51 = vadd.f32 %v936_v43, %v10606_v3 }
 0x156   : > { %v938_v49 = vpop.f32.mrf.mxu0  ;;  %1725 = vmatprep.mubr.bf16.mxu1 %v15097_v1  ;;  %v10702_v55 = vadd.f32 %v1039_v44, %v10647_v24 }
 0x157   : > { %v1041_v50 = vpop.f32.mrf.mxu1  ;;  %15358 = vst [vmem:[#allocation34_spill] sm:$0xff] %v10693_v51  ;;  %v10696_v52 = vadd.f32 %v938_v49, %v10598_v63 }
 0x158   : > { %v10699_v31 = vadd.f32 %v1041_v50, %v10686_v46  ;;  %v940_v53 = vpop.f32.mrf.mxu0  ;;  %15361 = vst [vmem:[#allocation37_spill] sm:$0xff] %v10702_v55 }
 0x159   : > { %15359 = vst [vmem:[#allocation35_spill] sm:$0xff] %v10696_v52  ;;  %v1043_v54 = vpop.f32.mrf.mxu1  ;;  %v10705_v56 = vadd.f32 %v940_v53, %v10606_v3 }
 0x15a   : > { %15360 = vst [vmem:[#allocation36_spill] sm:$0xff] %v10699_v31  ;;  %v10708_v57 = vadd.f32 %v1043_v54, %v10647_v24  ;;  %v942_v58 = vpop.f32.mrf.mxu0 }
 0x15b   : > { %15362 = vst [vmem:[#allocation38_spill] sm:$0xff] %v10705_v56  ;;  %v1045_v0 = vpop.f32.mrf.mxu1  ;;  %v10715_v8 = vadd.f32 %v942_v58, %v10598_v63 }
 0x15c   : > { %15363 = vst [vmem:[#allocation39_spill] sm:$0xff] %v10708_v57  ;;  %v10718_v9 = vadd.f32 %v1045_v0, %v10686_v46  ;;  %v946_v17 = vpop.f32.mrf.mxu0  ;;  %8473 = vmatmul.mubr.msk.bf16.gmra.mxu0 %vm857_vm0, %v10452_v42 }
 0x15d   : > { %15364 = vst [vmem:[#allocation40_spill] sm:$0xff] %v10715_v8  ;;  %v1049_v21 = vpop.f32.mrf.mxu1  ;;  %8479 = vmatmul.mubr.msk.bf16.gmra.mxu1 %vm857_vm0, %v10432_v36  ;;  %1642 = vmatprep.mubr.bf16.mxu0 %v15097_v1  ;;  %v10731_v35 = vadd.f32 %v946_v17, %v10606_v3 }
 0x15e   : > { %15365 = vst [vmem:[#allocation41_spill] sm:$0xff] %v10718_v9  ;;  %v948_v12 = vpop.f32.mrf.mxu0  ;;  %1735 = vmatprep.mubr.bf16.mxu1 %v15097_v1  ;;  %v10740_v50 = vadd.f32 %v1049_v21, %v10647_v24 }
 0x15f   : > { %v1051_v29 = vpop.f32.mrf.mxu1  ;;  %15366 = vst [vmem:[#allocation42_spill] sm:$0xff] %v10731_v35  ;;  %v10734_v43 = vadd.f32 %v948_v12, %v10598_v63 }
 0x160   : > { %v10737_v36 = vadd.f32 %v1051_v29, %v10686_v46  ;;  %v950_v44 = vpop.f32.mrf.mxu0  ;;  %15369 = vst [vmem:[#allocation45_spill] sm:$0xff] %v10740_v50 }
 0x161   : > { %15367 = vst [vmem:[#allocation43_spill] sm:$0xff] %v10734_v43  ;;  %v1053_v49 = vpop.f32.mrf.mxu1  ;;  %v10743_v53 = vadd.f32 %v950_v44, %v10606_v3 }
 0x162   : > { %15368 = vst [vmem:[#allocation44_spill] sm:$0xff] %v10737_v36  ;;  %v10746_v54 = vadd.f32 %v1053_v49, %v10647_v24  ;;  %v952_v58 = vpop.f32.mrf.mxu0 }
 0x163   : > { %15370 = vst [vmem:[#allocation46_spill] sm:$0xff] %v10743_v53  ;;  %v1055_v0 = vpop.f32.mrf.mxu1  ;;  %v10753_v29 = vadd.f32 %v952_v58, %v10598_v63 }
 0x164   : > { %15371 = vst [vmem:[#allocation47_spill] sm:$0xff] %v10746_v54  ;;  %v10756_v21 = vadd.f32 %v1055_v0, %v10686_v46  ;;  %v956_v19 = vpop.f32.mrf.mxu0  ;;  %8474 = vmatmul.mubr.msk.bf16.gmra.mxu0 %vm857_vm0, %v10462_v45 }
 0x165   : > { %15372 = vst [vmem:[#allocation48_spill] sm:$0xff] %v10753_v29  ;;  %v1059_v44 = vpop.f32.mrf.mxu1  ;;  %8480 = vmatmul.mubr.msk.bf16.gmra.mxu1 %vm857_vm0, %v10442_v39  ;;  %1652 = vmatprep.mubr.bf16.mxu0 %v15097_v1  ;;  %v10769_v0 = vadd.f32 %v956_v19, %v10606_v3 }
 0x166   : > { %15373 = vst [vmem:[#allocation49_spill] sm:$0xff] %v10756_v21  ;;  %v958_v58 = vpop.f32.mrf.mxu0  ;;  %1745 = vmatprep.mubr.bf16.mxu1 %v15097_v1  ;;  %v10778_v49 = vadd.f32 %v1059_v44, %v10647_v24 }
 0x167   : > { %v1061_v12 = vpop.f32.mrf.mxu1  ;;  %15374 = vst [vmem:[#allocation50_spill] sm:$0xff] %v10769_v0  ;;  %v10772_v5 = vadd.f32 %v958_v58, %v10598_v63 }
 0x168   : > { %v10775_v39 = vadd.f32 %v1061_v12, %v10686_v46  ;;  %v960_v17 = vpop.f32.mrf.mxu0  ;;  %15377 = vst [vmem:[#allocation53_spill] sm:$0xff] %v10778_v49 }
 0x169   : > { %15375 = vst [vmem:[#allocation51_spill] sm:$0xff] %v10772_v5  ;;  %v1063_v25 = vpop.f32.mrf.mxu1  ;;  %v10781_v23 = vadd.f32 %v960_v17, %v10606_v3 }
 0x16a   : > { %15376 = vst [vmem:[#allocation52_spill] sm:$0xff] %v10775_v39  ;;  %v10784_v40 = vadd.f32 %v1063_v25, %v10647_v24  ;;  %v962_v2 = vpop.f32.mrf.mxu0 }
 0x16b   : > { %15378 = vst [vmem:[#allocation54_spill] sm:$0xff] %v10781_v23  ;;  %v1065_v19 = vpop.f32.mrf.mxu1  ;;  %v10791_v22 = vadd.f32 %v962_v2, %v10598_v63  ;;  %v919_v2 = vadd.f32 %v10610_v4, %v10598_v63 }
 0x16c   : > { %15379 = vst [vmem:[#allocation55_spill] sm:$0xff] %v10784_v40  ;;  %v10794_v44 = vadd.f32 %v1065_v19, %v10686_v46  ;;  %v966_v38 = vpop.f32.mrf.mxu0  ;;  %8475 = vmatmul.mubr.msk.bf16.gmra.mxu0 %vm857_vm0, %v10472_v48  ;;  %v923_v19 = vadd.f32 %v10630_v16, %v10598_v63 }
 0x16d   : > { %15380 = vst [vmem:[#allocation56_spill] sm:$0xff] %v10791_v22  ;;  %v1069_v17 = vpop.f32.mrf.mxu1  ;;  %8481 = vmatmul.mubr.msk.bf16.gmra.mxu1 %vm857_vm0, %v10452_v42  ;;  %1662 = vmatprep.mubr.bf16.mxu0 %v15097_v1  ;;  %v10811_v42 = vadd.f32 %v966_v38, %v10606_v3 }
 0x16e   : > { %15381 = vst [vmem:[#allocation57_spill] sm:$0xff] %v10794_v44  ;;  %v968_v58 = vpop.f32.mrf.mxu0  ;;  %1755 = vmatprep.mubr.bf16.mxu1 %v15097_v1  ;;  %v10820_v4 = vadd.f32 %v1069_v17, %v10647_v24  ;;  %v1787_v1 = vpack.c.bf16 %v923_v19, %v919_v2 }
 0x16f   : > { %v1071_v47 = vpop.f32.mrf.mxu1  ;;  %15382 = vst [vmem:[#allocation58_spill] sm:$0xff] %v10811_v42  ;;  %v10814_v25 = vadd.f32 %v968_v58, %v10598_v63  ;;  %v1032_v42 = vadd.f32 %v10650_v26, %v10686_v46 }
 0x170   : > { %v10817_v12 = vadd.f32 %v1071_v47, %v10686_v46  ;;  %v970_v18 = vpop.f32.mrf.mxu0  ;;  %15385 = vst [vmem:[#allocation61_spill] sm:$0xff] %v10820_v4  ;;  %v15390_v47 = vmov 0  }
 0x171   : > { %15383 = vst [vmem:[#allocation59_spill] sm:$0xff] %v10814_v25  ;;  %v1073_v10 = vpop.f32.mrf.mxu1  ;;  %v10823_v16 = vadd.f32 %v970_v18, %v10606_v3 }
 0x172   : > { %15384 = vst [vmem:[#allocation60_spill] sm:$0xff] %v10817_v12  ;;  %v10826_v14 = vadd.f32 %v1073_v10, %v10647_v24  ;;  %v972_v38 = vpop.f32.mrf.mxu0 }
 0x173   : > { %15386 = vst [vmem:[#allocation62_spill] sm:$0xff] %v10823_v16  ;;  %v1075_v7 = vpop.f32.mrf.mxu1  ;;  %v10833_v20 = vadd.f32 %v972_v38, %v10598_v63 }
 0x174   : > { %15387 = vst [vmem:[#allocation63_spill] sm:$0xff] %v10826_v14  ;;  %v10836_v17 = vadd.f32 %v1075_v7, %v10686_v46  ;;  %v976_v18 = vpop.f32.mrf.mxu0  ;;  %8476 = vmatmul.mubr.msk.bf16.gmra.mxu0 %vm857_vm0, %v10401_v13  ;;  %v10848_v7 = vsub.s32 4, %v10586_v59 }
 0x175   : > { %15388 = vst [vmem:[#allocation64_spill] sm:$0xff] %v10833_v20  ;;  %v1079_v49 = vpop.f32.mrf.mxu1  ;;  %8482 = vmatmul.mubr.msk.bf16.gmra.mxu1 %vm857_vm0, %v10462_v45  ;;  %1882 = vmatprep.mubr.bf16.mxu0 %v1787_v1  ;;  %v10851_v58 = vadd.f32 %v976_v18, %v10606_v3 }
 0x176   : > { %15389 = vst [vmem:[#allocation65_spill] sm:$0xff] %v10836_v17  ;;  %v978_v19 = vpop.f32.mrf.mxu0  ;;  %1765 = vmatprep.mubr.bf16.mxu1 %v15390_v47  ;;  %15391 = vst [vmem:[#allocation66_spill] sm:$0xff] %v10848_v7  ;;  %v10860_v1 = vadd.f32 %v1079_v49, %v10647_v24 }
 0x177   : > { %v1081_v38 = vpop.f32.mrf.mxu1  ;;  %15392 = vst [vmem:[#allocation67_spill] sm:$0xff] %v10851_v58  ;;  %v10854_v4 = vadd.f32 %v978_v19, %v10598_v63  ;;  %v10870_v19 = vrot.slane %v10594_v62, %v10848_v7 }
 0x178   : > { %v10857_v45 = vadd.f32 %v1081_v38, %v10686_v46  ;;  %v980_v10 = vpop.f32.mrf.mxu0  ;;  %15395 = vst [vmem:[#allocation70_spill] sm:$0xff] %v10860_v1 }
 0x179   : > { %15393 = vst [vmem:[#allocation68_spill] sm:$0xff] %v10854_v4  ;;  %v1083_v14 = vpop.f32.mrf.mxu1  ;;  %v10863_v2 = vadd.f32 %v980_v10, %v10606_v3 }
 0x17a   : > { %15394 = vst [vmem:[#allocation69_spill] sm:$0xff] %v10857_v45  ;;  %v10866_v12 = vadd.f32 %v1083_v14, %v10647_v24  ;;  %v982_v17 = vpop.f32.mrf.mxu0 }
 0x17b   : > { %15396 = vst [vmem:[#allocation71_spill] sm:$0xff] %v10863_v2  ;;  %v1085_v18 = vpop.f32.mrf.mxu1  ;;  %v10877_v49 = vadd.f32 %v982_v17, %v10598_v63  ;;  %v1036_v63 = vadd.f32 %v10671_v37, %v10686_v46 }
 0x17c   : > { %15397 = vst [vmem:[#allocation72_spill] sm:$0xff] %v10866_v12  ;;  %v10880_v3 = vadd.f32 %v1085_v18, %v10686_v46  ;;  %v1142_v10 = vpop.f32.mrf.mxu0 }
 0x17d   : > { %15398 = vst [vmem:[#allocation73_spill] sm:$0xff] %v10877_v49  ;;  %v1089_v14 = vpop.f32.mrf.mxu1  ;;  %8483 = vmatmul.mubr.msk.bf16.gmra.mxu1 %vm857_vm0, %v10472_v48  ;;  %v10894_v17 = vadd.f32 %v1142_v10, %v10870_v19 }
 0x17e   : > { %15399 = vst [vmem:[#allocation74_spill] sm:$0xff] %v10880_v3  ;;  %1775 = vmatprep.mubr.bf16.mxu1 %v15390_v47  ;;  %v10889_v1 = vpop.f32.mrf.mxu0  ;;  %v10902_v38 = vadd.f32 %v1089_v14, %v10647_v24  ;;  %v1789_v3 = vpack.c.bf16 %v1036_v63, %v1032_v42 }
 0x17f   : > { %v1091_v40 = vpop.f32.mrf.mxu1  ;;  %15400 = vst [vmem:[#allocation75_spill] sm:$0xff] %v10894_v17 }
 0x180   : > { %v10897_v18 = vadd.f32 %v1091_v40, %v10686_v46  ;;  %v1146_v12 = vpop.f32.mrf.mxu0  ;;  %15402 = vst [vmem:[#allocation77_spill] sm:$0xff] %v10902_v38 }
 0x181   : > { %v1093_v48 = vpop.f32.mrf.mxu1  ;;  %v10908_v45 = vadd.f32 %v1146_v12, %v10870_v19 }
 0x182   : > { %15401 = vst [vmem:[#allocation76_spill] sm:$0xff] %v10897_v18  ;;  %v10905_v47 = vadd.f32 %v1093_v48, %v10647_v24  ;;  %v10910_v10 = vpop.f32.mrf.mxu0 }
 0x183   : > { %15404 = vst [vmem:[#allocation79_spill] sm:$0xff] %v10908_v45  ;;  %v1095_v37 = vpop.f32.mrf.mxu1 }
 0x184   : > { %15403 = vst [vmem:[#allocation78_spill] sm:$0xff] %v10905_v47  ;;  %v10917_v26 = vadd.f32 %v1095_v37, %v10686_v46  ;;  %v1152_v2 = vpop.f32.mrf.mxu0 }
 0x185   : > { %v1099_v14 = vpop.f32.mrf.mxu1  ;;  %8484 = vmatmul.mubr.msk.bf16.gmra.mxu1 %vm857_vm0, %v10401_v13  ;;  %v10926_v63 = vadd.f32 %v1152_v2, %v10870_v19 }
 0x186   : > { %15405 = vst [vmem:[#allocation80_spill] sm:$0xff] %v10917_v26  ;;  %1979 = vmatprep.mubr.bf16.mxu1 %v1789_v3  ;;  %v10923_v42 = vpop.f32.mrf.mxu0  ;;  %v10932_v38 = vadd.f32 %v1099_v14, %v10647_v24  ;;  %v10941_v3 = vsub.s32 6, %v10586_v59 }
 0x187   : > { %v1101_v48 = vpop.f32.mrf.mxu1 }
 0x188   : > { %v10929_v40 = vadd.f32 %v1101_v48, %v10686_v46  ;;  %v1156_v58 = vpop.f32.mrf.mxu0  ;;  %15407 = vst [vmem:[#allocation82_spill] sm:$0xff] %v10932_v38  ;;  %15409 = vst [vmem:[#allocation84_spill] sm:$0xff] %v10941_v3  ;;  %v10956_v26 = vrot.slane %v10594_v62, %v10941_v3 }
 0x189   : > { %v1103_v37 = vpop.f32.mrf.mxu1  ;;  %v10938_v12 = vadd.f32 %v1156_v58, %v10870_v19 }
 0x18a   : > { %15406 = vst [vmem:[#allocation81_spill] sm:$0xff] %v10929_v40  ;;  %v10935_v13 = vadd.f32 %v1103_v37, %v10647_v24  ;;  %v10943_v2 = vpop.f32.mrf.mxu0 }
 0x18b   : > { %v1105_v47 = vpop.f32.mrf.mxu1 }
 0x18c   : > { %15408 = vst [vmem:[#allocation83_spill] sm:$0xff] %v10935_v13  ;;  %v10950_v14 = vadd.f32 %v1105_v47, %v10686_v46  ;;  %v1162_v24 = vpop.f32.mrf.mxu0 }
 0x18d   : > { %v1255_v37 = vpop.f32.mrf.mxu1  ;;  %v10963_v48 = vadd.f32 %v1162_v24, %v10870_v19 }
 0x18e   : > { %15410 = vst [vmem:[#allocation85_spill] sm:$0xff] %v10950_v14  ;;  %v10958_v4 = vpop.f32.mrf.mxu0  ;;  %v10966_v46 = vadd.f32 %v1255_v37, %v10956_v26 }
 0x18f   : > { %v10960_v49 = vpop.f32.mrf.mxu1 }
 0x190   : > { %15411 = vst [vmem:[#allocation86_spill] sm:$0xff] %v10960_v49  ;;  %v1166_v18 = vpop.f32.mrf.mxu0  ;;  %15412 = vst [vmem:[#allocation87_spill] sm:$0xff] %v10966_v46 }
 0x191   : > { %v1259_v38 = vpop.f32.mrf.mxu1  ;;  %v10969_v47 = vadd.f32 %v1166_v18, %v10870_v19 }
 0x192   : > { %v10972_v58 = vadd.f32 %v1259_v38, %v10956_v26  ;;  %v10974_v13 = vpop.f32.mrf.mxu0 }
 0x193   : > { %v10976_v40 = vpop.f32.mrf.mxu1 }
 0x194   : > { %15413 = vst [vmem:[#allocation88_spill] sm:$0xff] %v10972_v58  ;;  %15414 = vst [vmem:[#allocation89_spill] sm:$0xff] %v10976_v40  ;;  %v1172_v3 = vpop.f32.mrf.mxu0 }
 0x195   : > { %v1265_v16 = vpop.f32.mrf.mxu1  ;;  %v10987_v18 = vadd.f32 %v1172_v3, %v10870_v19 }
 0x196   : > { %v10982_v37 = vpop.f32.mrf.mxu0  ;;  %v10990_v44 = vadd.f32 %v1265_v16, %v10956_v26 }
 0x197   : > { %v10984_v7 = vpop.f32.mrf.mxu1 }
 0x198   : > { %15415 = vst [vmem:[#allocation90_spill] sm:$0xff] %v10984_v7  ;;  %v1176_v38 = vpop.f32.mrf.mxu0  ;;  %15416 = vst [vmem:[#allocation91_spill] sm:$0xff] %v10990_v44 }
 0x199   : > { %v1269_v39 = vpop.f32.mrf.mxu1  ;;  %v10993_v25 = vadd.f32 %v1176_v38, %v10870_v19 }
 0x19a   : > { %v10996_v14 = vadd.f32 %v1269_v39, %v10956_v26  ;;  %v10998_v24 = vpop.f32.mrf.mxu0 }
 0x19b   : > { %v11000_v20 = vpop.f32.mrf.mxu1 }
 0x19c   : > { %15417 = vst [vmem:[#allocation92_spill] sm:$0xff] %v10996_v14  ;;  %15418 = vst [vmem:[#allocation93_spill] sm:$0xff] %v11000_v20  ;;  %v11006_v54 = vpop.f32.mrf.mxu0 }
 0x19d   : > { %v1275_v16 = vpop.f32.mrf.mxu1 }
 0x19e   : > { %v11008_v0 = vpop.f32.mrf.mxu0  ;;  %v11015_v36 = vadd.f32 %v1275_v16, %v10956_v26 }
 0x19f   : > { %v11010_v38 = vpop.f32.mrf.mxu1 }
 0x1a0   : > { %v11012_v23 = vpop.f32.mrf.mxu0  ;;  %15419 = vst [vmem:[#allocation94_spill] sm:$0xff] %v11015_v36  ;;  %v11070_v36 = vld [vmem:[#allocation5 + $0x8] sm:$0xff] }
 0x1a1   : > { %v1279_v39 = vpop.f32.mrf.mxu1 }
 0x1a2   : > { %v11018_v21 = vadd.f32 %v1279_v39, %v10956_v26  ;;  %v11020_v50 = vpop.f32.mrf.mxu0 }
 0x1a3   : > { %v11022_v5 = vpop.f32.mrf.mxu1 }
 0x1a4   : > { %15420 = vst [vmem:[#allocation95_spill] sm:$0xff] %v11018_v21  ;;  %v11026_v22 = vpop.f32.mrf.mxu0 }
 0x1a5   : > { %v1285_v55 = vpop.f32.mrf.mxu1 }
 0x1a6   : > { %v1194_v57 = vpop.f32.mrf.mxu0  ;;  %v11033_v31 = vadd.f32 %v1285_v55, %v10956_v26 }
 0x1a7   : > { %v11028_v35 = vpop.f32.mrf.mxu1 }
 0x1a8   : > { %v11030_v53 = vpop.f32.mrf.mxu0 }
 0x1a9   : > { %v1289_v16 = vpop.f32.mrf.mxu1 }
 0x1aa   : > { %v11036_v39 = vadd.f32 %v1289_v16, %v10956_v26  ;;  %v1198_v9 = vpop.f32.mrf.mxu0  ;;  %v11051_v16 = vsub.s32 5, %v10586_v59 }
 0x1ab   : > { %v11038_v43 = vpop.f32.mrf.mxu1 }
 0x1ac   : > { %v1202_v29 = vpop.f32.mrf.mxu0  ;;  %15421 = vst [vmem:[#allocation96_spill] sm:$0xff] %v11051_v16  ;;  %v11059_v33 = vrot.slane %v10594_v62, %v11051_v16 }
 0x1ad   : > { %v11042_v30 = vpop.f32.mrf.mxu1 }
 0x1ae   : > { %v1204_v34 = vpop.f32.mrf.mxu0 }
 0x1af   : > { %v11044_v51 = vpop.f32.mrf.mxu1  ;;  %v1205_v28 = vadd.f32 %v1204_v34, %v11059_v33  ;;  %v11077_v34 = vrot.slane %v11070_v36, %v10592_v61 }
 0x1b0   : > { %v1206_v56 = vpop.f32.mrf.mxu0 }
 0x1b1   : > { %v11046_v46 = vpop.f32.mrf.mxu1 }
 0x1b2   : > { %v1208_v55 = vpop.f32.mrf.mxu0 }
 0x1b3   : > { %v11048_v58 = vpop.f32.mrf.mxu1  ;;  %v1209_v41 = vadd.f32 %v1208_v55, %v11059_v33 }
 0x1b4   : > { %v1212_v52 = vpop.f32.mrf.mxu0 }
 0x1b5   : > { %v11053_v8 = vpop.f32.mrf.mxu1  ;;  %v1213_v32 = vadd.f32 %v1212_v52, %v10870_v19  ;;  %v1843_v45 = vpack.c.bf16 %v1209_v41, %v1205_v28  ;;  %v1207_v28 = vadd.f32 %v1206_v56, %v10870_v19 }
 0x1b6   : > { %v1214_v27 = vpop.f32.mrf.mxu0 }
 0x1b7   : > { %v11055_v3 = vpop.f32.mrf.mxu1  ;;  %v1215_v6 = vadd.f32 %v1214_v27, %v11059_v33 }
 0x1b8   : > { %v1216_v44 = vpop.f32.mrf.mxu0 }
 0x1b9   : > { %v11062_v14 = vpop.f32.mrf.mxu1  ;;  %v1217_v11 = vadd.f32 %v1216_v44, %v10870_v19 }
 0x1ba   : > { %v1218_v49 = vpop.f32.mrf.mxu0 }
 0x1bb   : > { %v11068_v40 = vpop.f32.mrf.mxu1  ;;  %v1219_v16 = vadd.f32 %v1218_v49, %v11059_v33  ;;  %v1846_v21 = vpack.c.bf16 %v1217_v11, %v1213_v32 }
 0x1bc   : > { %v1368_v17 = vpop.f32.mrf.mxu0 }
 0x1bd   : > { %v11073_v52 = vpop.f32.mrf.mxu1  ;;  %v1847_v60 = vpack.c.bf16 %v1219_v16, %v1215_v6  ;;  %v11082_v44 = vadd.f32 %v1368_v17, %v11077_v34  ;;  %v1203_v6 = vadd.f32 %v1202_v29, %v10870_v19  ;;  %v1199_v17 = vadd.f32 %v1198_v9, %v11059_v33 }
 0x1be   : > { %v11079_v55 = vpop.f32.mrf.mxu0  ;;  %v1185_v16 = vadd.f32 %v11008_v0, %v11059_v33 }
 0x1bf   : > { %v1317_v27 = vpop.f32.mrf.mxu1  ;;  %15422 = vst [vmem:[#allocation97_spill] sm:$0xff] %v11079_v55  ;;  %1850 = vmatprep.subr.bf16.mxu0 %v1847_v60  ;;  %15423 = vst [vmem:[#allocation98_spill] sm:$0xff] %v11082_v44  ;;  %v1195_v60 = vadd.f32 %v1194_v57, %v11059_v33 }
 0x1c0   : > { %1851 = vmatpush1.bf16.xpose.msra.mxu0 %v1846_v21  ;;  %v1372_v11 = vpop.f32.mrf.mxu0 }
 0x1c1   : > { %v11084_v7 = vpop.f32.mrf.mxu1  ;;  %1852 = vmatprep.subr.bf16.mxu0 %v1843_v45  ;;  %v11087_v32 = vadd.f32 %v1372_v11, %v11077_v34  ;;  %v11098_v45 = vsub.s32 7, %v10586_v59  ;;  %v1842_v11 = vpack.c.bf16 %v1207_v28, %v1203_v6  ;;  %v1839_v56 = vpack.c.bf16 %v1199_v17, %v1195_v60 }
 0x1c2   : > { %v11091_v49 = vpop.f32.mrf.mxu0  ;;  %v1189_v6 = vadd.f32 %v11020_v50, %v11059_v33  ;;  %v1197_v28 = vadd.f32 %v11030_v53, %v10870_v19 }
 0x1c3   : > { %15424 = vst [vmem:[#allocation99_spill] sm:$0xff] %v11087_v32  ;;  %v1321_v41 = vpop.f32.mrf.mxu1  ;;  %15425 = vst [vmem:[#allocation100_spill] sm:$0xff] %v11091_v49  ;;  %v11107_v9 = vrot.slane %v10594_v62, %v11098_v45 }
 0x1c4   : > { %v1378_v61 = vpop.f32.mrf.mxu0  ;;  %15426 = vst [vmem:[#allocation101_spill] sm:$0xff] %v11098_v45 }
 0x1c5   : > { %v1325_v21 = vpop.f32.mrf.mxu1  ;;  %v11103_v20 = vadd.f32 %v1378_v61, %v11077_v34  ;;  %v1193_v61 = vadd.f32 %v11026_v22, %v10870_v19  ;;  %v1322_v0 = vadd.f32 %v1321_v41, %v11107_v9  ;;  %v1318_v53 = vadd.f32 %v1317_v27, %v11107_v9 }
 0x1c6   : > { %v11100_v29 = vpop.f32.mrf.mxu0 }
 0x1c7   : > { %v1327_v55 = vpop.f32.mrf.mxu1  ;;  %15427 = vst [vmem:[#allocation102_spill] sm:$0xff] %v11100_v29  ;;  %v1838_v32 = vpack.c.bf16 %v1197_v28, %v1193_v61  ;;  %v1845_v29 = vpack.c.bf16 %v1322_v0, %v1318_v53  ;;  %v1312_v0 = vadd.f32 %v11068_v40, %v11107_v9 }
 0x1c8   : > { %1853 = vmatpush1.bf16.xpose.msra.mxu0 %v1842_v11  ;;  %v1382_v57 = vpop.f32.mrf.mxu0  ;;  %v1328_v11 = vadd.f32 %v1327_v55, %v11107_v9 }
 0x1c9   : > { %v1329_v49 = vpop.f32.mrf.mxu1  ;;  %1854 = vmatprep.subr.bf16.mxu0 %v1839_v56  ;;  %v11112_v59 = vadd.f32 %v1382_v57, %v11077_v34  ;;  %v1326_v57 = vadd.f32 %v1325_v21, %v10956_v26 }
 0x1ca   : > { %v1330_v60 = vadd.f32 %v1329_v49, %v10956_v26  ;;  %v11121_v17 = vpop.f32.mrf.mxu0  ;;  %v11132_v49 = vrot.slane %v11070_v36, %v10628_v15 }
 0x1cb   : > { %v1331_v62 = vpop.f32.mrf.mxu1  ;;  %15428 = vst [vmem:[#allocation103_spill] sm:$0xff] %v11121_v17 }
 0x1cc   : > { %v1332_v56 = vadd.f32 %v1331_v62, %v11107_v9  ;;  %v1388_v45 = vpop.f32.mrf.mxu0  ;;  %v1848_v41 = vpack.c.bf16 %v1330_v60, %v1326_v57  ;;  %v1835_v62 = vpack.c.bf16 %v1189_v6, %v1185_v16  ;;  %v1183_v16 = vadd.f32 %v11006_v54, %v10870_v19 }
 0x1cd   : > { %v1481_v22 = vpop.f32.mrf.mxu1  ;;  %v11142_v50 = vadd.f32 %v1388_v45, %v11077_v34  ;;  %v1320_v45 = vadd.f32 %v11084_v7, %v10956_v26  ;;  %v1179_v60 = vadd.f32 %v10998_v24, %v11059_v33 }
 0x1ce   : > { %v1849_v44 = vpack.c.bf16 %v1332_v56, %v1328_v11  ;;  %v11136_v55 = vpop.f32.mrf.mxu0  ;;  %v11139_v21 = vadd.f32 %v1481_v22, %v11132_v49  ;;  %v1308_v56 = vadd.f32 %v11055_v3, %v11107_v9 }
 0x1cf   : > { %v11134_v17 = vpop.f32.mrf.mxu1 }
 0x1d0   : > { %15429 = vst [vmem:[#allocation104_spill] sm:$0xff] %v11134_v17  ;;  %1947 = vmatprep.subr.bf16.mxu1 %v1849_v44  ;;  %15430 = vst [vmem:[#allocation105_spill] sm:$0xff] %v11139_v21  ;;  %1855 = vmatpush1.bf16.xpose.msra.mxu0 %v1838_v32  ;;  %v1392_v11 = vpop.f32.mrf.mxu0  ;;  %v1175_v44 = vadd.f32 %v10982_v37, %v11059_v33  ;;  %v1187_v32 = vadd.f32 %v11012_v23, %v10870_v19  ;;  %v15447_v37 = vld [vmem:[#allocation95_spill] sm:$0xff] }
 0x1d1   : > { %1948 = vmatpush1.bf16.xpose.msra.mxu1 %v1848_v41  ;;  %v1485_v27 = vpop.f32.mrf.mxu1  ;;  %1856 = vmatprep.subr.bf16.mxu0 %v1835_v62  ;;  %v11148_v28 = vadd.f32 %v1392_v11, %v11077_v34  ;;  %v1316_v23 = vadd.f32 %v11073_v52, %v10956_v26  ;;  %v1841_v41 = vpack.c.bf16 %v1312_v0, %v1308_v56 }
 0x1d2   : > { %1949 = vmatprep.subr.bf16.mxu1 %v1845_v29  ;;  %v11145_v61 = vadd.f32 %v1485_v27, %v11132_v49  ;;  %v11160_v29 = vpop.f32.mrf.mxu0  ;;  %v1834_v57 = vpack.c.bf16 %v1187_v32, %v1183_v16  ;;  %v1831_v53 = vpack.c.bf16 %v1179_v60, %v1175_v44  ;;  %v1310_v11 = vadd.f32 %v11062_v14, %v10956_v26 }
 0x1d3   : > { %v11158_v6 = vpop.f32.mrf.mxu1  ;;  %v1844_v24 = vpack.c.bf16 %v1320_v45, %v1316_v23  ;;  %v1165_v32 = vadd.f32 %v10958_v4, %v11059_v33  ;;  %v1169_v45 = vadd.f32 %v10974_v13, %v11059_v33  ;;  %v1302_v60 = vadd.f32 %v11048_v58, %v11107_v9 }
 0x1d4   : > { %15431 = vst [vmem:[#allocation106_spill] sm:$0xff] %v11145_v61  ;;  %15432 = vst [vmem:[#allocation107_spill] sm:$0xff] %v11158_v6  ;;  %v11172_v19 = vpop.f32.mrf.mxu0  ;;  %v1306_v23 = vadd.f32 %v11053_v8, %v10956_v26  ;;  %v1298_v56 = vadd.f32 %v11044_v51, %v11107_v9  ;;  %v1300_v51 = vadd.f32 %v11046_v46, %v10956_v26 }
 0x1d5   : > { %v1491_v7 = vpop.f32.mrf.mxu1  ;;  %v1288_v46 = vadd.f32 %v11028_v35, %v11107_v9 }
 0x1d6   : > { %v11178_v40 = vpop.f32.mrf.mxu0  ;;  %v11181_v62 = vadd.f32 %v1491_v7, %v11132_v49  ;;  %v1840_v4 = vpack.c.bf16 %v1310_v11, %v1306_v23  ;;  %v1837_v58 = vpack.c.bf16 %v1302_v60, %v1298_v56 }
 0x1d7   : > { %v11176_v22 = vpop.f32.mrf.mxu1 }
 0x1d8   : > { %15433 = vst [vmem:[#allocation108_spill] sm:$0xff] %v11176_v22  ;;  %15434 = vst [vmem:[#allocation109_spill] sm:$0xff] %v11181_v62  ;;  %1857 = vmatpush1.bf16.xpose.msra.mxu0 %v1834_v57  ;;  %v11183_v27 = vpop.f32.mrf.mxu0 }
 0x1d9   : > { %1950 = vmatpush1.bf16.xpose.msra.mxu1 %v1844_v24  ;;  %v1495_v52 = vpop.f32.mrf.mxu1  ;;  %1858 = vmatprep.subr.bf16.mxu0 %v1831_v53  ;;  %v1827_v24 = vpack.c.bf16 %v1169_v45, %v1165_v32  ;;  %v15437_v53 = vpack.c.bf16 %v10993_v25, %v10987_v18  ;;  %v1155_v32 = vadd.f32 %v10923_v42, %v11059_v33 }
 0x1da   : > { %1951 = vmatprep.subr.bf16.mxu1 %v1841_v41  ;;  %v11186_v3 = vadd.f32 %v1495_v52, %v11132_v49  ;;  %v11192_v44 = vpop.f32.mrf.mxu0  ;;  %v1159_v25 = vadd.f32 %v10943_v2, %v11059_v33  ;;  %v1292_v18 = vadd.f32 %v11038_v43, %v11107_v9  ;;  %v1296_v45 = vadd.f32 %v11042_v30, %v10956_v26 }
 0x1db   : > { %v11190_v16 = vpop.f32.mrf.mxu1  ;;  %v15438_v2 = vpack.c.bf16 %v10969_v47, %v10963_v48  ;;  %v1282_v48 = vadd.f32 %v11022_v5, %v11107_v9 }
 0x1dc   : > { %15435 = vst [vmem:[#allocation110_spill] sm:$0xff] %v11186_v3  ;;  %15436 = vst [vmem:[#allocation111_spill] sm:$0xff] %v11190_v16  ;;  %v11206_v7 = vpop.f32.mrf.mxu0  ;;  %v1836_v56 = vpack.c.bf16 %v1300_v51, %v1296_v45  ;;  %v1149_v51 = vadd.f32 %v10910_v10, %v11059_v33 }
 0x1dd   : > { %v11204_v14 = vpop.f32.mrf.mxu1 }
 0x1de   : > { %v11212_v13 = vpop.f32.mrf.mxu0 }
 0x1df   : > { %v11210_v57 = vpop.f32.mrf.mxu1 }
 0x1e0   : > { %1859 = vmatpush1.bf16.xpose.msra.mxu0 %v15437_v53  ;;  %v11219_v41 = vpop.f32.mrf.mxu0  ;;  %v1145_v53 = vadd.f32 %v10889_v1, %v11059_v33  ;;  %v15439_v1 = vpack.c.bf16 %v10938_v12, %v10926_v63  ;;  %v15440_v33 = vpack.c.bf16 %v11036_v39, %v11033_v31  ;;  %v15442_v12 = vld [vmem:[#allocation90_spill] sm:$0xff] }
 0x1e1   : > { %1952 = vmatpush1.bf16.xpose.msra.mxu1 %v1840_v4  ;;  %v11217_v8 = vpop.f32.mrf.mxu1  ;;  %1860 = vmatprep.subr.bf16.mxu0 %v1827_v24  ;;  %v1823_v24 = vpack.c.bf16 %v1159_v25, %v1155_v32  ;;  %v1278_v25 = vadd.f32 %v11010_v38, %v11107_v9  ;;  %v1268_v63 = vadd.f32 %v15442_v12, %v11107_v9 }
 0x1e2   : > { %1953 = vmatprep.subr.bf16.mxu1 %v1837_v58  ;;  %v11225_v11 = vpop.f32.mrf.mxu0  ;;  %v1833_v58 = vpack.c.bf16 %v1292_v18, %v1288_v46  ;;  %v1819_v46 = vpack.c.bf16 %v1149_v51, %v1145_v53 }
 0x1e3   : > { %v11223_v52 = vpop.f32.mrf.mxu1 }
 0x1e4   : > { %v11237_v23 = vpop.f32.mrf.mxu0 }
 0x1e5   : > { %v11235_v60 = vpop.f32.mrf.mxu1 }
 0x1e6   : > { %v1420_v42 = vpop.f32.mrf.mxu0 }
 0x1e7   : > { %v11241_v4 = vpop.f32.mrf.mxu1 }
 0x1e8   : > { %1861 = vmatpush1.bf16.xpose.msra.mxu0 %v15438_v2  ;;  %v11248_v30 = vpop.f32.mrf.mxu0 }
 0x1e9   : > { %1954 = vmatpush1.bf16.xpose.msra.mxu1 %v1836_v56  ;;  %v11246_v43 = vpop.f32.mrf.mxu1  ;;  %1862 = vmatprep.subr.bf16.mxu0 %v1823_v24  ;;  %v1829_v56 = vpack.c.bf16 %v1282_v48, %v1278_v25  ;;  %v15443_v48 = vld [vmem:[#allocation18_spill] sm:$0xff] }
 0x1ea   : > { %1955 = vmatprep.subr.bf16.mxu1 %v1833_v58  ;;  %v1424_v35 = vpop.f32.mrf.mxu0  ;;  %v15441_v58 = vld [vmem:[#allocation93_spill] sm:$0xff]  ;;  %v11282_v31 = vrot.slane %v11070_v36, %v15443_v48 }
 0x1eb   : > { %v11250_v26 = vpop.f32.mrf.mxu1  ;;  %v1272_v2 = vadd.f32 %v15441_v58, %v11107_v9  ;;  %v15448_v58 = vld [vmem:[#allocation94_spill] sm:$0xff] }
 0x1ec   : > { %v1428_v32 = vpop.f32.mrf.mxu0  ;;  %v15449_v0 = vpack.c.bf16 %v15447_v37, %v15448_v58  ;;  %v15450_v37 = vld [vmem:[#allocation89_spill] sm:$0xff]  ;;  %v1425_v3 = vadd.f32 %v1424_v35, %v11282_v31 }
 0x1ed   : > { %v11258_v47 = vpop.f32.mrf.mxu1 }
 0x1ee   : > { %v1430_v45 = vpop.f32.mrf.mxu0 }
 0x1ef   : > { %v11262_v18 = vpop.f32.mrf.mxu1 }
 0x1f0   : > { %1863 = vmatpush1.bf16.xpose.msra.mxu0 %v15439_v1  ;;  %v1432_v10 = vpop.f32.mrf.mxu0  ;;  %v15445_v1 = vld [vmem:[#allocation75_spill] sm:$0xff] }
 0x1f1   : > { %1956 = vmatpush1.bf16.xpose.msra.mxu1 %v15440_v33  ;;  %v11270_v5 = vpop.f32.mrf.mxu1  ;;  %1864 = vmatprep.subr.bf16.mxu0 %v1819_v46  ;;  %v1825_v46 = vpack.c.bf16 %v1272_v2, %v1268_v63  ;;  %v1431_v2 = vadd.f32 %v1430_v45, %v11282_v31  ;;  %v1433_v58 = vadd.f32 %v1432_v10, %v11077_v34  ;;  %v15460_v10 = vld [vmem:[#allocation91_spill] sm:$0xff] }
 0x1f2   : > { %1957 = vmatprep.subr.bf16.mxu1 %v1829_v56  ;;  %v1434_v38 = vpop.f32.mrf.mxu0  ;;  %v15444_v56 = vld [vmem:[#allocation79_spill] sm:$0xff] }
 0x1f3   : > { %v11272_v24 = vpop.f32.mrf.mxu1  ;;  %v15446_v33 = vpack.c.bf16 %v15444_v56, %v15445_v1  ;;  %v1435_v63 = vadd.f32 %v1434_v38, %v11282_v31  ;;  %v1421_v38 = vadd.f32 %v1420_v42, %v11282_v31 }
 0x1f4   : > { %v1438_v51 = vpop.f32.mrf.mxu0 }
 0x1f5   : > { %v11276_v53 = vpop.f32.mrf.mxu1  ;;  %v1439_v12 = vadd.f32 %v1438_v51, %v11077_v34  ;;  %v2317_v6 = vpack.c.bf16 %v1435_v63, %v1431_v2  ;;  %v1423_v2 = vadd.f32 %v11248_v30, %v11077_v34  ;;  %v2313_v63 = vpack.c.bf16 %v1425_v3, %v1421_v38  ;;  %v15463_v38 = vld [vmem:[#allocation31_spill] sm:$0xff] }
 0x1f6   : > { %v1440_v25 = vpop.f32.mrf.mxu0  ;;  %v1409_v30 = vadd.f32 %v11206_v7, %v11077_v34  ;;  %v1405_v3 = vadd.f32 %v11192_v44, %v11282_v31  ;;  %v1391_v7 = vadd.f32 %v11136_v55, %v11282_v31 }
 0x1f7   : > { %v11284_v39 = vpop.f32.mrf.mxu1  ;;  %v1441_v48 = vadd.f32 %v1440_v25, %v11282_v31 }
 0x1f8   : > { %1865 = vmatpush1.bf16.xpose.msra.mxu0 %v15446_v33  ;;  %v1442_v15 = vpop.f32.mrf.mxu0 }
 0x1f9   : > { %1958 = vmatpush1.bf16.xpose.msra.mxu1 %v15449_v0  ;;  %v11292_v54 = vpop.f32.mrf.mxu1  ;;  %v1443_v21 = vadd.f32 %v1442_v15, %v11077_v34  ;;  %v1262_v0 = vadd.f32 %v15450_v37, %v11107_v9  ;;  %v1429_v15 = vadd.f32 %v1428_v32, %v11077_v34  ;;  %v15457_v32 = vld [vmem:[#allocation28_spill] sm:$0xff] }
 0x1fa   : > { %1959 = vmatprep.subr.bf16.mxu1 %v1825_v46  ;;  %v1444_v56 = vpop.f32.mrf.mxu0  ;;  %v15451_v46 = vld [vmem:[#allocation86_spill] sm:$0xff] }
 0x1fb   : > { %v11297_v61 = vpop.f32.mrf.mxu1  ;;  %v1445_v1 = vadd.f32 %v1444_v56, %v11282_v31  ;;  %v1258_v33 = vadd.f32 %v15451_v46, %v11107_v9  ;;  %v2320_v45 = vpack.c.bf16 %v1443_v21, %v1439_v12  ;;  %v15453_v9 = vld [vmem:[#allocation23_spill] sm:$0xff]  ;;  %v15454_v46 = vld [vmem:[#allocation20_spill] sm:$0xff]  ;;  %v1419_v12 = vadd.f32 %v11237_v23, %v11077_v34  ;;  %v15462_v23 = vld [vmem:[#allocation30_spill] sm:$0xff] }
 0x1fc   : > { %v11308_v25 = vpop.f32.mrf.mxu0  ;;  %v15455_v16 = vpack.c.bf16 %v15453_v9, %v15454_v46  ;;  %v15459_v21 = vld [vmem:[#allocation92_spill] sm:$0xff]  ;;  %v15464_v9 = vld [vmem:[#allocation27_spill] sm:$0xff] }
 0x1fd   : > { %v11306_v51 = vpop.f32.mrf.mxu1  ;;  %15452 = vst [vmem:[#allocation93_spill] sm:$0xff] %v11308_v25  ;;  %v2321_v62 = vpack.c.bf16 %v1445_v1, %v1441_v48  ;;  %v1821_v17 = vpack.c.bf16 %v1262_v0, %v1258_v33  ;;  %v15456_v25 = vld [vmem:[#allocation33_spill] sm:$0xff]  ;;  %v15461_v48 = vpack.c.bf16 %v15459_v21, %v15460_v10  ;;  %v15465_v46 = vpack.c.bf16 %v15463_v38, %v15464_v9  ;;  %v15470_v10 = vld [vmem:[#allocation87_spill] sm:$0xff] }
 0x1fe   : > { %v11314_v56 = vpop.f32.mrf.mxu0  ;;  %v15458_v22 = vpack.c.bf16 %v15456_v25, %v15457_v32  ;;  %v11341_v25 = vrot.slane %v11070_v36, %v15462_v23  ;;  %v15467_v32 = vld [vmem:[#allocation35_spill] sm:$0xff]  ;;  %v15595_v23 = vld [vmem:[#allocation70_spill] sm:$0xff] }
 0x1ff   : > { %v1543_v37 = vpop.f32.mrf.mxu1  ;;  %1883 = vmatmul.mubr.bf16.vlgmr.msra.gmra.mxu0 %v15455_v16  ;;  %2324 = vmatprep.subr.bf16.mxu0 %v2321_v62  ;;  %v2316_v16 = vpack.c.bf16 %v1433_v58, %v1429_v15  ;;  %v1411_v62 = vadd.f32 %v11212_v13, %v11282_v31  ;;  %v1413_v13 = vadd.f32 %v11219_v41, %v11077_v34  ;;  %v15466_v41 = vld [vmem:[#allocation40_spill] sm:$0xff] }
 0x200   : > { %1890 = vmatprep.mubr.bf16.mxu0 %v15458_v22  ;;  %v11325_v35 = vpop.f32.mrf.mxu0  ;;  %2325 = vmatpush1.bf16.msra.mxu0 %v2320_v45  ;;  %v1415_v22 = vadd.f32 %v11225_v11, %v11282_v31  ;;  %v2312_v15 = vpack.c.bf16 %v1423_v2, %v1419_v12  ;;  %v15468_v21 = vpack.c.bf16 %v15466_v41, %v15467_v32 }
 0x201   : > { %1960 = vmatpush1.bf16.xpose.msra.mxu1 %v15461_v48  ;;  %v1545_v42 = vpop.f32.mrf.mxu1  ;;  %2326 = vmatprep.subr.bf16.mxu0 %v2317_v6  ;;  %v1401_v6 = vadd.f32 %v11178_v40, %v11282_v31  ;;  %v15469_v40 = vld [vmem:[#allocation88_spill] sm:$0xff]  ;;  %v1399_v2 = vadd.f32 %v11172_v19, %v11077_v34  ;;  %v1544_v19 = vadd.f32 %v1543_v37, %v11341_v25 }
 0x202   : > { %1961 = vmatprep.subr.bf16.mxu1 %v1821_v17  ;;  %v11335_v1 = vpop.f32.mrf.mxu0  ;;  %v2309_v11 = vpack.c.bf16 %v1415_v22, %v1411_v62  ;;  %v15471_v48 = vpack.c.bf16 %v15469_v40, %v15470_v10  ;;  %v2308_v62 = vpack.c.bf16 %v1413_v13, %v1409_v30  ;;  %v1395_v22 = vadd.f32 %v11160_v29, %v11282_v31  ;;  %v15472_v29 = vld [vmem:[#allocation102_spill] sm:$0xff] }
 0x203   : > { %v1547_v0 = vpop.f32.mrf.mxu1  ;;  %v1542_v37 = vadd.f32 %v11306_v51, %v11132_v49  ;;  %v15474_v10 = vld [vmem:[#allocation38_spill] sm:$0xff] }
 0x204   : > { %v11337_v33 = vpop.f32.mrf.mxu0  ;;  %2327 = vmatpush1.bf16.msra.mxu0 %v2316_v16  ;;  %v1403_v16 = vadd.f32 %v11183_v27, %v11077_v34  ;;  %v1548_v34 = vadd.f32 %v1547_v0, %v11341_v25  ;;  %v1546_v0 = vadd.f32 %v1545_v42, %v11132_v49  ;;  %v15481_v42 = vld [vmem:[#allocation100_spill] sm:$0xff] }
 0x205   : > { %v1551_v17 = vpop.f32.mrf.mxu1  ;;  %2328 = vmatprep.subr.bf16.mxu0 %v2313_v63  ;;  %v2305_v63 = vpack.c.bf16 %v1405_v3, %v1401_v6 }
 0x206   : > { %v11351_v45 = vpop.f32.mrf.mxu0  ;;  %v1552_v38 = vadd.f32 %v1551_v17, %v11132_v49  ;;  %v15473_v17 = vld [vmem:[#allocation103_spill] sm:$0xff]  ;;  %v2304_v3 = vpack.c.bf16 %v1403_v16, %v1399_v2  ;;  %v15478_v2 = vld [vmem:[#allocation29_spill] sm:$0xff] }
 0x207   : > { %v1553_v58 = vpop.f32.mrf.mxu1  ;;  %1891 = vmatmul.mubr.bf16.gmra.mxu0 %v15465_v46  ;;  %v1385_v6 = vadd.f32 %v15473_v17, %v11282_v31 }
 0x208   : > { %1898 = vmatprep.mubr.bf16.mxu0 %v15468_v21  ;;  %v11364_v12 = vpop.f32.mrf.mxu0  ;;  %v1554_v55 = vadd.f32 %v1553_v58, %v11341_v25  ;;  %2329 = vmatpush1.bf16.msra.mxu0 %v2312_v15  ;;  %v1381_v15 = vadd.f32 %v15472_v29, %v11282_v31  ;;  %v2301_v58 = vpack.c.bf16 %v1395_v22, %v1391_v7  ;;  %v15482_v22 = vld [vmem:[#allocation48_spill] sm:$0xff] }
 0x209   : > { %1962 = vmatpush1.bf16.xpose.msra.mxu1 %v15471_v48  ;;  %v1555_v44 = vpop.f32.mrf.mxu1  ;;  %2330 = vmatprep.subr.bf16.mxu0 %v2309_v11  ;;  %v15475_v48 = vld [vmem:[#allocation34_spill] sm:$0xff]  ;;  %v2319_v7 = vpack.c.bf16 %v1548_v34, %v1544_v19  ;;  %v1534_v19 = vadd.f32 %v11284_v39, %v11341_v25  ;;  %v1538_v34 = vadd.f32 %v11297_v61, %v11341_v25 }
 0x20a   : > { %v1556_v9 = vadd.f32 %v1555_v44, %v11132_v49  ;;  %v11375_v41 = vpop.f32.mrf.mxu0  ;;  %v15476_v44 = vpack.c.bf16 %v15474_v10, %v15475_v48  ;;  %v2297_v48 = vpack.c.bf16 %v1385_v6, %v1381_v15  ;;  %v1524_v39 = vadd.f32 %v11262_v18, %v11341_v25 }
 0x20b   : > { %v1557_v46 = vpop.f32.mrf.mxu1  ;;  %v1528_v61 = vadd.f32 %v11272_v24, %v11341_v25  ;;  %v1526_v18 = vadd.f32 %v11270_v5, %v11132_v49  ;;  %v15503_v5 = vld [vmem:[#allocation49_spill] sm:$0xff] }
 0x20c   : > { %v1558_v27 = vadd.f32 %v1557_v46, %v11341_v25  ;;  %v11382_v13 = vpop.f32.mrf.mxu0  ;;  %2331 = vmatpush1.bf16.msra.mxu0 %v2308_v62  ;;  %v2322_v32 = vpack.c.bf16 %v1556_v9, %v1552_v38  ;;  %v15477_v46 = vld [vmem:[#allocation32_spill] sm:$0xff]  ;;  %v15480_v62 = vld [vmem:[#allocation97_spill] sm:$0xff] }
 0x20d   : > { %v11380_v30 = vpop.f32.mrf.mxu1  ;;  %2332 = vmatprep.subr.bf16.mxu0 %v2305_v63  ;;  %v15479_v16 = vpack.c.bf16 %v15477_v46, %v15478_v2  ;;  %v1371_v51 = vadd.f32 %v15480_v62, %v11282_v31  ;;  %v15483_v63 = vld [vmem:[#allocation43_spill] sm:$0xff]  ;;  %v15485_v9 = vld [vmem:[#allocation41_spill] sm:$0xff]  ;;  %v2318_v46 = vpack.c.bf16 %v1546_v0, %v1542_v37 }
 0x20e   : > { %v2323_v11 = vpack.c.bf16 %v1558_v27, %v1554_v55  ;;  %v11393_v40 = vpop.f32.mrf.mxu0  ;;  %v1375_v55 = vadd.f32 %v15481_v42, %v11282_v31  ;;  %v15484_v38 = vpack.c.bf16 %v15482_v22, %v15483_v63  ;;  %v15486_v27 = vld [vmem:[#allocation36_spill] sm:$0xff]  ;;  %v1532_v31 = vadd.f32 %v11276_v53, %v11132_v49  ;;  %v15497_v62 = vld [vmem:[#allocation39_spill] sm:$0xff] }
 0x20f   : > { %v11391_v21 = vpop.f32.mrf.mxu1  ;;  %1899 = vmatmul.mubr.bf16.gmra.mxu0 %v15476_v44  ;;  %v15487_v29 = vpack.c.bf16 %v15485_v9, %v15486_v27  ;;  %v1536_v44 = vadd.f32 %v11292_v54, %v11132_v49  ;;  %v2315_v54 = vpack.c.bf16 %v1538_v34, %v1534_v19  ;;  %v15501_v42 = vld [vmem:[#allocation51_spill] sm:$0xff]  ;;  %v15504_v22 = vld [vmem:[#allocation44_spill] sm:$0xff]  ;;  %v1514_v27 = vadd.f32 %v11241_v4, %v11341_v25 }
 0x210   : > { %1980 = vmatmul.mubr.bf16.vlgmr.msra.gmra.mxu1 %v15479_v16  ;;  %1906 = vmatprep.mubr.bf16.mxu0 %v15484_v38  ;;  %v11413_v10 = vpop.f32.mrf.mxu0  ;;  %v15495_v16 = vld [vmem:[#allocation42_spill] sm:$0xff]  ;;  %v15505_v63 = vpack.c.bf16 %v15503_v5, %v15504_v22  ;;  %v1512_v19 = vadd.f32 %v11235_v60, %v11132_v49  ;;  %v1516_v34 = vadd.f32 %v11246_v43, %v11132_v49  ;;  %v15513_v43 = vld [vmem:[#allocation99_spill] sm:$0xff] }
 0x211   : > { %1987 = vmatprep.mubr.bf16.mxu1 %v15487_v29  ;;  %v11411_v17 = vpop.f32.mrf.mxu1  ;;  %2437 = vmatprep.subr.bf16.mxu1 %v2323_v11  ;;  %v15491_v11 = vpack.c.bf16 %v11148_v28, %v11142_v50  ;;  %v2314_v37 = vpack.c.bf16 %v1536_v44, %v1532_v31  ;;  %v15498_v50 = vld [vmem:[#allocation37_spill] sm:$0xff]  ;;  %v1518_v29 = vadd.f32 %v11250_v26, %v11341_v25  ;;  %v15533_v22 = vld [vmem:[#allocation111_spill] sm:$0xff] }
 0x212   : > { %2333 = vmatpush1.bf16.msra.mxu0 %v2304_v3  ;;  %2438 = vmatpush1.bf16.msra.mxu1 %v2322_v32  ;;  %v11425_v15 = vpop.f32.mrf.mxu0  ;;  %v2293_v3 = vpack.c.bf16 %v1375_v55, %v1371_v51  ;;  %v15494_v32 = vld [vmem:[#allocation46_spill] sm:$0xff]  ;;  %v15499_v28 = vpack.c.bf16 %v15497_v62, %v15498_v50  ;;  %v2311_v51 = vpack.c.bf16 %v1528_v61, %v1524_v39  ;;  %v15524_v50 = vld [vmem:[#allocation64_spill] sm:$0xff] }
 0x213   : > { %2334 = vmatprep.subr.bf16.mxu0 %v2301_v58  ;;  %v11423_v2 = vpop.f32.mrf.mxu1  ;;  %15488 = vst [vmem:[#allocation90_spill] sm:$0xff] %v11425_v15  ;;  %2439 = vmatprep.subr.bf16.mxu1 %v2319_v7  ;;  %v1522_v58 = vadd.f32 %v11258_v47, %v11132_v49  ;;  %v15496_v7 = vpack.c.bf16 %v15494_v32, %v15495_v16  ;;  %v15500_v47 = vld [vmem:[#allocation56_spill] sm:$0xff]  ;;  %v15514_v39 = vld [vmem:[#allocation98_spill] sm:$0xff]  ;;  %v15521_v16 = vld [vmem:[#allocation47_spill] sm:$0xff] }
 0x214   : > { %v11433_v53 = vpop.f32.mrf.mxu0  ;;  %v15502_v55 = vpack.c.bf16 %v15500_v47, %v15501_v42  ;;  %v1504_v26 = vadd.f32 %v11210_v57, %v11341_v25  ;;  %v15515_v61 = vpack.c.bf16 %v15513_v43, %v15514_v39  ;;  %v2306_v57 = vpack.c.bf16 %v1516_v34, %v1512_v19  ;;  %v15536_v19 = vld [vmem:[#allocation104_spill] sm:$0xff] }
 0x215   : > { %v11431_v6 = vpop.f32.mrf.mxu1  ;;  %15490 = vst [vmem:[#allocation75_spill] sm:$0xff] %v11433_v53  ;;  %v2310_v31 = vpack.c.bf16 %v1526_v18, %v1522_v58  ;;  %v15518_v18 = vld [vmem:[#allocation54_spill] sm:$0xff]  ;;  %v1484_v34 = vadd.f32 %v15536_v19, %v11341_v25 }
 0x216   : > { %15489 = vst [vmem:[#allocation79_spill] sm:$0xff] %v11431_v6  ;;  %2335 = vmatpush1.bf16.msra.mxu0 %v15491_v11  ;;  %2440 = vmatpush1.bf16.msra.mxu1 %v2318_v46  ;;  %v11444_v0 = vpop.f32.mrf.mxu0  ;;  %v2307_v46 = vpack.c.bf16 %v1518_v29, %v1514_v27  ;;  %v15558_v19 = vld [vmem:[#allocation110_spill] sm:$0xff] }
 0x217   : > { %2336 = vmatprep.subr.bf16.mxu0 %v2297_v48  ;;  %v11442_v24 = vpop.f32.mrf.mxu1  ;;  %15493 = vst [vmem:[#allocation94_spill] sm:$0xff] %v11444_v0  ;;  %1907 = vmatmul.mubr.bf16.gmra.mxu0 %v15496_v7  ;;  %v15508_v48 = vpack.c.bf16 %v11112_v59, %v11103_v20  ;;  %v1508_v20 = vadd.f32 %v11223_v52, %v11341_v25  ;;  %v15522_v7 = vld [vmem:[#allocation45_spill] sm:$0xff] }
 0x218   : > { %15492 = vst [vmem:[#allocation95_spill] sm:$0xff] %v11442_v24  ;;  %1988 = vmatmul.mubr.bf16.gmra.mxu1 %v15499_v28  ;;  %1914 = vmatprep.mubr.bf16.mxu0 %v15502_v55  ;;  %v11460_v9 = vpop.f32.mrf.mxu0  ;;  %v15523_v62 = vpack.c.bf16 %v15521_v16, %v15522_v7  ;;  %v15532_v55 = vld [vmem:[#allocation108_spill] sm:$0xff]  ;;  %v15546_v7 = vld [vmem:[#allocation55_spill] sm:$0xff] }
 0x219   : > { %1995 = vmatprep.mubr.bf16.mxu1 %v15505_v63  ;;  %v11458_v38 = vpop.f32.mrf.mxu1  ;;  %15507 = vst [vmem:[#allocation86_spill] sm:$0xff] %v11460_v9  ;;  %2441 = vmatprep.subr.bf16.mxu1 %v2315_v54  ;;  %v1506_v54 = vadd.f32 %v11217_v8, %v11132_v49  ;;  %v2303_v58 = vpack.c.bf16 %v1508_v20, %v1504_v26  ;;  %v15528_v8 = vld [vmem:[#allocation52_spill] sm:$0xff]  ;;  %v15538_v20 = vld [vmem:[#allocation66_spill] sm:$0xff] }
 0x21a   : > { %15506 = vst [vmem:[#allocation89_spill] sm:$0xff] %v11458_v38  ;;  %2337 = vmatpush1.bf16.msra.mxu0 %v15508_v48  ;;  %2442 = vmatpush1.bf16.msra.mxu1 %v2314_v37  ;;  %v11475_v4 = vpop.f32.mrf.mxu0  ;;  %v15519_v37 = vld [vmem:[#allocation50_spill] sm:$0xff]  ;;  %v1494_v5 = vadd.f32 %v15532_v55, %v11341_v25  ;;  %v1498_v63 = vadd.f32 %v15533_v22, %v11341_v25  ;;  %v15554_v55 = vld [vmem:[#allocation60_spill] sm:$0xff] }
 0x21b   : > { %2338 = vmatprep.subr.bf16.mxu0 %v2293_v3  ;;  %v11473_v44 = vpop.f32.mrf.mxu1  ;;  %15510 = vst [vmem:[#allocation20_spill] sm:$0xff] %v11475_v4  ;;  %2443 = vmatprep.subr.bf16.mxu1 %v2311_v51  ;;  %v1502_v3 = vadd.f32 %v11204_v14, %v11132_v49  ;;  %v15520_v32 = vpack.c.bf16 %v15518_v18, %v15519_v37  ;;  %v15525_v14 = vld [vmem:[#allocation59_spill] sm:$0xff]  ;;  %v15527_v49 = vld [vmem:[#allocation57_spill] sm:$0xff]  ;;  %v15543_v37 = vld [vmem:[#allocation62_spill] sm:$0xff] }
 0x21c   : > { %15509 = vst [vmem:[#allocation23_spill] sm:$0xff] %v11473_v44  ;;  %v11483_v60 = vpop.f32.mrf.mxu0  ;;  %v15526_v28 = vpack.c.bf16 %v15524_v50, %v15525_v14  ;;  %v15529_v51 = vpack.c.bf16 %v15527_v49, %v15528_v8  ;;  %v11526_v43 = vrot.slane %v11070_v36, %v15538_v20  ;;  %v15551_v49 = vld [vmem:[#allocation68_spill] sm:$0xff] }
 0x21d   : > { %v11481_v59 = vpop.f32.mrf.mxu1  ;;  %15512 = vst [vmem:[#allocation28_spill] sm:$0xff] %v11483_v60  ;;  %v2302_v27 = vpack.c.bf16 %v1506_v54, %v1502_v3  ;;  %v15540_v3 = vld [vmem:[#allocation96_spill] sm:$0xff] }
 0x21e   : > { %15511 = vst [vmem:[#allocation33_spill] sm:$0xff] %v11481_v59  ;;  %2339 = vmatpush1.bf16.msra.mxu0 %v15515_v61  ;;  %2444 = vmatpush1.bf16.msra.mxu1 %v2310_v31  ;;  %v11494_v52 = vpop.f32.mrf.mxu0  ;;  %v15537_v31 = vld [vmem:[#allocation107_spill] sm:$0xff]  ;;  %v2299_v61 = vpack.c.bf16 %v1498_v63, %v1494_v5  ;;  %v11532_v54 = vrot.slane %v11070_v36, %v15540_v3  ;;  %v15592_v3 = vld [vmem:[#allocation22_spill] sm:$0xff] }
 0x21f   : > { %v11492_v11 = vpop.f32.mrf.mxu1  ;;  %15517 = vst [vmem:[#allocation91_spill] sm:$0xff] %v11494_v52  ;;  %1915 = vmatmul.mubr.bf16.gmra.mxu0 %v15520_v32  ;;  %2445 = vmatprep.subr.bf16.mxu1 %v2307_v46  ;;  %v1488_v26 = vadd.f32 %v15537_v31, %v11341_v25  ;;  %v15544_v32 = vld [vmem:[#allocation58_spill] sm:$0xff] }
 0x220   : > { %15516 = vst [vmem:[#allocation92_spill] sm:$0xff] %v11492_v11  ;;  %1996 = vmatmul.mubr.bf16.gmra.mxu1 %v15523_v62  ;;  %1922 = vmatprep.mubr.bf16.mxu0 %v15526_v28  ;;  %v11510_v42 = vpop.f32.mrf.mxu0  ;;  %v15545_v16 = vpack.c.bf16 %v15543_v37, %v15544_v32  ;;  %v15547_v62 = vld [vmem:[#allocation53_spill] sm:$0xff] }
 0x221   : > { %2003 = vmatprep.mubr.bf16.mxu1 %v15529_v51  ;;  %v11508_v47 = vpop.f32.mrf.mxu1  ;;  %15531 = vst [vmem:[#allocation27_spill] sm:$0xff] %v11510_v42  ;;  %v15548_v50 = vpack.c.bf16 %v15546_v7, %v15547_v62  ;;  %v15550_v28 = vld [vmem:[#allocation73_spill] sm:$0xff] }
 0x222   : > { %15530 = vst [vmem:[#allocation31_spill] sm:$0xff] %v11508_v47  ;;  %2446 = vmatpush1.bf16.msra.mxu1 %v2306_v57  ;;  %v11518_v48 = vpop.f32.mrf.mxu0  ;;  %v15552_v8 = vpack.c.bf16 %v15550_v28, %v15551_v49  ;;  %v15553_v51 = vld [vmem:[#allocation65_spill] sm:$0xff]  ;;  %v15569_v28 = vld [vmem:[#allocation71_spill] sm:$0xff] }
 0x223   : > { %v11516_v29 = vpop.f32.mrf.mxu1  ;;  %15535 = vst [vmem:[#allocation35_spill] sm:$0xff] %v11518_v48  ;;  %2447 = vmatprep.subr.bf16.mxu1 %v2303_v58  ;;  %v2295_v58 = vpack.c.bf16 %v1488_v26, %v1484_v34  ;;  %v15555_v5 = vpack.c.bf16 %v15553_v51, %v15554_v55  ;;  %v15559_v34 = vld [vmem:[#allocation109_spill] sm:$0xff]  ;;  %v15570_v49 = vld [vmem:[#allocation67_spill] sm:$0xff] }
 0x224   : > { %15534 = vst [vmem:[#allocation40_spill] sm:$0xff] %v11516_v29  ;;  %v1644_v46 = vpop.f32.mrf.mxu0  ;;  %v15560_v31 = vpack.c.bf16 %v15558_v19, %v15559_v34  ;;  %v15572_v51 = vld [vmem:[#allocation63_spill] sm:$0xff]  ;;  %v15573_v55 = vld [vmem:[#allocation61_spill] sm:$0xff] }
 0x225   : > { %v11528_v39 = vpop.f32.mrf.mxu1  ;;  %v11535_v57 = vadd.f32 %v1644_v46, %v11526_v43  ;;  %v15577_v19 = vld [vmem:[#allocation21_spill] sm:$0xff] }
 0x226   : > { %15539 = vst [vmem:[#allocation88_spill] sm:$0xff] %v11528_v39  ;;  %2448 = vmatpush1.bf16.msra.mxu1 %v2302_v27  ;;  %v1646_v25 = vpop.f32.mrf.mxu0 }
 0x227   : > { %15541 = vst [vmem:[#allocation87_spill] sm:$0xff] %v11535_v57  ;;  %v11537_v18 = vpop.f32.mrf.mxu1  ;;  %1923 = vmatmul.mubr.bf16.gmra.mxu0 %v15545_v16  ;;  %v11546_v14 = vadd.f32 %v1646_v25, %v11532_v54  ;;  %2449 = vmatprep.subr.bf16.mxu1 %v2299_v61  ;;  %v15565_v16 = vld [vmem:[#allocation106_spill] sm:$0xff]  ;;  %v15566_v61 = vld [vmem:[#allocation105_spill] sm:$0xff] }
 0x228   : > { %15542 = vst [vmem:[#allocation102_spill] sm:$0xff] %v11537_v18  ;;  %2004 = vmatmul.mubr.bf16.gmra.mxu1 %v15548_v50  ;;  %1930 = vmatprep.mubr.bf16.mxu0 %v15552_v8  ;;  %v1648_v63 = vpop.f32.mrf.mxu0  ;;  %v15567_v7 = vpack.c.bf16 %v15565_v16, %v15566_v61  ;;  %v15571_v8 = vpack.c.bf16 %v15569_v28, %v15570_v49 }
 0x229   : > { %15549 = vst [vmem:[#allocation103_spill] sm:$0xff] %v11546_v14  ;;  %2011 = vmatprep.mubr.bf16.mxu1 %v15555_v5  ;;  %v11554_v22 = vpop.f32.mrf.mxu1  ;;  %v11557_v27 = vadd.f32 %v1648_v63, %v11526_v43  ;;  %v15576_v63 = vld [vmem:[#allocation26_spill] sm:$0xff] }
 0x22a   : > { %15556 = vst [vmem:[#allocation38_spill] sm:$0xff] %v11554_v22  ;;  %2450 = vmatpush1.bf16.msra.mxu1 %v15560_v31  ;;  %v11564_v46 = vpop.f32.mrf.mxu0  ;;  %v15578_v34 = vpack.c.bf16 %v15576_v63, %v15577_v19  ;;  %v15579_v31 = vld [vmem:[#allocation74_spill] sm:$0xff]  ;;  %v15587_v63 = vld [vmem:[#allocation101_spill] sm:$0xff] }
 0x22b   : > { %15557 = vst [vmem:[#allocation34_spill] sm:$0xff] %v11557_v27  ;;  %v11562_v26 = vpop.f32.mrf.mxu1  ;;  %15562 = vst [vmem:[#allocation29_spill] sm:$0xff] %v11564_v46  ;;  %2451 = vmatprep.subr.bf16.mxu1 %v2295_v58  ;;  %v15574_v58 = vpack.c.bf16 %v15572_v51, %v15573_v55  ;;  %v11606_v19 = vrot.slane %v11070_v36, %v15587_v63  ;;  %v15600_v63 = vld [vmem:[#allocation76_spill] sm:$0xff]  ;;  %v15602_v27 = vmov 0  }
 0x22c   : > { %15561 = vst [vmem:[#allocation32_spill] sm:$0xff] %v11562_v26  ;;  %v1654_v37 = vpop.f32.mrf.mxu0 }
 0x22d   : > { %v11566_v25 = vpop.f32.mrf.mxu1  ;;  %v11569_v32 = vadd.f32 %v1654_v37, %v11526_v43  ;;  %v15580_v37 = vld [vmem:[#allocation69_spill] sm:$0xff]  ;;  %15588 = vst [vmem:[#allocation39_spill] sm:$0xff] %v11606_v19 }
 0x22e   : > { %15563 = vst [vmem:[#allocation97_spill] sm:$0xff] %v11566_v25  ;;  %2452 = vmatpush1.bf16.msra.mxu1 %v15567_v7  ;;  %v1656_v50 = vpop.f32.mrf.mxu0  ;;  %v15581_v16 = vpack.c.bf16 %v15579_v31, %v15580_v37 }
 0x22f   : > { %15564 = vst [vmem:[#allocation100_spill] sm:$0xff] %v11569_v32  ;;  %v11574_v62 = vpop.f32.mrf.mxu1  ;;  %1931 = vmatmul.mubr.bf16.gmra.mxu0 %v15571_v8  ;;  %v11583_v5 = vadd.f32 %v1656_v50, %v11532_v54  ;;  %v15586_v50 = vld [vmem:[#allocation84_spill] sm:$0xff] }
 0x230   : > { %15568 = vst [vmem:[#allocation48_spill] sm:$0xff] %v11574_v62  ;;  %2012 = vmatmul.mubr.bf16.gmra.mxu1 %v15574_v58  ;;  %1938 = vmatprep.mubr.bf16.mxu0 %v15578_v34  ;;  %v1658_v7 = vpop.f32.mrf.mxu0  ;;  %v11602_v51 = vrot.slane %v11070_v36, %v15586_v50  ;;  %v15594_v50 = vld [vmem:[#allocation72_spill] sm:$0xff] }
 0x231   : > { %15575 = vst [vmem:[#allocation43_spill] sm:$0xff] %v11583_v5  ;;  %2019 = vmatprep.mubr.bf16.mxu1 %v15581_v16  ;;  %v11591_v61 = vpop.f32.mrf.mxu1  ;;  %v11594_v28 = vadd.f32 %v1658_v7, %v11526_v43  ;;  %v15591_v7 = vld [vmem:[#allocation24_spill] sm:$0xff] }
 0x232   : > { %15582 = vst [vmem:[#allocation41_spill] sm:$0xff] %v11591_v61  ;;  %v11598_v8 = vpop.f32.mrf.mxu0  ;;  %v15593_v20 = vpack.c.bf16 %v15591_v7, %v15592_v3 }
 0x233   : > { %15583 = vst [vmem:[#allocation36_spill] sm:$0xff] %v11594_v28  ;;  %v11596_v49 = vpop.f32.mrf.mxu1  ;;  %15585 = vst [vmem:[#allocation42_spill] sm:$0xff] %v11598_v8  ;;  %v15596_v28 = vpack.c.bf16 %v15594_v50, %v15595_v23 }
 0x234   : > { %15584 = vst [vmem:[#allocation46_spill] sm:$0xff] %v11596_v49  ;;  %v1664_v58 = vpop.f32.mrf.mxu0 }
 0x235   : > { %v1757_v55 = vpop.f32.mrf.mxu1  ;;  %v11612_v31 = vadd.f32 %v1664_v58, %v11526_v43 }
 0x236   : > { %v11609_v34 = vadd.f32 %v1757_v55, %v11602_v51  ;;  %v1666_v16 = vpop.f32.mrf.mxu0  ;;  %v15599_v55 = vld [vmem:[#allocation80_spill] sm:$0xff] }
 0x237   : > { %15590 = vst [vmem:[#allocation56_spill] sm:$0xff] %v11612_v31  ;;  %v1759_v37 = vpop.f32.mrf.mxu1  ;;  %1939 = vmatmul.mubr.bf16.gmra.mxu0 %v15593_v20  ;;  %v11624_v36 = vadd.f32 %v1666_v16, %v11532_v54  ;;  %v15601_v58 = vpack.c.bf16 %v15599_v55, %v15600_v63  ;;  %v15607_v16 = vld [vmem:[#allocation78_spill] sm:$0xff]  ;;  %v15608_v63 = vld [vmem:[#allocation77_spill] sm:$0xff] }
 0x238   : > { %15589 = vst [vmem:[#allocation37_spill] sm:$0xff] %v11609_v34  ;;  %2020 = vmatmul.mubr.bf16.gmra.mxu1 %v15596_v28  ;;  %v11621_v5 = vadd.f32 %v1759_v37, %v11606_v19  ;;  %v1668_v32 = vpop.f32.mrf.mxu0  ;;  %2356 = vmatprep.mubr.bf16.mxu0 %v15602_v27  ;;  %v15609_v7 = vpack.c.bf16 %v15607_v16, %v15608_v63  ;;  %v15617_v63 = vld [vmem:[#allocation83_spill] sm:$0xff] }
 0x239   : > { %15598 = vst [vmem:[#allocation49_spill] sm:$0xff] %v11624_v36  ;;  %2027 = vmatprep.mubr.bf16.mxu1 %v15601_v58  ;;  %v1761_v31 = vpop.f32.mrf.mxu1  ;;  %v11634_v23 = vadd.f32 %v1668_v32, %v11526_v43  ;;  %v15612_v58 = vld [vmem:[#allocation81_spill] sm:$0xff]  ;;  %v11687_v34 = vld [vmem:[%s11678_s25 + $0x8] sm:$0xff] }
 0x23a   : > { %15597 = vst [vmem:[#allocation51_spill] sm:$0xff] %v11621_v5  ;;  %v11631_v20 = vadd.f32 %v1761_v31, %v11602_v51  ;;  %v15611_v31 = vld [vmem:[#allocation85_spill] sm:$0xff]  ;;  %15625 = vst [vmem:[#allocation104_spill] sm:$0xff] %v11687_v34  ;;  %vm2061_vm2 = vcmp.gt.f32.partialorder %v11687_v34, 0.0 }
 0x23b   : > { %15604 = vst [vmem:[#allocation99_spill] sm:$0xff] %v11634_v23  ;;  %v11636_v3 = vpop.f32.mrf.mxu1  ;;  %v15613_v36 = vpack.c.bf16 %v15611_v31, %v15612_v58  ;;  %v11668_v58 = vpop.f32.mrf.mxu0 }
 0x23c   : > { %15603 = vst [vmem:[#allocation44_spill] sm:$0xff] %v11631_v20  ;;  %15605 = vst [vmem:[#allocation98_spill] sm:$0xff] %v11636_v3 }
 0x23d   : > { %v1767_v28 = vpop.f32.mrf.mxu1  ;;  %15622 = vst [vmem:[#allocation52_spill] sm:$0xff] %v11668_v58 }
 0x23e   : > { %v11639_v50 = vadd.f32 %v1767_v28, %v11602_v51 }
 0x23f   : > { %v1769_v37 = vpop.f32.mrf.mxu1 }
 0x240   : > { %15606 = vst [vmem:[#allocation54_spill] sm:$0xff] %v11639_v50  ;;  %2028 = vmatmul.mubr.bf16.gmra.mxu1 %v15609_v7  ;;  %v11645_v55 = vadd.f32 %v1769_v37, %v11606_v19  ;;  %v15618_v7 = vld [vmem:[#allocation82_spill] sm:$0xff] }
 0x241   : > { %2035 = vmatprep.mubr.bf16.mxu1 %v15613_v36  ;;  %v1771_v32 = vpop.f32.mrf.mxu1  ;;  %v15619_v37 = vpack.c.bf16 %v15617_v63, %v15618_v7 }
 0x242   : > { %15610 = vst [vmem:[#allocation50_spill] sm:$0xff] %v11645_v55  ;;  %v11651_v23 = vadd.f32 %v1771_v32, %v11602_v51 }
 0x243   : > { %v11653_v28 = vpop.f32.mrf.mxu1 }
 0x244   : > { %15614 = vst [vmem:[#allocation47_spill] sm:$0xff] %v11651_v23  ;;  %15615 = vst [vmem:[#allocation45_spill] sm:$0xff] %v11653_v28 }
 0x245   : > { %v1777_v50 = vpop.f32.mrf.mxu1 }
 0x246   : > { %v11656_v20 = vadd.f32 %v1777_v50, %v11602_v51 }
 0x247   : > { %v1779_v16 = vpop.f32.mrf.mxu1 }
 0x248   : > { %15616 = vst [vmem:[#allocation64_spill] sm:$0xff] %v11656_v20  ;;  %2036 = vmatmul.mubr.bf16.gmra.mxu1 %v15619_v37  ;;  %v11662_v55 = vadd.f32 %v1779_v16, %v11606_v19 }
 0x249   : > { %v1781_v36 = vpop.f32.mrf.mxu1  ;;  %2469 = vmatprep.mubr.bf16.mxu1 %v15602_v27 }
 0x24a   : > { %15620 = vst [vmem:[#allocation59_spill] sm:$0xff] %v11662_v55  ;;  %v11666_v31 = vadd.f32 %v1781_v36, %v11602_v51 }
 0x24b   : > { %v11680_v36 = vpop.f32.mrf.mxu1 }
 0x24c   : > { %15621 = vst [vmem:[#allocation57_spill] sm:$0xff] %v11666_v31  ;;  %15623 = vst [vmem:[#allocation108_spill] sm:$0xff] %v11680_v36 }
 0x2bf   : > { %v1884_v32 = vpop.f32.mrf.mxu0 }
 0x2c1   : > { %v1886_v50 = vpop.f32.mrf.mxu0 }
 0x2c2   : > { %v11683_v50 = vld [vmem:[%s11678_s25] sm:$0xff] }
 0x2c3   : > { %v1887_v20 = vpop.f32.mrf.mxu0  ;;  %15624 = vst [vmem:[#allocation111_spill] sm:$0xff] %v11683_v50  ;;  %vm2060_vm1 = vcmp.gt.f32.partialorder %v11683_v50, 0.0 }
 0x2c5   : > { %v1889_v63 = vpop.f32.mrf.mxu0 }
 0x2c7   : > { %v1892_v7 = vpop.f32.mrf.mxu0 }
 0x2c9   : > { %v1894_v16 = vpop.f32.mrf.mxu0 }
 0x2cb   : > { %v1895_v37 = vpop.f32.mrf.mxu0 }
 0x2cd   : > { %v1897_v31 = vpop.f32.mrf.mxu0 }
 0x2cf   : > { %v1900_v55 = vpop.f32.mrf.mxu0 }
 0x2d0   : > { %v1981_v23 = vpop.f32.mrf.mxu1 }
 0x2d1   : > { %v1982_v63 = vadd.f32 %v1981_v23, %v1884_v32  ;;  %v1902_v5 = vpop.f32.mrf.mxu0 }
 0x2d2   : > { %v1983_v14 = vpop.f32.mrf.mxu1  ;;  %v11696_v5 = vld [vmem:[%s11678_s25 + $0x10] sm:$0xff] }
 0x2d3   : > { %v2044_v16 = vmul.f32 0.044194173, %v1982_v63  ;;  %v1903_v57 = vpop.f32.mrf.mxu0  ;;  %15626 = vst [vmem:[#allocation107_spill] sm:$0xff] %v11696_v5  ;;  %vm2062_vm3 = vcmp.gt.f32.partialorder %v11696_v5, 0.0 }
 0x2d4   : > { %v1984_v28 = vpop.f32.mrf.mxu1 }
 0x2d5   : > { %v1985_v58 = vadd.f32 %v1984_v28, %v1887_v20  ;;  %v11691_v36 = vsel %vm2060_vm1, %v2044_v16, -1e+30  ;;  %v1905_v31 = vpop.f32.mrf.mxu0 }
 0x2d6   : > { %v1986_v3 = vpop.f32.mrf.mxu1  ;;  %2092 = vmax.xlane.f32.xlu0 %v11691_v36  ;;  %v11705_v31 = vld [vmem:[%s11678_s25 + $0x18] sm:$0xff] }
 0x2d7   : > { %v2045_v14 = vmul.f32 0.044194173, %v1985_v58  ;;  %v1908_v23 = vpop.f32.mrf.mxu0  ;;  %15627 = vst [vmem:[#allocation62_spill] sm:$0xff] %v11705_v31  ;;  %vm2063_vm4 = vcmp.gt.f32.partialorder %v11705_v31, 0.0 }
 0x2d8   : > { %v1989_v32 = vpop.f32.mrf.mxu1 }
 0x2d9   : > { %v1990_v63 = vadd.f32 %v1989_v32, %v1892_v7  ;;  %v11700_v20 = vsel %vm2061_vm2, %v2045_v14, -1e+30  ;;  %v1910_v28 = vpop.f32.mrf.mxu0 }
 0x2da   : > { %v1991_v16 = vpop.f32.mrf.mxu1  ;;  %2094 = vmax.xlane.f32.xlu0 %v11700_v20 }
 0x2db   : > { %v2046_v3 = vmul.f32 0.044194173, %v1990_v63  ;;  %v1911_v58 = vpop.f32.mrf.mxu0  ;;  %v11714_v16 = vld [vmem:[%s11678_s25 + $0x20] sm:$0xff] }
 0x2dc   : > { %v1992_v8 = vpop.f32.mrf.mxu1  ;;  %15628 = vst [vmem:[#allocation58_spill] sm:$0xff] %v11714_v16  ;;  %vm2064_vm5 = vcmp.gt.f32.partialorder %v11714_v16, 0.0 }
 0x2dd   : > { %v1993_v49 = vadd.f32 %v1992_v8, %v1895_v37  ;;  %v11709_v7 = vsel %vm2062_vm3, %v2046_v3, -1e+30  ;;  %v1913_v14 = vpop.f32.mrf.mxu0 }
 0x2de   : > { %v1994_v32 = vpop.f32.mrf.mxu1  ;;  %2096 = vmax.xlane.f32.xlu1 %v11709_v7 }
 0x2df   : > { %v2047_v28 = vmul.f32 0.044194173, %v1993_v49  ;;  %v1916_v63 = vpop.f32.mrf.mxu0  ;;  %v11723_v32 = vld [vmem:[%s11678_s25 + $0x28] sm:$0xff] }
 0x2e0   : > { %v1997_v61 = vpop.f32.mrf.mxu1  ;;  %15629 = vst [vmem:[#allocation55_spill] sm:$0xff] %v11723_v32  ;;  %vm2065_vm6 = vcmp.gt.f32.partialorder %v11723_v32, 0.0 }
 0x2e1   : > { %v1998_v46 = vadd.f32 %v1997_v61, %v1900_v55  ;;  %v11718_v8 = vsel %vm2063_vm4, %v2047_v28, -1e+30  ;;  %v1918_v37 = vpop.f32.mrf.mxu0 }
 0x2e2   : > { %v1999_v3 = vpop.f32.mrf.mxu1  ;;  %2098 = vmax.xlane.f32.xlu1 %v11718_v8 }
 0x2e3   : > { %v2048_v14 = vmul.f32 0.044194173, %v1998_v46  ;;  %v1919_v49 = vpop.f32.mrf.mxu0  ;;  %v11732_v3 = vld [vmem:[%s11678_s25 + $0x30] sm:$0xff] }
 0x2e4   : > { %v2000_v62 = vpop.f32.mrf.mxu1  ;;  %15630 = vst [vmem:[#allocation53_spill] sm:$0xff] %v11732_v3  ;;  %vm2066_vm7 = vcmp.gt.f32.partialorder %v11732_v3, 0.0 }
 0x2e5   : > { %v2001_v25 = vadd.f32 %v2000_v62, %v1903_v57  ;;  %v11727_v61 = vsel %vm2064_vm5, %v2048_v14, -1e+30  ;;  %v1921_v55 = vpop.f32.mrf.mxu0 }
 0x2e6   : > { %v2002_v28 = vpop.f32.mrf.mxu1  ;;  %2100 = vmax.xlane.f32.xlu0 %v11727_v61 }
 0x2e7   : > { %v2049_v37 = vmul.f32 0.044194173, %v2001_v25  ;;  %v1924_v46 = vpop.f32.mrf.mxu0  ;;  %v11741_v28 = vld [vmem:[%s11678_s25 + $0x38] sm:$0xff] }
 0x2e8   : > { %v2005_v26 = vpop.f32.mrf.mxu1  ;;  %15631 = vst [vmem:[#allocation73_spill] sm:$0xff] %v11741_v28  ;;  %vm15289_vm8 = vcmp.gt.f32.partialorder %v11741_v28, 0.0 }
 0x2e9   : > { %v2006_v22 = vadd.f32 %v2005_v26, %v1908_v23  ;;  %v11736_v57 = vsel %vm2065_vm6, %v2049_v37, -1e+30  ;;  %v1926_v62 = vpop.f32.mrf.mxu0 }
 0x2ea   : > { %v2007_v14 = vpop.f32.mrf.mxu1  ;;  %2102 = vmax.xlane.f32.xlu1 %v11736_v57 }
 0x2eb   : > { %v2050_v55 = vmul.f32 0.044194173, %v2006_v22  ;;  %v1927_v25 = vpop.f32.mrf.mxu0  ;;  %v11750_v14 = vld [vmem:[%s11678_s25 + $0x40] sm:$0xff] }
 0x2ec   : > { %v2008_v18 = vpop.f32.mrf.mxu1  ;;  %15632 = vst [vmem:[#allocation68_spill] sm:$0xff] %v11750_v14  ;;  %vm15288_vm9 = vcmp.gt.f32.partialorder %v11750_v14, 0.0 }
 0x2ed   : > { %v2009_v39 = vadd.f32 %v2008_v18, %v1911_v58  ;;  %v11745_v26 = vsel %vm2066_vm7, %v2050_v55, -1e+30  ;;  %v1929_v23 = vpop.f32.mrf.mxu0 }
 0x2ee   : > { %v2010_v37 = vpop.f32.mrf.mxu1  ;;  %2104 = vmax.xlane.f32.xlu0 %v11745_v26 }
 0x2ef   : > { %v2051_v62 = vmul.f32 0.044194173, %v2009_v39  ;;  %v1932_v22 = vpop.f32.mrf.mxu0  ;;  %v11759_v37 = vld [vmem:[%s11678_s25 + $0x48] sm:$0xff] }
 0x2f0   : > { %v2013_v48 = vpop.f32.mrf.mxu1  ;;  %15633 = vst [vmem:[#allocation65_spill] sm:$0xff] %v11759_v37  ;;  %vm15287_vm10 = vcmp.gt.f32.partialorder %v11759_v37, 0.0 }
 0x2f1   : > { %v2014_v42 = vadd.f32 %v2013_v48, %v1916_v63  ;;  %v11754_v18 = vsel %vm15289_vm8, %v2051_v62, -1e+30  ;;  %v1934_v58 = vpop.f32.mrf.mxu0 }
 0x2f2   : > { %v2015_v55 = vpop.f32.mrf.mxu1  ;;  %2106 = vmax.xlane.f32.xlu1 %v11754_v18 }
 0x2f3   : > { %v2052_v23 = vmul.f32 0.044194173, %v2014_v42  ;;  %v1935_v39 = vpop.f32.mrf.mxu0  ;;  %v11768_v55 = vld [vmem:[%s11678_s25 + $0x50] sm:$0xff] }
 0x2f4   : > { %v2016_v29 = vpop.f32.mrf.mxu1  ;;  %15634 = vst [vmem:[#allocation60_spill] sm:$0xff] %v11768_v55  ;;  %vm15286_vm11 = vcmp.gt.f32.partialorder %v11768_v55, 0.0 }
 0x2f5   : > { %v2017_v47 = vadd.f32 %v2016_v29, %v1919_v49  ;;  %v11763_v48 = vsel %vm15288_vm9, %v2052_v23, -1e+30  ;;  %v1937_v63 = vpop.f32.mrf.mxu0 }
 0x2f6   : > { %v2018_v62 = vpop.f32.mrf.mxu1  ;;  %2108 = vmax.xlane.f32.xlu0 %v11763_v48 }
 0x2f7   : > { %v2053_v58 = vmul.f32 0.044194173, %v2017_v47  ;;  %v1940_v42 = vpop.f32.mrf.mxu0  ;;  %v11777_v62 = vld [vmem:[%s11678_s25 + $0x58] sm:$0xff] }
 0x2f8   : > { %v2021_v52 = vpop.f32.mrf.mxu1  ;;  %15635 = vst [vmem:[#allocation110_spill] sm:$0xff] %v11777_v62  ;;  %vm15195_vm12 = vcmp.gt.f32.partialorder %v11777_v62, 0.0 }
 0x2f9   : > { %v2022_v60 = vadd.f32 %v2021_v52, %v1924_v46  ;;  %v11772_v29 = vsel %vm15287_vm10, %v2053_v58, -1e+30  ;;  %v1942_v49 = vpop.f32.mrf.mxu0 }
 0x2fa   : > { %v2023_v23 = vpop.f32.mrf.mxu1  ;;  %2110 = vmax.xlane.f32.xlu1 %v11772_v29 }
 0x2fb   : > { %v2054_v63 = vmul.f32 0.044194173, %v2022_v60  ;;  %v1943_v47 = vpop.f32.mrf.mxu0  ;;  %v11786_v23 = vld [vmem:[%s11678_s25 + $0x60] sm:$0xff] }
 0x2fc   : > { %v2024_v11 = vpop.f32.mrf.mxu1  ;;  %15636 = vst [vmem:[#allocation109_spill] sm:$0xff] %v11786_v23  ;;  %vm15194_vm13 = vcmp.gt.f32.partialorder %v11786_v23, 0.0 }
 0x2fd   : > { %v2025_v59 = vadd.f32 %v2024_v11, %v1927_v25  ;;  %v11781_v52 = vsel %vm15286_vm11, %v2054_v63, -1e+30  ;;  %v1945_v46 = vpop.f32.mrf.mxu0  ;;  %v11795_v63 = vld [vmem:[%s11678_s25 + $0x68] sm:$0xff] }
 0x2fe   : > { %v2026_v58 = vpop.f32.mrf.mxu1  ;;  %2112 = vmax.xlane.f32.xlu0 %v11781_v52  ;;  %15637 = vst [vmem:[#allocation106_spill] sm:$0xff] %v11795_v63  ;;  %vm15189_vm14 = vcmp.gt.f32.partialorder %v11795_v63, 0.0 }
 0x2ff   : > { %v2055_v49 = vmul.f32 0.044194173, %v2025_v59 }
 0x300   : > { %v2029_v60 = vpop.f32.mrf.mxu1 }
 0x301   : > { %v2030_v4 = vadd.f32 %v2029_v60, %v1932_v22  ;;  %v11790_v9 = vsel %vm15195_vm12, %v2055_v49, -1e+30  ;;  %v11804_v60 = vld [vmem:[%s11678_s25 + $0x70] sm:$0xff] }
 0x302   : > { %v2031_v11 = vpop.f32.mrf.mxu1  ;;  %2114 = vmax.xlane.f32.xlu1 %v11790_v9  ;;  %15638 = vst [vmem:[#allocation105_spill] sm:$0xff] %v11804_v60  ;;  %vm15188_vm15 = vcmp.gt.f32.partialorder %v11804_v60, 0.0 }
 0x303   : > { %v2056_v25 = vmul.f32 0.044194173, %v2030_v4 }
 0x304   : > { %v2032_v46 = vpop.f32.mrf.mxu1 }
 0x305   : > { %v2033_v59 = vadd.f32 %v2032_v46, %v1935_v39  ;;  %v11799_v58 = vsel %vm15194_vm13, %v2056_v25, -1e+30  ;;  %v11813_v25 = vld [vmem:[%s11678_s25 + $0x78] sm:$0xff] }
 0x306   : > { %v2034_v22 = vpop.f32.mrf.mxu1  ;;  %2116 = vmax.xlane.f32.xlu0 %v11799_v58  ;;  %15639 = vst [vmem:[#allocation71_spill] sm:$0xff] %v11813_v25  ;;  %vm15187_vm0 = vcmp.gt.f32.partialorder %v11813_v25, 0.0 }
 0x307   : > { %v2057_v49 = vmul.f32 0.044194173, %v2033_v59 }
 0x308   : > { %v2037_v11 = vpop.f32.mrf.mxu1 }
 0x309   : > { %v2038_v44 = vadd.f32 %v2037_v11, %v1940_v42  ;;  %v11808_v4 = vsel %vm15189_vm14, %v2057_v49, -1e+30 }
 0x30a   : > { %v2039_v38 = vpop.f32.mrf.mxu1  ;;  %2118 = vmax.xlane.f32.xlu1 %v11808_v4 }
 0x30b   : > { %v2058_v39 = vmul.f32 0.044194173, %v2038_v44 }
 0x30c   : > { %v2040_v46 = vpop.f32.mrf.mxu1 }
 0x30d   : > { %v2041_v22 = vadd.f32 %v2040_v46, %v1943_v47  ;;  %v11817_v59 = vsel %vm15188_vm15, %v2058_v39, -1e+30 }
 0x30e   : > { %v2042_v0 = vpop.f32.mrf.mxu1  ;;  %2120 = vmax.xlane.f32.xlu0 %v11817_v59 }
 0x30f   : > { %v2059_v42 = vmul.f32 0.044194173, %v2041_v22 }
 0x311   : > { %v11823_v38 = vsel %vm15187_vm0, %v2059_v42, -1e+30 }
 0x312   : > { %2122 = vmax.xlane.f32.xlu1 %v11823_v38 }
 0x35f   : > { %v2093_v44 = vpop.xlane.xlu0 %2092 }
 0x360   : > { %v2124_v49 = vsub.f32 %v11691_v36, %v2093_v44 }
 0x362   : > { %v2140_v47 = vmul.f32 1.442695, %v2124_v49 }
 0x363   : > { %v2095_v11 = vpop.xlane.xlu0 %2094 }
 0x364   : > { %9402 = vpow2.f32 %v2140_v47  ;;  %v2125_v39 = vsub.f32 %v11700_v20, %v2095_v11 }
 0x366   : > { %v2142_v0 = vmul.f32 1.442695, %v2125_v39 }
 0x367   : > { %v2097_v46 = vpop.xlane.xlu1 %2096 }
 0x368   : > { %9404 = vpow2.f32 %v2142_v0  ;;  %v2126_v53 = vsub.f32 %v11709_v7, %v2097_v46 }
 0x36a   : > { %v2144_v22 = vmul.f32 1.442695, %v2126_v53 }
 0x36b   : > { %v2099_v24 = vpop.xlane.xlu1 %2098 }
 0x36c   : > { %9406 = vpow2.f32 %v2144_v22  ;;  %v2127_v42 = vsub.f32 %v11718_v8, %v2099_v24 }
 0x36e   : > { %v2146_v6 = vmul.f32 1.442695, %v2127_v42 }
 0x36f   : > { %v2101_v15 = vpop.xlane.xlu0 %2100 }
 0x370   : > { %9408 = vpow2.f32 %v2146_v6  ;;  %v2128_v36 = vsub.f32 %v11727_v61, %v2101_v15 }
 0x371   : > { %v9403_v44 = vpop.eup %9402 }
 0x372   : > { %v2148_v49 = vmul.f32 1.442695, %v2128_v36  ;;  %v11832_v47 = vmul.f32 %v9403_v44, %v11683_v50 }
 0x373   : > { %v2103_v20 = vpop.xlane.xlu1 %2102 }
 0x374   : > { %9410 = vpow2.f32 %v2148_v49  ;;  %v2129_v11 = vsub.f32 %v11736_v57, %v2103_v20  ;;  %2188 = vadd.xlane.f32.xlu0 %v11832_v47 }
 0x375   : > { %v9405_v53 = vpop.eup %9404 }
 0x376   : > { %v2150_v7 = vmul.f32 1.442695, %v2129_v11  ;;  %v11837_v24 = vmul.f32 %v9405_v53, %v11687_v34  ;;  %v12132_v34 = vld [vmem:[#allocation7 + $0x508] sm:$0xff] }
 0x377   : > { %v2105_v8 = vpop.xlane.xlu0 %2104  ;;  %15678 = vst [vmem:[#allocation76_spill] sm:$0xff] %v12132_v34 }
 0x378   : > { %9412 = vpow2.f32 %v2150_v7  ;;  %v2130_v15 = vsub.f32 %v11745_v26, %v2105_v8  ;;  %2190 = vadd.xlane.f32.xlu1 %v11837_v24 }
 0x379   : > { %v9407_v6 = vpop.eup %9406 }
 0x37a   : > { %v2152_v61 = vmul.f32 1.442695, %v2130_v15  ;;  %v11842_v39 = vmul.f32 %v9407_v6, %v11696_v5  ;;  %v12130_v5 = vld [vmem:[#allocation7 + $0x128] sm:$0xff] }
 0x37b   : > { %v2107_v0 = vpop.xlane.xlu1 %2106  ;;  %15677 = vst [vmem:[#allocation80_spill] sm:$0xff] %v12130_v5 }
 0x37c   : > { %9414 = vpow2.f32 %v2152_v61  ;;  %v2131_v57 = vsub.f32 %v11754_v18, %v2107_v0  ;;  %2192 = vadd.xlane.f32.xlu0 %v11842_v39 }
 0x37d   : > { %v9409_v46 = vpop.eup %9408 }
 0x37e   : > { %v2154_v22 = vmul.f32 1.442695, %v2131_v57  ;;  %v11847_v42 = vmul.f32 %v9409_v46, %v11705_v31  ;;  %v12128_v31 = vld [vmem:[#allocation7 + $0x108] sm:$0xff] }
 0x37f   : > { %v2109_v36 = vpop.xlane.xlu0 %2108 }
 0x380   : > { %9416 = vpow2.f32 %v2154_v22  ;;  %v2132_v26 = vsub.f32 %v11763_v48, %v2109_v36  ;;  %2194 = vadd.xlane.f32.xlu1 %v11847_v42 }
 0x381   : > { %v9411_v44 = vpop.eup %9410 }
 0x382   : > { %v2156_v49 = vmul.f32 1.442695, %v2132_v26  ;;  %v11852_v20 = vmul.f32 %v9411_v44, %v11714_v16 }
 0x383   : > { %v2111_v11 = vpop.xlane.xlu1 %2110 }
 0x384   : > { %9418 = vpow2.f32 %v2156_v49  ;;  %v2133_v18 = vsub.f32 %v11772_v29, %v2111_v11  ;;  %2196 = vadd.xlane.f32.xlu0 %v11852_v20 }
 0x385   : > { %v9413_v53 = vpop.eup %9412 }
 0x386   : > { %v2158_v7 = vmul.f32 1.442695, %v2133_v18  ;;  %v11857_v8 = vmul.f32 %v9413_v53, %v11723_v32  ;;  %v3130_v32 = vld [vmem:[#allocation7 + $0x520] sm:$0xff] }
 0x387   : > { %v2113_v15 = vpop.xlane.xlu0 %2112 }
 0x388   : > { %9420 = vpow2.f32 %v2158_v7  ;;  %v2134_v48 = vsub.f32 %v11781_v52, %v2113_v15  ;;  %2198 = vadd.xlane.f32.xlu1 %v11857_v8 }
 0x389   : > { %v9415_v6 = vpop.eup %9414 }
 0x38a   : > { %v2160_v61 = vmul.f32 1.442695, %v2134_v48  ;;  %v11862_v0 = vmul.f32 %v9415_v6, %v11732_v3  ;;  %v3126_v3 = vld [vmem:[#allocation7 + $0x500] sm:$0xff] }
 0x38b   : > { %v2115_v57 = vpop.xlane.xlu1 %2114 }
 0x38c   : > { %9422 = vpow2.f32 %v2160_v61  ;;  %v2135_v29 = vsub.f32 %v11790_v9, %v2115_v57  ;;  %2200 = vadd.xlane.f32.xlu0 %v11862_v0 }
 0x38d   : > { %v9417_v46 = vpop.eup %9416 }
 0x38e   : > { %v2162_v22 = vmul.f32 1.442695, %v2135_v29  ;;  %v11867_v36 = vmul.f32 %v9417_v46, %v11741_v28  ;;  %v3002_v28 = vld [vmem:[#allocation7 + $0x120] sm:$0xff] }
 0x38f   : > { %v2117_v26 = vpop.xlane.xlu0 %2116 }
 0x390   : > { %9424 = vpow2.f32 %v2162_v22  ;;  %v2136_v52 = vsub.f32 %v11799_v58, %v2117_v26  ;;  %2202 = vadd.xlane.f32.xlu1 %v11867_v36 }
 0x391   : > { %v9419_v44 = vpop.eup %9418 }
 0x392   : > { %v2164_v49 = vmul.f32 1.442695, %v2136_v52  ;;  %v11872_v11 = vmul.f32 %v9419_v44, %v11750_v14 }
 0x393   : > { %v2119_v18 = vpop.xlane.xlu1 %2118 }
 0x394   : > { %9426 = vpow2.f32 %v2164_v49  ;;  %v2137_v9 = vsub.f32 %v11808_v4, %v2119_v18  ;;  %2204 = vadd.xlane.f32.xlu0 %v11872_v11 }
 0x395   : > { %v9421_v53 = vpop.eup %9420 }
 0x396   : > { %v2166_v7 = vmul.f32 1.442695, %v2137_v9  ;;  %v11877_v15 = vmul.f32 %v9421_v53, %v11759_v37  ;;  %v3134_v37 = vld [vmem:[#allocation7 + $0x540] sm:$0xff] }
 0x397   : > { %v2121_v48 = vpop.xlane.xlu0 %2120 }
 0x398   : > { %9428 = vpow2.f32 %v2166_v7  ;;  %v2138_v58 = vsub.f32 %v11817_v59, %v2121_v48  ;;  %2206 = vadd.xlane.f32.xlu1 %v11877_v15  ;;  %v3022_v7 = vld [vmem:[#allocation7 + $0x1c0] sm:$0xff] }
 0x399   : > { %v9423_v6 = vpop.eup %9422  ;;  %v3026_v48 = vld [vmem:[#allocation7 + $0x1e0] sm:$0xff] }
 0x39a   : > { %v2168_v61 = vmul.f32 1.442695, %v2138_v58  ;;  %v11882_v57 = vmul.f32 %v9423_v6, %v11768_v55  ;;  %v3150_v58 = vld [vmem:[#allocation7 + $0x5c0] sm:$0xff]  ;;  %v8605_v6 = vcombine.low %v3022_v7, %v3026_v48 }
 0x39b   : > { %v2123_v29 = vpop.xlane.xlu1 %2122  ;;  %v3006_v55 = vld [vmem:[#allocation7 + $0x140] sm:$0xff] }
 0x39c   : > { %9430 = vpow2.f32 %v2168_v61  ;;  %v2139_v4 = vsub.f32 %v11823_v38, %v2123_v29  ;;  %2208 = vadd.xlane.f32.xlu0 %v11882_v57  ;;  %v8606_v61 = vcombine.high %v3022_v7, %v3026_v48  ;;  %v3154_v29 = vld [vmem:[#allocation7 + $0x5e0] sm:$0xff] }
 0x39d   : > { %v9425_v46 = vpop.eup %9424 }
 0x39e   : > { %v2170_v22 = vmul.f32 1.442695, %v2139_v4  ;;  %v11887_v26 = vmul.f32 %v9425_v46, %v11777_v62  ;;  %v8733_v4 = vcombine.low %v3150_v58, %v3154_v29  ;;  %v8734_v46 = vcombine.high %v3150_v58, %v3154_v29  ;;  %4544 = vmatprep.subr.bf16.mxu0 %v8606_v61 }
 0x3a0   : > { %9432 = vpow2.f32 %v2170_v22  ;;  %2210 = vadd.xlane.f32.xlu1 %v11887_v26  ;;  %4657 = vmatprep.subr.bf16.mxu1 %v8734_v46 }
 0x3a1   : > { %v9427_v59 = vpop.eup %9426 }
 0x3a2   : > { %v11891_v52 = vmul.f32 %v9427_v59, %v11786_v23 }
 0x3a4   : > { %2212 = vadd.xlane.f32.xlu0 %v11891_v52 }
 0x3a5   : > { %v9429_v44 = vpop.eup %9428 }
 0x3a6   : > { %v11895_v49 = vmul.f32 %v9429_v44, %v11795_v63  ;;  %v3146_v63 = vld [vmem:[#allocation7 + $0x5a0] sm:$0xff] }
 0x3a8   : > { %2214 = vadd.xlane.f32.xlu1 %v11895_v49 }
 0x3a9   : > { %v9431_v38 = vpop.eup %9430 }
 0x3aa   : > { %v11899_v18 = vmul.f32 %v9431_v38, %v11804_v60 }
 0x3ac   : > { %2216 = vadd.xlane.f32.xlu0 %v11899_v18 }
 0x3ad   : > { %v9433_v9 = vpop.eup %9432 }
 0x3ae   : > { %v11903_v53 = vmul.f32 %v9433_v9, %v11813_v25 }
 0x3b0   : > { %2218 = vadd.xlane.f32.xlu1 %v11903_v53 }
 0x3fd   : > { %v2189_v22 = vpop.xlane.xlu0 %2188 }
 0x3fe   : > { %vm2220_vm0 = vcmp.gt.f32.partialorder %v2189_v22, 0.0 }
 0x3ff   : > { %v2236_v59 = vsel %vm2220_vm0, %v2189_v22, 1.0  ;;  %v3014_v22 = vld [vmem:[#allocation7 + $0x180] sm:$0xff] }
 0x400   : > { %9434 = vrcp.f32 %v2236_v59 }
 0x401   : > { %v2191_v44 = vpop.xlane.xlu1 %2190 }
 0x402   : > { %vm2221_vm15 = vcmp.gt.f32.partialorder %v2191_v44, 0.0 }
 0x403   : > { %v2237_v38 = vsel %vm2221_vm15, %v2191_v44, 1.0 }
 0x404   : > { %9436 = vrcp.f32 %v2237_v38  ;;  %v3018_v38 = vld [vmem:[#allocation7 + $0x1a0] sm:$0xff] }
 0x405   : > { %v2193_v9 = vpop.xlane.xlu0 %2192  ;;  %v8598_v23 = vcombine.high %v3014_v22, %v3018_v38 }
 0x406   : > { %vm2222_vm14 = vcmp.gt.f32.partialorder %v2193_v9, 0.0 }
 0x407   : > { %v2238_v25 = vsel %vm2222_vm14, %v2193_v9, 1.0  ;;  %v3142_v9 = vld [vmem:[#allocation7 + $0x580] sm:$0xff] }
 0x408   : > { %9438 = vrcp.f32 %v2238_v25  ;;  %v8726_v62 = vcombine.high %v3142_v9, %v3146_v63 }
 0x409   : > { %v2195_v60 = vpop.xlane.xlu1 %2194 }
 0x40a   : > { %vm2223_vm13 = vcmp.gt.f32.partialorder %v2195_v60, 0.0 }
 0x40b   : > { %v2239_v7 = vsel %vm2223_vm13, %v2195_v60, 1.0 }
 0x40c   : > { %9440 = vrcp.f32 %v2239_v7 }
 0x40d   : > { %v2197_v48 = vpop.xlane.xlu0 %2196  ;;  %v9435_v58 = vpop.eup %9434 }
 0x40e   : > { %vm2224_vm12 = vcmp.gt.f32.partialorder %v2197_v48, 0.0  ;;  %v2268_v59 = vmul.f32 %v9435_v58, %v11832_v47  ;;  %v3138_v47 = vld [vmem:[#allocation7 + $0x560] sm:$0xff] }
 0x40f   : > { %v2240_v61 = vsel %vm2224_vm12, %v2197_v48, 1.0  ;;  %v3010_v48 = vld [vmem:[#allocation7 + $0x160] sm:$0xff] }
 0x410   : > { %9442 = vrcp.f32 %v2240_v61  ;;  %v8597_v61 = vcombine.low %v3014_v22, %v3018_v38  ;;  %v8710_v38 = vcombine.high %v3126_v3, %v3130_v32 }
 0x411   : > { %v9437_v29 = vpop.eup %9436  ;;  %v2199_v46 = vpop.xlane.xlu1 %2198 }
 0x412   : > { %v2269_v44 = vmul.f32 %v9437_v29, %v11837_v24  ;;  %vm2225_vm15 = vcmp.gt.f32.partialorder %v2199_v46, 0.0  ;;  %v8725_v29 = vcombine.low %v3142_v9, %v3146_v63  ;;  %v8589_v63 = vcombine.low %v3006_v55, %v3010_v48  ;;  %v2990_v9 = vld [vmem:[#allocation7 + $0xc0] sm:$0xff] }
 0x413   : > { %v2241_v25 = vsel %vm2225_vm15, %v2199_v46, 1.0 }
 0x414   : > { %9444 = vrcp.f32 %v2241_v25  ;;  %v2284_v60 = vpack.c.bf16 %v2269_v44, %v2268_v59  ;;  %v8590_v44 = vcombine.high %v3006_v55, %v3010_v48  ;;  %v8718_v25 = vcombine.high %v3134_v37, %v3138_v47 }
 0x415   : > { %v2201_v7 = vpop.xlane.xlu0 %2200  ;;  %v9439_v58 = vpop.eup %9438 }
 0x416   : > { %vm2226_vm12 = vcmp.gt.f32.partialorder %v2201_v7, 0.0  ;;  %2357 = vmatmul.mubr.bf16.vlgmr.msra.gmra.mxu0 %v2284_v60  ;;  %2470 = vmatmul.mubr.bf16.vlgmr.msra.gmra.mxu1 %v2284_v60  ;;  %v2998_v60 = vld [vmem:[#allocation7 + $0x100] sm:$0xff]  ;;  %v2270_v14 = vmul.f32 %v9439_v58, %v11842_v39 }
 0x417   : > { %v2242_v24 = vsel %vm2226_vm12, %v2201_v7, 1.0  ;;  %2366 = vmatprep.mubr.bf16.mxu0 %v15602_v27  ;;  %2479 = vmatprep.mubr.bf16.mxu1 %v15602_v27  ;;  %v8582_v22 = vcombine.high %v2998_v60, %v3002_v28  ;;  %v2994_v39 = vld [vmem:[#allocation7 + $0xe0] sm:$0xff] }
 0x418   : > { %4545 = vmatpush1.bf16.msra.mxu0 %v8605_v6  ;;  %4658 = vmatpush1.bf16.msra.mxu1 %v8733_v4  ;;  %9446 = vrcp.f32 %v2242_v24  ;;  %v3122_v58 = vld [vmem:[#allocation7 + $0x4e0] sm:$0xff] }
 0x419   : > { %v9441_v46 = vpop.eup %9440  ;;  %v2203_v59 = vpop.xlane.xlu1 %2202  ;;  %4546 = vmatprep.subr.bf16.mxu0 %v8598_v23  ;;  %4659 = vmatprep.subr.bf16.mxu1 %v8726_v62  ;;  %v8717_v23 = vcombine.low %v3134_v37, %v3138_v47  ;;  %v8709_v37 = vcombine.low %v3126_v3, %v3130_v32  ;;  %v8574_v47 = vcombine.high %v2990_v9, %v2994_v39 }
 0x41a   : > { %vm2227_vm13 = vcmp.gt.f32.partialorder %v2203_v59, 0.0  ;;  %v2271_v7 = vmul.f32 %v9441_v46, %v11847_v42  ;;  %v3118_v42 = vld [vmem:[#allocation7 + $0x4c0] sm:$0xff]  ;;  %v8573_v32 = vcombine.low %v2990_v9, %v2994_v39 }
 0x41b   : > { %v2243_v6 = vsel %vm2227_vm13, %v2203_v59, 1.0  ;;  %v8701_v3 = vcombine.low %v3118_v42, %v3122_v58 }
 0x41c   : > { %9448 = vrcp.f32 %v2243_v6  ;;  %v2285_v4 = vpack.c.bf16 %v2271_v7, %v2270_v14  ;;  %4547 = vmatpush1.bf16.msra.mxu0 %v8597_v61  ;;  %4660 = vmatpush1.bf16.msra.mxu1 %v8725_v29  ;;  %v8581_v14 = vcombine.low %v2998_v60, %v3002_v28  ;;  %v8702_v61 = vcombine.high %v3118_v42, %v3122_v58  ;;  %v2982_v29 = vld [vmem:[#allocation7 + $0x80] sm:$0xff] }
 0x41d   : > { %v2205_v62 = vpop.xlane.xlu0 %2204  ;;  %4548 = vmatprep.subr.bf16.mxu0 %v8590_v44  ;;  %4661 = vmatprep.subr.bf16.mxu1 %v8718_v25  ;;  %v9443_v24 = vpop.eup %9442  ;;  %v2986_v25 = vld [vmem:[#allocation7 + $0xa0] sm:$0xff] }
 0x41e   : > { %vm2228_vm14 = vcmp.gt.f32.partialorder %v2205_v62, 0.0  ;;  %2367 = vmatmul.mubr.bf16.gmra.mxu0 %v2285_v4  ;;  %2480 = vmatmul.mubr.bf16.gmra.mxu1 %v2285_v4  ;;  %v2272_v59 = vmul.f32 %v9443_v24, %v11852_v20  ;;  %v3110_v7 = vld [vmem:[#allocation7 + $0x480] sm:$0xff]  ;;  %v8565_v9 = vcombine.low %v2982_v29, %v2986_v25 }
 0x41f   : > { %v2244_v46 = vsel %vm2228_vm14, %v2205_v62, 1.0  ;;  %2376 = vmatprep.mubr.bf16.mxu0 %v15602_v27  ;;  %2489 = vmatprep.mubr.bf16.mxu1 %v15602_v27  ;;  %v3114_v6 = vld [vmem:[#allocation7 + $0x4a0] sm:$0xff] }
 0x420   : > { %4549 = vmatpush1.bf16.msra.mxu0 %v8589_v63  ;;  %4662 = vmatpush1.bf16.msra.mxu1 %v8717_v23  ;;  %9450 = vrcp.f32 %v2244_v46  ;;  %v8566_v63 = vcombine.high %v2982_v29, %v2986_v25  ;;  %v8694_v23 = vcombine.high %v3110_v7, %v3114_v6  ;;  %v2974_v62 = vld [vmem:[#allocation7 + $0x40] sm:$0xff]  ;;  %v8693_v39 = vcombine.low %v3110_v7, %v3114_v6 }
 0x421   : > { %v9445_v55 = vpop.eup %9444  ;;  %v2207_v48 = vpop.xlane.xlu1 %2206  ;;  %4550 = vmatprep.subr.bf16.mxu0 %v8582_v22  ;;  %4663 = vmatprep.subr.bf16.mxu1 %v8710_v38  ;;  %v2978_v20 = vld [vmem:[#allocation7 + $0x60] sm:$0xff] }
 0x422   : > { %vm2229_vm0 = vcmp.gt.f32.partialorder %v2207_v48, 0.0  ;;  %v2273_v44 = vmul.f32 %v9445_v55, %v11857_v8  ;;  %v3102_v8 = vld [vmem:[#allocation7 + $0x440] sm:$0xff]  ;;  %v8558_v46 = vcombine.high %v2974_v62, %v2978_v20  ;;  %v8557_v25 = vcombine.low %v2974_v62, %v2978_v20 }
 0x423   : > { %v2245_v4 = vsel %vm2229_vm0, %v2207_v48, 1.0  ;;  %v3106_v22 = vld [vmem:[#allocation7 + $0x460] sm:$0xff] }
 0x424   : > { %9452 = vrcp.f32 %v2245_v4  ;;  %v2286_v28 = vpack.c.bf16 %v2273_v44, %v2272_v59  ;;  %4551 = vmatpush1.bf16.msra.mxu0 %v8581_v14  ;;  %4664 = vmatpush1.bf16.msra.mxu1 %v8709_v37  ;;  %v8686_v14 = vcombine.high %v3102_v8, %v3106_v22  ;;  %v2966_v37 = vld [vmem:[#allocation7] sm:$0xff]  ;;  %v8685_v7 = vcombine.low %v3102_v8, %v3106_v22 }
 0x425   : > { %v2209_v60 = vpop.xlane.xlu0 %2208  ;;  %4552 = vmatprep.subr.bf16.mxu0 %v8574_v47  ;;  %4665 = vmatprep.subr.bf16.mxu1 %v8702_v61  ;;  %v9447_v38 = vpop.eup %9446  ;;  %v2970_v47 = vld [vmem:[#allocation7 + $0x20] sm:$0xff] }
 0x426   : > { %vm2230_vm15 = vcmp.gt.f32.partialorder %v2209_v60, 0.0  ;;  %2377 = vmatmul.mubr.bf16.gmra.mxu0 %v2286_v28  ;;  %2490 = vmatmul.mubr.bf16.gmra.mxu1 %v2286_v28  ;;  %v2274_v55 = vmul.f32 %v9447_v38, %v11862_v0  ;;  %v3094_v61 = vld [vmem:[#allocation7 + $0x400] sm:$0xff]  ;;  %v8550_v4 = vcombine.high %v2966_v37, %v2970_v47 }
 0x427   : > { %v2246_v24 = vsel %vm2230_vm15, %v2209_v60, 1.0  ;;  %2386 = vmatprep.mubr.bf16.mxu0 %v15602_v27  ;;  %2499 = vmatprep.mubr.bf16.mxu1 %v15602_v27  ;;  %v3098_v59 = vld [vmem:[#allocation7 + $0x420] sm:$0xff] }
 0x428   : > { %4553 = vmatpush1.bf16.msra.mxu0 %v8573_v32  ;;  %4666 = vmatpush1.bf16.msra.mxu1 %v8701_v3  ;;  %9454 = vrcp.f32 %v2246_v24  ;;  %v8678_v28 = vcombine.high %v3094_v61, %v3098_v59  ;;  %v8549_v32 = vcombine.low %v2966_v37, %v2970_v47  ;;  %v8677_v3 = vcombine.low %v3094_v61, %v3098_v59 }
 0x429   : > { %v9449_v42 = vpop.eup %9448  ;;  %v2211_v58 = vpop.xlane.xlu1 %2210  ;;  %4554 = vmatprep.subr.bf16.mxu0 %v8566_v63  ;;  %4667 = vmatprep.subr.bf16.mxu1 %v8694_v23 }
 0x42a   : > { %vm2231_vm12 = vcmp.gt.f32.partialorder %v2211_v58, 0.0  ;;  %v2275_v48 = vmul.f32 %v9449_v42, %v11867_v36 }
 0x42b   : > { %v2247_v44 = vsel %vm2231_vm12, %v2211_v58, 1.0 }
 0x42c   : > { %9456 = vrcp.f32 %v2247_v44  ;;  %v2287_v29 = vpack.c.bf16 %v2275_v48, %v2274_v55  ;;  %4555 = vmatpush1.bf16.msra.mxu0 %v8565_v9  ;;  %4668 = vmatpush1.bf16.msra.mxu1 %v8693_v39  ;;  %v3086_v44 = vld [vmem:[#allocation7 + $0x3c0] sm:$0xff] }
 0x42d   : > { %v2213_v6 = vpop.xlane.xlu0 %2212  ;;  %4556 = vmatprep.subr.bf16.mxu0 %v8558_v46  ;;  %4669 = vmatprep.subr.bf16.mxu1 %v8686_v14  ;;  %v9451_v0 = vpop.eup %9450 }
 0x42e   : > { %vm2232_vm13 = vcmp.gt.f32.partialorder %v2213_v6, 0.0  ;;  %2387 = vmatmul.mubr.bf16.gmra.mxu0 %v2287_v29  ;;  %2500 = vmatmul.mubr.bf16.gmra.mxu1 %v2287_v29  ;;  %v2276_v23 = vmul.f32 %v9451_v0, %v11872_v11  ;;  %v3214_v29 = vld [vmem:[#allocation7 + $0x7c0] sm:$0xff] }
 0x42f   : > { %v2248_v36 = vsel %vm2232_vm13, %v2213_v6, 1.0  ;;  %2396 = vmatprep.mubr.bf16.mxu0 %v15602_v27  ;;  %2509 = vmatprep.mubr.bf16.mxu1 %v15602_v27  ;;  %v3082_v0 = vld [vmem:[#allocation7 + $0x3a0] sm:$0xff] }
 0x430   : > { %4557 = vmatpush1.bf16.msra.mxu0 %v8557_v25  ;;  %4670 = vmatpush1.bf16.msra.mxu1 %v8685_v7  ;;  %9458 = vrcp.f32 %v2248_v36  ;;  %v3218_v25 = vld [vmem:[#allocation7 + $0x7e0] sm:$0xff] }
 0x431   : > { %v9453_v60 = vpop.eup %9452  ;;  %v2215_v63 = vpop.xlane.xlu1 %2214  ;;  %4558 = vmatprep.subr.bf16.mxu0 %v8550_v4  ;;  %4671 = vmatprep.subr.bf16.mxu1 %v8678_v28  ;;  %v8797_v6 = vcombine.low %v3214_v29, %v3218_v25  ;;  %v8798_v4 = vcombine.high %v3214_v29, %v3218_v25  ;;  %v3078_v28 = vld [vmem:[#allocation7 + $0x380] sm:$0xff] }
 0x432   : > { %vm2233_vm14 = vcmp.gt.f32.partialorder %v2215_v63, 0.0  ;;  %v2277_v62 = vmul.f32 %v9453_v60, %v11877_v15  ;;  %v8662_v36 = vcombine.high %v3078_v28, %v3082_v0  ;;  %v3174_v29 = vld [vmem:[#allocation7 + $0x680] sm:$0xff] }
 0x433   : > { %v2249_v20 = vsel %vm2233_vm14, %v2215_v63, 1.0  ;;  %v3070_v63 = vld [vmem:[#allocation7 + $0x340] sm:$0xff] }
 0x434   : > { %9460 = vrcp.f32 %v2249_v20  ;;  %v2288_v8 = vpack.c.bf16 %v2277_v62, %v2276_v23  ;;  %4559 = vmatpush1.bf16.msra.mxu0 %v8549_v32  ;;  %4672 = vmatpush1.bf16.msra.mxu1 %v8677_v3  ;;  %v8661_v32 = vcombine.low %v3078_v28, %v3082_v0  ;;  %v3074_v23 = vld [vmem:[#allocation7 + $0x360] sm:$0xff] }
 0x435   : > { %v2217_v22 = vpop.xlane.xlu0 %2216  ;;  %v9455_v38 = vpop.eup %9454  ;;  %4673 = vmatprep.subr.bf16.mxu1 %v8798_v4  ;;  %v3198_v62 = vld [vmem:[#allocation7 + $0x740] sm:$0xff]  ;;  %v8654_v20 = vcombine.high %v3070_v63, %v3074_v23 }
 0x436   : > { %vm2234_vm0 = vcmp.gt.f32.partialorder %v2217_v22, 0.0  ;;  %2397 = vmatmul.mubr.bf16.gmra.mxu0 %v2288_v8  ;;  %2510 = vmatmul.mubr.bf16.gmra.mxu1 %v2288_v8  ;;  %v2278_v11 = vmul.f32 %v9455_v38, %v11882_v57  ;;  %v3202_v8 = vld [vmem:[#allocation7 + $0x760] sm:$0xff] }
 0x437   : > { %v2250_v24 = vsel %vm2234_vm0, %v2217_v22, 1.0  ;;  %2406 = vmatprep.mubr.bf16.mxu0 %v15602_v27  ;;  %2519 = vmatprep.mubr.bf16.mxu1 %v15602_v27  ;;  %v8653_v22 = vcombine.low %v3070_v63, %v3074_v23  ;;  %v8781_v38 = vcombine.low %v3198_v62, %v3202_v8  ;;  %v3178_v25 = vld [vmem:[#allocation7 + $0x6a0] sm:$0xff] }
 0x438   : > { %9462 = vrcp.f32 %v2250_v24  ;;  %4674 = vmatpush2.bf16.msra.mxu1 %v8797_v6  ;;  %v8782_v24 = vcombine.high %v3198_v62, %v3202_v8  ;;  %v8757_v6 = vcombine.low %v3174_v29, %v3178_v25  ;;  %v8758_v4 = vcombine.high %v3174_v29, %v3178_v25  ;;  %v3038_v28 = vld [vmem:[#allocation7 + $0x240] sm:$0xff]  ;;  %v15644_v29 = vld [vmem:[#allocation75_spill] sm:$0xff] }
 0x439   : > { %v9457_v9 = vpop.eup %9456  ;;  %v2219_v39 = vpop.xlane.xlu1 %2218  ;;  %v3042_v0 = vld [vmem:[#allocation7 + $0x260] sm:$0xff] }
 0x43a   : > { %vm2235_vm15 = vcmp.gt.f32.partialorder %v2219_v39, 0.0  ;;  %v2279_v15 = vmul.f32 %v9457_v9, %v11887_v26  ;;  %v3062_v9 = vld [vmem:[#allocation7 + $0x300] sm:$0xff] }
 0x43b   : > { %v2251_v42 = vsel %vm2235_vm15, %v2219_v39, 1.0  ;;  %v3066_v39 = vld [vmem:[#allocation7 + $0x320] sm:$0xff] }
 0x43c   : > { %9464 = vrcp.f32 %v2251_v42  ;;  %v2289_v58 = vpack.c.bf16 %v2279_v15, %v2278_v11  ;;  %v3190_v11 = vld [vmem:[#allocation7 + $0x700] sm:$0xff]  ;;  %v8646_v15 = vcombine.high %v3062_v9, %v3066_v39 }
 0x43d   : > { %v9459_v46 = vpop.eup %9458  ;;  %v3194_v42 = vld [vmem:[#allocation7 + $0x720] sm:$0xff] }
 0x43e   : > { %2407 = vmatmul.mubr.bf16.gmra.mxu0 %v2289_v58  ;;  %2520 = vmatmul.mubr.bf16.gmra.mxu1 %v2289_v58  ;;  %v2280_v37 = vmul.f32 %v9459_v46, %v11891_v52  ;;  %v3090_v52 = vld [vmem:[#allocation7 + $0x3e0] sm:$0xff]  ;;  %v8645_v58 = vcombine.low %v3062_v9, %v3066_v39  ;;  %v8773_v46 = vcombine.low %v3190_v11, %v3194_v42  ;;  %v11936_v9 = vld [vmem:[#allocation7 + $0x1c8] sm:$0xff] }
 0x43f   : > { %2416 = vmatprep.mubr.bf16.mxu0 %v15602_v27  ;;  %2529 = vmatprep.mubr.bf16.mxu1 %v15602_v27  ;;  %v8669_v7 = vcombine.low %v3086_v44, %v3090_v52  ;;  %v3030_v63 = vld [vmem:[#allocation7 + $0x200] sm:$0xff]  ;;  %v11938_v39 = vld [vmem:[#allocation7 + $0x1e8] sm:$0xff] }
 0x440   : > { %v3034_v23 = vld [vmem:[#allocation7 + $0x220] sm:$0xff] }
 0x441   : > { %v9461_v14 = vpop.eup %9460  ;;  %v3158_v62 = vld [vmem:[#allocation7 + $0x600] sm:$0xff] }
 0x442   : > { %v2281_v55 = vmul.f32 %v9461_v14, %v11895_v49  ;;  %v8670_v49 = vcombine.high %v3086_v44, %v3090_v52  ;;  %v8774_v14 = vcombine.high %v3190_v11, %v3194_v42  ;;  %v3046_v44 = vld [vmem:[#allocation7 + $0x280] sm:$0xff]  ;;  %v11940_v11 = vld [vmem:[#allocation7 + $0x5c8] sm:$0xff] }
 0x443   : > { %v3050_v52 = vld [vmem:[#allocation7 + $0x2a0] sm:$0xff]  ;;  %v11944_v42 = vld [vmem:[#allocation7 + $0x5e8] sm:$0xff] }
 0x444   : > { %v2290_v48 = vpack.c.bf16 %v2281_v55, %v2280_v37  ;;  %4560 = vmatprep.subr.bf16.mxu0 %v8670_v49  ;;  %v3054_v37 = vld [vmem:[#allocation7 + $0x2c0] sm:$0xff]  ;;  %v8630_v49 = vcombine.high %v3046_v44, %v3050_v52 }
 0x445   : > { %v9463_v57 = vpop.eup %9462  ;;  %4561 = vmatpush2.bf16.msra.mxu0 %v8669_v7  ;;  %v3058_v55 = vld [vmem:[#allocation7 + $0x2e0] sm:$0xff]  ;;  %v8629_v7 = vcombine.low %v3046_v44, %v3050_v52  ;;  %v15642_v44 = vld [vmem:[#allocation79_spill] sm:$0xff] }
 0x446   : > { %2417 = vmatmul.mubr.bf16.gmra.mxu0 %v2290_v48  ;;  %2530 = vmatmul.mubr.bf16.gmra.mxu1 %v2290_v48  ;;  %v2282_v47 = vmul.f32 %v9463_v57, %v11899_v18  ;;  %v3206_v18 = vld [vmem:[#allocation7 + $0x780] sm:$0xff]  ;;  %v8638_v57 = vcombine.high %v3054_v37, %v3058_v55  ;;  %v15643_v52 = vld [vmem:[#allocation95_spill] sm:$0xff] }
 0x447   : > { %2426 = vmatprep.mubr.bf16.mxu0 %v15602_v27  ;;  %2539 = vmatprep.mubr.bf16.mxu1 %v15602_v27  ;;  %v3182_v48 = vld [vmem:[#allocation7 + $0x6c0] sm:$0xff] }
 0x448   : > { %4562 = vmatprep.subr.bf16.mxu0 %v8662_v36  ;;  %v8622_v36 = vcombine.high %v3038_v28, %v3042_v0  ;;  %v3162_v8 = vld [vmem:[#allocation7 + $0x620] sm:$0xff] }
 0x449   : > { %v9465_v26 = vpop.eup %9464  ;;  %4563 = vmatpush2.bf16.msra.mxu0 %v8661_v32  ;;  %v8621_v32 = vcombine.low %v3038_v28, %v3042_v0  ;;  %v15646_v25 = vld [vmem:[#allocation89_spill] sm:$0xff]  ;;  %v15648_v28 = vld [vmem:[#allocation86_spill] sm:$0xff] }
 0x44a   : > { %v2283_v61 = vmul.f32 %v9465_v26, %v11903_v53  ;;  %v3210_v53 = vld [vmem:[#allocation7 + $0x7a0] sm:$0xff]  ;;  %4564 = vmatprep.subr.bf16.mxu0 %v8654_v20  ;;  %v8614_v20 = vcombine.high %v3030_v63, %v3034_v23  ;;  %v12042_v0 = vadd.f32 %v15648_v28, %v11526_v43 }
 0x44b   : > { %v8789_v3 = vcombine.low %v3206_v18, %v3210_v53  ;;  %v8790_v60 = vcombine.high %v3206_v18, %v3210_v53  ;;  %v3186_v26 = vld [vmem:[#allocation7 + $0x6e0] sm:$0xff] }
 0x44c   : > { %v2291_v59 = vpack.c.bf16 %v2283_v61, %v2282_v47  ;;  %v8637_v47 = vcombine.low %v3054_v37, %v3058_v55  ;;  %v8765_v61 = vcombine.low %v3182_v48, %v3186_v26  ;;  %v3166_v18 = vld [vmem:[#allocation7 + $0x640] sm:$0xff] }
 0x44d   : > { %4675 = vmatprep.subr.bf16.mxu1 %v8790_v60  ;;  %4565 = vmatpush2.bf16.msra.mxu0 %v8653_v22  ;;  %v3170_v53 = vld [vmem:[#allocation7 + $0x660] sm:$0xff]  ;;  %v8613_v22 = vcombine.low %v3030_v63, %v3034_v23 }
 0x44e   : > { %2427 = vmatmul.mubr.bf16.gmra.mxu0 %v2291_v59  ;;  %2540 = vmatmul.mubr.bf16.gmra.mxu1 %v2291_v59  ;;  %v8766_v59 = vcombine.high %v3182_v48, %v3186_v26  ;;  %v8750_v60 = vcombine.high %v3166_v18, %v3170_v53  ;;  %v15640_v37 = vld [vmem:[#allocation93_spill] sm:$0xff]  ;;  %v11958_v48 = vadd.f32 %v11314_v56, %v11532_v54  ;;  %v15653_v63 = vld [vmem:[#allocation28_spill] sm:$0xff] }
 0x44f   : > { %4676 = vmatpush2.bf16.msra.mxu1 %v8789_v3  ;;  %4566 = vmatprep.subr.bf16.mxu0 %v8646_v15  ;;  %v8749_v3 = vcombine.low %v3166_v18, %v3170_v53  ;;  %v8608_v15 = vcombine.high %v11936_v9, %v11938_v39  ;;  %v11954_v55 = vadd.f32 %v15640_v37, %v11526_v43  ;;  %v15649_v18 = vld [vmem:[#allocation20_spill] sm:$0xff]  ;;  %v15651_v53 = vld [vmem:[#allocation33_spill] sm:$0xff]  ;;  %v15659_v37 = vld [vmem:[#allocation27_spill] sm:$0xff] }
 0x450   : > { %4677 = vmatprep.subr.bf16.mxu1 %v8782_v24  ;;  %v8742_v24 = vcombine.high %v3158_v62, %v3162_v8  ;;  %v11966_v26 = vadd.f32 %v11335_v1, %v11532_v54  ;;  %v11978_v56 = vadd.f32 %v11364_v12, %v11526_v43  ;;  %v11986_v1 = vadd.f32 %v11380_v30, %v11602_v51 }
 0x451   : > { %4567 = vmatpush2.bf16.msra.mxu0 %v8645_v58  ;;  %v11998_v12 = vadd.f32 %v11393_v40, %v11532_v54  ;;  %v12006_v30 = vadd.f32 %v11423_v2, %v11606_v19  ;;  %v12018_v40 = vadd.f32 %v15642_v44, %v11602_v51  ;;  %v12026_v2 = vadd.f32 %v15644_v29, %v11526_v43  ;;  %v15661_v44 = vld [vmem:[#allocation35_spill] sm:$0xff]  ;;  %v12084_v29 = vld [vmem:[#allocation7 + $0x588] sm:$0xff] }
 0x452   : > { %4568 = vmatprep.subr.bf16.mxu0 %v8638_v57  ;;  %v11962_v57 = vadd.f32 %v11325_v35, %v11526_v43  ;;  %v11982_v35 = vadd.f32 %v11375_v41, %v11532_v54  ;;  %v12002_v41 = vadd.f32 %v11411_v17, %v11602_v51  ;;  %v12022_v17 = vadd.f32 %v15643_v52, %v11606_v19 }
 0x453   : > { %4678 = vmatpush2.bf16.msra.mxu1 %v8781_v38  ;;  %v8741_v38 = vcombine.low %v3158_v62, %v3162_v8  ;;  %v12058_v23 = vadd.f32 %v15653_v63, %v11526_v43  ;;  %v15655_v62 = vld [vmem:[#allocation91_spill] sm:$0xff]  ;;  %v12064_v8 = vld [vmem:[#allocation7 + $0x188] sm:$0xff]  ;;  %v12082_v52 = vadd.f32 %v15661_v44, %v11532_v54  ;;  %v15667_v63 = vld [vmem:[#allocation32_spill] sm:$0xff] }
 0x454   : > { %4679 = vmatprep.subr.bf16.mxu1 %v8774_v14  ;;  %v8736_v14 = vcombine.high %v11940_v11, %v11944_v42  ;;  %v15669_v44 = vld [vmem:[#allocation97_spill] sm:$0xff] }
 0x455   : > { %4569 = vmatpush2.bf16.msra.mxu0 %v8637_v47  ;;  %v11970_v47 = vadd.f32 %v11337_v33, %v11526_v43  ;;  %v11990_v33 = vadd.f32 %v11391_v21, %v11606_v19  ;;  %v12010_v21 = vadd.f32 %v11413_v10, %v11526_v43  ;;  %15654 = vst [vmem:[#allocation63_spill] sm:$0xff] %v12058_v23  ;;  %15662 = vst [vmem:[#allocation21_spill] sm:$0xff] %v12082_v52  ;;  %v12150_v52 = vld [vmem:[#allocation7 + $0x528] sm:$0xff] }
 0x456   : > { %4570 = vmatprep.subr.bf16.mxu0 %v8630_v49  ;;  %v15645_v49 = vld [vmem:[#allocation94_spill] sm:$0xff]  ;;  %15687 = vst [vmem:[#allocation83_spill] sm:$0xff] %v12150_v52 }
 0x457   : > { %4680 = vmatpush2.bf16.msra.mxu1 %v8773_v46  ;;  %v12030_v10 = vadd.f32 %v15645_v49, %v11532_v54  ;;  %v12086_v49 = vld [vmem:[#allocation7 + $0x5a8] sm:$0xff] }
 0x458   : > { %4681 = vmatprep.subr.bf16.mxu1 %v8766_v59  ;;  %v15641_v59 = vld [vmem:[#allocation90_spill] sm:$0xff] }
 0x459   : > { %4571 = vmatpush2.bf16.msra.mxu0 %v8629_v7  ;;  %v12034_v7 = vadd.f32 %v15646_v25, %v11602_v51  ;;  %v12088_v25 = vld [vmem:[#allocation7 + $0x148] sm:$0xff] }
 0x45a   : > { %4572 = vmatprep.subr.bf16.mxu0 %v8622_v36  ;;  %v12046_v36 = vadd.f32 %v15649_v18, %v11532_v54  ;;  %v15664_v18 = vld [vmem:[#allocation102_spill] sm:$0xff] }
 0x45b   : > { %4682 = vmatpush2.bf16.msra.mxu1 %v8765_v61  ;;  %v11974_v61 = vadd.f32 %v11351_v45, %v11532_v54  ;;  %v11994_v45 = vadd.f32 %v11382_v13, %v11526_v43  ;;  %v12014_v13 = vadd.f32 %v15641_v59, %v11532_v54  ;;  %v12078_v59 = vadd.f32 %v15659_v37, %v11526_v43  ;;  %v15665_v43 = vld [vmem:[#allocation38_spill] sm:$0xff] }
 0x45c   : > { %4683 = vmatprep.subr.bf16.mxu1 %v8758_v4  ;;  %15650 = vst [vmem:[#allocation67_spill] sm:$0xff] %v12046_v36  ;;  %v12110_v37 = vld [vmem:[#allocation7 + $0x568] sm:$0xff] }
 0x45d   : > { %4573 = vmatpush2.bf16.msra.mxu0 %v8621_v32  ;;  %v12050_v32 = vadd.f32 %v15651_v53, %v11602_v51  ;;  %15660 = vst [vmem:[#allocation26_spill] sm:$0xff] %v12078_v59  ;;  %v12096_v53 = vadd.f32 %v15664_v18, %v11606_v19  ;;  %v15671_v18 = vld [vmem:[#allocation48_spill] sm:$0xff]  ;;  %v12154_v59 = vld [vmem:[#allocation7 + $0xe8] sm:$0xff] }
 0x45e   : > { %4574 = vmatprep.subr.bf16.mxu0 %v8614_v20  ;;  %v12062_v20 = vadd.f32 %v15655_v62, %v11532_v54  ;;  %v12104_v62 = vadd.f32 %v15667_v63, %v11606_v19  ;;  %v12118_v46 = vadd.f32 %v15671_v18, %v11606_v19  ;;  %v15675_v63 = vld [vmem:[#allocation41_spill] sm:$0xff]  ;;  %v15681_v18 = vld [vmem:[#allocation42_spill] sm:$0xff]  ;;  %15689 = vst [vmem:[#allocation93_spill] sm:$0xff] %v12154_v59 }
 0x45f   : > { %4684 = vmatpush2.bf16.msra.mxu1 %v8757_v6  ;;  %v15647_v6 = vld [vmem:[#allocation23_spill] sm:$0xff]  ;;  %v12126_v16 = vadd.f32 %v15675_v63, %v11602_v51  ;;  %v12140_v27 = vadd.f32 %v15681_v18, %v11532_v54  ;;  %v12210_v18 = vld [vmem:[#allocation7 + $0x8] sm:$0xff] }
 0x460   : > { %4685 = vmatprep.subr.bf16.mxu1 %v8750_v60  ;;  %v12038_v4 = vadd.f32 %v15647_v6, %v11606_v19  ;;  %15656 = vst [vmem:[#allocation61_spill] sm:$0xff] %v12062_v20  ;;  %v15663_v6 = vld [vmem:[#allocation88_spill] sm:$0xff]  ;;  %15668 = vst [vmem:[#allocation69_spill] sm:$0xff] %v12104_v62  ;;  %v12194_v20 = vld [vmem:[#allocation7 + $0x48] sm:$0xff] }
 0x461   : > { %4575 = vmatpush2.bf16.msra.mxu0 %v8613_v22  ;;  %v12066_v22 = vld [vmem:[#allocation7 + $0x1a8] sm:$0xff]  ;;  %v12092_v28 = vadd.f32 %v15663_v6, %v11602_v51  ;;  %v12114_v6 = vadd.f32 %v15669_v44, %v11602_v51  ;;  %15672 = vst [vmem:[#allocation22_spill] sm:$0xff] %v12118_v46  ;;  %15676 = vst [vmem:[#allocation70_spill] sm:$0xff] %v12126_v16 }
 0x462   : > { %4770 = vmatprep.subr.bf16.mxu0 %v8608_v15  ;;  %v15658_v15 = vld [vmem:[#allocation40_spill] sm:$0xff]  ;;  %v15679_v44 = vld [vmem:[#allocation46_spill] sm:$0xff]  ;;  %15682 = vst [vmem:[#allocation77_spill] sm:$0xff] %v12140_v27  ;;  %15698 = vst [vmem:[#allocation86_spill] sm:$0xff] %v12194_v20 }
 0x463   : > { %4686 = vmatpush2.bf16.msra.mxu1 %v8749_v3  ;;  %v15652_v3 = vld [vmem:[#allocation92_spill] sm:$0xff]  ;;  %15670 = vst [vmem:[#allocation24_spill] sm:$0xff] %v12114_v6  ;;  %v12136_v50 = vadd.f32 %v15679_v44, %v11606_v19  ;;  %v12152_v16 = vld [vmem:[#allocation7 + $0xc8] sm:$0xff]  ;;  %15702 = vst [vmem:[#allocation28_spill] sm:$0xff] %v12210_v18 }
 0x464   : > { %4687 = vmatprep.subr.bf16.mxu1 %v8742_v24  ;;  %v12054_v60 = vadd.f32 %v15652_v3, %v11606_v19  ;;  %v12100_v3 = vadd.f32 %v15665_v43, %v11602_v51  ;;  %v15673_v43 = vld [vmem:[#allocation29_spill] sm:$0xff]  ;;  %15688 = vst [vmem:[#allocation82_spill] sm:$0xff] %v12152_v16 }
 0x465   : > { %v12122_v58 = vadd.f32 %v15673_v43, %v11532_v54  ;;  %15680 = vst [vmem:[#allocation78_spill] sm:$0xff] %v12136_v50  ;;  %v15683_v43 = vld [vmem:[#allocation98_spill] sm:$0xff]  ;;  %v15690_v44 = vld [vmem:[#allocation45_spill] sm:$0xff] }
 0x466   : > { %15666 = vst [vmem:[#allocation74_spill] sm:$0xff] %v12100_v3  ;;  %v12158_v50 = vadd.f32 %v15690_v44, %v11606_v19  ;;  %v12170_v27 = vld [vmem:[#allocation7 + $0x88] sm:$0xff] }
 0x467   : > { %4688 = vmatpush2.bf16.msra.mxu1 %v8741_v38  ;;  %v15657_v38 = vld [vmem:[#allocation31_spill] sm:$0xff]  ;;  %15674 = vst [vmem:[#allocation72_spill] sm:$0xff] %v12122_v58  ;;  %v12144_v58 = vadd.f32 %v15683_v43, %v11606_v19  ;;  %15694 = vst [vmem:[#allocation75_spill] sm:$0xff] %v12170_v27  ;;  %v12196_v43 = vld [vmem:[#allocation7 + $0x68] sm:$0xff] }
 0x468   : > { %4883 = vmatprep.subr.bf16.mxu1 %v8736_v14  ;;  %v12070_v24 = vadd.f32 %v15657_v38, %v11602_v51  ;;  %v12074_v14 = vadd.f32 %v15658_v15, %v11606_v19  ;;  %v12106_v38 = vld [vmem:[#allocation7 + $0x168] sm:$0xff]  ;;  %v15685_v51 = vld [vmem:[#allocation52_spill] sm:$0xff]  ;;  %15691 = vst [vmem:[#allocation90_spill] sm:$0xff] %v12158_v50  ;;  %15699 = vst [vmem:[#allocation20_spill] sm:$0xff] %v12196_v43 }
 0x469   : > { %v12108_v15 = vld [vmem:[#allocation7 + $0x548] sm:$0xff]  ;;  %15684 = vst [vmem:[#allocation85_spill] sm:$0xff] %v12144_v58  ;;  %v12148_v63 = vadd.f32 %v15685_v51, %v11532_v54 }
 0x46a   : > { %v12166_v51 = vld [vmem:[#allocation7 + $0x4c8] sm:$0xff] }
 0x46b   : > { %15686 = vst [vmem:[#allocation81_spill] sm:$0xff] %v12148_v63  ;;  %15692 = vst [vmem:[#allocation79_spill] sm:$0xff] %v12166_v51  ;;  %v12168_v63 = vld [vmem:[#allocation7 + $0x4e8] sm:$0xff] }
 0x46c   : > { %15693 = vst [vmem:[#allocation95_spill] sm:$0xff] %v12168_v63  ;;  %v12180_v50 = vld [vmem:[#allocation7 + $0xa8] sm:$0xff] }
 0x46d   : > { %15695 = vst [vmem:[#allocation94_spill] sm:$0xff] %v12180_v50  ;;  %v12182_v54 = vld [vmem:[#allocation7 + $0x488] sm:$0xff] }
 0x46e   : > { %15696 = vst [vmem:[#allocation89_spill] sm:$0xff] %v12182_v54  ;;  %v12184_v19 = vld [vmem:[#allocation7 + $0x4a8] sm:$0xff] }
 0x46f   : > { %15697 = vst [vmem:[#allocation23_spill] sm:$0xff] %v12184_v19  ;;  %v12198_v6 = vld [vmem:[#allocation7 + $0x448] sm:$0xff] }
 0x470   : > { %15700 = vst [vmem:[#allocation33_spill] sm:$0xff] %v12198_v6  ;;  %v12208_v62 = vld [vmem:[#allocation7 + $0x468] sm:$0xff] }
 0x471   : > { %15701 = vst [vmem:[#allocation92_spill] sm:$0xff] %v12208_v62  ;;  %v12212_v36 = vld [vmem:[#allocation7 + $0x28] sm:$0xff] }
 0x472   : > { %15703 = vst [vmem:[#allocation91_spill] sm:$0xff] %v12212_v36  ;;  %v12222_v59 = vld [vmem:[#allocation7 + $0x408] sm:$0xff] }
 0x473   : > { %15704 = vst [vmem:[#allocation31_spill] sm:$0xff] %v12222_v59  ;;  %v12224_v16 = vld [vmem:[#allocation7 + $0x428] sm:$0xff] }
 0x474   : > { %15705 = vst [vmem:[#allocation40_spill] sm:$0xff] %v12224_v16  ;;  %v12236_v58 = vld [vmem:[#allocation7 + $0x3c8] sm:$0xff] }
 0x475   : > { %15706 = vst [vmem:[#allocation27_spill] sm:$0xff] %v12236_v58  ;;  %v12238_v50 = vld [vmem:[#allocation7 + $0x3e8] sm:$0xff] }
 0x476   : > { %15707 = vst [vmem:[#allocation35_spill] sm:$0xff] %v12238_v50  ;;  %v12254_v63 = vld [vmem:[#allocation7 + $0x7c8] sm:$0xff] }
 0x477   : > { %15708 = vst [vmem:[#allocation88_spill] sm:$0xff] %v12254_v63  ;;  %v12256_v43 = vld [vmem:[#allocation7 + $0x7e8] sm:$0xff] }
 0x478   : > { %15709 = vst [vmem:[#allocation102_spill] sm:$0xff] %v12256_v43  ;;  %v12268_v36 = vld [vmem:[#allocation7 + $0x388] sm:$0xff] }
 0x479   : > { %15710 = vst [vmem:[#allocation38_spill] sm:$0xff] %v12268_v36  ;;  %v12270_v19 = vld [vmem:[#allocation7 + $0x3a8] sm:$0xff] }
 0x47a   : > { %15711 = vst [vmem:[#allocation32_spill] sm:$0xff] %v12270_v19  ;;  %v12292_v58 = vld [vmem:[#allocation7 + $0x7a8] sm:$0xff] }
 0x47b   : > { %15713 = vst [vmem:[#allocation48_spill] sm:$0xff] %v12292_v58  ;;  %v12303_v43 = vld [vmem:[#allocation7 + $0x348] sm:$0xff] }
 0x47c   : > { %15714 = vst [vmem:[#allocation29_spill] sm:$0xff] %v12303_v43  ;;  %v12336_v36 = vld [vmem:[#allocation7 + $0x328] sm:$0xff] }
 0x47d   : > { %15719 = vst [vmem:[#allocation52_spill] sm:$0xff] %v12336_v36 }
 0x4d6   : > { %v2358_v3 = vpop.f32.mrf.mxu0  ;;  %v2471_v5 = vpop.f32.mrf.mxu1 }
 0x4d7   : > { %v12227_v52 = vadd.f32 %v2358_v3, %v11954_v55  ;;  %v12230_v34 = vadd.f32 %v2471_v5, %v11986_v1 }
 0x4d8   : > { %v2360_v44 = vpop.f32.mrf.mxu0  ;;  %v2473_v27 = vpop.f32.mrf.mxu1 }
 0x4d9   : > { %v2614_v3 = vmin.f32 %v12227_v52, 0.0  ;;  %v2616_v46 = vmin.f32 %v12230_v34, 0.0  ;;  %v12259_v55 = vadd.f32 %v2360_v44, %v11958_v48  ;;  %v12262_v5 = vadd.f32 %v2473_v27, %v11990_v33 }
 0x4da   : > { %v2362_v1 = vpop.f32.mrf.mxu0  ;;  %v2475_v62 = vpop.f32.mrf.mxu1  ;;  %vm2550_vm12 = vcmp.gt.f32.partialorder %v12227_v52, 0.0  ;;  %vm2552_vm13 = vcmp.gt.f32.partialorder %v12230_v34, 0.0 }
 0x4db   : > { %v2678_v18 = vmul.f32 1.442695, %v2614_v3  ;;  %v2682_v20 = vmul.f32 1.442695, %v2616_v46  ;;  %v12273_v48 = vadd.f32 %v2362_v1, %v11962_v57  ;;  %v12276_v27 = vadd.f32 %v2475_v62, %v12002_v41  ;;  %v12289_v62 = vld [vmem:[#allocation7 + $0x788] sm:$0xff] }
 0x4dc   : > { %v2615_v33 = vmin.f32 %v12259_v55, 0.0  ;;  %v2617_v44 = vmin.f32 %v12262_v5, 0.0  ;;  %v2364_v6 = vpop.f32.mrf.mxu0  ;;  %v2477_v16 = vpop.f32.mrf.mxu1  ;;  %15712 = vst [vmem:[#allocation97_spill] sm:$0xff] %v12289_v62  ;;  %vm2551_vm14 = vcmp.gt.f32.partialorder %v12259_v55, 0.0  ;;  %vm2553_vm0 = vcmp.gt.f32.partialorder %v12262_v5, 0.0 }
 0x4dd   : > { %9466 = vpow2.f32 %v2678_v18  ;;  %v2618_v46 = vmin.f32 %v12273_v48, 0.0  ;;  %v2620_v54 = vmin.f32 %v12276_v27, 0.0  ;;  %v12295_v59 = vadd.f32 %v2364_v6, %v11966_v26  ;;  %v12324_v26 = vld [vmem:[#allocation7 + $0x748] sm:$0xff] }
 0x4de   : > { %9468 = vpow2.f32 %v2682_v20  ;;  %v2680_v1 = vmul.f32 1.442695, %v2615_v33  ;;  %v2684_v3 = vmul.f32 1.442695, %v2617_v44  ;;  %v2368_v23 = vpop.f32.mrf.mxu0  ;;  %v2481_v50 = vpop.f32.mrf.mxu1  ;;  %v12298_v57 = vadd.f32 %v2477_v16, %v12006_v30  ;;  %v12305_v20 = vld [vmem:[#allocation7 + $0x368] sm:$0xff]  ;;  %15716 = vst [vmem:[#allocation46_spill] sm:$0xff] %v12324_v26 }
 0x4df   : > { %v2686_v18 = vmul.f32 1.442695, %v2618_v46  ;;  %v12301_v41 = vadd.f32 %v2368_v23, %v11970_v47  ;;  %15715 = vst [vmem:[#allocation41_spill] sm:$0xff] %v12305_v20  ;;  %v2690_v33 = vmul.f32 1.442695, %v2620_v54  ;;  %v12308_v44 = vadd.f32 %v2481_v50, %v12018_v40  ;;  %v12326_v30 = vld [vmem:[#allocation7 + $0x768] sm:$0xff] }
 0x4e0   : > { %9470 = vpow2.f32 %v2680_v1  ;;  %v2370_v63 = vpop.f32.mrf.mxu0  ;;  %v2483_v46 = vpop.f32.mrf.mxu1  ;;  %v2619_v16 = vmin.f32 %v12295_v59, 0.0  ;;  %v2621_v23 = vmin.f32 %v12298_v57, 0.0  ;;  %15717 = vst [vmem:[#allocation42_spill] sm:$0xff] %v12326_v30  ;;  %vm2554_vm15 = vcmp.gt.f32.partialorder %v12273_v48, 0.0 }
 0x4e1   : > { %9472 = vpow2.f32 %v2684_v3  ;;  %v2622_v50 = vmin.f32 %v12301_v41, 0.0  ;;  %v2624_v3 = vmin.f32 %v12308_v44, 0.0  ;;  %v12329_v62 = vadd.f32 %v2370_v63, %v11974_v61 }
 0x4e2   : > { %9474 = vpow2.f32 %v2686_v18  ;;  %v2372_v40 = vpop.f32.mrf.mxu0  ;;  %v2485_v6 = vpop.f32.mrf.mxu1  ;;  %v2688_v1 = vmul.f32 1.442695, %v2619_v16  ;;  %v2692_v18 = vmul.f32 1.442695, %v2621_v23  ;;  %v12332_v19 = vadd.f32 %v2483_v46, %v12022_v17  ;;  %v12334_v16 = vld [vmem:[#allocation7 + $0x308] sm:$0xff] }
 0x4e3   : > { %9476 = vpow2.f32 %v2690_v33  ;;  %v2694_v58 = vmul.f32 1.442695, %v2622_v50  ;;  %15718 = vst [vmem:[#allocation98_spill] sm:$0xff] %v12334_v16  ;;  %v2698_v47 = vmul.f32 1.442695, %v2624_v3  ;;  %v12339_v20 = vadd.f32 %v2372_v40, %v11978_v56 }
 0x4e4   : > { %v2374_v54 = vpop.f32.mrf.mxu0  ;;  %v2487_v33 = vpop.f32.mrf.mxu1  ;;  %9478 = vpow2.f32 %v2688_v1  ;;  %v12342_v23 = vadd.f32 %v2485_v6, %v12034_v7  ;;  %v2623_v61 = vmin.f32 %v12329_v62, 0.0  ;;  %v2625_v1 = vmin.f32 %v12332_v19, 0.0 }
 0x4e5   : > { %9480 = vpow2.f32 %v2692_v18  ;;  %v2626_v56 = vmin.f32 %v12339_v20, 0.0  ;;  %v12357_v50 = vadd.f32 %v2374_v54, %v11982_v35  ;;  %vm2556_vm11 = vcmp.gt.f32.partialorder %v12276_v27, 0.0 }
 0x4e6   : > { %v2378_v63 = vpop.f32.mrf.mxu0  ;;  %v2491_v17 = vpop.f32.mrf.mxu1  ;;  %9482 = vpow2.f32 %v2694_v58  ;;  %v2696_v40 = vmul.f32 1.442695, %v2623_v61  ;;  %v2628_v6 = vmin.f32 %v12342_v23, 0.0  ;;  %v2700_v46 = vmul.f32 1.442695, %v2625_v1 }
 0x4e7   : > { %9484 = vpow2.f32 %v2698_v47  ;;  %v2702_v43 = vmul.f32 1.442695, %v2626_v56  ;;  %v12360_v58 = vadd.f32 %v2487_v33, %v12038_v4  ;;  %v12364_v61 = vadd.f32 %v2378_v63, %v11994_v45 }
 0x4e8   : > { %v2380_v3 = vpop.f32.mrf.mxu0  ;;  %9486 = vpow2.f32 %v2696_v40  ;;  %v2706_v47 = vmul.f32 1.442695, %v2628_v6  ;;  %v2493_v7 = vpop.f32.mrf.mxu1  ;;  %v2627_v1 = vmin.f32 %v12357_v50, 0.0  ;;  %v12369_v35 = vadd.f32 %v2491_v17, %v12050_v32 }
 0x4e9   : > { %9488 = vpow2.f32 %v2700_v46  ;;  %v2629_v54 = vmin.f32 %v12360_v58, 0.0  ;;  %vm2555_vm10 = vcmp.gt.f32.partialorder %v12295_v59, 0.0  ;;  %vm2557_vm9 = vcmp.gt.f32.partialorder %v12298_v57, 0.0 }
 0x4ea   : > { %v9467_v30 = vpop.eup %9466  ;;  %9490 = vpow2.f32 %v2702_v43  ;;  %v2382_v33 = vpop.f32.mrf.mxu0  ;;  %v2704_v63 = vmul.f32 1.442695, %v2627_v1  ;;  %vm2558_vm8 = vcmp.gt.f32.partialorder %v12301_v41, 0.0 }
 0x4eb   : > { %v9469_v26 = vpop.eup %9468  ;;  %v8485_v4 = vadd.f32 -1.0, %v9467_v30  ;;  %9492 = vpow2.f32 %v2706_v47  ;;  %v2708_v32 = vmul.f32 1.442695, %v2629_v54  ;;  %v2630_v30 = vmin.f32 %v12364_v61, 0.0  ;;  %v2495_v17 = vpop.f32.mrf.mxu1 }
 0x4ec   : > { %v8487_v45 = vadd.f32 -1.0, %v9469_v26  ;;  %9494 = vpow2.f32 %v2704_v63  ;;  %v2632_v26 = vmin.f32 %v12369_v35, 0.0  ;;  %v2384_v54 = vpop.f32.mrf.mxu0  ;;  %v12388_v63 = vadd.f32 %v2380_v3, %v11998_v12 }
 0x4ed   : > { %v9471_v56 = vpop.eup %9470  ;;  %v2870_v47 = vsel %vm2550_vm12, %v12227_v52, %v8485_v4  ;;  %9496 = vpow2.f32 %v2708_v32  ;;  %v2710_v36 = vmul.f32 1.442695, %v2630_v30  ;;  %vm2560_vm12 = vcmp.gt.f32.partialorder %v12308_v44, 0.0 }
 0x4ee   : > { %v9473_v46 = vpop.eup %9472  ;;  %v8486_v40 = vadd.f32 -1.0, %v9471_v56  ;;  %v2872_v56 = vsel %vm2552_vm13, %v12230_v34, %v8487_v45  ;;  %v12398_v32 = vadd.f32 %v2493_v7, %v12054_v60  ;;  %v2497_v34 = vpop.f32.mrf.mxu1  ;;  %vm2562_vm13 = vcmp.gt.f32.partialorder %v12339_v20, 0.0 }
 0x4ef   : > { %v9475_v43 = vpop.eup %9474  ;;  %v8488_v52 = vadd.f32 -1.0, %v9473_v46  ;;  %v12410_v60 = vadd.f32 %v2382_v33, %v12010_v21  ;;  %v12412_v7 = vpop.f32.mrf.mxu0  ;;  %9498 = vpow2.f32 %v2710_v36 }
 0x4f0   : > { %v9477_v6 = vpop.eup %9476  ;;  %v8489_v1 = vadd.f32 -1.0, %v9475_v43  ;;  %v2871_v51 = vsel %vm2551_vm14, %v12259_v55, %v8486_v40  ;;  %v2714_v55 = vmul.f32 1.442695, %v2632_v26  ;;  %v2631_v43 = vmin.f32 %v12388_v63, 0.0 }
 0x4f1   : > { %v8491_v18 = vadd.f32 -1.0, %v9477_v6  ;;  %v9479_v16 = vpop.eup %9478  ;;  %v2873_v26 = vsel %vm2553_vm0, %v12262_v5, %v8488_v52  ;;  %vm2564_vm14 = vcmp.gt.f32.partialorder %v12342_v23, 0.0  ;;  %vm2563_vm0 = vcmp.gt.f32.partialorder %v12357_v50, 0.0  ;;  %v12436_v5 = vpop.f32.mrf.mxu0 }
 0x4f2   : > { %v2874_v4 = vsel %vm2554_vm15, %v12273_v48, %v8489_v1  ;;  %v9481_v45 = vpop.eup %9480  ;;  %v8490_v3 = vadd.f32 -1.0, %v9479_v16  ;;  %v2712_v33 = vmul.f32 1.442695, %v2631_v43  ;;  %v12427_v1 = vpop.f32.mrf.mxu1  ;;  %vm2565_vm15 = vcmp.gt.f32.partialorder %v12360_v58, 0.0 }
 0x4f3   : > { %v12400_v30 = vpack.c.bf16 %v2874_v4, %v2870_v47  ;;  %v2876_v12 = vsel %vm2556_vm11, %v12276_v27, %v8491_v18  ;;  %v9483_v46 = vpop.eup %9482  ;;  %v8492_v48 = vadd.f32 -1.0, %v9481_v45  ;;  %vm2559_vm11 = vcmp.gt.f32.partialorder %v12329_v62, 0.0 }
 0x4f4   : > { %v12406_v40 = vpack.c.bf16 %v2876_v12, %v2872_v56  ;;  %v9485_v6 = vpop.eup %9484  ;;  %v2875_v27 = vsel %vm2555_vm10, %v12295_v59, %v8490_v3  ;;  %v8493_v16 = vadd.f32 -1.0, %v9483_v46  ;;  %v2633_v18 = vmin.f32 %v12398_v32, 0.0 }
 0x4f5   : > { %v12422_v47 = vpack.c.bf16 %v2875_v27, %v2871_v51  ;;  %v2877_v21 = vsel %vm2557_vm9, %v12298_v57, %v8492_v48  ;;  %v9487_v59 = vpop.eup %9486  ;;  %v8495_v4 = vadd.f32 -1.0, %v9485_v6  ;;  %vm2561_vm10 = vcmp.gt.f32.partialorder %v12332_v19, 0.0  ;;  %v2503_v6 = vpop.f32.mrf.mxu1 }
 0x4f6   : > { %v12429_v56 = vpack.c.bf16 %v2877_v21, %v2873_v26  ;;  %v2716_v36 = vmul.f32 1.442695, %v2633_v18  ;;  %v9489_v45 = vpop.eup %9488  ;;  %9500 = vpow2.f32 %v2714_v55  ;;  %v2634_v51 = vmin.f32 %v12410_v60, 0.0  ;;  %v2392_v26 = vpop.f32.mrf.mxu0 }
 0x4f7   : > { %4576 = vmatprep.mubr.bf16.mxu0 %v12422_v47  ;;  %v9491_v57 = vpop.eup %9490  ;;  %v2878_v52 = vsel %vm2558_vm8, %v12301_v41, %v8493_v16  ;;  %9502 = vpow2.f32 %v2712_v33  ;;  %v12443_v12 = vadd.f32 %v2495_v17, %v12070_v24  ;;  %v12446_v3 = vadd.f32 %v2384_v54, %v12014_v13 }
 0x4f8   : > { %4689 = vmatprep.mubr.bf16.mxu1 %v12429_v56  ;;  %4577 = vmatmul.mubr.bf16.vlgmr.msra.gmra.mxu0 %v12400_v30  ;;  %v9493_v55 = vpop.eup %9492  ;;  %v8494_v46 = vadd.f32 -1.0, %v9487_v59  ;;  %v8497_v48 = vadd.f32 -1.0, %v9491_v57  ;;  %9504 = vpow2.f32 %v2716_v36  ;;  %v2718_v43 = vmul.f32 1.442695, %v2634_v51  ;;  %v12489_v57 = vld [vmem:[#allocation7 + $0x708] sm:$0xff] }
 0x4f9   : > { %4690 = vmatmul.mubr.bf16.vlgmr.msra.gmra.mxu1 %v12406_v40  ;;  %v15720_v41 = vcombine.low %v11936_v9, %v11938_v39  ;;  %v2880_v13 = vsel %vm2560_vm12, %v12308_v44, %v8495_v4  ;;  %v8499_v24 = vadd.f32 -1.0, %v9493_v55  ;;  %v2636_v17 = vmin.f32 %v12443_v12, 0.0  ;;  %v9495_v9 = vpop.eup %9494 }
 0x4fa   : > { %v12459_v54 = vadd.f32 %v2497_v34, %v12074_v14  ;;  %v15721_v27 = vcombine.low %v11940_v11, %v11944_v42  ;;  %v15722_v16 = vcombine.high %v12064_v8, %v12066_v22  ;;  %v8496_v39 = vadd.f32 -1.0, %v9489_v45  ;;  %v9497_v11 = vpop.eup %9496  ;;  %v12484_v45 = vpop.f32.mrf.mxu1 }
 0x4fb   : > { %4771 = vmatpush1.bf16.msra.mxu0 %v15720_v41  ;;  %v2882_v44 = vsel %vm2562_vm13, %v12339_v20, %v8497_v48  ;;  %9506 = vpow2.f32 %v2718_v43  ;;  %v2635_v18 = vmin.f32 %v12446_v3, 0.0  ;;  %v15723_v14 = vcombine.high %v12084_v29, %v12086_v49  ;;  %v12509_v48 = vld [vmem:[#allocation7 + $0x2e8] sm:$0xff] }
 0x4fc   : > { %4884 = vmatpush1.bf16.msra.mxu1 %v15721_v27  ;;  %4772 = vmatprep.subr.bf16.mxu0 %v15722_v16  ;;  %v12474_v42 = vpack.c.bf16 %v2882_v44, %v2878_v52  ;;  %v2884_v34 = vsel %vm2564_vm14, %v12342_v23, %v8499_v24  ;;  %v8498_v21 = vadd.f32 -1.0, %v9495_v9  ;;  %v2722_v33 = vmul.f32 1.442695, %v2636_v17  ;;  %v12491_v52 = vld [vmem:[#allocation7 + $0x728] sm:$0xff] }
 0x4fd   : > { %4885 = vmatprep.subr.bf16.mxu1 %v15723_v14  ;;  %v2879_v20 = vsel %vm2559_vm11, %v12329_v62, %v8494_v46  ;;  %v12482_v59 = vpack.c.bf16 %v2884_v34, %v2880_v13  ;;  %v8500_v4 = vadd.f32 -1.0, %v9497_v11  ;;  %v2720_v36 = vmul.f32 1.442695, %v2635_v18  ;;  %v12528_v24 = vld [vmem:[#allocation7 + $0x6c8] sm:$0xff] }
 0x4fe   : > { %v15724_v51 = vcombine.low %v12064_v8, %v12066_v22  ;;  %v2883_v23 = vsel %vm2563_vm0, %v12357_v50, %v8498_v21  ;;  %9508 = vpow2.f32 %v2722_v33  ;;  %v2637_v62 = vmin.f32 %v12459_v54, 0.0  ;;  %v12507_v22 = vld [vmem:[#allocation7 + $0x2c8] sm:$0xff] }
 0x4ff   : > { %v12499_v55 = vadd.f32 %v12412_v7, %v12026_v2  ;;  %v15725_v46 = vcombine.low %v12084_v29, %v12086_v49  ;;  %v15726_v8 = vcombine.high %v12088_v25, %v12106_v38  ;;  %v2881_v50 = vsel %vm2561_vm10, %v12332_v19, %v8496_v39  ;;  %v2394_v29 = vpop.f32.mrf.mxu0  ;;  %v12530_v17 = vld [vmem:[#allocation7 + $0x6e8] sm:$0xff]  ;;  %v2507_v39 = vpop.f32.mrf.mxu1 }
 0x500   : > { %4773 = vmatpush1.bf16.msra.mxu0 %v15724_v51  ;;  %v12514_v43 = vpack.c.bf16 %v2883_v23, %v2879_v20  ;;  %v2885_v2 = vsel %vm2565_vm15, %v12360_v58, %v8500_v4  ;;  %9510 = vpow2.f32 %v2720_v36  ;;  %v15727_v49 = vcombine.high %v12108_v15, %v12110_v37  ;;  %v9499_v58 = vpop.eup %9498  ;;  %v15732_v51 = vld [vmem:[#allocation76_spill] sm:$0xff]  ;;  %v15733_v23 = vld [vmem:[#allocation83_spill] sm:$0xff] }
 0x501   : > { %4886 = vmatpush1.bf16.msra.mxu1 %v15725_v46  ;;  %4774 = vmatprep.subr.bf16.mxu0 %v15726_v8  ;;  %v12522_v7 = vpack.c.bf16 %v2885_v2, %v2881_v50  ;;  %v2724_v41 = vmul.f32 1.442695, %v2637_v62  ;;  %v8775_v13 = vcombine.low %v12489_v57, %v12491_v52  ;;  %v8776_v19 = vcombine.high %v12489_v57, %v12491_v52  ;;  %v2511_v36 = vpop.f32.mrf.mxu1  ;;  %v15736_v8 = vld [vmem:[#allocation74_spill] sm:$0xff] }
 0x502   : > { %4887 = vmatprep.subr.bf16.mxu1 %v15727_v49  ;;  %v2638_v27 = vmin.f32 %v12499_v55, 0.0  ;;  %v12535_v16 = vadd.f32 %v12427_v1, %v12092_v28  ;;  %v12539_v9 = vadd.f32 %v12436_v5, %v12030_v10  ;;  %4586 = vmatprep.mubr.bf16.mxu0 %v12514_v43  ;;  %v15728_v44 = vcombine.low %v12088_v25, %v12106_v38  ;;  %v2398_v1 = vpop.f32.mrf.mxu0  ;;  %v15737_v2 = vld [vmem:[#allocation82_spill] sm:$0xff]  ;;  %v15738_v49 = vld [vmem:[#allocation93_spill] sm:$0xff]  ;;  %v15783_v10 = vld [vmem:[#allocation88_spill] sm:$0xff] }
 0x503   : > { %v8640_v18 = vcombine.high %v12507_v22, %v12509_v48  ;;  %9512 = vpow2.f32 %v2724_v41  ;;  %v12548_v14 = vadd.f32 %v2503_v6, %v12096_v53  ;;  %v12551_v28 = vadd.f32 %v2392_v26, %v12042_v0  ;;  %4699 = vmatprep.mubr.bf16.mxu1 %v12522_v7  ;;  %4587 = vmatmul.mubr.bf16.gmra.mxu0 %v12474_v42  ;;  %v15729_v53 = vld [vmem:[#allocation80_spill] sm:$0xff]  ;;  %v9501_v6 = vpop.eup %9500 }
 0x504   : > { %4775 = vmatpush1.bf16.msra.mxu0 %v15728_v44  ;;  %vm2566_vm8 = vcmp.gt.f32.partialorder %v12364_v61, 0.0  ;;  %v2726_v25 = vmul.f32 1.442695, %v2638_v27  ;;  %v2640_v38 = vmin.f32 %v12535_v16, 0.0  ;;  %4700 = vmatmul.mubr.bf16.gmra.mxu1 %v12482_v59  ;;  %v15730_v5 = vcombine.high %v12128_v31, %v15729_v53  ;;  %v9503_v33 = vpop.eup %9502  ;;  %v15740_v27 = vld [vmem:[#allocation67_spill] sm:$0xff] }
 0x505   : > { %v8501_v26 = vadd.f32 -1.0, %v9499_v58  ;;  %vm2568_vm9 = vcmp.gt.f32.partialorder %v12369_v35, 0.0  ;;  %v2639_v11 = vmin.f32 %v12539_v9, 0.0  ;;  %v2641_v34 = vmin.f32 %v12548_v14, 0.0 }
 0x506   : > { %4776 = vmatprep.subr.bf16.mxu0 %v15730_v5  ;;  %v15731_v21 = vcombine.low %v12108_v15, %v12110_v37  ;;  %vm2567_vm12 = vcmp.gt.f32.partialorder %v12388_v63, 0.0  ;;  %vm2570_vm13 = vcmp.gt.f32.partialorder %v12410_v60, 0.0  ;;  %9514 = vpow2.f32 %v2726_v25  ;;  %v9505_v15 = vpop.eup %9504  ;;  %v2400_v25 = vpop.f32.mrf.mxu0 }
 0x507   : > { %v2730_v20 = vmul.f32 1.442695, %v2640_v38  ;;  %v2642_v4 = vmin.f32 %v12551_v28, 0.0  ;;  %v15734_v62 = vcombine.high %v15732_v51, %v15733_v23  ;;  %v15735_v46 = vcombine.low %v12128_v31, %v15729_v53 }
 0x508   : > { %4888 = vmatpush1.bf16.msra.mxu1 %v15731_v21  ;;  %vm2569_vm11 = vcmp.gt.f32.partialorder %v12398_v32, 0.0  ;;  %vm2572_vm10 = vcmp.gt.f32.partialorder %v12443_v12, 0.0  ;;  %vm2571_vm14 = vcmp.gt.f32.partialorder %v12446_v3, 0.0  ;;  %v2728_v37 = vmul.f32 1.442695, %v2639_v11  ;;  %v9507_v38 = vpop.eup %9506 }
 0x509   : > { %4889 = vmatprep.subr.bf16.mxu1 %v15734_v62  ;;  %4777 = vmatpush1.bf16.msra.mxu0 %v15735_v46  ;;  %v12585_v50 = vadd.f32 %v12484_v45, %v15736_v8  ;;  %v15739_v41 = vcombine.high %v15737_v2, %v15738_v49  ;;  %9516 = vpow2.f32 %v2730_v20  ;;  %v2732_v58 = vmul.f32 1.442695, %v2641_v34  ;;  %v15742_v62 = vld [vmem:[#allocation79_spill] sm:$0xff] }
 0x50a   : > { %v2734_v31 = vmul.f32 1.442695, %v2642_v4  ;;  %v12591_v44 = vadd.f32 %v2394_v29, %v15740_v27  ;;  %v2886_v53 = vsel %vm2566_vm8, %v12364_v61, %v8501_v26  ;;  %v8503_v5 = vadd.f32 -1.0, %v9501_v6  ;;  %v2513_v4 = vpop.f32.mrf.mxu1  ;;  %v15743_v46 = vld [vmem:[#allocation95_spill] sm:$0xff]  ;;  %v15746_v26 = vld [vmem:[#allocation69_spill] sm:$0xff] }
 0x50b   : > { %4778 = vmatprep.subr.bf16.mxu0 %v15739_v41  ;;  %9518 = vpow2.f32 %v2728_v37  ;;  %v2644_v45 = vmin.f32 %v12585_v50, 0.0  ;;  %v15741_v11 = vcombine.low %v15732_v51, %v15733_v23  ;;  %v8502_v21 = vadd.f32 -1.0, %v9503_v33  ;;  %v15747_v33 = vld [vmem:[#allocation63_spill] sm:$0xff]  ;;  %v15749_v37 = vld [vmem:[#allocation94_spill] sm:$0xff]  ;;  %v9509_v27 = vpop.eup %9508 }
 0x50c   : > { %v8504_v34 = vadd.f32 -1.0, %v9505_v15  ;;  %v8505_v20 = vadd.f32 -1.0, %v9507_v38  ;;  %vm2573_vm0 = vcmp.gt.f32.partialorder %v12459_v54, 0.0  ;;  %v2643_v29 = vmin.f32 %v12591_v44, 0.0  ;;  %v15748_v15 = vld [vmem:[#allocation75_spill] sm:$0xff] }
 0x50d   : > { %4890 = vmatpush1.bf16.msra.mxu1 %v15741_v11  ;;  %v15744_v8 = vcombine.high %v15742_v62, %v15743_v46  ;;  %v15745_v61 = vcombine.low %v15737_v2, %v15738_v49  ;;  %9520 = vpow2.f32 %v2734_v31  ;;  %v2738_v6 = vmul.f32 1.442695, %v2644_v45  ;;  %v15751_v49 = vld [vmem:[#allocation24_spill] sm:$0xff]  ;;  %v2402_v45 = vpop.f32.mrf.mxu0 }
 0x50e   : > { %v12609_v51 = vadd.f32 %v2507_v39, %v15746_v26  ;;  %v12612_v23 = vadd.f32 %v2398_v1, %v15747_v33  ;;  %v15750_v41 = vcombine.high %v15748_v15, %v15749_v37  ;;  %v2890_v38 = vsel %vm2570_vm13, %v12410_v60, %v8505_v20  ;;  %v9511_v39 = vpop.eup %9510  ;;  %v15754_v26 = vld [vmem:[#allocation89_spill] sm:$0xff]  ;;  %v15755_v33 = vld [vmem:[#allocation23_spill] sm:$0xff] }
 0x50f   : > { %4891 = vmatprep.subr.bf16.mxu1 %v15744_v8  ;;  %4779 = vmatpush1.bf16.msra.mxu0 %v15745_v61  ;;  %9522 = vpow2.f32 %v2732_v58  ;;  %v2736_v2 = vmul.f32 1.442695, %v2643_v29  ;;  %v12621_v31 = vadd.f32 %v2511_v36, %v15751_v49  ;;  %v2888_v1 = vsel %vm2568_vm9, %v12369_v35, %v8503_v5  ;;  %v15753_v36 = vld [vmem:[#allocation61_spill] sm:$0xff]  ;;  %v2515_v29 = vpop.f32.mrf.mxu1 }
 0x510   : > { %4780 = vmatprep.subr.bf16.mxu0 %v15750_v41  ;;  %v12626_v11 = vpack.c.bf16 %v2890_v38, %v2886_v53  ;;  %v8507_v8 = vadd.f32 -1.0, %v9509_v27  ;;  %9524 = vpow2.f32 %v2738_v6  ;;  %v15752_v61 = vcombine.low %v15742_v62, %v15743_v46  ;;  %v15758_v46 = vld [vmem:[#allocation86_spill] sm:$0xff]  ;;  %v15759_v6 = vld [vmem:[#allocation20_spill] sm:$0xff]  ;;  %v9513_v38 = vpop.eup %9512 }
 0x511   : > { %v8506_v60 = vadd.f32 -1.0, %v9511_v39  ;;  %9526 = vpow2.f32 %v2736_v2  ;;  %v2645_v58 = vmin.f32 %v12609_v51, 0.0  ;;  %v12633_v20 = vadd.f32 %v2400_v25, %v15753_v36  ;;  %v15763_v36 = vld [vmem:[#allocation26_spill] sm:$0xff] }
 0x512   : > { %4892 = vmatpush1.bf16.msra.mxu1 %v15752_v61  ;;  %v15756_v41 = vcombine.high %v15754_v26, %v15755_v33  ;;  %v15757_v35 = vcombine.low %v15748_v15, %v15749_v37  ;;  %v2887_v53 = vsel %vm2567_vm12, %v12388_v63, %v8502_v21  ;;  %v2892_v5 = vsel %vm2572_vm10, %v12443_v12, %v8507_v8  ;;  %v2404_v21 = vpop.f32.mrf.mxu0 }
 0x513   : > { %v2646_v25 = vmin.f32 %v12612_v23, 0.0  ;;  %v2648_v62 = vmin.f32 %v12621_v31, 0.0  ;;  %v15760_v27 = vcombine.high %v15758_v46, %v15759_v6  ;;  %v2889_v15 = vsel %vm2569_vm11, %v12398_v32, %v8504_v34  ;;  %v15762_v34 = vld [vmem:[#allocation22_spill] sm:$0xff] }
 0x514   : > { %4893 = vmatprep.subr.bf16.mxu1 %v15756_v41  ;;  %4781 = vmatpush1.bf16.msra.mxu0 %v15757_v35  ;;  %v12655_v37 = vpack.c.bf16 %v2892_v5, %v2888_v1  ;;  %v2891_v63 = vsel %vm2571_vm14, %v12446_v3, %v8506_v60  ;;  %v2740_v12 = vmul.f32 1.442695, %v2645_v58  ;;  %v8508_v49 = vadd.f32 -1.0, %v9513_v38  ;;  %v2517_v3 = vpop.f32.mrf.mxu1  ;;  %v15764_v60 = vld [vmem:[#allocation33_spill] sm:$0xff]  ;;  %v15765_v58 = vld [vmem:[#allocation92_spill] sm:$0xff] }
 0x515   : > { %4782 = vmatprep.subr.bf16.mxu0 %v15760_v27  ;;  %v12660_v2 = vpack.c.bf16 %v2891_v63, %v2887_v53  ;;  %v2742_v39 = vmul.f32 1.442695, %v2646_v25  ;;  %v2746_v8 = vmul.f32 1.442695, %v2648_v62  ;;  %v15761_v61 = vcombine.low %v15754_v26, %v15755_v33  ;;  %v9515_v26 = vpop.eup %9514  ;;  %v15770_v62 = vld [vmem:[#allocation28_spill] sm:$0xff]  ;;  %v15771_v27 = vld [vmem:[#allocation91_spill] sm:$0xff] }
 0x516   : > { %9528 = vpow2.f32 %v2740_v12  ;;  %v2647_v32 = vmin.f32 %v12633_v20, 0.0  ;;  %v12667_v1 = vadd.f32 %v2513_v4, %v15762_v34  ;;  %v12670_v41 = vadd.f32 %v2402_v45, %v15763_v36  ;;  %v15768_v4 = vld [vmem:[#allocation70_spill] sm:$0xff]  ;;  %v15769_v45 = vld [vmem:[#allocation21_spill] sm:$0xff]  ;;  %v2408_v12 = vpop.f32.mrf.mxu0  ;;  %v15775_v34 = vld [vmem:[#allocation40_spill] sm:$0xff] }
 0x517   : > { %4894 = vmatpush1.bf16.msra.mxu1 %v15761_v61  ;;  %v15766_v35 = vcombine.high %v15764_v60, %v15765_v58  ;;  %v15767_v53 = vcombine.low %v15758_v46, %v15759_v6  ;;  %v2893_v33 = vsel %vm2573_vm0, %v12459_v54, %v8508_v49  ;;  %9530 = vpow2.f32 %v2742_v39  ;;  %4596 = vmatprep.mubr.bf16.mxu0 %v12660_v2  ;;  %v9517_v54 = vpop.eup %9516  ;;  %v2521_v61 = vpop.f32.mrf.mxu1 }
 0x518   : > { %v12682_v5 = vadd.f32 %v2515_v29, %v15768_v4  ;;  %v12685_v25 = vadd.f32 %v2404_v21, %v15769_v45  ;;  %v15772_v38 = vcombine.high %v15770_v62, %v15771_v27  ;;  %v12691_v46 = vpack.c.bf16 %v2893_v33, %v2889_v15  ;;  %4597 = vmatmul.mubr.bf16.gmra.mxu0 %v12626_v11  ;;  %v9519_v39 = vpop.eup %9518  ;;  %v2410_v45 = vpop.f32.mrf.mxu0 }
 0x519   : > { %4895 = vmatprep.subr.bf16.mxu1 %v15766_v35  ;;  %4783 = vmatpush1.bf16.msra.mxu0 %v15767_v53  ;;  %v8509_v6 = vadd.f32 -1.0, %v9515_v26  ;;  %9532 = vpow2.f32 %v2746_v8  ;;  %v2744_v63 = vmul.f32 1.442695, %v2647_v32  ;;  %vm2574_vm15 = vcmp.gt.f32.partialorder %v12499_v55, 0.0  ;;  %v15774_v32 = vld [vmem:[#allocation31_spill] sm:$0xff] }
 0x51a   : > { %4784 = vmatprep.subr.bf16.mxu0 %v15772_v38  ;;  %v2649_v29 = vmin.f32 %v12667_v1, 0.0  ;;  %v2650_v21 = vmin.f32 %v12670_v41, 0.0  ;;  %v15773_v49 = vcombine.low %v15764_v60, %v15765_v58  ;;  %vm2576_vm8 = vcmp.gt.f32.partialorder %v12535_v16, 0.0  ;;  %4709 = vmatprep.mubr.bf16.mxu1 %v12691_v46  ;;  %v9521_v26 = vpop.eup %9520  ;;  %v15778_v38 = vld [vmem:[#allocation27_spill] sm:$0xff] }
 0x51b   : > { %v8511_v8 = vadd.f32 -1.0, %v9517_v54  ;;  %vm2575_vm9 = vcmp.gt.f32.partialorder %v12539_v9, 0.0  ;;  %9534 = vpow2.f32 %v2744_v63  ;;  %v15776_v36 = vcombine.high %v15774_v32, %v15775_v34  ;;  %4710 = vmatmul.mubr.bf16.gmra.mxu1 %v12655_v37  ;;  %v15779_v63 = vld [vmem:[#allocation35_spill] sm:$0xff] }
 0x51c   : > { %4896 = vmatpush1.bf16.msra.mxu1 %v15773_v49  ;;  %vm2578_vm12 = vcmp.gt.f32.partialorder %v12551_v28, 0.0  ;;  %v2748_v60 = vmul.f32 1.442695, %v2649_v29  ;;  %v2750_v58 = vmul.f32 1.442695, %v2650_v21  ;;  %v2652_v35 = vmin.f32 %v12682_v5, 0.0 }
 0x51d   : > { %4897 = vmatprep.subr.bf16.mxu1 %v15776_v36  ;;  %v15777_v53 = vcombine.low %v15770_v62, %v15771_v27  ;;  %v2894_v33 = vsel %vm2574_vm15, %v12499_v55, %v8509_v6  ;;  %vm2577_vm13 = vcmp.gt.f32.partialorder %v12548_v14, 0.0  ;;  %vm2580_vm11 = vcmp.gt.f32.partialorder %v12585_v50, 0.0  ;;  %v9523_v62 = vpop.eup %9522 }
 0x51e   : > { %vm2579_vm10 = vcmp.gt.f32.partialorder %v12591_v44, 0.0  ;;  %v2651_v4 = vmin.f32 %v12685_v25, 0.0  ;;  %v15780_v54 = vcombine.high %v15778_v38, %v15779_v63  ;;  %v8510_v27 = vadd.f32 -1.0, %v9519_v39  ;;  %v9525_v6 = vpop.eup %9524  ;;  %v15784_v39 = vld [vmem:[#allocation102_spill] sm:$0xff] }
 0x51f   : > { %4785 = vmatpush1.bf16.msra.mxu0 %v15777_v53  ;;  %v8513_v29 = vadd.f32 -1.0, %v9521_v26  ;;  %9536 = vpow2.f32 %v2748_v60  ;;  %v2754_v21 = vmul.f32 1.442695, %v2652_v35  ;;  %v15781_v55 = vcombine.low %v15774_v32, %v15775_v34  ;;  %v15782_v53 = vld [vmem:[#allocation78_spill] sm:$0xff]  ;;  %v9527_v60 = vpop.eup %9526  ;;  %v15786_v35 = vld [vmem:[#allocation87_spill] sm:$0xff] }
 0x520   : > { %4786 = vmatprep.subr.bf16.mxu0 %v15780_v54  ;;  %v2896_v49 = vsel %vm2576_vm8, %v12535_v16, %v8511_v8  ;;  %9538 = vpow2.f32 %v2750_v58  ;;  %v2752_v36 = vmul.f32 1.442695, %v2651_v4  ;;  %v12731_v0 = vadd.f32 %v2517_v3, %v15782_v53  ;;  %v2523_v54 = vpop.f32.mrf.mxu1  ;;  %v2412_v4 = vpop.f32.mrf.mxu0  ;;  %v15788_v53 = vld [vmem:[#allocation38_spill] sm:$0xff] }
 0x521   : > { %4898 = vmatpush1.bf16.msra.mxu1 %v15781_v55  ;;  %v15785_v26 = vcombine.high %v15783_v10, %v15784_v39  ;;  %v2898_v32 = vsel %vm2578_vm12, %v12551_v28, %v8513_v29  ;;  %v8515_v34 = vadd.f32 -1.0, %v9525_v6  ;;  %9540 = vpow2.f32 %v2754_v21  ;;  %v15792_v29 = vld [vmem:[#allocation37_spill] sm:$0xff] }
 0x522   : > { %v12740_v55 = vadd.f32 %v2408_v12, %v15786_v35  ;;  %v15787_v16 = vcombine.low %v15778_v38, %v15779_v63  ;;  %v8512_v3 = vadd.f32 -1.0, %v9523_v62  ;;  %v12745_v8 = vpack.c.bf16 %v2898_v32, %v2894_v33  ;;  %v15794_v6 = vld [vmem:[#allocation97_spill] sm:$0xff] }
 0x523   : > { %4899 = vmatprep.subr.bf16.mxu1 %v15785_v26  ;;  %v8514_v58 = vadd.f32 -1.0, %v9527_v60  ;;  %9542 = vpow2.f32 %v2752_v36  ;;  %v15789_v26 = vld [vmem:[#allocation32_spill] sm:$0xff]  ;;  %v2895_v28 = vsel %vm2575_vm9, %v12539_v9, %v8510_v27  ;;  %v2900_v12 = vsel %vm2580_vm11, %v12585_v50, %v8515_v34  ;;  %v15793_v27 = vld [vmem:[#allocation103_spill] sm:$0xff]  ;;  %v2525_v50 = vpop.f32.mrf.mxu1  ;;  %v9529_v32 = vpop.eup %9528 }
 0x524   : > { %4787 = vmatpush2.bf16.msra.mxu0 %v15787_v16  ;;  %v15790_v15 = vcombine.high %v15788_v53, %v15789_v26  ;;  %v2653_v38 = vmin.f32 %v12731_v0, 0.0  ;;  %v2654_v33 = vmin.f32 %v12740_v55, 0.0  ;;  %v15791_v63 = vcombine.low %v15783_v10, %v15784_v39  ;;  %v15795_v36 = vld [vmem:[#allocation48_spill] sm:$0xff]  ;;  %v15797_v34 = vld [vmem:[#allocation51_spill] sm:$0xff] }
 0x525   : > { %v12761_v62 = vpack.c.bf16 %v2900_v12, %v2896_v49  ;;  %v12767_v9 = vadd.f32 %v2521_v61, %v15792_v29  ;;  %v12770_v21 = vadd.f32 %v2410_v45, %v15793_v27  ;;  %v15796_v60 = vcombine.high %v15794_v6, %v15795_v36  ;;  %v9531_v61 = vpop.eup %9530  ;;  %v15800_v12 = vld [vmem:[#allocation41_spill] sm:$0xff]  ;;  %v2527_v27 = vpop.f32.mrf.mxu1 }
 0x526   : > { %4788 = vmatprep.subr.bf16.mxu0 %v15790_v15  ;;  %4900 = vmatpush2.bf16.msra.mxu1 %v15791_v63  ;;  %v2899_v15 = vsel %vm2579_vm10, %v12591_v44, %v8514_v58  ;;  %v2756_v49 = vmul.f32 1.442695, %v2653_v38  ;;  %v2758_v39 = vmul.f32 1.442695, %v2654_v33  ;;  %v12778_v35 = vadd.f32 %v2523_v54, %v15797_v34  ;;  %v2414_v58 = vpop.f32.mrf.mxu0  ;;  %v9533_v33 = vpop.eup %9532 }
 0x527   : > { %4901 = vmatprep.subr.bf16.mxu1 %v15796_v60  ;;  %v12775_v10 = vpack.c.bf16 %v2899_v15, %v2895_v28  ;;  %v15798_v44 = vcombine.low %v15788_v53, %v15789_v26  ;;  %vm2581_vm14 = vcmp.gt.f32.partialorder %v12609_v51, 0.0  ;;  %v8516_v45 = vadd.f32 -1.0, %v9529_v32  ;;  %v15799_v28 = vld [vmem:[#allocation29_spill] sm:$0xff] }
 0x528   : > { %vm2582_vm0 = vcmp.gt.f32.partialorder %v12612_v23, 0.0  ;;  %v2656_v16 = vmin.f32 %v12767_v9, 0.0  ;;  %v15801_v38 = vcombine.high %v15799_v28, %v15800_v12  ;;  %v2897_v54 = vsel %vm2577_vm13, %v12548_v14, %v8512_v3  ;;  %v15803_v14 = vld [vmem:[#allocation46_spill] sm:$0xff]  ;;  %v9535_v32 = vpop.eup %9534 }
 0x529   : > { %4789 = vmatpush2.bf16.msra.mxu0 %v15798_v44  ;;  %vm2584_vm15 = vcmp.gt.f32.partialorder %v12621_v31, 0.0  ;;  %9544 = vpow2.f32 %v2756_v49  ;;  %v2655_v53 = vmin.f32 %v12770_v21, 0.0  ;;  %4606 = vmatprep.mubr.bf16.mxu0 %v12775_v10  ;;  %v15802_v26 = vcombine.low %v15794_v6, %v15795_v36  ;;  %v15804_v3 = vld [vmem:[#allocation42_spill] sm:$0xff] }
 0x52a   : > { %4790 = vmatprep.subr.bf16.mxu0 %v15801_v38  ;;  %v2901_v63 = vsel %vm2581_vm14, %v12609_v51, %v8516_v45  ;;  %v8517_v15 = vadd.f32 -1.0, %v9531_v61  ;;  %9546 = vpow2.f32 %v2758_v39  ;;  %v2762_v29 = vmul.f32 1.442695, %v2656_v16  ;;  %4607 = vmatmul.mubr.bf16.gmra.mxu0 %v12745_v8  ;;  %v15807_v39 = vld [vmem:[#allocation34_spill] sm:$0xff]  ;;  %v2418_v45 = vpop.f32.mrf.mxu0  ;;  %v15809_v38 = vld [vmem:[#allocation52_spill] sm:$0xff] }
 0x52b   : > { %4902 = vmatpush2.bf16.msra.mxu1 %v15802_v26  ;;  %v15805_v60 = vcombine.high %v15803_v14, %v15804_v3  ;;  %v12803_v49 = vpack.c.bf16 %v2901_v63, %v2897_v54  ;;  %v8519_v34 = vadd.f32 -1.0, %v9533_v33  ;;  %v2760_v44 = vmul.f32 1.442695, %v2655_v53  ;;  %v15808_v16 = vld [vmem:[#allocation98_spill] sm:$0xff]  ;;  %v15811_v53 = vld [vmem:[#allocation44_spill] sm:$0xff] }
 0x52c   : > { %v2657_v6 = vmin.f32 %v12778_v35, 0.0  ;;  %v15806_v51 = vcombine.low %v15799_v28, %v15800_v12  ;;  %vm2583_vm8 = vcmp.gt.f32.partialorder %v12633_v20, 0.0  ;;  %v8518_v36 = vadd.f32 -1.0, %v9535_v32  ;;  %v15812_v63 = vld [vmem:[#allocation72_spill] sm:$0xff]  ;;  %v15814_v32 = vld [vmem:[#allocation85_spill] sm:$0xff] }
 0x52d   : > { %4903 = vmatprep.subr.bf16.mxu1 %v15805_v60  ;;  %9548 = vpow2.f32 %v2762_v29  ;;  %v12811_v61 = vadd.f32 %v2412_v4, %v15807_v39  ;;  %v15810_v54 = vcombine.high %v15808_v16, %v15809_v38  ;;  %v12817_v26 = vadd.f32 %v2525_v50, %v15811_v53  ;;  %4719 = vmatprep.mubr.bf16.mxu1 %v12803_v49  ;;  %v9537_v4 = vpop.eup %9536  ;;  %v2531_v50 = vpop.f32.mrf.mxu1 }
 0x52e   : > { %4791 = vmatpush2.bf16.msra.mxu0 %v15806_v51  ;;  %9550 = vpow2.f32 %v2760_v44  ;;  %v2764_v33 = vmul.f32 1.442695, %v2657_v6  ;;  %v12820_v28 = vadd.f32 %v2414_v58, %v15812_v63  ;;  %v15813_v12 = vcombine.low %v15803_v14, %v15804_v3  ;;  %4720 = vmatmul.mubr.bf16.gmra.mxu1 %v12761_v62  ;;  %v9539_v58 = vpop.eup %9538 }
 0x52f   : > { %4792 = vmatprep.subr.bf16.mxu0 %v15810_v54  ;;  %vm2586_vm9 = vcmp.gt.f32.partialorder %v12670_v41, 0.0  ;;  %vm2588_vm12 = vcmp.gt.f32.partialorder %v12682_v5, 0.0  ;;  %vm2587_vm13 = vcmp.gt.f32.partialorder %v12685_v25, 0.0  ;;  %v2658_v29 = vmin.f32 %v12811_v61, 0.0  ;;  %v9541_v51 = vpop.eup %9540  ;;  %v2420_v54 = vpop.f32.mrf.mxu0 }
 0x530   : > { %4904 = vmatpush2.bf16.msra.mxu1 %v15813_v12  ;;  %v2902_v14 = vsel %vm2582_vm0, %v12612_v23, %v8517_v15  ;;  %v2904_v3 = vsel %vm2584_vm15, %v12621_v31, %v8519_v34  ;;  %v2660_v60 = vmin.f32 %v12817_v26, 0.0  ;;  %v12842_v44 = vadd.f32 %v2527_v27, %v15814_v32  ;;  %v9543_v31 = vpop.eup %9542  ;;  %v2533_v53 = vpop.f32.mrf.mxu1  ;;  %v15818_v12 = vld [vmem:[#allocation100_spill] sm:$0xff]  ;;  %v15820_v32 = vld [vmem:[#allocation43_spill] sm:$0xff] }
 0x531   : > { %4905 = vmatprep.subr.bf16.mxu1 %v8776_v19  ;;  %v15815_v6 = vcombine.low %v15808_v16, %v15809_v38  ;;  %v2903_v19 = vsel %vm2583_vm8, %v12633_v20, %v8518_v36  ;;  %v8521_v39 = vadd.f32 -1.0, %v9539_v58  ;;  %v2766_v23 = vmul.f32 1.442695, %v2658_v29  ;;  %v2422_v29 = vpop.f32.mrf.mxu0 }
 0x532   : > { %v2659_v15 = vmin.f32 %v12820_v28, 0.0  ;;  %v8520_v27 = vadd.f32 -1.0, %v9537_v4  ;;  %v8523_v34 = vadd.f32 -1.0, %v9541_v51  ;;  %9552 = vpow2.f32 %v2764_v33 }
 0x533   : > { %4793 = vmatpush2.bf16.msra.mxu0 %v15815_v6  ;;  %v2770_v16 = vmul.f32 1.442695, %v2660_v60  ;;  %v2906_v20 = vsel %vm2586_vm9, %v12670_v41, %v8521_v39  ;;  %v8522_v36 = vadd.f32 -1.0, %v9543_v31  ;;  %9554 = vpow2.f32 %v2766_v23  ;;  %v15823_v6 = vld [vmem:[#allocation108_spill] sm:$0xff] }
 0x534   : > { %4794 = vmatprep.subr.bf16.mxu0 %v8640_v18  ;;  %4906 = vmatpush2.bf16.msra.mxu1 %v8775_v13  ;;  %v2768_v38 = vmul.f32 1.442695, %v2659_v15  ;;  %v15816_v18 = vcombine.high %v12528_v24, %v12530_v17  ;;  %v12863_v63 = vpack.c.bf16 %v2906_v20, %v2902_v14  ;;  %v2908_v33 = vsel %vm2588_vm12, %v12682_v5, %v8523_v34  ;;  %v15819_v14 = vld [vmem:[#allocation54_spill] sm:$0xff]  ;;  %v15825_v31 = vld [vmem:[#allocation36_spill] sm:$0xff] }
 0x535   : > { %9556 = vpow2.f32 %v2770_v16  ;;  %v2661_v57 = vmin.f32 %v12842_v44, 0.0  ;;  %v15817_v52 = vcombine.low %v12507_v22, %v12509_v48  ;;  %v12872_v13 = vpack.c.bf16 %v2908_v33, %v2904_v3  ;;  %v2424_v16 = vpop.f32.mrf.mxu0 }
 0x536   : > { %4907 = vmatprep.subr.bf16.mxu1 %v15816_v18  ;;  %v2907_v41 = vsel %vm2587_vm13, %v12685_v25, %v8522_v36  ;;  %9558 = vpow2.f32 %v2768_v38  ;;  %v12878_v4 = vadd.f32 %v2418_v45, %v15818_v12  ;;  %v12883_v60 = vadd.f32 %v2531_v50, %v15819_v14  ;;  %v9545_v3 = vpop.eup %9544  ;;  %v15822_v25 = vld [vmem:[#allocation39_spill] sm:$0xff]  ;;  %v2535_v50 = vpop.f32.mrf.mxu1 }
 0x537   : > { %4795 = vmatpush2.bf16.msra.mxu0 %v15817_v52  ;;  %v12880_v58 = vpack.c.bf16 %v2907_v41, %v2903_v19  ;;  %v2772_v5 = vmul.f32 1.442695, %v2661_v57  ;;  %v12886_v22 = vadd.f32 %v2420_v54, %v15820_v32  ;;  %v15821_v48 = vcombine.low %v12528_v24, %v12530_v17  ;;  %v15824_v19 = vld [vmem:[#allocation50_spill] sm:$0xff]  ;;  %v9547_v23 = vpop.eup %9546  ;;  %v2428_v14 = vpop.f32.mrf.mxu0 }
 0x538   : > { %v12893_v51 = vadd.f32 %v15823_v6, %v15822_v25  ;;  %vm2585_vm11 = vcmp.gt.f32.partialorder %v12667_v1, 0.0  ;;  %v2662_v45 = vmin.f32 %v12878_v4, 0.0  ;;  %v12898_v39 = vadd.f32 %v2533_v53, %v15824_v19  ;;  %v2537_v41 = vpop.f32.mrf.mxu1 }
 0x539   : > { %4908 = vmatpush2.bf16.msra.mxu1 %v15821_v48  ;;  %vm2589_vm10 = vcmp.gt.f32.partialorder %v12731_v0, 0.0  ;;  %v8524_v15 = vadd.f32 -1.0, %v9545_v3  ;;  %9560 = vpow2.f32 %v2772_v5  ;;  %v2664_v24 = vmin.f32 %v12883_v60, 0.0  ;;  %4616 = vmatprep.mubr.bf16.mxu0 %v12880_v58  ;;  %v15827_v48 = vld [vmem:[#allocation77_spill] sm:$0xff] }
 0x53a   : > { %vm2590_vm14 = vcmp.gt.f32.partialorder %v12740_v55, 0.0  ;;  %v2774_v17 = vmul.f32 1.442695, %v2662_v45  ;;  %v2663_v54 = vmin.f32 %v12886_v22, 0.0  ;;  %v12906_v34 = vadd.f32 %v2422_v29, %v15825_v31  ;;  %4617 = vmatmul.mubr.bf16.gmra.mxu0 %v12863_v63  ;;  %v9549_v20 = vpop.eup %9548 }
 0x53b   : > { %v2905_v36 = vsel %vm2585_vm11, %v12667_v1, %v8520_v27  ;;  %v2909_v38 = vsel %vm2589_vm10, %v12731_v0, %v8524_v15  ;;  %v2778_v53 = vmul.f32 1.442695, %v2664_v24  ;;  %v2665_v18 = vmin.f32 %v12898_v39, 0.0  ;;  %v9551_v33 = vpop.eup %9550  ;;  %v15826_v1 = vld [vmem:[#allocation47_spill] sm:$0xff] }
 0x53c   : > { %v12914_v57 = vpack.c.bf16 %v2909_v38, %v2905_v36  ;;  %v8525_v52 = vadd.f32 -1.0, %v9547_v23  ;;  %vm2592_vm0 = vcmp.gt.f32.partialorder %v12767_v9, 0.0  ;;  %9562 = vpow2.f32 %v2774_v17  ;;  %v15828_v17 = vld [vmem:[#allocation90_spill] sm:$0xff]  ;;  %v2430_v38 = vpop.f32.mrf.mxu0 }
 0x53d   : > { %v8527_v12 = vadd.f32 -1.0, %v9549_v20  ;;  %9564 = vpow2.f32 %v2778_v53  ;;  %v2776_v29 = vmul.f32 1.442695, %v2663_v54  ;;  %v2780_v5 = vmul.f32 1.442695, %v2665_v18  ;;  %v15829_v20 = vld [vmem:[#allocation56_spill] sm:$0xff] }
 0x53e   : > { %vm2591_vm15 = vcmp.gt.f32.partialorder %v12770_v21, 0.0  ;;  %vm2594_vm8 = vcmp.gt.f32.partialorder %v12811_v61, 0.0  ;;  %v2666_v0 = vmin.f32 %v12906_v34, 0.0  ;;  %v12921_v27 = vadd.f32 %v2535_v50, %v15826_v1  ;;  %4729 = vmatprep.mubr.bf16.mxu1 %v12914_v57  ;;  %v2541_v50 = vpop.f32.mrf.mxu1 }
 0x53f   : > { %v8526_v32 = vadd.f32 -1.0, %v9551_v33  ;;  %vm2596_vm9 = vcmp.gt.f32.partialorder %v12817_v26, 0.0  ;;  %vm2595_vm12 = vcmp.gt.f32.partialorder %v12820_v28, 0.0  ;;  %v12927_v3 = vadd.f32 %v2424_v16, %v15827_v48  ;;  %4730 = vmatmul.mubr.bf16.gmra.mxu1 %v12872_v13  ;;  %v9553_v25 = vpop.eup %9552 }
 0x540   : > { %v2910_v6 = vsel %vm2590_vm14, %v12740_v55, %v8525_v52  ;;  %vm2593_vm13 = vcmp.gt.f32.partialorder %v12778_v35, 0.0  ;;  %9566 = vpow2.f32 %v2776_v29  ;;  %v2782_v45 = vmul.f32 1.442695, %v2666_v0  ;;  %v9555_v23 = vpop.eup %9554 }
 0x541   : > { %v2668_v19 = vmin.f32 %v12921_v27, 0.0  ;;  %v2912_v15 = vsel %vm2592_vm0, %v12767_v9, %v8527_v12  ;;  %9568 = vpow2.f32 %v2780_v5  ;;  %v2667_v24 = vmin.f32 %v12927_v3, 0.0  ;;  %v2543_v5 = vpop.f32.mrf.mxu1 }
 0x542   : > { %v12940_v54 = vadd.f32 %v2537_v41, %v15828_v17  ;;  %v9557_v31 = vpop.eup %9556  ;;  %v8529_v55 = vadd.f32 -1.0, %v9555_v23  ;;  %9570 = vpow2.f32 %v2782_v45  ;;  %v12943_v36 = vadd.f32 %v2428_v14, %v15829_v20  ;;  %v12971_v17 = vld [vmem:[#allocation7 + $0x288] sm:$0xff] }
 0x543   : > { %v2786_v16 = vmul.f32 1.442695, %v2668_v19  ;;  %v9559_v53 = vpop.eup %9558  ;;  %v2911_v18 = vsel %vm2591_vm15, %v12770_v21, %v8526_v32  ;;  %v8531_v9 = vadd.f32 -1.0, %v9557_v31  ;;  %v2784_v33 = vmul.f32 1.442695, %v2667_v24 }
 0x544   : > { %v2669_v52 = vmin.f32 %v12940_v54, 0.0  ;;  %v8528_v12 = vadd.f32 -1.0, %v9553_v25  ;;  %v2914_v41 = vsel %vm2594_vm8, %v12811_v61, %v8529_v55  ;;  %v8530_v29 = vadd.f32 -1.0, %v9559_v53  ;;  %v15830_v25 = vld [vmem:[#allocation64_spill] sm:$0xff]  ;;  %v15832_v55 = vld [vmem:[#allocation59_spill] sm:$0xff] }
 0x545   : > { %9572 = vpow2.f32 %v2786_v16  ;;  %v12952_v0 = vpack.c.bf16 %v2914_v41, %v2910_v6  ;;  %v2916_v1 = vsel %vm2596_vm9, %v12817_v26, %v8531_v9  ;;  %v2670_v61 = vmin.f32 %v12943_v36, 0.0  ;;  %v2432_v6 = vpop.f32.mrf.mxu0  ;;  %v15831_v26 = vld [vmem:[#allocation49_spill] sm:$0xff]  ;;  %v2545_v16 = vpop.f32.mrf.mxu1  ;;  %v15833_v9 = vld [vmem:[#allocation99_spill] sm:$0xff] }
 0x546   : > { %9574 = vpow2.f32 %v2784_v33  ;;  %v2788_v21 = vmul.f32 1.442695, %v2669_v52  ;;  %v9561_v14 = vpop.eup %9560  ;;  %v12957_v32 = vpack.c.bf16 %v2916_v1, %v2912_v15  ;;  %v2915_v48 = vsel %vm2595_vm12, %v12820_v28, %v8530_v29  ;;  %v12973_v15 = vld [vmem:[#allocation7 + $0x2a8] sm:$0xff] }
 0x547   : > { %v12964_v45 = vadd.f32 %v2541_v50, %v15830_v25  ;;  %v12966_v19 = vpack.c.bf16 %v2915_v48, %v2911_v18  ;;  %v8532_v23 = vadd.f32 -1.0, %v9561_v14  ;;  %v12969_v24 = vadd.f32 %v2430_v38, %v15831_v26  ;;  %v2434_v1 = vpop.f32.mrf.mxu0  ;;  %v2547_v48 = vpop.f32.mrf.mxu1  ;;  %v15834_v26 = vld [vmem:[#allocation57_spill] sm:$0xff] }
 0x548   : > { %9576 = vpow2.f32 %v2788_v21  ;;  %vm2597_vm11 = vcmp.gt.f32.partialorder %v12842_v44, 0.0  ;;  %v2790_v28 = vmul.f32 1.442695, %v2670_v61  ;;  %v12978_v50 = vadd.f32 %v2543_v5, %v15832_v55 }
 0x549   : > { %v2672_v31 = vmin.f32 %v12964_v45, 0.0  ;;  %v9563_v20 = vpop.eup %9562  ;;  %v2913_v53 = vsel %vm2593_vm13, %v12778_v35, %v8528_v12  ;;  %v2917_v38 = vsel %vm2597_vm11, %v12842_v44, %v8532_v23  ;;  %v2671_v18 = vmin.f32 %v12969_v24, 0.0  ;;  %4626 = vmatprep.mubr.bf16.mxu0 %v12966_v19 }
 0x54a   : > { %v12986_v33 = vadd.f32 %v2432_v6, %v15833_v9  ;;  %v9565_v52 = vpop.eup %9564  ;;  %v12989_v41 = vpack.c.bf16 %v2917_v38, %v2913_v53  ;;  %vm2598_vm10 = vcmp.gt.f32.partialorder %v12878_v4, 0.0  ;;  %4627 = vmatmul.mubr.bf16.gmra.mxu0 %v12952_v0  ;;  %v8631_v35 = vcombine.low %v12971_v17, %v12973_v15  ;;  %v3175_v9 = vld [vmem:[#allocation7 + $0x688] sm:$0xff] }
 0x54b   : > { %v2794_v29 = vmul.f32 1.442695, %v2672_v31  ;;  %v8533_v12 = vadd.f32 -1.0, %v9563_v20  ;;  %vm2600_vm14 = vcmp.gt.f32.partialorder %v12883_v60, 0.0  ;;  %v2792_v44 = vmul.f32 1.442695, %v2671_v18 }
 0x54c   : > { %v2673_v5 = vmin.f32 %v12978_v50, 0.0  ;;  %v8535_v21 = vadd.f32 -1.0, %v9565_v52  ;;  %vm2599_vm0 = vcmp.gt.f32.partialorder %v12886_v22, 0.0  ;;  %9578 = vpow2.f32 %v2790_v28  ;;  %4739 = vmatprep.mubr.bf16.mxu1 %v12989_v41  ;;  %v15835_v31 = vld [vmem:[#allocation81_spill] sm:$0xff] }
 0x54d   : > { %v2674_v14 = vmin.f32 %v12986_v33, 0.0  ;;  %v9567_v61 = vpop.eup %9566  ;;  %vm2602_vm15 = vcmp.gt.f32.partialorder %v12906_v34, 0.0  ;;  %vm2604_vm8 = vcmp.gt.f32.partialorder %v12921_v27, 0.0  ;;  %vm2603_vm9 = vcmp.gt.f32.partialorder %v12927_v3, 0.0  ;;  %4740 = vmatmul.mubr.bf16.gmra.mxu1 %v12957_v32  ;;  %v3179_v52 = vld [vmem:[#allocation7 + $0x6a8] sm:$0xff] }
 0x54e   : > { %v2796_v25 = vmul.f32 1.442695, %v2673_v5  ;;  %v9569_v6 = vpop.eup %9568  ;;  %vm2601_vm12 = vcmp.gt.f32.partialorder %v12898_v39, 0.0  ;;  %vm2605_vm13 = vcmp.gt.f32.partialorder %v12940_v54, 0.0  ;;  %9580 = vpow2.f32 %v2794_v29 }
 0x54f   : > { %v2798_v23 = vmul.f32 1.442695, %v2674_v14  ;;  %v13007_v28 = vadd.f32 %v2545_v16, %v15834_v26  ;;  %v13010_v55 = vadd.f32 %v2434_v1, %v15835_v31  ;;  %v9571_v20 = vpop.eup %9570  ;;  %v2918_v53 = vsel %vm2598_vm10, %v12878_v4, %v8533_v12 }
 0x550   : > { %9582 = vpow2.f32 %v2792_v44  ;;  %v13016_v38 = vadd.f32 %v2547_v48, %v12893_v51  ;;  %v8632_v18 = vcombine.high %v12971_v17, %v12973_v15  ;;  %v2920_v16 = vsel %vm2600_vm14, %v12883_v60, %v8535_v21  ;;  %v3039_v21 = vld [vmem:[#allocation7 + $0x248] sm:$0xff] }
 0x551   : > { %v8534_v29 = vadd.f32 -1.0, %v9567_v61  ;;  %v8537_v5 = vadd.f32 -1.0, %v9571_v20  ;;  %9584 = vpow2.f32 %v2798_v23  ;;  %v8536_v14 = vadd.f32 -1.0, %v9569_v6  ;;  %v3043_v23 = vld [vmem:[#allocation7 + $0x268] sm:$0xff] }
 0x552   : > { %v9573_v1 = vpop.eup %9572  ;;  %9586 = vpow2.f32 %v2796_v25  ;;  %v2676_v4 = vmin.f32 %v13007_v28, 0.0  ;;  %v2675_v51 = vmin.f32 %v13010_v55, 0.0  ;;  %4796 = vmatprep.subr.bf16.mxu0 %v8632_v18  ;;  %v2677_v44 = vmin.f32 %v13016_v38, 0.0 }
 0x553   : > { %v9575_v12 = vpop.eup %9574  ;;  %v2922_v17 = vsel %vm2602_vm15, %v12906_v34, %v8537_v5  ;;  %v8539_v15 = vadd.f32 -1.0, %v9573_v1  ;;  %v8759_v60 = vcombine.low %v3175_v9, %v3179_v52  ;;  %4797 = vmatpush2.bf16.msra.mxu0 %v8631_v35  ;;  %v2919_v31 = vsel %vm2599_vm0, %v12886_v22, %v8534_v29  ;;  %v3167_v5 = vld [vmem:[#allocation7 + $0x648] sm:$0xff] }
 0x554   : > { %v13029_v48 = vpack.c.bf16 %v2922_v17, %v2918_v53  ;;  %v8538_v61 = vadd.f32 -1.0, %v9575_v12  ;;  %v2802_v25 = vmul.f32 1.442695, %v2676_v4  ;;  %v2800_v6 = vmul.f32 1.442695, %v2675_v51  ;;  %v3171_v35 = vld [vmem:[#allocation7 + $0x668] sm:$0xff] }
 0x555   : > { %v9577_v26 = vpop.eup %9576  ;;  %v2924_v34 = vsel %vm2604_vm8, %v12921_v27, %v8539_v15  ;;  %v2804_v20 = vmul.f32 1.442695, %v2677_v44  ;;  %v8760_v18 = vcombine.high %v3175_v9, %v3179_v52  ;;  %v3031_v51 = vld [vmem:[#allocation7 + $0x208] sm:$0xff]  ;;  %v8623_v22 = vcombine.low %v3039_v21, %v3043_v23 }
 0x556   : > { %v13037_v1 = vpack.c.bf16 %v2924_v34, %v2920_v16  ;;  %v2923_v53 = vsel %vm2603_vm9, %v12927_v3, %v8538_v61  ;;  %v8540_v4 = vadd.f32 -1.0, %v9577_v26  ;;  %9588 = vpow2.f32 %v2802_v25  ;;  %v3035_v12 = vld [vmem:[#allocation7 + $0x228] sm:$0xff]  ;;  %v13053_v61 = vld [vmem:[#allocation7 + $0x1d0] sm:$0xff] }
 0x557   : > { %v13042_v17 = vpack.c.bf16 %v2923_v53, %v2919_v31  ;;  %9590 = vpow2.f32 %v2800_v6  ;;  %4909 = vmatprep.subr.bf16.mxu1 %v8760_v18  ;;  %v8624_v27 = vcombine.high %v3039_v21, %v3043_v23  ;;  %v3159_v29 = vld [vmem:[#allocation7 + $0x608] sm:$0xff]  ;;  %v2921_v52 = vsel %vm2601_vm12, %v12898_v39, %v8536_v14  ;;  %v13055_v25 = vld [vmem:[#allocation7 + $0x1f0] sm:$0xff] }
 0x558   : > { %v3163_v9 = vld [vmem:[#allocation7 + $0x628] sm:$0xff]  ;;  %v2925_v3 = vsel %vm2605_vm13, %v12940_v54, %v8540_v4  ;;  %9592 = vpow2.f32 %v2804_v20  ;;  %4910 = vmatpush2.bf16.msra.mxu1 %v8759_v60  ;;  %v8752_v16 = vcombine.high %v3167_v5, %v3171_v35  ;;  %v8751_v44 = vcombine.low %v3167_v5, %v3171_v35  ;;  %v13059_v14 = vld [vmem:[#allocation7 + $0x5d0] sm:$0xff] }
 0x559   : > { %v13050_v15 = vpack.c.bf16 %v2925_v3, %v2921_v52  ;;  %4636 = vmatprep.mubr.bf16.mxu0 %v13042_v17  ;;  %4798 = vmatprep.subr.bf16.mxu0 %v8624_v27  ;;  %v8616_v21 = vcombine.high %v3031_v51, %v3035_v12  ;;  %v9579_v6 = vpop.eup %9578  ;;  %v8744_v39 = vcombine.high %v3159_v29, %v3163_v9  ;;  %v13061_v60 = vld [vmem:[#allocation7 + $0x5f0] sm:$0xff]  ;;  %vm2606_vm11 = vcmp.gt.f32.partialorder %v12943_v36, 0.0 }
 0x55a   : > { %4637 = vmatmul.mubr.bf16.gmra.mxu0 %v13029_v48  ;;  %4911 = vmatprep.subr.bf16.mxu1 %v8752_v16  ;;  %v8615_v54 = vcombine.low %v3031_v51, %v3035_v12  ;;  %v8610_v26 = vcombine.high %v13053_v61, %v13055_v25  ;;  %v8541_v34 = vadd.f32 -1.0, %v9579_v6  ;;  %v8743_v20 = vcombine.low %v3159_v29, %v3163_v9 }
 0x55b   : > { %4749 = vmatprep.mubr.bf16.mxu1 %v13050_v15  ;;  %4799 = vmatpush2.bf16.msra.mxu0 %v8623_v22  ;;  %v9581_v23 = vpop.eup %9580  ;;  %v8738_v5 = vcombine.high %v13059_v14, %v13061_v60  ;;  %vm2610_vm10 = vcmp.gt.f32.partialorder %v12986_v33, 0.0  ;;  %vm2608_vm14 = vcmp.gt.f32.partialorder %v12964_v45, 0.0  ;;  %vm2607_vm0 = vcmp.gt.f32.partialorder %v12969_v24, 0.0 }
 0x55c   : > { %4750 = vmatmul.mubr.bf16.gmra.mxu1 %v13037_v1  ;;  %4800 = vmatprep.subr.bf16.mxu0 %v8616_v21  ;;  %v2926_v4 = vsel %vm2606_vm11, %v12943_v36, %v8541_v34  ;;  %v8543_v12 = vadd.f32 -1.0, %v9581_v23  ;;  %vm2609_vm15 = vcmp.gt.f32.partialorder %v12978_v50, 0.0  ;;  %vm2612_vm8 = vcmp.gt.f32.partialorder %v13007_v28, 0.0 }
 0x55d   : > { %v9583_v31 = vpop.eup %9582  ;;  %4912 = vmatpush2.bf16.msra.mxu1 %v8751_v44  ;;  %vm2611_vm9 = vcmp.gt.f32.partialorder %v13010_v55, 0.0  ;;  %vm2613_vm12 = vcmp.gt.f32.partialorder %v13016_v38, 0.0  ;;  %v8737_v34 = vcombine.low %v13059_v14, %v13061_v60  ;;  %v3000_v60 = vld [vmem:[#allocation7 + $0x110] sm:$0xff] }
 0x55e   : > { %v9585_v18 = vpop.eup %9584  ;;  %4913 = vmatprep.subr.bf16.mxu1 %v8744_v39  ;;  %v8542_v29 = vadd.f32 -1.0, %v9583_v31 }
 0x55f   : > { %v9587_v35 = vpop.eup %9586  ;;  %v8545_v53 = vadd.f32 -1.0, %v9585_v18  ;;  %4801 = vmatpush2.bf16.msra.mxu0 %v8615_v54 }
 0x560   : > { %4996 = vmatprep.subr.bf16.mxu0 %v8610_v26  ;;  %v8544_v52 = vadd.f32 -1.0, %v9587_v35  ;;  %v2927_v6 = vsel %vm2607_vm0, %v12969_v24, %v8542_v29  ;;  %v3016_v24 = vld [vmem:[#allocation7 + $0x190] sm:$0xff] }
 0x561   : > { %v2930_v51 = vsel %vm2610_vm10, %v12986_v33, %v8545_v53  ;;  %4914 = vmatpush2.bf16.msra.mxu1 %v8743_v20  ;;  %v2928_v33 = vsel %vm2608_vm14, %v12964_v45, %v8543_v12  ;;  %v3012_v35 = vld [vmem:[#allocation7 + $0x170] sm:$0xff] }
 0x562   : > { %v13072_v22 = vpack.c.bf16 %v2930_v51, %v2926_v4  ;;  %5109 = vmatprep.subr.bf16.mxu1 %v8738_v5  ;;  %v2929_v23 = vsel %vm2609_vm15, %v12978_v50, %v8544_v52  ;;  %v3020_v50 = vld [vmem:[#allocation7 + $0x1b0] sm:$0xff] }
 0x563   : > { %v9589_v27 = vpop.eup %9588  ;;  %v8602_v20 = vcombine.high %v3016_v24, %v3020_v50  ;;  %v3008_v5 = vld [vmem:[#allocation7 + $0x150] sm:$0xff]  ;;  %v8601_v51 = vcombine.low %v3016_v24, %v3020_v50 }
 0x564   : > { %v9591_v9 = vpop.eup %9590  ;;  %v8547_v3 = vadd.f32 -1.0, %v9589_v27  ;;  %v3136_v53 = vld [vmem:[#allocation7 + $0x550] sm:$0xff] }
 0x565   : > { %v9593_v16 = vpop.eup %9592  ;;  %v8546_v36 = vadd.f32 -1.0, %v9591_v9  ;;  %v3140_v4 = vld [vmem:[#allocation7 + $0x570] sm:$0xff]  ;;  %v8593_v9 = vcombine.low %v3008_v5, %v3012_v35 }
 0x566   : > { %v2932_v44 = vsel %vm2612_vm8, %v13007_v28, %v8547_v3  ;;  %v8548_v21 = vadd.f32 -1.0, %v9593_v16  ;;  %v3144_v28 = vld [vmem:[#allocation7 + $0x590] sm:$0xff]  ;;  %v8722_v14 = vcombine.high %v3136_v53, %v3140_v4  ;;  %v8721_v52 = vcombine.low %v3136_v53, %v3140_v4 }
 0x567   : > { %v13082_v39 = vpack.c.bf16 %v2932_v44, %v2928_v33  ;;  %v2931_v54 = vsel %vm2611_vm9, %v13010_v55, %v8546_v36  ;;  %v3148_v55 = vld [vmem:[#allocation7 + $0x5b0] sm:$0xff] }
 0x568   : > { %v13087_v26 = vpack.c.bf16 %v2931_v54, %v2927_v6  ;;  %v2933_v31 = vsel %vm2613_vm12, %v13016_v38, %v8548_v21  ;;  %v8609_v38 = vcombine.low %v13053_v61, %v13055_v25  ;;  %v8730_v18 = vcombine.high %v3144_v28, %v3148_v55  ;;  %v3004_v12 = vld [vmem:[#allocation7 + $0x130] sm:$0xff] }
 0x569   : > { %v13090_v45 = vpack.c.bf16 %v2933_v31, %v2929_v23  ;;  %v8729_v61 = vcombine.low %v3144_v28, %v3148_v55  ;;  %v8594_v25 = vcombine.high %v3008_v5, %v3012_v35  ;;  %v3128_v27 = vld [vmem:[#allocation7 + $0x510] sm:$0xff]  ;;  %v8586_v3 = vcombine.high %v3000_v60, %v3004_v12 }
 0x56a   : > { %4646 = vmatprep.mubr.bf16.mxu0 %v13087_v26  ;;  %v3132_v29 = vld [vmem:[#allocation7 + $0x530] sm:$0xff]  ;;  %v8585_v6 = vcombine.low %v3000_v60, %v3004_v12 }
 0x56b   : > { %4759 = vmatprep.mubr.bf16.mxu1 %v13090_v45  ;;  %4647 = vmatmul.mubr.bf16.gmra.mxu0 %v13072_v22  ;;  %v8714_v16 = vcombine.high %v3128_v27, %v3132_v29  ;;  %v2992_v36 = vld [vmem:[#allocation7 + $0xd0] sm:$0xff]  ;;  %v8713_v54 = vcombine.low %v3128_v27, %v3132_v29 }
 0x56c   : > { %4760 = vmatmul.mubr.bf16.gmra.mxu1 %v13082_v39  ;;  %4802 = vmatprep.mubr.bf16.mxu0 %v12422_v47  ;;  %v2996_v33 = vld [vmem:[#allocation7 + $0xf0] sm:$0xff] }
 0x56d   : > { %4915 = vmatprep.mubr.bf16.mxu1 %v12429_v56  ;;  %v3120_v44 = vld [vmem:[#allocation7 + $0x4d0] sm:$0xff]  ;;  %v8578_v23 = vcombine.high %v2992_v36, %v2996_v33 }
 0x56e   : > { %v3124_v21 = vld [vmem:[#allocation7 + $0x4f0] sm:$0xff] }
 0x56f   : > { %v8706_v31 = vcombine.high %v3120_v44, %v3124_v21  ;;  %v2984_v24 = vld [vmem:[#allocation7 + $0x90] sm:$0xff] }
 0x570   : > { %v2988_v50 = vld [vmem:[#allocation7 + $0xb0] sm:$0xff] }
 0x571   : > { %v3112_v28 = vld [vmem:[#allocation7 + $0x490] sm:$0xff] }
 0x572   : > { %v3116_v55 = vld [vmem:[#allocation7 + $0x4b0] sm:$0xff] }
 0x573   : > { %4803 = vmatmul.mubr.bf16.vlgmr.msra.gmra.mxu0 %v12400_v30  ;;  %v2976_v5 = vld [vmem:[#allocation7 + $0x50] sm:$0xff] }
 0x574   : > { %4916 = vmatmul.mubr.bf16.vlgmr.msra.gmra.mxu1 %v12406_v40  ;;  %4812 = vmatprep.mubr.bf16.mxu0 %v12514_v43  ;;  %v2980_v35 = vld [vmem:[#allocation7 + $0x70] sm:$0xff] }
 0x575   : > { %4925 = vmatprep.mubr.bf16.mxu1 %v12522_v7  ;;  %4997 = vmatpush1.bf16.msra.mxu0 %v8609_v38  ;;  %v8577_v38 = vcombine.low %v2992_v36, %v2996_v33  ;;  %v3104_v53 = vld [vmem:[#allocation7 + $0x450] sm:$0xff] }
 0x576   : > { %5110 = vmatpush1.bf16.msra.mxu1 %v8737_v34  ;;  %4998 = vmatprep.subr.bf16.mxu0 %v8602_v20  ;;  %v8705_v34 = vcombine.low %v3120_v44, %v3124_v21  ;;  %v8570_v20 = vcombine.high %v2984_v24, %v2988_v50  ;;  %v3108_v4 = vld [vmem:[#allocation7 + $0x470] sm:$0xff] }
 0x577   : > { %5111 = vmatprep.subr.bf16.mxu1 %v8730_v18  ;;  %v8698_v18 = vcombine.high %v3112_v28, %v3116_v55  ;;  %v2968_v60 = vld [vmem:[#allocation7 + $0x10] sm:$0xff] }
 0x578   : > { %v2972_v12 = vld [vmem:[#allocation7 + $0x30] sm:$0xff] }
 0x579   : > { %4999 = vmatpush1.bf16.msra.mxu0 %v8601_v51  ;;  %v8569_v51 = vcombine.low %v2984_v24, %v2988_v50  ;;  %v3096_v27 = vld [vmem:[#allocation7 + $0x410] sm:$0xff] }
 0x57a   : > { %5112 = vmatpush1.bf16.msra.mxu1 %v8729_v61  ;;  %5000 = vmatprep.subr.bf16.mxu0 %v8594_v25  ;;  %v8697_v61 = vcombine.low %v3112_v28, %v3116_v55  ;;  %v8562_v25 = vcombine.high %v2976_v5, %v2980_v35  ;;  %v3100_v29 = vld [vmem:[#allocation7 + $0x430] sm:$0xff] }
 0x57b   : > { %4813 = vmatmul.mubr.bf16.gmra.mxu0 %v12474_v42  ;;  %5113 = vmatprep.subr.bf16.mxu1 %v8722_v14  ;;  %v8690_v14 = vcombine.high %v3104_v53, %v3108_v4  ;;  %v3088_v36 = vld [vmem:[#allocation7 + $0x3d0] sm:$0xff] }
 0x57c   : > { %4926 = vmatmul.mubr.bf16.gmra.mxu1 %v12482_v59  ;;  %4822 = vmatprep.mubr.bf16.mxu0 %v12660_v2  ;;  %v3092_v33 = vld [vmem:[#allocation7 + $0x3f0] sm:$0xff] }
 0x57d   : > { %4935 = vmatprep.mubr.bf16.mxu1 %v12691_v46  ;;  %5001 = vmatpush1.bf16.msra.mxu0 %v8593_v9  ;;  %v8561_v9 = vcombine.low %v2976_v5, %v2980_v35  ;;  %v3216_v44 = vld [vmem:[#allocation7 + $0x7d0] sm:$0xff] }
 0x57e   : > { %5114 = vmatpush1.bf16.msra.mxu1 %v8721_v52  ;;  %5002 = vmatprep.subr.bf16.mxu0 %v8586_v3  ;;  %v8689_v52 = vcombine.low %v3104_v53, %v3108_v4  ;;  %v8554_v3 = vcombine.high %v2968_v60, %v2972_v12  ;;  %v3220_v21 = vld [vmem:[#allocation7 + $0x7f0] sm:$0xff] }
 0x57f   : > { %5115 = vmatprep.subr.bf16.mxu1 %v8714_v16  ;;  %v8682_v16 = vcombine.high %v3096_v27, %v3100_v29  ;;  %v3080_v24 = vld [vmem:[#allocation7 + $0x390] sm:$0xff] }
 0x580   : > { %v3084_v50 = vld [vmem:[#allocation7 + $0x3b0] sm:$0xff] }
 0x581   : > { %5003 = vmatpush1.bf16.msra.mxu0 %v8585_v6  ;;  %v8553_v6 = vcombine.low %v2968_v60, %v2972_v12  ;;  %v3208_v28 = vld [vmem:[#allocation7 + $0x790] sm:$0xff] }
 0x582   : > { %5116 = vmatpush1.bf16.msra.mxu1 %v8713_v54  ;;  %5004 = vmatprep.subr.bf16.mxu0 %v8578_v23  ;;  %v8681_v54 = vcombine.low %v3096_v27, %v3100_v29  ;;  %v8674_v23 = vcombine.high %v3088_v36, %v3092_v33  ;;  %v3212_v55 = vld [vmem:[#allocation7 + $0x7b0] sm:$0xff] }
 0x583   : > { %4823 = vmatmul.mubr.bf16.gmra.mxu0 %v12626_v11  ;;  %5117 = vmatprep.subr.bf16.mxu1 %v8706_v31  ;;  %v8802_v31 = vcombine.high %v3216_v44, %v3220_v21  ;;  %v3072_v5 = vld [vmem:[#allocation7 + $0x350] sm:$0xff] }
 0x584   : > { %4936 = vmatmul.mubr.bf16.gmra.mxu1 %v12655_v37  ;;  %4832 = vmatprep.mubr.bf16.mxu0 %v12775_v10  ;;  %v3076_v35 = vld [vmem:[#allocation7 + $0x370] sm:$0xff] }
 0x585   : > { %4945 = vmatprep.mubr.bf16.mxu1 %v12803_v49  ;;  %5005 = vmatpush1.bf16.msra.mxu0 %v8577_v38  ;;  %v8673_v38 = vcombine.low %v3088_v36, %v3092_v33  ;;  %v3200_v53 = vld [vmem:[#allocation7 + $0x750] sm:$0xff] }
 0x586   : > { %5118 = vmatpush1.bf16.msra.mxu1 %v8705_v34  ;;  %5006 = vmatprep.subr.bf16.mxu0 %v8570_v20  ;;  %v8801_v34 = vcombine.low %v3216_v44, %v3220_v21  ;;  %v8666_v20 = vcombine.high %v3080_v24, %v3084_v50  ;;  %v3204_v4 = vld [vmem:[#allocation7 + $0x770] sm:$0xff] }
 0x587   : > { %5119 = vmatprep.subr.bf16.mxu1 %v8698_v18  ;;  %v8794_v18 = vcombine.high %v3208_v28, %v3212_v55  ;;  %v3064_v60 = vld [vmem:[#allocation7 + $0x310] sm:$0xff] }
 0x588   : > { %v3068_v12 = vld [vmem:[#allocation7 + $0x330] sm:$0xff] }
 0x589   : > { %5007 = vmatpush1.bf16.msra.mxu0 %v8569_v51  ;;  %v8665_v51 = vcombine.low %v3080_v24, %v3084_v50  ;;  %v3192_v27 = vld [vmem:[#allocation7 + $0x710] sm:$0xff] }
 0x58a   : > { %5120 = vmatpush1.bf16.msra.mxu1 %v8697_v61  ;;  %5008 = vmatprep.subr.bf16.mxu0 %v8562_v25  ;;  %v8793_v61 = vcombine.low %v3208_v28, %v3212_v55  ;;  %v8658_v25 = vcombine.high %v3072_v5, %v3076_v35  ;;  %v3196_v29 = vld [vmem:[#allocation7 + $0x730] sm:$0xff] }
 0x58b   : > { %4833 = vmatmul.mubr.bf16.gmra.mxu0 %v12745_v8  ;;  %5121 = vmatprep.subr.bf16.mxu1 %v8690_v14  ;;  %v8786_v14 = vcombine.high %v3200_v53, %v3204_v4  ;;  %v3056_v36 = vld [vmem:[#allocation7 + $0x2d0] sm:$0xff] }
 0x58c   : > { %4946 = vmatmul.mubr.bf16.gmra.mxu1 %v12761_v62  ;;  %4842 = vmatprep.mubr.bf16.mxu0 %v12880_v58  ;;  %v3060_v33 = vld [vmem:[#allocation7 + $0x2f0] sm:$0xff] }
 0x58d   : > { %4955 = vmatprep.mubr.bf16.mxu1 %v12914_v57  ;;  %5009 = vmatpush1.bf16.msra.mxu0 %v8561_v9  ;;  %v8657_v9 = vcombine.low %v3072_v5, %v3076_v35  ;;  %v3184_v44 = vld [vmem:[#allocation7 + $0x6d0] sm:$0xff] }
 0x58e   : > { %5122 = vmatpush1.bf16.msra.mxu1 %v8689_v52  ;;  %5010 = vmatprep.subr.bf16.mxu0 %v8554_v3  ;;  %v8785_v52 = vcombine.low %v3200_v53, %v3204_v4  ;;  %v8650_v3 = vcombine.high %v3064_v60, %v3068_v12  ;;  %v3188_v21 = vld [vmem:[#allocation7 + $0x6f0] sm:$0xff] }
 0x58f   : > { %5123 = vmatprep.subr.bf16.mxu1 %v8682_v16  ;;  %v8778_v16 = vcombine.high %v3192_v27, %v3196_v29  ;;  %v3048_v24 = vld [vmem:[#allocation7 + $0x290] sm:$0xff] }
 0x590   : > { %v3052_v50 = vld [vmem:[#allocation7 + $0x2b0] sm:$0xff] }
 0x591   : > { %5011 = vmatpush1.bf16.msra.mxu0 %v8553_v6  ;;  %v8649_v6 = vcombine.low %v3064_v60, %v3068_v12  ;;  %v3176_v28 = vld [vmem:[#allocation7 + $0x690] sm:$0xff] }
 0x592   : > { %5124 = vmatpush1.bf16.msra.mxu1 %v8681_v54  ;;  %5012 = vmatprep.subr.bf16.mxu0 %v8674_v23  ;;  %v8777_v54 = vcombine.low %v3192_v27, %v3196_v29  ;;  %v8642_v23 = vcombine.high %v3056_v36, %v3060_v33  ;;  %v3180_v55 = vld [vmem:[#allocation7 + $0x6b0] sm:$0xff] }
 0x593   : > { %4843 = vmatmul.mubr.bf16.gmra.mxu0 %v12863_v63  ;;  %5125 = vmatprep.subr.bf16.mxu1 %v8802_v31  ;;  %v8770_v31 = vcombine.high %v3184_v44, %v3188_v21  ;;  %v3040_v5 = vld [vmem:[#allocation7 + $0x250] sm:$0xff] }
 0x594   : > { %4956 = vmatmul.mubr.bf16.gmra.mxu1 %v12872_v13  ;;  %4852 = vmatprep.mubr.bf16.mxu0 %v12966_v19  ;;  %v3044_v35 = vld [vmem:[#allocation7 + $0x270] sm:$0xff] }
 0x595   : > { %4965 = vmatprep.mubr.bf16.mxu1 %v12989_v41  ;;  %5013 = vmatpush2.bf16.msra.mxu0 %v8673_v38  ;;  %v8641_v38 = vcombine.low %v3056_v36, %v3060_v33  ;;  %v3168_v53 = vld [vmem:[#allocation7 + $0x650] sm:$0xff]  ;;  %v3025_v36 = vld [vmem:[#allocation7 + $0x1d8] sm:$0xff] }
 0x596   : > { %5126 = vmatpush2.bf16.msra.mxu1 %v8801_v34  ;;  %5014 = vmatprep.subr.bf16.mxu0 %v8666_v20  ;;  %v8769_v34 = vcombine.low %v3184_v44, %v3188_v21  ;;  %v8634_v20 = vcombine.high %v3048_v24, %v3052_v50  ;;  %v3172_v4 = vld [vmem:[#allocation7 + $0x670] sm:$0xff]  ;;  %v3029_v33 = vld [vmem:[#allocation7 + $0x1f8] sm:$0xff] }
 0x597   : > { %5127 = vmatprep.subr.bf16.mxu1 %v8794_v18  ;;  %v8762_v18 = vcombine.high %v3176_v28, %v3180_v55  ;;  %v3032_v60 = vld [vmem:[#allocation7 + $0x210] sm:$0xff]  ;;  %v3153_v44 = vld [vmem:[#allocation7 + $0x5d8] sm:$0xff] }
 0x598   : > { %v3036_v12 = vld [vmem:[#allocation7 + $0x230] sm:$0xff]  ;;  %v3157_v21 = vld [vmem:[#allocation7 + $0x5f8] sm:$0xff] }
 0x599   : > { %5015 = vmatpush2.bf16.msra.mxu0 %v8665_v51  ;;  %v8633_v51 = vcombine.low %v3048_v24, %v3052_v50  ;;  %v3160_v27 = vld [vmem:[#allocation7 + $0x610] sm:$0xff]  ;;  %v3017_v24 = vld [vmem:[#allocation7 + $0x198] sm:$0xff] }
 0x59a   : > { %5128 = vmatpush2.bf16.msra.mxu1 %v8793_v61  ;;  %5016 = vmatprep.subr.bf16.mxu0 %v8658_v25  ;;  %v8761_v61 = vcombine.low %v3176_v28, %v3180_v55  ;;  %v8626_v25 = vcombine.high %v3040_v5, %v3044_v35  ;;  %v3164_v29 = vld [vmem:[#allocation7 + $0x630] sm:$0xff]  ;;  %v3021_v50 = vld [vmem:[#allocation7 + $0x1b8] sm:$0xff] }
 0x59b   : > { %4853 = vmatmul.mubr.bf16.gmra.mxu0 %v12952_v0  ;;  %5129 = vmatprep.subr.bf16.mxu1 %v8786_v14  ;;  %v8754_v14 = vcombine.high %v3168_v53, %v3172_v4  ;;  %v3145_v28 = vld [vmem:[#allocation7 + $0x598] sm:$0xff] }
 0x59c   : > { %4966 = vmatmul.mubr.bf16.gmra.mxu1 %v12957_v32  ;;  %4862 = vmatprep.mubr.bf16.mxu0 %v13042_v17  ;;  %v3149_v55 = vld [vmem:[#allocation7 + $0x5b8] sm:$0xff] }
 0x59d   : > { %4975 = vmatprep.mubr.bf16.mxu1 %v13050_v15  ;;  %5017 = vmatpush2.bf16.msra.mxu0 %v8657_v9  ;;  %v8625_v9 = vcombine.low %v3040_v5, %v3044_v35  ;;  %v3009_v5 = vld [vmem:[#allocation7 + $0x158] sm:$0xff] }
 0x59e   : > { %5130 = vmatpush2.bf16.msra.mxu1 %v8785_v52  ;;  %5018 = vmatprep.subr.bf16.mxu0 %v8650_v3  ;;  %v8753_v52 = vcombine.low %v3168_v53, %v3172_v4  ;;  %v8618_v3 = vcombine.high %v3032_v60, %v3036_v12  ;;  %v3013_v35 = vld [vmem:[#allocation7 + $0x178] sm:$0xff] }
 0x59f   : > { %5131 = vmatprep.subr.bf16.mxu1 %v8778_v16  ;;  %v8746_v16 = vcombine.high %v3160_v27, %v3164_v29  ;;  %v3137_v53 = vld [vmem:[#allocation7 + $0x558] sm:$0xff] }
 0x5a0   : > { %v3141_v4 = vld [vmem:[#allocation7 + $0x578] sm:$0xff] }
 0x5a1   : > { %5019 = vmatpush2.bf16.msra.mxu0 %v8649_v6  ;;  %v8617_v6 = vcombine.low %v3032_v60, %v3036_v12  ;;  %v3001_v60 = vld [vmem:[#allocation7 + $0x118] sm:$0xff] }
 0x5a2   : > { %5132 = vmatpush2.bf16.msra.mxu1 %v8777_v54  ;;  %5020 = vmatprep.subr.bf16.mxu0 %v8642_v23  ;;  %v8745_v54 = vcombine.low %v3160_v27, %v3164_v29  ;;  %v8612_v23 = vcombine.high %v3025_v36, %v3029_v33  ;;  %v3005_v12 = vld [vmem:[#allocation7 + $0x138] sm:$0xff] }
 0x5a3   : > { %4863 = vmatmul.mubr.bf16.gmra.mxu0 %v13029_v48  ;;  %5133 = vmatprep.subr.bf16.mxu1 %v8770_v31  ;;  %v8740_v31 = vcombine.high %v3153_v44, %v3157_v21  ;;  %v3129_v27 = vld [vmem:[#allocation7 + $0x518] sm:$0xff] }
 0x5a4   : > { %4976 = vmatmul.mubr.bf16.gmra.mxu1 %v13037_v1  ;;  %4872 = vmatprep.mubr.bf16.mxu0 %v13087_v26  ;;  %v3133_v29 = vld [vmem:[#allocation7 + $0x538] sm:$0xff] }
 0x5a5   : > { %4985 = vmatprep.mubr.bf16.mxu1 %v13090_v45  ;;  %5021 = vmatpush2.bf16.msra.mxu0 %v8641_v38  ;;  %v8611_v38 = vcombine.low %v3025_v36, %v3029_v33  ;;  %v2993_v36 = vld [vmem:[#allocation7 + $0xd8] sm:$0xff] }
 0x5a6   : > { %5134 = vmatpush2.bf16.msra.mxu1 %v8769_v34  ;;  %5022 = vmatprep.subr.bf16.mxu0 %v8634_v20  ;;  %v8739_v34 = vcombine.low %v3153_v44, %v3157_v21  ;;  %v8604_v20 = vcombine.high %v3017_v24, %v3021_v50  ;;  %v2997_v33 = vld [vmem:[#allocation7 + $0xf8] sm:$0xff] }
 0x5a7   : > { %5135 = vmatprep.subr.bf16.mxu1 %v8762_v18  ;;  %v8732_v18 = vcombine.high %v3145_v28, %v3149_v55  ;;  %v3121_v44 = vld [vmem:[#allocation7 + $0x4d8] sm:$0xff] }
 0x5a8   : > { %v3125_v21 = vld [vmem:[#allocation7 + $0x4f8] sm:$0xff] }
 0x5a9   : > { %5023 = vmatpush2.bf16.msra.mxu0 %v8633_v51  ;;  %v8603_v51 = vcombine.low %v3017_v24, %v3021_v50  ;;  %v8708_v24 = vcombine.high %v3121_v44, %v3125_v21  ;;  %v2985_v50 = vld [vmem:[#allocation7 + $0x98] sm:$0xff] }
 0x5aa   : > { %5136 = vmatpush2.bf16.msra.mxu1 %v8761_v61  ;;  %5024 = vmatprep.subr.bf16.mxu0 %v8626_v25  ;;  %v8731_v61 = vcombine.low %v3145_v28, %v3149_v55  ;;  %v8596_v25 = vcombine.high %v3009_v5, %v3013_v35  ;;  %v2989_v28 = vld [vmem:[#allocation7 + $0xb8] sm:$0xff] }
 0x5ab   : > { %4873 = vmatmul.mubr.bf16.gmra.mxu0 %v13072_v22  ;;  %5137 = vmatprep.subr.bf16.mxu1 %v8754_v14  ;;  %v8724_v14 = vcombine.high %v3137_v53, %v3141_v4  ;;  %v3113_v55 = vld [vmem:[#allocation7 + $0x498] sm:$0xff] }
 0x5ac   : > { %4986 = vmatmul.mubr.bf16.gmra.mxu1 %v13082_v39  ;;  %5028 = vmatprep.mubr.bf16.mxu0 %v12422_v47 }
 0x5ad   : > { %5025 = vmatpush2.bf16.msra.mxu0 %v8625_v9  ;;  %5141 = vmatprep.mubr.bf16.mxu1 %v12429_v56  ;;  %v8595_v9 = vcombine.low %v3009_v5, %v3013_v35  ;;  %v8707_v5 = vcombine.low %v3121_v44, %v3125_v21  ;;  %v8572_v35 = vcombine.high %v2985_v50, %v2989_v28  ;;  %v2973_v44 = vld [vmem:[#allocation7 + $0x38] sm:$0xff] }
 0x5ae   : > { %5138 = vmatpush2.bf16.msra.mxu1 %v8753_v52  ;;  %5026 = vmatprep.subr.bf16.mxu0 %v8618_v3  ;;  %v8723_v52 = vcombine.low %v3137_v53, %v3141_v4  ;;  %v8588_v3 = vcombine.high %v3001_v60, %v3005_v12  ;;  %v2977_v4 = vld [vmem:[#allocation7 + $0x58] sm:$0xff] }
 0x5af   : > { %5139 = vmatprep.subr.bf16.mxu1 %v8746_v16  ;;  %v8716_v16 = vcombine.high %v3129_v27, %v3133_v29 }
 0x5b1   : > { %5027 = vmatpush2.bf16.msra.mxu0 %v8617_v6  ;;  %v8587_v6 = vcombine.low %v3001_v60, %v3005_v12 }
 0x5b2   : > { %5140 = vmatpush2.bf16.msra.mxu1 %v8745_v54  ;;  %5222 = vmatprep.subr.bf16.mxu0 %v8612_v23  ;;  %v13142_v54 = vld [vmem:[#allocation8] sm:$0xff]  ;;  %v8715_v23 = vcombine.low %v3129_v27, %v3133_v29  ;;  %v8571_v27 = vcombine.low %v2985_v50, %v2989_v28 }
 0x5b3   : > { %5335 = vmatprep.subr.bf16.mxu1 %v8740_v31  ;;  %15836 = vst [vmem:[#allocation45_spill] sm:$0xff] %v13142_v54  ;;  %v8580_v31 = vcombine.high %v2993_v36, %v2997_v33 }
 0x5b4   : > { %5029 = vmatmul.mubr.bf16.vlgmr.msra.gmra.mxu0 %v12400_v30 }
 0x5b5   : > { %5142 = vmatmul.mubr.bf16.vlgmr.msra.gmra.mxu1 %v12406_v40  ;;  %5038 = vmatprep.mubr.bf16.mxu0 %v12514_v43 }
 0x5b6   : > { %5151 = vmatprep.mubr.bf16.mxu1 %v12522_v7  ;;  %5223 = vmatpush1.bf16.msra.mxu0 %v8611_v38  ;;  %v3117_v38 = vld [vmem:[#allocation7 + $0x4b8] sm:$0xff] }
 0x5b7   : > { %5336 = vmatpush1.bf16.msra.mxu1 %v8739_v34  ;;  %5224 = vmatprep.subr.bf16.mxu0 %v8604_v20  ;;  %v15837_v34 = vld [vmem:[#allocation19_spill] sm:$0xff]  ;;  %v8700_v53 = vcombine.high %v3113_v55, %v3117_v38 }
 0x5b8   : > { %5337 = vmatprep.subr.bf16.mxu1 %v8732_v18  ;;  %v13146_v20 = vrot.slane %v13142_v54, %v15837_v34  ;;  %v8579_v18 = vcombine.low %v2993_v36, %v2997_v33  ;;  %v2969_v33 = vld [vmem:[#allocation7 + $0x18] sm:$0xff] }
 0x5b9   : > { %v4691_v12 = vpop.f32.mrf.mxu1 }
 0x5ba   : > { %5225 = vmatpush1.bf16.msra.mxu0 %v8603_v51  ;;  %v2981_v51 = vld [vmem:[#allocation7 + $0x78] sm:$0xff] }
 0x5bb   : > { %5338 = vmatpush1.bf16.msra.mxu1 %v8731_v61  ;;  %5226 = vmatprep.subr.bf16.mxu0 %v8596_v25  ;;  %v4578_v61 = vpop.f32.mrf.mxu0  ;;  %v3105_v25 = vld [vmem:[#allocation7 + $0x458] sm:$0xff]  ;;  %v8563_v50 = vcombine.low %v2977_v4, %v2981_v51 }
 0x5bc   : > { %5039 = vmatmul.mubr.bf16.gmra.mxu0 %v12474_v42  ;;  %5339 = vmatprep.subr.bf16.mxu1 %v8724_v14  ;;  %v3109_v14 = vld [vmem:[#allocation7 + $0x478] sm:$0xff]  ;;  %v4579_v60 = vadd.f32 %v4578_v61, %v13146_v20 }
 0x5bd   : > { %5152 = vmatmul.mubr.bf16.gmra.mxu1 %v12482_v59  ;;  %5048 = vmatprep.mubr.bf16.mxu0 %v12660_v2  ;;  %v13153_v29 = vpop.f32.mrf.mxu0  ;;  %v8692_v36 = vcombine.high %v3105_v25, %v3109_v14  ;;  %v3093_v61 = vld [vmem:[#allocation7 + $0x3f8] sm:$0xff] }
 0x5be   : > { %5161 = vmatprep.mubr.bf16.mxu1 %v12691_v46  ;;  %5227 = vmatpush1.bf16.msra.mxu0 %v8595_v9  ;;  %v8699_v9 = vcombine.low %v3113_v55, %v3117_v38  ;;  %v8691_v55 = vcombine.low %v3105_v25, %v3109_v14  ;;  %v8556_v38 = vcombine.high %v2969_v33, %v2973_v44  ;;  %v3085_v25 = vld [vmem:[#allocation7 + $0x3b8] sm:$0xff] }
 0x5bf   : > { %5340 = vmatpush1.bf16.msra.mxu1 %v8723_v52  ;;  %5228 = vmatprep.subr.bf16.mxu0 %v8588_v3  ;;  %v8564_v52 = vcombine.high %v2977_v4, %v2981_v51  ;;  %v13155_v3 = vadd.f32 %v4691_v12, %v4579_v60  ;;  %v4582_v21 = vpop.f32.mrf.mxu0  ;;  %v3217_v4 = vld [vmem:[#allocation7 + $0x7d8] sm:$0xff]  ;;  %v8555_v14 = vcombine.low %v2969_v33, %v2973_v44 }
 0x5c0   : > { %5341 = vmatprep.subr.bf16.mxu1 %v8716_v16  ;;  %v13157_v16 = vpop.f32.mrf.mxu1  ;;  %v3221_v51 = vld [vmem:[#allocation7 + $0x7f8] sm:$0xff] }
 0x5c1   : > { %15838 = vst [vmem:[#allocation80_spill] sm:$0xff] %v13155_v3  ;;  %15839 = vst [vmem:[#allocation76_spill] sm:$0xff] %v13157_v16  ;;  %v13160_v28 = vpop.f32.mrf.mxu0  ;;  %v3209_v3 = vld [vmem:[#allocation7 + $0x798] sm:$0xff] }
 0x5c2   : > { %5229 = vmatpush1.bf16.msra.mxu0 %v8587_v6  ;;  %v3097_v6 = vld [vmem:[#allocation7 + $0x418] sm:$0xff] }
 0x5c3   : > { %5342 = vmatpush1.bf16.msra.mxu1 %v8715_v23  ;;  %5230 = vmatprep.subr.bf16.mxu0 %v8580_v31  ;;  %v3101_v23 = vld [vmem:[#allocation7 + $0x438] sm:$0xff]  ;;  %v4583_v31 = vadd.f32 %v4582_v21, %v13146_v20  ;;  %v4588_v12 = vpop.f32.mrf.mxu0 }
 0x5c4   : > { %5049 = vmatmul.mubr.bf16.gmra.mxu0 %v12626_v11  ;;  %5343 = vmatprep.subr.bf16.mxu1 %v8708_v24  ;;  %v4695_v24 = vpop.f32.mrf.mxu1  ;;  %v8683_v60 = vcombine.low %v3097_v6, %v3101_v23  ;;  %v3037_v16 = vld [vmem:[#allocation7 + $0x238] sm:$0xff] }
 0x5c5   : > { %5162 = vmatmul.mubr.bf16.gmra.mxu1 %v12655_v37  ;;  %5058 = vmatprep.mubr.bf16.mxu0 %v12775_v10  ;;  %v4590_v34 = vpop.f32.mrf.mxu0 }
 0x5c6   : > { %5171 = vmatprep.mubr.bf16.mxu1 %v12803_v49  ;;  %5231 = vmatpush1.bf16.msra.mxu0 %v8579_v18  ;;  %v13162_v18 = vadd.f32 %v4695_v24, %v4583_v31  ;;  %v8804_v31 = vcombine.high %v3217_v4, %v3221_v51  ;;  %v3081_v24 = vld [vmem:[#allocation7 + $0x398] sm:$0xff] }
 0x5c7   : > { %5344 = vmatpush1.bf16.msra.mxu1 %v8707_v5  ;;  %5232 = vmatprep.subr.bf16.mxu0 %v8572_v35  ;;  %v13164_v5 = vpop.f32.mrf.mxu1  ;;  %v8684_v35 = vcombine.high %v3097_v6, %v3101_v23 }
 0x5c8   : > { %5345 = vmatprep.subr.bf16.mxu1 %v8700_v53  ;;  %15840 = vst [vmem:[#allocation83_spill] sm:$0xff] %v13162_v18  ;;  %15841 = vst [vmem:[#allocation74_spill] sm:$0xff] %v13164_v5  ;;  %v3089_v53 = vld [vmem:[#allocation7 + $0x3d8] sm:$0xff] }
 0x5c9   : > { %v4701_v21 = vpop.f32.mrf.mxu1  ;;  %v8675_v23 = vcombine.low %v3089_v53, %v3093_v61  ;;  %v3165_v5 = vld [vmem:[#allocation7 + $0x638] sm:$0xff] }
 0x5ca   : > { %5233 = vmatpush1.bf16.msra.mxu0 %v8571_v27  ;;  %v8676_v27 = vcombine.high %v3089_v53, %v3093_v61  ;;  %v3205_v53 = vld [vmem:[#allocation7 + $0x778] sm:$0xff] }
 0x5cb   : > { %5346 = vmatpush1.bf16.msra.mxu1 %v8699_v9  ;;  %5234 = vmatprep.subr.bf16.mxu0 %v8564_v52  ;;  %v15842_v9 = vld [vmem:[#allocation18_spill] sm:$0xff]  ;;  %v4703_v6 = vpop.f32.mrf.mxu1 }
 0x5cc   : > { %5059 = vmatmul.mubr.bf16.gmra.mxu0 %v12745_v8  ;;  %5347 = vmatprep.subr.bf16.mxu1 %v8692_v36  ;;  %v13174_v52 = vrot.slane %v13142_v54, %v15842_v9  ;;  %v4589_v36 = vadd.f32 %v4588_v12, %v13146_v20  ;;  %v8668_v12 = vcombine.high %v3081_v24, %v3085_v25 }
 0x5cd   : > { %5172 = vmatmul.mubr.bf16.gmra.mxu1 %v12761_v62  ;;  %5068 = vmatprep.mubr.bf16.mxu0 %v12880_v58  ;;  %v4705_v54 = vpop.f32.mrf.mxu1 }
 0x5ce   : > { %5181 = vmatprep.mubr.bf16.mxu1 %v12914_v57  ;;  %5235 = vmatpush1.bf16.msra.mxu0 %v8563_v50  ;;  %15843 = vst [vmem:[#allocation82_spill] sm:$0xff] %v13174_v52  ;;  %v3213_v50 = vld [vmem:[#allocation7 + $0x7b8] sm:$0xff]  ;;  %v13177_v33 = vadd.f32 %v4701_v21, %v4589_v36  ;;  %v4591_v44 = vadd.f32 %v4590_v34, %v13174_v52 }
 0x5cf   : > { %5348 = vmatpush1.bf16.msra.mxu1 %v8691_v55  ;;  %5236 = vmatprep.subr.bf16.mxu0 %v8556_v38  ;;  %v8803_v55 = vcombine.low %v3217_v4, %v3221_v51  ;;  %v4592_v38 = vpop.f32.mrf.mxu0  ;;  %v8796_v18 = vcombine.high %v3209_v3, %v3213_v50  ;;  %v3073_v36 = vld [vmem:[#allocation7 + $0x358] sm:$0xff]  ;;  %v8667_v4 = vcombine.low %v3081_v24, %v3085_v25 }
 0x5d0   : > { %5349 = vmatprep.subr.bf16.mxu1 %v8684_v35  ;;  %15844 = vst [vmem:[#allocation93_spill] sm:$0xff] %v13177_v33  ;;  %v13180_v9 = vadd.f32 %v4703_v6, %v4591_v44  ;;  %v4593_v35 = vadd.f32 %v4592_v38, %v13146_v20  ;;  %v3077_v21 = vld [vmem:[#allocation7 + $0x378] sm:$0xff]  ;;  %v8795_v51 = vcombine.low %v3209_v3, %v3213_v50 }
 0x5d1   : > { %v3201_v34 = vld [vmem:[#allocation7 + $0x758] sm:$0xff]  ;;  %v13191_v25 = vpop.f32.mrf.mxu0 }
 0x5d2   : > { %5237 = vmatpush1.bf16.msra.mxu0 %v8555_v14  ;;  %15845 = vst [vmem:[#allocation67_spill] sm:$0xff] %v13180_v9  ;;  %v13186_v61 = vadd.f32 %v4705_v54, %v4593_v35  ;;  %v8660_v14 = vcombine.high %v3073_v36, %v3077_v21  ;;  %v3069_v44 = vld [vmem:[#allocation7 + $0x338] sm:$0xff]  ;;  %v8659_v54 = vcombine.low %v3073_v36, %v3077_v21  ;;  %15847 = vst [vmem:[#allocation95_spill] sm:$0xff] %v13191_v25  ;;  %v13197_v36 = vpop.f32.mrf.mxu1 }
 0x5d3   : > { %5350 = vmatpush1.bf16.msra.mxu1 %v8683_v60  ;;  %5238 = vmatprep.subr.bf16.mxu0 %v8676_v27  ;;  %v8788_v27 = vcombine.high %v3201_v34, %v3205_v53  ;;  %v3193_v6 = vld [vmem:[#allocation7 + $0x718] sm:$0xff]  ;;  %v8787_v35 = vcombine.low %v3201_v34, %v3205_v53  ;;  %15848 = vst [vmem:[#allocation69_spill] sm:$0xff] %v13197_v36 }
 0x5d4   : > { %5069 = vmatmul.mubr.bf16.gmra.mxu0 %v12863_v63  ;;  %5351 = vmatprep.subr.bf16.mxu1 %v8804_v31  ;;  %15846 = vst [vmem:[#allocation79_spill] sm:$0xff] %v13186_v61  ;;  %v3065_v31 = vld [vmem:[#allocation7 + $0x318] sm:$0xff] }
 0x5d5   : > { %5182 = vmatmul.mubr.bf16.gmra.mxu1 %v12872_v13  ;;  %5078 = vmatprep.mubr.bf16.mxu0 %v12966_v19  ;;  %v3197_v38 = vld [vmem:[#allocation7 + $0x738] sm:$0xff] }
 0x5d6   : > { %5191 = vmatprep.mubr.bf16.mxu1 %v12989_v41  ;;  %5239 = vmatpush2.bf16.msra.mxu0 %v8675_v23  ;;  %v8652_v23 = vcombine.high %v3065_v31, %v3069_v44  ;;  %v8780_v3 = vcombine.high %v3193_v6, %v3197_v38  ;;  %v3057_v24 = vld [vmem:[#allocation7 + $0x2d8] sm:$0xff]  ;;  %v8779_v21 = vcombine.low %v3193_v6, %v3197_v38 }
 0x5d7   : > { %5352 = vmatpush2.bf16.msra.mxu1 %v8803_v55  ;;  %5240 = vmatprep.subr.bf16.mxu0 %v8668_v12  ;;  %v3061_v50 = vld [vmem:[#allocation7 + $0x2f8] sm:$0xff]  ;;  %v8651_v12 = vcombine.low %v3065_v31, %v3069_v44 }
 0x5d8   : > { %5353 = vmatprep.subr.bf16.mxu1 %v8796_v18  ;;  %v3185_v18 = vld [vmem:[#allocation7 + $0x6d8] sm:$0xff]  ;;  %v8644_v34 = vcombine.high %v3057_v24, %v3061_v50  ;;  %v4598_v53 = vpop.f32.mrf.mxu0  ;;  %v8643_v9 = vcombine.low %v3057_v24, %v3061_v50 }
 0x5d9   : > { %v3189_v55 = vld [vmem:[#allocation7 + $0x6f8] sm:$0xff] }
 0x5da   : > { %5241 = vmatpush2.bf16.msra.mxu0 %v8667_v4  ;;  %v8772_v4 = vcombine.high %v3185_v18, %v3189_v55  ;;  %v3177_v60 = vld [vmem:[#allocation7 + $0x698] sm:$0xff]  ;;  %v4600_v61 = vpop.f32.mrf.mxu0  ;;  %v8771_v44 = vcombine.low %v3185_v18, %v3189_v55 }
 0x5db   : > { %5354 = vmatpush2.bf16.msra.mxu1 %v8795_v51  ;;  %5242 = vmatprep.subr.bf16.mxu0 %v8660_v14  ;;  %v3049_v51 = vld [vmem:[#allocation7 + $0x298] sm:$0xff]  ;;  %v4601_v31 = vadd.f32 %v4600_v61, %v13174_v52 }
 0x5dc   : > { %5079 = vmatmul.mubr.bf16.gmra.mxu0 %v12952_v0  ;;  %5355 = vmatprep.subr.bf16.mxu1 %v8788_v27  ;;  %v3053_v14 = vld [vmem:[#allocation7 + $0x2b8] sm:$0xff]  ;;  %v4599_v27 = vadd.f32 %v4598_v53, %v13146_v20 }
 0x5dd   : > { %5192 = vmatmul.mubr.bf16.gmra.mxu1 %v12957_v32  ;;  %5088 = vmatprep.mubr.bf16.mxu0 %v13042_v17  ;;  %v3181_v33 = vld [vmem:[#allocation7 + $0x6b8] sm:$0xff]  ;;  %v8636_v6 = vcombine.high %v3049_v51, %v3053_v14  ;;  %v8635_v55 = vcombine.low %v3049_v51, %v3053_v14 }
 0x5de   : > { %5201 = vmatprep.mubr.bf16.mxu1 %v13050_v15  ;;  %5243 = vmatpush2.bf16.msra.mxu0 %v8659_v54  ;;  %v4711_v54 = vpop.f32.mrf.mxu1  ;;  %v3045_v53 = vld [vmem:[#allocation7 + $0x278] sm:$0xff] }
 0x5df   : > { %5356 = vmatpush2.bf16.msra.mxu1 %v8787_v35  ;;  %5244 = vmatprep.subr.bf16.mxu0 %v8652_v23  ;;  %v13201_v38 = vadd.f32 %v4711_v54, %v4599_v27  ;;  %v4602_v35 = vpop.f32.mrf.mxu0  ;;  %v8764_v23 = vcombine.high %v3177_v60, %v3181_v33  ;;  %v3169_v61 = vld [vmem:[#allocation7 + $0x658] sm:$0xff] }
 0x5e0   : > { %5357 = vmatprep.subr.bf16.mxu1 %v8780_v3  ;;  %v3041_v3 = vld [vmem:[#allocation7 + $0x258] sm:$0xff]  ;;  %v4713_v36 = vpop.f32.mrf.mxu1 }
 0x5e1   : > { %15849 = vst [vmem:[#allocation63_spill] sm:$0xff] %v13201_v38  ;;  %v3173_v24 = vld [vmem:[#allocation7 + $0x678] sm:$0xff]  ;;  %v13207_v50 = vadd.f32 %v4713_v36, %v4601_v31  ;;  %v4604_v18 = vpop.f32.mrf.mxu0  ;;  %v8628_v27 = vcombine.high %v3041_v3, %v3045_v53  ;;  %v8627_v14 = vcombine.low %v3041_v3, %v3045_v53 }
 0x5e2   : > { %5245 = vmatpush2.bf16.msra.mxu0 %v8651_v12  ;;  %v4603_v12 = vadd.f32 %v4602_v35, %v13146_v20  ;;  %v8756_v35 = vcombine.high %v3169_v61, %v3173_v24  ;;  %v3033_v25 = vld [vmem:[#allocation7 + $0x218] sm:$0xff] }
 0x5e3   : > { %5358 = vmatpush2.bf16.msra.mxu1 %v8779_v21  ;;  %5246 = vmatprep.subr.bf16.mxu0 %v8644_v34  ;;  %15850 = vst [vmem:[#allocation75_spill] sm:$0xff] %v13207_v50  ;;  %v4715_v21 = vpop.f32.mrf.mxu1  ;;  %v4605_v34 = vadd.f32 %v4604_v18, %v13174_v52  ;;  %v3161_v31 = vld [vmem:[#allocation7 + $0x618] sm:$0xff]  ;;  %v8619_v3 = vcombine.low %v3033_v25, %v3037_v16 }
 0x5e4   : > { %5089 = vmatmul.mubr.bf16.gmra.mxu0 %v13029_v48  ;;  %5359 = vmatprep.subr.bf16.mxu1 %v8772_v4  ;;  %v8763_v4 = vcombine.low %v3177_v60, %v3181_v33  ;;  %v13211_v54 = vadd.f32 %v4715_v21, %v4603_v12  ;;  %v8755_v33 = vcombine.low %v3169_v61, %v3173_v24 }
 0x5e5   : > { %5202 = vmatmul.mubr.bf16.gmra.mxu1 %v13037_v1  ;;  %5098 = vmatprep.mubr.bf16.mxu0 %v13087_v26  ;;  %v4717_v36 = vpop.f32.mrf.mxu1  ;;  %v8620_v60 = vcombine.high %v3033_v25, %v3037_v16  ;;  %v8747_v12 = vcombine.low %v3161_v31, %v3165_v5 }
 0x5e6   : > { %5211 = vmatprep.mubr.bf16.mxu1 %v13090_v45  ;;  %5247 = vmatpush2.bf16.msra.mxu0 %v8643_v9  ;;  %15851 = vst [vmem:[#allocation94_spill] sm:$0xff] %v13211_v54  ;;  %v13215_v51 = vadd.f32 %v4717_v36, %v4605_v34  ;;  %v15892_v54 = vld [vmem:[#allocation66_spill] sm:$0xff] }
 0x5e7   : > { %5360 = vmatpush2.bf16.msra.mxu1 %v8771_v44  ;;  %5248 = vmatprep.subr.bf16.mxu0 %v8636_v6  ;;  %v8748_v6 = vcombine.high %v3161_v31, %v3165_v5 }
 0x5e8   : > { %5361 = vmatprep.subr.bf16.mxu1 %v8764_v23  ;;  %15852 = vst [vmem:[#allocation24_spill] sm:$0xff] %v13215_v51 }
 0x5ea   : > { %5249 = vmatpush2.bf16.msra.mxu0 %v8635_v55  ;;  %v4608_v23 = vpop.f32.mrf.mxu0 }
 0x5eb   : > { %5362 = vmatpush2.bf16.msra.mxu1 %v8763_v4  ;;  %5250 = vmatprep.subr.bf16.mxu0 %v8628_v27  ;;  %v4609_v53 = vadd.f32 %v4608_v23, %v13146_v20 }
 0x5ec   : > { %5099 = vmatmul.mubr.bf16.gmra.mxu0 %v13072_v22  ;;  %5363 = vmatprep.subr.bf16.mxu1 %v8756_v35  ;;  %v4610_v61 = vpop.f32.mrf.mxu0 }
 0x5ed   : > { %5212 = vmatmul.mubr.bf16.gmra.mxu1 %v13082_v39  ;;  %5254 = vmatprep.mubr.bf16.mxu0 %v12422_v47  ;;  %v4611_v24 = vadd.f32 %v4610_v61, %v13174_v52 }
 0x5ee   : > { %5251 = vmatpush2.bf16.msra.mxu0 %v8627_v14  ;;  %5367 = vmatprep.mubr.bf16.mxu1 %v12429_v56  ;;  %v4721_v18 = vpop.f32.mrf.mxu1  ;;  %v4612_v55 = vpop.f32.mrf.mxu0 }
 0x5ef   : > { %5364 = vmatpush2.bf16.msra.mxu1 %v8755_v33  ;;  %5252 = vmatprep.subr.bf16.mxu0 %v8620_v60  ;;  %v13225_v21 = vadd.f32 %v4721_v18, %v4609_v53  ;;  %v4613_v47 = vadd.f32 %v4612_v55, %v13146_v20 }
 0x5f0   : > { %5365 = vmatprep.subr.bf16.mxu1 %v8748_v6  ;;  %v4723_v34 = vpop.f32.mrf.mxu1  ;;  %v4614_v56 = vpop.f32.mrf.mxu0 }
 0x5f1   : > { %15853 = vst [vmem:[#allocation61_spill] sm:$0xff] %v13225_v21  ;;  %v13228_v16 = vadd.f32 %v4723_v34, %v4611_v24  ;;  %v4615_v25 = vadd.f32 %v4614_v56, %v13174_v52 }
 0x5f2   : > { %5253 = vmatpush2.bf16.msra.mxu0 %v8619_v3  ;;  %v4725_v5 = vpop.f32.mrf.mxu1 }
 0x5f3   : > { %5366 = vmatpush2.bf16.msra.mxu1 %v8747_v12  ;;  %15854 = vst [vmem:[#allocation89_spill] sm:$0xff] %v13228_v16  ;;  %v13234_v4 = vadd.f32 %v4725_v5, %v4613_v47 }
 0x5f4   : > { %v4727_v27 = vpop.f32.mrf.mxu1 }
 0x5f5   : > { %5255 = vmatmul.mubr.bf16.vlgmr.msra.gmra.mxu0 %v12400_v30  ;;  %15855 = vst [vmem:[#allocation23_spill] sm:$0xff] %v13234_v4  ;;  %v13239_v36 = vadd.f32 %v4727_v27, %v4615_v25 }
 0x5f6   : > { %5368 = vmatmul.mubr.bf16.vlgmr.msra.gmra.mxu1 %v12406_v40  ;;  %5264 = vmatprep.mubr.bf16.mxu0 %v12514_v43 }
 0x5f7   : > { %5377 = vmatprep.mubr.bf16.mxu1 %v12522_v7  ;;  %15856 = vst [vmem:[#allocation86_spill] sm:$0xff] %v13239_v36 }
 0x5fa   : > { %v4618_v14 = vpop.f32.mrf.mxu0 }
 0x5fb   : > { %v4619_v30 = vadd.f32 %v4618_v14, %v13146_v20 }
 0x5fc   : > { %v4620_v40 = vpop.f32.mrf.mxu0 }
 0x5fd   : > { %5265 = vmatmul.mubr.bf16.gmra.mxu0 %v12474_v42  ;;  %v4621_v43 = vadd.f32 %v4620_v40, %v13174_v52 }
 0x5fe   : > { %5378 = vmatmul.mubr.bf16.gmra.mxu1 %v12482_v59  ;;  %5274 = vmatprep.mubr.bf16.mxu0 %v12660_v2  ;;  %v4622_v7 = vpop.f32.mrf.mxu0 }
 0x5ff   : > { %5387 = vmatprep.mubr.bf16.mxu1 %v12691_v46  ;;  %v4731_v33 = vpop.f32.mrf.mxu1  ;;  %v4623_v6 = vadd.f32 %v4622_v7, %v13146_v20  ;;  %v4585_v7 = vadd.f32 %v13160_v28, %v13174_v52 }
 0x600   : > { %v13249_v60 = vadd.f32 %v4731_v33, %v4619_v30  ;;  %v13262_v2 = vpop.f32.mrf.mxu0 }
 0x601   : > { %v4733_v23 = vpop.f32.mrf.mxu1  ;;  %15860 = vst [vmem:[#allocation33_spill] sm:$0xff] %v13262_v2 }
 0x602   : > { %15857 = vst [vmem:[#allocation20_spill] sm:$0xff] %v13249_v60  ;;  %v13252_v3 = vadd.f32 %v4733_v23, %v4621_v43  ;;  %v15873_v23 = vld [vmem:[#allocation76_spill] sm:$0xff] }
 0x603   : > { %v4735_v42 = vpop.f32.mrf.mxu1 }
 0x604   : > { %15858 = vst [vmem:[#allocation22_spill] sm:$0xff] %v13252_v3  ;;  %v13255_v53 = vadd.f32 %v4735_v42, %v4623_v6 }
 0x605   : > { %5275 = vmatmul.mubr.bf16.gmra.mxu0 %v12626_v11  ;;  %v13264_v46 = vpop.f32.mrf.mxu1 }
 0x606   : > { %15859 = vst [vmem:[#allocation26_spill] sm:$0xff] %v13255_v53  ;;  %5388 = vmatmul.mubr.bf16.gmra.mxu1 %v12655_v37  ;;  %5284 = vmatprep.mubr.bf16.mxu0 %v12775_v10  ;;  %15861 = vst [vmem:[#allocation92_spill] sm:$0xff] %v13264_v46 }
 0x607   : > { %5397 = vmatprep.mubr.bf16.mxu1 %v12803_v49 }
 0x60a   : > { %v4628_v12 = vpop.f32.mrf.mxu0 }
 0x60b   : > { %v4629_v61 = vadd.f32 %v4628_v12, %v13146_v20 }
 0x60c   : > { %v4630_v11 = vpop.f32.mrf.mxu0 }
 0x60d   : > { %5285 = vmatmul.mubr.bf16.gmra.mxu0 %v12745_v8  ;;  %v4741_v37 = vpop.f32.mrf.mxu1  ;;  %v4631_v10 = vadd.f32 %v4630_v11, %v13174_v52 }
 0x60e   : > { %5398 = vmatmul.mubr.bf16.gmra.mxu1 %v12761_v62  ;;  %5294 = vmatprep.mubr.bf16.mxu0 %v12880_v58  ;;  %v13272_v49 = vadd.f32 %v4741_v37, %v4629_v61  ;;  %v4632_v24 = vpop.f32.mrf.mxu0  ;;  %v15875_v37 = vmov 0  }
 0x60f   : > { %5407 = vmatprep.mubr.bf16.mxu1 %v12914_v57  ;;  %v4743_v18 = vpop.f32.mrf.mxu1  ;;  %v4633_v55 = vadd.f32 %v4632_v24, %v13146_v20 }
 0x610   : > { %15862 = vst [vmem:[#allocation70_spill] sm:$0xff] %v13272_v49  ;;  %v13275_v47 = vadd.f32 %v4743_v18, %v4631_v10  ;;  %v13284_v58 = vpop.f32.mrf.mxu0 }
 0x611   : > { %v4745_v34 = vpop.f32.mrf.mxu1  ;;  %15865 = vst [vmem:[#allocation91_spill] sm:$0xff] %v13284_v58 }
 0x612   : > { %15863 = vst [vmem:[#allocation21_spill] sm:$0xff] %v13275_v47  ;;  %v13277_v8 = vadd.f32 %v4745_v34, %v4633_v55  ;;  %v15877_v55 = vld [vmem:[#allocation25_spill] sm:$0xff] }
 0x613   : > { %v13287_v57 = vpop.f32.mrf.mxu1  ;;  %v15878_v34 = vld [vmem:[#allocation45_spill] sm:$0xff] }
 0x614   : > { %15864 = vst [vmem:[#allocation28_spill] sm:$0xff] %v13277_v8  ;;  %15866 = vst [vmem:[#allocation31_spill] sm:$0xff] %v13287_v57  ;;  %v13437_v2 = vrot.slane %v15878_v34, %v15892_v54 }
 0x615   : > { %5295 = vmatmul.mubr.bf16.gmra.mxu0 %v12863_v63 }
 0x616   : > { %5408 = vmatmul.mubr.bf16.gmra.mxu1 %v12872_v13  ;;  %5304 = vmatprep.mubr.bf16.mxu0 %v12966_v19 }
 0x617   : > { %5417 = vmatprep.mubr.bf16.mxu1 %v12989_v41 }
 0x61a   : > { %v4638_v56 = vpop.f32.mrf.mxu0 }
 0x61b   : > { %v4639_v25 = vadd.f32 %v4638_v56, %v13146_v20 }
 0x61c   : > { %v4751_v5 = vpop.f32.mrf.mxu1  ;;  %v4640_v27 = vpop.f32.mrf.mxu0 }
 0x61d   : > { %5305 = vmatmul.mubr.bf16.gmra.mxu0 %v12952_v0  ;;  %v13291_v63 = vadd.f32 %v4751_v5, %v4639_v25  ;;  %v4641_v14 = vadd.f32 %v4640_v27, %v13174_v52  ;;  %v15882_v5 = vld [vmem:[#allocation30_spill] sm:$0xff] }
 0x61e   : > { %5418 = vmatmul.mubr.bf16.gmra.mxu1 %v12957_v32  ;;  %5314 = vmatprep.mubr.bf16.mxu0 %v13042_v17  ;;  %v4753_v13 = vpop.f32.mrf.mxu1  ;;  %v4642_v19 = vpop.f32.mrf.mxu0  ;;  %v4581_v32 = vadd.f32 %v13153_v29, %v13174_v52  ;;  %v13340_v27 = vrot.slane %v15878_v34, %v15882_v5 }
 0x61f   : > { %15867 = vst [vmem:[#allocation40_spill] sm:$0xff] %v13291_v63  ;;  %5427 = vmatprep.mubr.bf16.mxu1 %v13050_v15  ;;  %v13297_v41 = vadd.f32 %v4753_v13, %v4641_v14  ;;  %v4643_v30 = vadd.f32 %v4642_v19, %v13146_v20  ;;  %v15871_v15 = vld [vmem:[#allocation74_spill] sm:$0xff] }
 0x620   : > { %v4755_v40 = vpop.f32.mrf.mxu1  ;;  %v13312_v17 = vpop.f32.mrf.mxu0  ;;  %v4698_v33 = vadd.f32 %v15871_v15, %v4585_v7  ;;  %v4694_v42 = vadd.f32 %v15873_v23, %v4581_v32 }
 0x621   : > { %15868 = vst [vmem:[#allocation27_spill] sm:$0xff] %v13297_v41  ;;  %v13300_v43 = vadd.f32 %v4755_v40, %v4643_v30  ;;  %15870 = vst [vmem:[#allocation78_spill] sm:$0xff] %v13312_v17 }
 0x622   : > { %v13315_v6 = vpop.f32.mrf.mxu1  ;;  %v5449_v12 = vpack.c.bf16 %v4698_v33, %v4694_v42 }
 0x623   : > { %15869 = vst [vmem:[#allocation35_spill] sm:$0xff] %v13300_v43  ;;  %15872 = vst [vmem:[#allocation88_spill] sm:$0xff] %v13315_v6 }
 0x625   : > { %5315 = vmatmul.mubr.bf16.gmra.mxu0 %v13029_v48 }
 0x626   : > { %5428 = vmatmul.mubr.bf16.gmra.mxu1 %v13037_v1  ;;  %5324 = vmatprep.mubr.bf16.mxu0 %v13087_v26 }
 0x627   : > { %5437 = vmatprep.mubr.bf16.mxu1 %v13090_v45 }
 0x62b   : > { %v4648_v28 = vpop.f32.mrf.mxu0 }
 0x62c   : > { %v4649_v48 = vadd.f32 %v4648_v28, %v13146_v20  ;;  %v4761_v61 = vpop.f32.mrf.mxu1 }
 0x62d   : > { %5325 = vmatmul.mubr.bf16.gmra.mxu0 %v13072_v22  ;;  %v4650_v1 = vpop.f32.mrf.mxu0  ;;  %v13330_v22 = vrot.slane %v15878_v34, %v15877_v55 }
 0x62e   : > { %v13320_v29 = vadd.f32 %v4761_v61, %v4649_v48  ;;  %5438 = vmatmul.mubr.bf16.gmra.mxu1 %v13082_v39  ;;  %5512 = vmatprep.mubr.bf16.mxu0 %v5449_v12  ;;  %v4651_v26 = vadd.f32 %v4650_v1, %v13174_v52  ;;  %v4763_v45 = vpop.f32.mrf.mxu1  ;;  %v15893_v52 = vld [vmem:[#allocation96_spill] sm:$0xff] }
 0x62f   : > { %v4652_v11 = vpop.f32.mrf.mxu0  ;;  %5857 = vmatprep.mubr.bf16.mxu1 %v15875_v37 }
 0x630   : > { %15874 = vst [vmem:[#allocation102_spill] sm:$0xff] %v13320_v29  ;;  %v13325_v10 = vadd.f32 %v4763_v45, %v4651_v26  ;;  %v4653_v24 = vadd.f32 %v4652_v11, %v13146_v20  ;;  %v4765_v18 = vpop.f32.mrf.mxu1 }
 0x631   : > { %v13332_v56 = vpop.f32.mrf.mxu0 }
 0x632   : > { %15876 = vst [vmem:[#allocation87_spill] sm:$0xff] %v13325_v10  ;;  %15879 = vst [vmem:[#allocation38_spill] sm:$0xff] %v13332_v56  ;;  %v13334_v25 = vadd.f32 %v4765_v18, %v4653_v24  ;;  %v13336_v39 = vpop.f32.mrf.mxu1 }
 0x633   : > { %15881 = vst [vmem:[#allocation37_spill] sm:$0xff] %v13336_v39  ;;  %v4804_v14 = vpop.f32.mrf.mxu0 }
 0x634   : > { %15880 = vst [vmem:[#allocation32_spill] sm:$0xff] %v13334_v25  ;;  %v4805_v20 = vadd.f32 %v4804_v14, %v13330_v22  ;;  %v4917_v19 = vpop.f32.mrf.mxu1 }
 0x635   : > { %v4806_v30 = vpop.f32.mrf.mxu0 }
 0x636   : > { %v13345_v40 = vadd.f32 %v4917_v19, %v4805_v20  ;;  %v4807_v7 = vadd.f32 %v4806_v30, %v13340_v27  ;;  %v4919_v32 = vpop.f32.mrf.mxu1 }
 0x637   : > { %v4808_v15 = vpop.f32.mrf.mxu0 }
 0x638   : > { %15883 = vst [vmem:[#allocation103_spill] sm:$0xff] %v13345_v40  ;;  %v13348_v33 = vadd.f32 %v4919_v32, %v4807_v7  ;;  %v4809_v23 = vadd.f32 %v4808_v15, %v13330_v22  ;;  %v4921_v42 = vpop.f32.mrf.mxu1 }
 0x639   : > { %v13351_v28 = vpop.f32.mrf.mxu0 }
 0x63a   : > { %15884 = vst [vmem:[#allocation97_spill] sm:$0xff] %v13348_v33  ;;  %v13353_v12 = vadd.f32 %v4921_v42, %v4809_v23  ;;  %v13355_v48 = vpop.f32.mrf.mxu1 }
 0x63b   : > { %15886 = vst [vmem:[#allocation51_spill] sm:$0xff] %v13355_v48  ;;  %v4814_v61 = vpop.f32.mrf.mxu0 }
 0x63c   : > { %15885 = vst [vmem:[#allocation48_spill] sm:$0xff] %v13353_v12  ;;  %v4815_v26 = vadd.f32 %v4814_v61, %v13330_v22  ;;  %v4927_v45 = vpop.f32.mrf.mxu1 }
 0x63d   : > { %v4816_v11 = vpop.f32.mrf.mxu0 }
 0x63e   : > { %v13360_v24 = vadd.f32 %v4927_v45, %v4815_v26  ;;  %v4817_v18 = vadd.f32 %v4816_v11, %v13340_v27  ;;  %v4929_v55 = vpop.f32.mrf.mxu1 }
 0x63f   : > { %v4818_v5 = vpop.f32.mrf.mxu0 }
 0x640   : > { %15887 = vst [vmem:[#allocation29_spill] sm:$0xff] %v13360_v24  ;;  %v13363_v14 = vadd.f32 %v4929_v55, %v4817_v18  ;;  %v4819_v20 = vadd.f32 %v4818_v5, %v13330_v22  ;;  %v4931_v19 = vpop.f32.mrf.mxu1 }
 0x641   : > { %v13366_v30 = vpop.f32.mrf.mxu0 }
 0x642   : > { %15888 = vst [vmem:[#allocation41_spill] sm:$0xff] %v13363_v14  ;;  %v13368_v7 = vadd.f32 %v4931_v19, %v4819_v20  ;;  %v13370_v32 = vpop.f32.mrf.mxu1 }
 0x643   : > { %v4824_v15 = vpop.f32.mrf.mxu0 }
 0x644   : > { %15889 = vst [vmem:[#allocation46_spill] sm:$0xff] %v13368_v7  ;;  %v4825_v42 = vadd.f32 %v4824_v15, %v13330_v22  ;;  %v4937_v61 = vpop.f32.mrf.mxu1 }
 0x645   : > { %v4826_v26 = vpop.f32.mrf.mxu0 }
 0x646   : > { %v13375_v45 = vadd.f32 %v4937_v61, %v4825_v42  ;;  %v4827_v11 = vadd.f32 %v4826_v26, %v13340_v27  ;;  %v4939_v18 = vpop.f32.mrf.mxu1 }
 0x647   : > { %v4828_v55 = vpop.f32.mrf.mxu0 }
 0x648   : > { %15890 = vst [vmem:[#allocation42_spill] sm:$0xff] %v13375_v45  ;;  %v13378_v5 = vadd.f32 %v4939_v18, %v4827_v11  ;;  %v4829_v20 = vadd.f32 %v4828_v55, %v13330_v22  ;;  %v4941_v19 = vpop.f32.mrf.mxu1 }
 0x649   : > { %v13381_v13 = vpop.f32.mrf.mxu0 }
 0x64a   : > { %v13383_v0 = vadd.f32 %v4941_v19, %v4829_v20  ;;  %v13385_v62 = vpop.f32.mrf.mxu1 }
 0x64b   : > { %v4834_v15 = vpop.f32.mrf.mxu0 }
 0x64c   : > { %15891 = vst [vmem:[#allocation34_spill] sm:$0xff] %v13383_v0  ;;  %v4835_v61 = vadd.f32 %v4834_v15, %v13330_v22  ;;  %v4947_v26 = vpop.f32.mrf.mxu1 }
 0x64d   : > { %v13390_v59 = vpop.f32.mrf.mxu0 }
 0x64e   : > { %v13392_v11 = vadd.f32 %v4947_v26, %v4835_v61  ;;  %v13394_v18 = vpop.f32.mrf.mxu1 }
 0x64f   : > { %v4838_v55 = vpop.f32.mrf.mxu0 }
 0x650   : > { %v4839_v35 = vadd.f32 %v4838_v55, %v13330_v22  ;;  %v4951_v20 = vpop.f32.mrf.mxu1 }
 0x651   : > { %v13397_v19 = vpop.f32.mrf.mxu0 }
 0x652   : > { %v13399_v31 = vadd.f32 %v4951_v20, %v4839_v35  ;;  %v13401_v9 = vpop.f32.mrf.mxu1 }
 0x653   : > { %v13403_v44 = vpop.f32.mrf.mxu0 }
 0x654   : > { %v13407_v1 = vpop.f32.mrf.mxu1 }
 0x655   : > { %v13409_v61 = vpop.f32.mrf.mxu0 }
 0x656   : > { %v13411_v26 = vpop.f32.mrf.mxu1 }
 0x657   : > { %v13413_v23 = vpop.f32.mrf.mxu0 }
 0x658   : > { %v13415_v55 = vpop.f32.mrf.mxu1 }
 0x659   : > { %v13417_v42 = vpop.f32.mrf.mxu0 }
 0x65a   : > { %v13419_v35 = vpop.f32.mrf.mxu1 }
 0x65b   : > { %v13421_v20 = vpop.f32.mrf.mxu0 }
 0x65c   : > { %v13423_v37 = vpop.f32.mrf.mxu1 }
 0x65d   : > { %v4856_v29 = vpop.f32.mrf.mxu0 }
 0x65e   : > { %v13425_v15 = vpop.f32.mrf.mxu1 }
 0x65f   : > { %v13427_v25 = vpop.f32.mrf.mxu0 }
 0x660   : > { %v13429_v63 = vpop.f32.mrf.mxu1 }
 0x661   : > { %v4860_v43 = vpop.f32.mrf.mxu0 }
 0x662   : > { %v4973_v10 = vpop.f32.mrf.mxu1 }
 0x663   : > { %v4864_v39 = vpop.f32.mrf.mxu0 }
 0x664   : > { %v4977_v49 = vpop.f32.mrf.mxu1 }
 0x665   : > { %v4866_v8 = vpop.f32.mrf.mxu0 }
 0x666   : > { %v4979_v56 = vpop.f32.mrf.mxu1  ;;  %v4867_v50 = vadd.f32 %v4866_v8, %v13340_v27 }
 0x667   : > { %v4868_v41 = vpop.f32.mrf.mxu0 }
 0x668   : > { %v4981_v6 = vpop.f32.mrf.mxu1  ;;  %v4980_v54 = vadd.f32 %v4979_v56, %v4867_v50  ;;  %v4869_v8 = vadd.f32 %v4868_v41, %v13330_v22 }
 0x669   : > { %v4870_v60 = vpop.f32.mrf.mxu0 }
 0x66a   : > { %v4983_v53 = vpop.f32.mrf.mxu1  ;;  %v4871_v58 = vadd.f32 %v4870_v60, %v13340_v27  ;;  %v13443_v60 = vrot.slane %v15878_v34, %v15893_v52  ;;  %v4982_v41 = vadd.f32 %v4981_v6, %v4869_v8 }
 0x66b   : > { %v4874_v17 = vpop.f32.mrf.mxu0 }
 0x66c   : > { %v4987_v47 = vpop.f32.mrf.mxu1  ;;  %v4875_v36 = vadd.f32 %v4874_v17, %v13330_v22 }
 0x66d   : > { %v4876_v57 = vpop.f32.mrf.mxu0 }
 0x66e   : > { %v4989_v21 = vpop.f32.mrf.mxu1  ;;  %v4877_v3 = vadd.f32 %v4876_v57, %v13340_v27  ;;  %v4984_v57 = vadd.f32 %v4983_v53, %v4871_v58  ;;  %v4988_v17 = vadd.f32 %v4987_v47, %v4875_v36  ;;  %v4861_v53 = vadd.f32 %v4860_v43, %v13340_v27 }
 0x66f   : > { %v4878_v4 = vpop.f32.mrf.mxu0  ;;  %v4865_v36 = vadd.f32 %v4864_v39, %v13330_v22  ;;  %v4857_v47 = vadd.f32 %v4856_v29, %v13340_v27  ;;  %v15918_v39 = vld [vmem:[#allocation95_spill] sm:$0xff] }
 0x670   : > { %v4879_v46 = vadd.f32 %v4878_v4, %v13330_v22  ;;  %v4991_v16 = vpop.f32.mrf.mxu1  ;;  %v4990_v4 = vadd.f32 %v4989_v21, %v4877_v3  ;;  %v5477_v21 = vpack.c.bf16 %v4984_v57, %v4980_v54  ;;  %v4974_v34 = vadd.f32 %v4973_v10, %v4861_v53 }
 0x671   : > { %v4880_v38 = vpop.f32.mrf.mxu0 }
 0x672   : > { %v4881_v51 = vadd.f32 %v4880_v38, %v13340_v27  ;;  %v4993_v40 = vpop.f32.mrf.mxu1  ;;  %v4992_v12 = vadd.f32 %v4991_v16, %v4879_v46 }
 0x674   : > { %v4994_v24 = vadd.f32 %v4993_v40, %v4881_v51  ;;  %v5030_v7 = vpop.f32.mrf.mxu0  ;;  %v5478_v38 = vpack.c.bf16 %v4992_v12, %v4988_v17  ;;  %v4978_v40 = vadd.f32 %v4977_v49, %v4865_v36  ;;  %v4851_v49 = vadd.f32 %v13417_v42, %v13340_v27 }
 0x675   : > { %v5031_v33 = vadd.f32 %v5030_v7, %v13437_v2  ;;  %v5143_v48 = vpop.f32.mrf.mxu1  ;;  %v4855_v17 = vadd.f32 %v13421_v20, %v13330_v22 }
 0x676   : > { %v5479_v45 = vpack.c.bf16 %v4994_v24, %v4990_v4  ;;  %v5032_v0 = vpop.f32.mrf.mxu0  ;;  %v4859_v24 = vadd.f32 %v13427_v25, %v13330_v22  ;;  %v5476_v6 = vpack.c.bf16 %v4982_v41, %v4978_v40  ;;  %v4847_v25 = vadd.f32 %v13409_v61, %v13340_v27 }
 0x677   : > { %v13447_v14 = vadd.f32 %v5143_v48, %v5031_v33  ;;  %v5033_v16 = vadd.f32 %v5032_v0, %v13443_v60  ;;  %v5145_v52 = vpop.f32.mrf.mxu1  ;;  %v4970_v48 = vadd.f32 %v13425_v15, %v4857_v47  ;;  %v4964_v20 = vadd.f32 %v13419_v35, %v4851_v49 }
 0x678   : > { %v5034_v51 = vpop.f32.mrf.mxu0  ;;  %5480 = vmatprep.subr.bf16.mxu0 %v5479_v45  ;;  %v4845_v40 = vadd.f32 %v13403_v44, %v13330_v22 }
 0x679   : > { %15894 = vst [vmem:[#allocation98_spill] sm:$0xff] %v13447_v14  ;;  %v13452_v3 = vadd.f32 %v5145_v52, %v5033_v16  ;;  %v5035_v50 = vadd.f32 %v5034_v51, %v13437_v2  ;;  %v5147_v46 = vpop.f32.mrf.mxu1  ;;  %5481 = vmatpush1.bf16.xpose.msra.mxu0 %v5478_v38  ;;  %v5475_v57 = vpack.c.bf16 %v4974_v34, %v4970_v48 }
 0x67a   : > { %v13456_v58 = vpop.f32.mrf.mxu0  ;;  %5482 = vmatprep.subr.bf16.mxu0 %v5477_v21  ;;  %v4972_v16 = vadd.f32 %v13429_v63, %v4859_v24  ;;  %v4968_v21 = vadd.f32 %v13423_v37, %v4855_v17  ;;  %v4849_v63 = vadd.f32 %v13413_v23, %v13330_v22  ;;  %v4841_v37 = vadd.f32 %v13397_v19, %v13340_v27 }
 0x67b   : > { %15895 = vst [vmem:[#allocation52_spill] sm:$0xff] %v13452_v3  ;;  %15896 = vst [vmem:[#allocation44_spill] sm:$0xff] %v13456_v58  ;;  %v13458_v0 = vadd.f32 %v5147_v46, %v5035_v50  ;;  %v13460_v43 = vpop.f32.mrf.mxu1  ;;  %v4960_v50 = vadd.f32 %v13411_v26, %v4847_v25  ;;  %v4837_v23 = vadd.f32 %v13390_v59, %v13340_v27 }
 0x67c   : > { %15898 = vst [vmem:[#allocation85_spill] sm:$0xff] %v13460_v43  ;;  %v5040_v56 = vpop.f32.mrf.mxu0  ;;  %v5474_v47 = vpack.c.bf16 %v4972_v16, %v4968_v21  ;;  %v4954_v19 = vadd.f32 %v13401_v9, %v4841_v37  ;;  %v4958_v24 = vadd.f32 %v13407_v1, %v4845_v40  ;;  %v15910_v40 = vld [vmem:[#allocation42_spill] sm:$0xff]  ;;  %v15923_v43 = vld [vmem:[#allocation84_spill] sm:$0xff] }
 0x67d   : > { %15897 = vst [vmem:[#allocation72_spill] sm:$0xff] %v13458_v0  ;;  %v5041_v33 = vadd.f32 %v5040_v56, %v13437_v2  ;;  %v5153_v12 = vpop.f32.mrf.mxu1  ;;  %v5473_v34 = vpack.c.bf16 %v4964_v20, %v4960_v50  ;;  %v4950_v22 = vadd.f32 %v13394_v18, %v4837_v23 }
 0x67e   : > { %v5042_v29 = vpop.f32.mrf.mxu0 }
 0x67f   : > { %v13468_v7 = vadd.f32 %v5153_v12, %v5041_v33  ;;  %v5043_v45 = vadd.f32 %v5042_v29, %v13443_v60  ;;  %v5155_v10 = vpop.f32.mrf.mxu1  ;;  %v4962_v12 = vadd.f32 %v13415_v55, %v4849_v63  ;;  %v4831_v55 = vadd.f32 %v13381_v13, %v13340_v27 }
 0x680   : > { %v5044_v4 = vpop.f32.mrf.mxu0  ;;  %v4811_v63 = vadd.f32 %v13351_v28, %v13340_v27 }
 0x681   : > { %15899 = vst [vmem:[#allocation100_spill] sm:$0xff] %v13468_v7  ;;  %v13475_v54 = vadd.f32 %v5155_v10, %v5043_v45  ;;  %v5045_v15 = vadd.f32 %v5044_v4, %v13437_v2  ;;  %v5157_v8 = vpop.f32.mrf.mxu1  ;;  %5483 = vmatpush1.bf16.xpose.msra.mxu0 %v5476_v6  ;;  %v5472_v59 = vpack.c.bf16 %v4962_v12, %v4958_v24 }
 0x682   : > { %v13480_v38 = vpop.f32.mrf.mxu0  ;;  %5484 = vmatprep.subr.bf16.mxu0 %v5475_v57  ;;  %v5471_v10 = vpack.c.bf16 %v4954_v19, %v4950_v22  ;;  %v4944_v18 = vadd.f32 %v13385_v62, %v4831_v55  ;;  %v15907_v62 = vpack.c.bf16 %v13399_v31, %v13392_v11  ;;  %v15912_v19 = vld [vmem:[#allocation51_spill] sm:$0xff] }
 0x683   : > { %15900 = vst [vmem:[#allocation54_spill] sm:$0xff] %v13475_v54  ;;  %v13483_v42 = vadd.f32 %v5157_v8, %v5045_v15  ;;  %v13485_v52 = vpop.f32.mrf.mxu1  ;;  %v4821_v8 = vadd.f32 %v13366_v30, %v13340_v27  ;;  %v4924_v24 = vadd.f32 %v15912_v19, %v4811_v63 }
 0x684   : > { %15902 = vst [vmem:[#allocation39_spill] sm:$0xff] %v13485_v52  ;;  %v5050_v53 = vpop.f32.mrf.mxu0  ;;  %v5469_v25 = vpack.c.bf16 %v4944_v18, %v13378_v5  ;;  %v15913_v18 = vld [vmem:[#allocation97_spill] sm:$0xff] }
 0x685   : > { %15901 = vst [vmem:[#allocation43_spill] sm:$0xff] %v13483_v42  ;;  %v5051_v36 = vadd.f32 %v5050_v53, %v13437_v2  ;;  %v5163_v61 = vpop.f32.mrf.mxu1  ;;  %v5465_v27 = vpack.c.bf16 %v4924_v24, %v15913_v18 }
 0x686   : > { %v13493_v46 = vpop.f32.mrf.mxu0 }
 0x687   : > { %v13497_v41 = vadd.f32 %v5163_v61, %v5051_v36  ;;  %v13499_v35 = vpop.f32.mrf.mxu1  ;;  %v4934_v36 = vadd.f32 %v13370_v32, %v4821_v8 }
 0x688   : > { %15904 = vst [vmem:[#allocation50_spill] sm:$0xff] %v13499_v35  ;;  %v13503_v56 = vpop.f32.mrf.mxu0  ;;  %v15925_v35 = vld [vmem:[#allocation67_spill] sm:$0xff] }
 0x689   : > { %15903 = vst [vmem:[#allocation108_spill] sm:$0xff] %v13497_v41  ;;  %v13507_v26 = vpop.f32.mrf.mxu1  ;;  %5485 = vmatpush1.bf16.xpose.msra.mxu0 %v5474_v47  ;;  %v15908_v47 = vld [vmem:[#allocation41_spill] sm:$0xff] }
 0x68a   : > { %15905 = vst [vmem:[#allocation36_spill] sm:$0xff] %v13507_v26  ;;  %v13511_v33 = vpop.f32.mrf.mxu0  ;;  %5486 = vmatprep.subr.bf16.mxu0 %v5473_v34  ;;  %v5467_v31 = vpack.c.bf16 %v4934_v36, %v15908_v47  ;;  %v15909_v34 = vld [vmem:[#allocation34_spill] sm:$0xff]  ;;  %v15924_v26 = vld [vmem:[#allocation101_spill] sm:$0xff] }
 0x68b   : > { %v13514_v48 = vpop.f32.mrf.mxu1  ;;  %v15911_v23 = vpack.c.bf16 %v15909_v34, %v15910_v40 }
 0x68c   : > { %v13517_v29 = vpop.f32.mrf.mxu0 }
 0x68d   : > { %v13520_v44 = vpop.f32.mrf.mxu1 }
 0x68e   : > { %15906 = vst [vmem:[#allocation47_spill] sm:$0xff] %v13520_v44  ;;  %v13523_v6 = vpop.f32.mrf.mxu0 }
 0x68f   : > { %v13525_v45 = vpop.f32.mrf.mxu1 }
 0x690   : > { %v13529_v49 = vpop.f32.mrf.mxu0 }
 0x691   : > { %v13531_v9 = vpop.f32.mrf.mxu1  ;;  %5487 = vmatpush1.bf16.xpose.msra.mxu0 %v5472_v59 }
 0x692   : > { %v13533_v57 = vpop.f32.mrf.mxu0  ;;  %5488 = vmatprep.subr.bf16.mxu0 %v5471_v10 }
 0x693   : > { %v13535_v1 = vpop.f32.mrf.mxu1 }
 0x694   : > { %v13538_v4 = vpop.f32.mrf.mxu0 }
 0x695   : > { %v13540_v17 = vpop.f32.mrf.mxu1 }
 0x696   : > { %v13542_v15 = vpop.f32.mrf.mxu0 }
 0x697   : > { %v13544_v13 = vpop.f32.mrf.mxu1 }
 0x698   : > { %v13549_v16 = vpop.f32.mrf.mxu0 }
 0x699   : > { %v13551_v20 = vpop.f32.mrf.mxu1  ;;  %5489 = vmatpush1.bf16.xpose.msra.mxu0 %v15907_v62  ;;  %v15915_v62 = vld [vmem:[#allocation29_spill] sm:$0xff] }
 0x69a   : > { %v13556_v53 = vpop.f32.mrf.mxu0  ;;  %5490 = vmatprep.subr.bf16.mxu0 %v5469_v25  ;;  %v15914_v25 = vld [vmem:[#allocation46_spill] sm:$0xff] }
 0x69b   : > { %v13558_v21 = vpop.f32.mrf.mxu1  ;;  %v15916_v36 = vpack.c.bf16 %v15914_v25, %v15915_v62  ;;  %v15919_v25 = vld [vmem:[#allocation48_spill] sm:$0xff]  ;;  %v15920_v62 = vld [vmem:[#allocation103_spill] sm:$0xff] }
 0x69c   : > { %v13561_v61 = vpop.f32.mrf.mxu0 }
 0x69d   : > { %v13563_v30 = vpop.f32.mrf.mxu1 }
 0x69e   : > { %v5082_v5 = vpop.f32.mrf.mxu0 }
 0x69f   : > { %v13565_v50 = vpop.f32.mrf.mxu1 }
 0x6a0   : > { %v5084_v11 = vpop.f32.mrf.mxu0 }
 0x6a1   : > { %v13570_v37 = vpop.f32.mrf.mxu1  ;;  %5491 = vmatpush1.bf16.xpose.msra.mxu0 %v15911_v23  ;;  %v15917_v23 = vld [vmem:[#allocation82_spill] sm:$0xff] }
 0x6a2   : > { %v5086_v32 = vpop.f32.mrf.mxu0  ;;  %5492 = vmatprep.subr.bf16.mxu0 %v5467_v31  ;;  %v4595_v63 = vadd.f32 %v15918_v39, %v15917_v23  ;;  %v9922_v39 = vld [vmem:[#allocation8] sm:$0xff] }
 0x6a3   : > { %v5199_v12 = vpop.f32.mrf.mxu1  ;;  %v13591_v41 = vrot.slane %v9922_v39, %v15923_v43 }
 0x6a4   : > { %v5090_v22 = vpop.f32.mrf.mxu0 }
 0x6a5   : > { %v5203_v59 = vpop.f32.mrf.mxu1  ;;  %v5091_v23 = vadd.f32 %v5090_v22, %v13437_v2  ;;  %v15927_v22 = vld [vmem:[#allocation80_spill] sm:$0xff] }
 0x6a6   : > { %v5092_v55 = vpop.f32.mrf.mxu0 }
 0x6a7   : > { %v5205_v10 = vpop.f32.mrf.mxu1 }
 0x6a8   : > { %v5094_v28 = vpop.f32.mrf.mxu0 }
 0x6a9   : > { %v5207_v8 = vpop.f32.mrf.mxu1  ;;  %5493 = vmatpush1.bf16.xpose.msra.mxu0 %v15916_v36  ;;  %v15921_v36 = vpack.c.bf16 %v15919_v25, %v15920_v62  ;;  %v13597_v25 = vrot.slane %v9922_v39, %v15924_v26 }
 0x6aa   : > { %v5096_v47 = vpop.f32.mrf.mxu0  ;;  %5494 = vmatprep.subr.bf16.mxu0 %v5465_v27  ;;  %v15922_v27 = vld [vmem:[#allocation69_spill] sm:$0xff] }
 0x6ab   : > { %v5209_v34 = vpop.f32.mrf.mxu1  ;;  %v5097_v0 = vadd.f32 %v5096_v47, %v13443_v60  ;;  %v4708_v42 = vadd.f32 %v15922_v27, %v4595_v63  ;;  %v5093_v47 = vadd.f32 %v5092_v55, %v13443_v60  ;;  %v5087_v63 = vadd.f32 %v5086_v32, %v13443_v60 }
 0x6ac   : > { %v5100_v40 = vpop.f32.mrf.mxu0 }
 0x6ad   : > { %v5213_v31 = vpop.f32.mrf.mxu1  ;;  %v5101_v3 = vadd.f32 %v5100_v40, %v13437_v2  ;;  %v5210_v62 = vadd.f32 %v5209_v34, %v5097_v0  ;;  %v5451_v43 = vpack.c.bf16 %v4708_v42, %v15925_v35  ;;  %v5206_v26 = vadd.f32 %v5205_v10, %v5093_v47  ;;  %v15926_v35 = vld [vmem:[#allocation83_spill] sm:$0xff] }
 0x6ae   : > { %v5102_v19 = vpop.f32.mrf.mxu0  ;;  %v5077_v34 = vadd.f32 %v13556_v53, %v13443_v60  ;;  %v5073_v47 = vadd.f32 %v13542_v15, %v13443_v60 }
 0x6af   : > { %v5215_v51 = vpop.f32.mrf.mxu1  ;;  %v5103_v24 = vadd.f32 %v5102_v19, %v13443_v60  ;;  %v5214_v55 = vadd.f32 %v5213_v31, %v5101_v3  ;;  %v15928_v3 = vpack.c.bf16 %v15926_v35, %v15927_v22  ;;  %v5822_v31 = vpack.c.bf16 %v5210_v62, %v5206_v26  ;;  %v15930_v26 = vld [vmem:[#allocation93_spill] sm:$0xff] }
 0x6b0   : > { %v5104_v14 = vpop.f32.mrf.mxu0  ;;  %v5190_v15 = vadd.f32 %v13558_v21, %v5077_v34 }
 0x6b1   : > { %v5105_v18 = vadd.f32 %v5104_v14, %v13437_v2  ;;  %v5217_v7 = vpop.f32.mrf.mxu1  ;;  %5495 = vmatpush1.bf16.xpose.msra.mxu0 %v15921_v36  ;;  %v5095_v14 = vadd.f32 %v5094_v28, %v13437_v2  ;;  %v5216_v40 = vadd.f32 %v5215_v51, %v5103_v24  ;;  %v5083_v28 = vadd.f32 %v5082_v5, %v13443_v60 }
 0x6b2   : > { %v5106_v54 = vpop.f32.mrf.mxu0  ;;  %v5200_v5 = vadd.f32 %v5199_v12, %v5087_v63  ;;  %v5067_v63 = vadd.f32 %v13533_v57, %v13443_v60  ;;  %v5186_v57 = vadd.f32 %v13544_v13, %v5073_v47 }
 0x6b3   : > { %v5107_v19 = vadd.f32 %v5106_v54, %v13443_v60  ;;  %v5219_v52 = vpop.f32.mrf.mxu1  ;;  %v5218_v58 = vadd.f32 %v5217_v7, %v5105_v18  ;;  %v5085_v7 = vadd.f32 %v5084_v11, %v13437_v2  ;;  %v5208_v32 = vadd.f32 %v5207_v8, %v5095_v14 }
 0x6b4   : > { %v5196_v53 = vadd.f32 %v13565_v50, %v5083_v28  ;;  %v5818_v13 = vpack.c.bf16 %v5190_v15, %v5186_v57 }
 0x6b5   : > { %v5220_v36 = vadd.f32 %v5219_v52, %v5107_v19  ;;  %v5256_v27 = vpop.f32.mrf.mxu0  ;;  %v5823_v0 = vpack.c.bf16 %v5218_v58, %v5214_v55  ;;  %v5081_v58 = vadd.f32 %v13561_v61, %v13437_v2  ;;  %v5075_v19 = vadd.f32 %v13549_v16, %v13437_v2 }
 0x6b6   : > { %v5257_v54 = vadd.f32 %v5256_v27, %v13591_v41  ;;  %v5369_v44 = vpop.f32.mrf.mxu1  ;;  %v5198_v61 = vadd.f32 %v13570_v37, %v5085_v7  ;;  %v5820_v62 = vpack.c.bf16 %v5200_v5, %v5196_v53  ;;  %v5063_v27 = vadd.f32 %v13523_v6, %v13443_v60  ;;  %v15929_v7 = vld [vmem:[#allocation79_spill] sm:$0xff] }
 0x6b7   : > { %v5824_v18 = vpack.c.bf16 %v5220_v36, %v5216_v40  ;;  %v5258_v39 = vpop.f32.mrf.mxu0  ;;  %v5071_v40 = vadd.f32 %v13538_v4, %v13437_v2  ;;  %v5194_v36 = vadd.f32 %v13563_v30, %v5081_v58  ;;  %v5188_v55 = vadd.f32 %v13551_v20, %v5075_v19  ;;  %v15938_v19 = vld [vmem:[#allocation50_spill] sm:$0xff] }
 0x6b8   : > { %v13605_v51 = vadd.f32 %v5369_v44, %v5257_v54  ;;  %v5259_v52 = vadd.f32 %v5258_v39, %v13597_v25  ;;  %v5371_v42 = vpop.f32.mrf.mxu1  ;;  %5513 = vmatmul.mubr.bf16.vlgmr.msra.gmra.mxu0 %v15928_v3  ;;  %v5204_v44 = vadd.f32 %v5203_v59, %v5091_v23  ;;  %v5057_v6 = vadd.f32 %v13511_v33, %v13443_v60 }
 0x6b9   : > { %v5260_v11 = vpop.f32.mrf.mxu0  ;;  %5825 = vmatprep.subr.bf16.mxu1 %v5824_v18  ;;  %5520 = vmatprep.mubr.bf16.mxu0 %v5451_v43  ;;  %v5065_v43 = vadd.f32 %v13529_v49, %v13437_v2  ;;  %v5819_v54 = vpack.c.bf16 %v5198_v61, %v5194_v36  ;;  %v15931_v18 = vpack.c.bf16 %v15929_v7, %v15930_v26  ;;  %v15941_v36 = vld [vmem:[#allocation63_spill] sm:$0xff] }
 0x6ba   : > { %v13615_v10 = vadd.f32 %v5371_v42, %v5259_v52  ;;  %v5261_v8 = vadd.f32 %v5260_v11, %v13591_v41  ;;  %v5373_v24 = vpop.f32.mrf.mxu1  ;;  %5826 = vmatpush1.bf16.msra.mxu1 %v5823_v0  ;;  %v5821_v59 = vpack.c.bf16 %v5208_v32, %v5204_v44  ;;  %v5180_v49 = vadd.f32 %v13535_v1, %v5067_v63  ;;  %v15932_v32 = vld [vmem:[#allocation24_spill] sm:$0xff]  ;;  %v15933_v0 = vld [vmem:[#allocation75_spill] sm:$0xff] }
 0x6bb   : > { %v13621_v12 = vpop.f32.mrf.mxu0  ;;  %5827 = vmatprep.subr.bf16.mxu1 %v5822_v31  ;;  %v15934_v20 = vpack.c.bf16 %v15932_v32, %v15933_v0  ;;  %v5061_v52 = vadd.f32 %v13517_v29, %v13437_v2  ;;  %v5184_v42 = vadd.f32 %v13540_v17, %v5071_v40  ;;  %v5053_v33 = vadd.f32 %v13493_v46, %v13443_v60  ;;  %v15939_v63 = vld [vmem:[#allocation36_spill] sm:$0xff]  ;;  %v15940_v40 = vld [vmem:[#allocation94_spill] sm:$0xff] }
 0x6bc   : > { %v13626_v23 = vadd.f32 %v5373_v24, %v5261_v8  ;;  %v13628_v14 = vpop.f32.mrf.mxu1  ;;  %v5176_v1 = vadd.f32 %v13525_v45, %v5063_v27  ;;  %v5055_v5 = vadd.f32 %v13503_v56, %v13437_v2  ;;  %v5178_v29 = vadd.f32 %v13531_v9, %v5065_v43  ;;  %v15935_v8 = vld [vmem:[#allocation47_spill] sm:$0xff]  ;;  %v15936_v2 = vld [vmem:[#allocation82_spill] sm:$0xff]  ;;  %v15937_v56 = vld [vmem:[#allocation33_spill] sm:$0xff] }
 0x6bd   : > { %v5266_v50 = vpop.f32.mrf.mxu0  ;;  %v5817_v17 = vpack.c.bf16 %v5188_v55, %v5184_v42  ;;  %v5047_v58 = vadd.f32 %v13480_v38, %v13443_v60  ;;  %v5170_v46 = vadd.f32 %v13514_v48, %v5057_v6  ;;  %v5174_v24 = vadd.f32 %v15935_v8, %v5061_v52  ;;  %v15944_v43 = vld [vmem:[#allocation39_spill] sm:$0xff]  ;;  %v15948_v6 = vld [vmem:[#allocation92_spill] sm:$0xff]  ;;  %v15951_v42 = vld [vmem:[#allocation54_spill] sm:$0xff] }
 0x6be   : > { %v5267_v16 = vadd.f32 %v5266_v50, %v13591_v41  ;;  %v5379_v37 = vpop.f32.mrf.mxu1  ;;  %5828 = vmatpush1.bf16.msra.mxu1 %v5821_v59  ;;  %v5816_v44 = vpack.c.bf16 %v5180_v49, %v5176_v1  ;;  %v4625_v9 = vadd.f32 %v15937_v56, %v15936_v2  ;;  %v5166_v61 = vadd.f32 %v15938_v19, %v5053_v33  ;;  %v15957_v56 = vld [vmem:[#allocation52_spill] sm:$0xff] }
 0x6bf   : > { %v5268_v21 = vpop.f32.mrf.mxu0  ;;  %5829 = vmatprep.subr.bf16.mxu1 %v5820_v62  ;;  %v5168_v15 = vadd.f32 %v15939_v63, %v5055_v5  ;;  %v5815_v38 = vpack.c.bf16 %v5178_v29, %v5174_v24  ;;  %v5160_v57 = vadd.f32 %v15944_v43, %v5047_v58  ;;  %v15952_v5 = vld [vmem:[#allocation22_spill] sm:$0xff]  ;;  %v15954_v24 = vld [vmem:[#allocation23_spill] sm:$0xff] }
 0x6c0   : > { %v13643_v4 = vadd.f32 %v5379_v37, %v5267_v16  ;;  %v5269_v30 = vadd.f32 %v5268_v21, %v13597_v25  ;;  %v5381_v28 = vpop.f32.mrf.mxu1  ;;  %5521 = vmatmul.mubr.bf16.gmra.mxu0 %v15931_v18  ;;  %v15942_v16 = vpack.c.bf16 %v15940_v40, %v15941_v36  ;;  %v15943_v37 = vld [vmem:[#allocation44_spill] sm:$0xff]  ;;  %v5814_v21 = vpack.c.bf16 %v5170_v46, %v5166_v61 }
 0x6c1   : > { %v5270_v39 = vpop.f32.mrf.mxu0  ;;  %5528 = vmatprep.mubr.bf16.mxu0 %v15934_v20  ;;  %v5037_v27 = vadd.f32 %v15943_v37, %v13443_v60  ;;  %v4738_v49 = vadd.f32 %v15948_v6, %v4625_v9  ;;  %v15949_v60 = vld [vmem:[#allocation108_spill] sm:$0xff]  ;;  %v15950_v20 = vld [vmem:[#allocation85_spill] sm:$0xff] }
 0x6c2   : > { %v13658_v35 = vadd.f32 %v5381_v28, %v5269_v30  ;;  %v5271_v22 = vadd.f32 %v5270_v39, %v13591_v41  ;;  %v5383_v3 = vpop.f32.mrf.mxu1  ;;  %5830 = vmatpush1.bf16.msra.mxu1 %v5819_v54  ;;  %v15945_v54 = vld [vmem:[#allocation86_spill] sm:$0xff]  ;;  %v15946_v30 = vld [vmem:[#allocation89_spill] sm:$0xff]  ;;  %v5813_v39 = vpack.c.bf16 %v5168_v15, %v15949_v60  ;;  %v15958_v15 = vld [vmem:[#allocation43_spill] sm:$0xff] }
 0x6c3   : > { %v13664_v34 = vpop.f32.mrf.mxu0  ;;  %5831 = vmatprep.subr.bf16.mxu1 %v5818_v13  ;;  %v15947_v28 = vpack.c.bf16 %v15945_v54, %v15946_v30  ;;  %v5150_v52 = vadd.f32 %v15950_v20, %v5037_v27  ;;  %v5457_v29 = vpack.c.bf16 %v4738_v49, %v15952_v5  ;;  %v15965_v30 = vld [vmem:[#allocation21_spill] sm:$0xff]  ;;  %v15967_v20 = vld [vmem:[#allocation26_spill] sm:$0xff]  ;;  %v15970_v5 = vld [vmem:[#allocation88_spill] sm:$0xff] }
 0x6c4   : > { %v13669_v31 = vadd.f32 %v5383_v3, %v5271_v22  ;;  %v13671_v11 = vpop.f32.mrf.mxu1  ;;  %v5812_v22 = vpack.c.bf16 %v5160_v57, %v15951_v42 }
 0x6c5   : > { %v5276_v45 = vpop.f32.mrf.mxu0  ;;  %v5810_v9 = vpack.c.bf16 %v5150_v52, %v15957_v56  ;;  %v15968_v52 = vld [vmem:[#allocation20_spill] sm:$0xff]  ;;  %v15972_v56 = vld [vmem:[#allocation38_spill] sm:$0xff] }
 0x6c6   : > { %v5277_v47 = vadd.f32 %v5276_v45, %v13591_v41  ;;  %v5389_v53 = vpop.f32.mrf.mxu1  ;;  %5832 = vmatpush1.bf16.msra.mxu1 %v5817_v17  ;;  %v15953_v17 = vld [vmem:[#allocation91_spill] sm:$0xff]  ;;  %v15969_v42 = vpack.c.bf16 %v15967_v20, %v15968_v52 }
 0x6c7   : > { %v5278_v59 = vpop.f32.mrf.mxu0  ;;  %5833 = vmatprep.subr.bf16.mxu1 %v5816_v44  ;;  %v4635_v58 = vadd.f32 %v15953_v17, %v15936_v2 }
 0x6c8   : > { %v13682_v62 = vadd.f32 %v5389_v53, %v5277_v47  ;;  %v5279_v48 = vadd.f32 %v5278_v59, %v13597_v25  ;;  %v5391_v50 = vpop.f32.mrf.mxu1  ;;  %5529 = vmatmul.mubr.bf16.gmra.mxu0 %v15942_v16  ;;  %v15955_v47 = vld [vmem:[#allocation61_spill] sm:$0xff] }
 0x6c9   : > { %v5280_v55 = vpop.f32.mrf.mxu0  ;;  %5536 = vmatprep.mubr.bf16.mxu0 %v15947_v28  ;;  %v15956_v53 = vpack.c.bf16 %v15954_v24, %v15955_v47  ;;  %v15971_v47 = vld [vmem:[#allocation27_spill] sm:$0xff] }
 0x6ca   : > { %v13694_v7 = vadd.f32 %v5391_v50, %v5279_v48  ;;  %v5281_v26 = vadd.f32 %v5280_v55, %v13591_v41  ;;  %v5393_v18 = vpop.f32.mrf.mxu1  ;;  %5834 = vmatpush1.bf16.msra.mxu1 %v5815_v38  ;;  %v15959_v38 = vld [vmem:[#allocation100_spill] sm:$0xff]  ;;  %v15961_v50 = vld [vmem:[#allocation31_spill] sm:$0xff]  ;;  %v15963_v55 = vld [vmem:[#allocation98_spill] sm:$0xff] }
 0x6cb   : > { %v13698_v13 = vpop.f32.mrf.mxu0  ;;  %5835 = vmatprep.subr.bf16.mxu1 %v5814_v21  ;;  %v15960_v48 = vpack.c.bf16 %v15958_v15, %v15959_v38  ;;  %v4748_v40 = vadd.f32 %v15961_v50, %v4635_v58  ;;  %v15962_v21 = vld [vmem:[#allocation72_spill] sm:$0xff] }
 0x6cc   : > { %v13701_v32 = vadd.f32 %v5393_v18, %v5281_v26  ;;  %v13703_v0 = vpop.f32.mrf.mxu1  ;;  %v15964_v54 = vpack.c.bf16 %v15962_v21, %v15963_v55  ;;  %v15966_v26 = vld [vmem:[#allocation78_spill] sm:$0xff]  ;;  %v15973_v38 = vld [vmem:[#allocation28_spill] sm:$0xff]  ;;  %v15976_v21 = vld [vmem:[#allocation37_spill] sm:$0xff] }
 0x6cd   : > { %v5286_v3 = vpop.f32.mrf.mxu0  ;;  %v5459_v28 = vpack.c.bf16 %v4748_v40, %v15965_v30  ;;  %v4645_v18 = vadd.f32 %v15966_v26, %v15936_v2 }
 0x6ce   : > { %v5287_v33 = vadd.f32 %v5286_v3, %v13591_v41  ;;  %v5399_v1 = vpop.f32.mrf.mxu1  ;;  %5836 = vmatpush1.bf16.msra.mxu1 %v5813_v39 }
 0x6cf   : > { %v5288_v46 = vpop.f32.mrf.mxu0  ;;  %5837 = vmatprep.subr.bf16.mxu1 %v5812_v22 }
 0x6d0   : > { %v13711_v44 = vadd.f32 %v5399_v1, %v5287_v33  ;;  %v5289_v45 = vadd.f32 %v5288_v46, %v13597_v25  ;;  %v5401_v8 = vpop.f32.mrf.mxu1  ;;  %5537 = vmatmul.mubr.bf16.gmra.mxu0 %v15956_v53 }
 0x6d1   : > { %v5290_v19 = vpop.f32.mrf.mxu0  ;;  %5544 = vmatprep.mubr.bf16.mxu0 %v5457_v29  ;;  %v4758_v29 = vadd.f32 %v15970_v5, %v4645_v18 }
 0x6d2   : > { %v13718_v61 = vadd.f32 %v5401_v8, %v5289_v45  ;;  %v5291_v59 = vadd.f32 %v5290_v19, %v13591_v41  ;;  %v5403_v63 = vpop.f32.mrf.mxu1  ;;  %5838 = vmatpush1.bf16.msra.mxu1 %v15960_v48  ;;  %v15974_v48 = vld [vmem:[#allocation70_spill] sm:$0xff] }
 0x6d3   : > { %v13725_v36 = vpop.f32.mrf.mxu0  ;;  %5839 = vmatprep.subr.bf16.mxu1 %v5810_v9  ;;  %v5461_v53 = vpack.c.bf16 %v4758_v29, %v15971_v47  ;;  %v4655_v9 = vadd.f32 %v15972_v56, %v15936_v2  ;;  %v15975_v50 = vpack.c.bf16 %v15973_v38, %v15974_v48 }
 0x6d4   : > { %v13727_v16 = vadd.f32 %v5403_v63, %v5291_v59  ;;  %v13729_v37 = vpop.f32.mrf.mxu1 }
 0x6d5   : > { %v5296_v27 = vpop.f32.mrf.mxu0  ;;  %v4768_v55 = vadd.f32 %v15976_v21, %v4655_v9 }
 0x6d6   : > { %v5297_v43 = vadd.f32 %v5296_v27, %v13591_v41  ;;  %v5409_v57 = vpop.f32.mrf.mxu1  ;;  %5840 = vmatpush1.bf16.msra.mxu1 %v15964_v54 }
 0x6d7   : > { %v5298_v6 = vpop.f32.mrf.mxu0 }
 0x6d8   : > { %v13738_v49 = vadd.f32 %v5409_v57, %v5297_v43  ;;  %v5299_v60 = vadd.f32 %v5298_v6, %v13597_v25  ;;  %v5411_v39 = vpop.f32.mrf.mxu1  ;;  %5545 = vmatmul.mubr.bf16.gmra.mxu0 %v15969_v42  ;;  %v15977_v6 = vld [vmem:[#allocation87_spill] sm:$0xff] }
 0x6d9   : > { %v5300_v22 = vpop.f32.mrf.mxu0  ;;  %5552 = vmatprep.mubr.bf16.mxu0 %v5459_v28 }
 0x6da   : > { %v13744_v3 = vadd.f32 %v5411_v39, %v5299_v60  ;;  %v5301_v33 = vadd.f32 %v5300_v22, %v13591_v41  ;;  %v5413_v1 = vpop.f32.mrf.mxu1  ;;  %v5463_v60 = vpack.c.bf16 %v4768_v55, %v15977_v6  ;;  %v15979_v22 = vld [vmem:[#allocation35_spill] sm:$0xff] }
 0x6db   : > { %v13748_v17 = vpop.f32.mrf.mxu0 }
 0x6dc   : > { %v13750_v58 = vadd.f32 %v5413_v1, %v5301_v33  ;;  %v13752_v46 = vpop.f32.mrf.mxu1  ;;  %v15980_v33 = vld [vmem:[#allocation40_spill] sm:$0xff] }
 0x6dd   : > { %v5306_v45 = vpop.f32.mrf.mxu0  ;;  %v15981_v1 = vpack.c.bf16 %v15979_v22, %v15980_v33 }
 0x6de   : > { %v5307_v8 = vadd.f32 %v5306_v45, %v13591_v41  ;;  %v5419_v24 = vpop.f32.mrf.mxu1 }
 0x6df   : > { %v5308_v19 = vpop.f32.mrf.mxu0 }
 0x6e0   : > { %v13758_v59 = vadd.f32 %v5419_v24, %v5307_v8  ;;  %v5309_v63 = vadd.f32 %v5308_v19, %v13597_v25  ;;  %v5421_v15 = vpop.f32.mrf.mxu1  ;;  %5553 = vmatmul.mubr.bf16.gmra.mxu0 %v15975_v50  ;;  %v15985_v50 = vld [vmem:[#allocation32_spill] sm:$0xff] }
 0x6e1   : > { %v5310_v40 = vpop.f32.mrf.mxu0  ;;  %5560 = vmatprep.mubr.bf16.mxu0 %v5461_v53 }
 0x6e2   : > { %v13764_v27 = vadd.f32 %v5421_v15, %v5309_v63  ;;  %v5311_v43 = vadd.f32 %v5310_v40, %v13591_v41  ;;  %v5423_v57 = vpop.f32.mrf.mxu1  ;;  %v15986_v40 = vld [vmem:[#allocation102_spill] sm:$0xff] }
 0x6e3   : > { %v13768_v2 = vpop.f32.mrf.mxu0 }
 0x6e4   : > { %v13770_v54 = vadd.f32 %v5423_v57, %v5311_v43  ;;  %v13772_v30 = vpop.f32.mrf.mxu1  ;;  %v15987_v43 = vpack.c.bf16 %v15985_v50, %v15986_v40 }
 0x6e5   : > { %v5316_v28 = vpop.f32.mrf.mxu0 }
 0x6e6   : > { %v5317_v26 = vadd.f32 %v5316_v28, %v13591_v41  ;;  %v5429_v18 = vpop.f32.mrf.mxu1 }
 0x6e7   : > { %v5318_v39 = vpop.f32.mrf.mxu0 }
 0x6e8   : > { %v13776_v20 = vadd.f32 %v5429_v18, %v5317_v26  ;;  %v5319_v52 = vadd.f32 %v5318_v39, %v13597_v25  ;;  %v5431_v42 = vpop.f32.mrf.mxu1  ;;  %5561 = vmatmul.mubr.bf16.gmra.mxu0 %v15981_v1 }
 0x6e9   : > { %v5320_v5 = vpop.f32.mrf.mxu0  ;;  %5568 = vmatprep.mubr.bf16.mxu0 %v5463_v60 }
 0x6ea   : > { %15978 = vst [vmem:[#allocation77_spill] sm:$0xff] %v13776_v20  ;;  %v13782_v29 = vadd.f32 %v5431_v42, %v5319_v52  ;;  %v5321_v45 = vadd.f32 %v5320_v5, %v13591_v41  ;;  %v5433_v8 = vpop.f32.mrf.mxu1 }
 0x6eb   : > { %v13785_v24 = vpop.f32.mrf.mxu0 }
 0x6ec   : > { %15982 = vst [vmem:[#allocation90_spill] sm:$0xff] %v13782_v29  ;;  %v13787_v47 = vadd.f32 %v5433_v8, %v5321_v45  ;;  %v13789_v53 = vpop.f32.mrf.mxu1 }
 0x6ed   : > { %v5326_v56 = vpop.f32.mrf.mxu0 }
 0x6ee   : > { %15983 = vst [vmem:[#allocation56_spill] sm:$0xff] %v13787_v47  ;;  %v5327_v9 = vadd.f32 %v5326_v56, %v13591_v41  ;;  %v5439_v19 = vpop.f32.mrf.mxu1 }
 0x6ef   : > { %v5328_v63 = vpop.f32.mrf.mxu0 }
 0x6f0   : > { %v13792_v15 = vadd.f32 %v5439_v19, %v5327_v9  ;;  %v5329_v38 = vadd.f32 %v5328_v63, %v13597_v25  ;;  %v5441_v48 = vpop.f32.mrf.mxu1  ;;  %5569 = vmatmul.mubr.bf16.gmra.mxu0 %v15987_v43 }
 0x6f1   : > { %v5330_v57 = vpop.f32.mrf.mxu0 }
 0x6f2   : > { %15984 = vst [vmem:[#allocation64_spill] sm:$0xff] %v13792_v15  ;;  %v13798_v21 = vadd.f32 %v5441_v48, %v5329_v38  ;;  %v5331_v55 = vadd.f32 %v5330_v57, %v13591_v41  ;;  %v5443_v28 = vpop.f32.mrf.mxu1 }
 0x6f3   : > { %v13803_v18 = vpop.f32.mrf.mxu0 }
 0x6f4   : > { %15988 = vst [vmem:[#allocation49_spill] sm:$0xff] %v13798_v21  ;;  %v13801_v26 = vadd.f32 %v5443_v28, %v5331_v55 }
 0x6f6   : > { %15989 = vst [vmem:[#allocation59_spill] sm:$0xff] %v13801_v26 }
 0x778   : > { %v5514_v6 = vpop.f32.mrf.mxu0 }
 0x779   : > { %v5577_v60 = vmul.f32 0.0625, %v5514_v6 }
 0x77a   : > { %v5516_v39 = vpop.f32.mrf.mxu0 }
 0x77b   : > { %v13807_v42 = vsel %vm2060_vm1, %v5577_v60, -1e+30 }
 0x77c   : > { %5609 = vmax.xlane.f32.xlu0 %v13807_v42  ;;  %v5517_v22 = vpop.f32.mrf.mxu0 }
 0x77d   : > { %v5578_v33 = vmul.f32 0.0625, %v5517_v22 }
 0x77e   : > { %v5519_v1 = vpop.f32.mrf.mxu0 }
 0x77f   : > { %v13812_v41 = vsel %vm2061_vm2, %v5578_v33, -1e+30 }
 0x780   : > { %5611 = vmax.xlane.f32.xlu1 %v13812_v41  ;;  %v5522_v45 = vpop.f32.mrf.mxu0 }
 0x781   : > { %v5579_v8 = vmul.f32 0.0625, %v5522_v45 }
 0x782   : > { %v5524_v56 = vpop.f32.mrf.mxu0 }
 0x783   : > { %v13817_v19 = vsel %vm2062_vm3, %v5579_v8, -1e+30 }
 0x784   : > { %5613 = vmax.xlane.f32.xlu0 %v13817_v19  ;;  %v5525_v63 = vpop.f32.mrf.mxu0 }
 0x785   : > { %v5580_v38 = vmul.f32 0.0625, %v5525_v63 }
 0x786   : > { %v5527_v48 = vpop.f32.mrf.mxu0 }
 0x787   : > { %v13822_v40 = vsel %vm2063_vm4, %v5580_v38, -1e+30 }
 0x788   : > { %5615 = vmax.xlane.f32.xlu1 %v13822_v40  ;;  %v5530_v43 = vpop.f32.mrf.mxu0 }
 0x789   : > { %v5581_v57 = vmul.f32 0.0625, %v5530_v43 }
 0x78a   : > { %v5532_v55 = vpop.f32.mrf.mxu0 }
 0x78b   : > { %v13827_v6 = vsel %vm2064_vm5, %v5581_v57, -1e+30  ;;  %v15997_v55 = vld [vmem:[#allocation73_spill] sm:$0xff] }
 0x78c   : > { %5617 = vmax.xlane.f32.xlu0 %v13827_v6  ;;  %v5533_v60 = vpop.f32.mrf.mxu0  ;;  %vm15998_vm13 = vcmp.gt.f32.partialorder %v15997_v55, 0.0 }
 0x78d   : > { %v5582_v39 = vmul.f32 0.0625, %v5533_v60 }
 0x78e   : > { %v5535_v22 = vpop.f32.mrf.mxu0 }
 0x78f   : > { %v13832_v1 = vsel %vm2065_vm6, %v5582_v39, -1e+30 }
 0x790   : > { %5619 = vmax.xlane.f32.xlu1 %v13832_v1  ;;  %v5538_v45 = vpop.f32.mrf.mxu0 }
 0x791   : > { %v5583_v8 = vmul.f32 0.0625, %v5538_v45  ;;  %v15999_v45 = vld [vmem:[#allocation68_spill] sm:$0xff] }
 0x792   : > { %v5540_v56 = vpop.f32.mrf.mxu0  ;;  %vm16000_vm11 = vcmp.gt.f32.partialorder %v15999_v45, 0.0 }
 0x793   : > { %v13837_v38 = vsel %vm2066_vm7, %v5583_v8, -1e+30 }
 0x794   : > { %5621 = vmax.xlane.f32.xlu0 %v13837_v38  ;;  %v5541_v48 = vpop.f32.mrf.mxu0 }
 0x795   : > { %v5584_v43 = vmul.f32 0.0625, %v5541_v48  ;;  %v16001_v48 = vld [vmem:[#allocation65_spill] sm:$0xff] }
 0x796   : > { %v5543_v57 = vpop.f32.mrf.mxu0  ;;  %vm16002_vm10 = vcmp.gt.f32.partialorder %v16001_v48, 0.0 }
 0x797   : > { %v13842_v60 = vsel %vm15998_vm13, %v5584_v43, -1e+30 }
 0x798   : > { %5623 = vmax.xlane.f32.xlu1 %v13842_v60  ;;  %v5546_v39 = vpop.f32.mrf.mxu0 }
 0x799   : > { %v5585_v22 = vmul.f32 0.0625, %v5546_v39  ;;  %v16003_v39 = vld [vmem:[#allocation60_spill] sm:$0xff] }
 0x79a   : > { %v5548_v33 = vpop.f32.mrf.mxu0  ;;  %vm16004_vm14 = vcmp.gt.f32.partialorder %v16003_v39, 0.0 }
 0x79b   : > { %v13847_v56 = vsel %vm16000_vm11, %v5585_v22, -1e+30 }
 0x79c   : > { %5625 = vmax.xlane.f32.xlu0 %v13847_v56  ;;  %v5549_v8 = vpop.f32.mrf.mxu0 }
 0x79d   : > { %v5586_v63 = vmul.f32 0.0625, %v5549_v8  ;;  %v16005_v8 = vld [vmem:[#allocation110_spill] sm:$0xff] }
 0x79e   : > { %v5551_v28 = vpop.f32.mrf.mxu0  ;;  %vm16006_vm0 = vcmp.gt.f32.partialorder %v16005_v8, 0.0 }
 0x79f   : > { %v13852_v57 = vsel %vm16002_vm10, %v5586_v63, -1e+30 }
 0x7a0   : > { %5627 = vmax.xlane.f32.xlu1 %v13852_v57  ;;  %v5554_v43 = vpop.f32.mrf.mxu0 }
 0x7a1   : > { %v5587_v55 = vmul.f32 0.0625, %v5554_v43  ;;  %v16007_v43 = vld [vmem:[#allocation109_spill] sm:$0xff] }
 0x7a2   : > { %v5556_v50 = vpop.f32.mrf.mxu0  ;;  %vm16008_vm15 = vcmp.gt.f32.partialorder %v16007_v43, 0.0 }
 0x7a3   : > { %v13857_v33 = vsel %vm16004_vm14, %v5587_v55, -1e+30 }
 0x7a4   : > { %5629 = vmax.xlane.f32.xlu0 %v13857_v33  ;;  %v5557_v22 = vpop.f32.mrf.mxu0 }
 0x7a5   : > { %v5588_v45 = vmul.f32 0.0625, %v5557_v22  ;;  %v16009_v22 = vld [vmem:[#allocation106_spill] sm:$0xff] }
 0x7a6   : > { %v5559_v5 = vpop.f32.mrf.mxu0  ;;  %vm16010_vm8 = vcmp.gt.f32.partialorder %v16009_v22, 0.0 }
 0x7a7   : > { %v13862_v28 = vsel %vm16006_vm0, %v5588_v45, -1e+30 }
 0x7a8   : > { %5631 = vmax.xlane.f32.xlu1 %v13862_v28  ;;  %v5562_v63 = vpop.f32.mrf.mxu0 }
 0x7a9   : > { %v5589_v48 = vmul.f32 0.0625, %v5562_v63  ;;  %v16011_v63 = vld [vmem:[#allocation105_spill] sm:$0xff] }
 0x7aa   : > { %v5564_v9 = vpop.f32.mrf.mxu0  ;;  %vm16012_vm9 = vcmp.gt.f32.partialorder %v16011_v63, 0.0 }
 0x7ab   : > { %v13867_v50 = vsel %vm16008_vm15, %v5589_v48, -1e+30 }
 0x7ac   : > { %5633 = vmax.xlane.f32.xlu0 %v13867_v50  ;;  %v5565_v55 = vpop.f32.mrf.mxu0 }
 0x7ad   : > { %v5590_v39 = vmul.f32 0.0625, %v5565_v55  ;;  %v16013_v55 = vld [vmem:[#allocation71_spill] sm:$0xff] }
 0x7ae   : > { %v5567_v52 = vpop.f32.mrf.mxu0  ;;  %vm16014_vm12 = vcmp.gt.f32.partialorder %v16013_v55, 0.0 }
 0x7af   : > { %v13872_v5 = vsel %vm16010_vm8, %v5590_v39, -1e+30 }
 0x7b0   : > { %5635 = vmax.xlane.f32.xlu1 %v13872_v5  ;;  %v5570_v45 = vpop.f32.mrf.mxu0 }
 0x7b1   : > { %v5591_v8 = vmul.f32 0.0625, %v5570_v45 }
 0x7b2   : > { %v5572_v26 = vpop.f32.mrf.mxu0 }
 0x7b3   : > { %v13877_v9 = vsel %vm16012_vm9, %v5591_v8, -1e+30 }
 0x7b4   : > { %5637 = vmax.xlane.f32.xlu0 %v13877_v9  ;;  %v5573_v48 = vpop.f32.mrf.mxu0 }
 0x7b5   : > { %v5592_v43 = vmul.f32 0.0625, %v5573_v48 }
 0x7b6   : > { %v5575_v21 = vpop.f32.mrf.mxu0 }
 0x7b7   : > { %v13882_v52 = vsel %vm16014_vm12, %v5592_v43, -1e+30 }
 0x7b8   : > { %5639 = vmax.xlane.f32.xlu1 %v13882_v52 }
 0x805   : > { %v5610_v39 = vpop.xlane.xlu0 %5609 }
 0x806   : > { %v5641_v22 = vsub.f32 %v13807_v42, %v5610_v39 }
 0x808   : > { %v5657_v45 = vmul.f32 1.442695, %v5641_v22 }
 0x809   : > { %v5612_v26 = vpop.xlane.xlu1 %5611 }
 0x80a   : > { %9594 = vpow2.f32 %v5657_v45  ;;  %v5642_v8 = vsub.f32 %v13812_v41, %v5612_v26  ;;  %v9923_v45 = vld [vmem:[%s11678_s25] sm:$0xff] }
 0x80c   : > { %v5659_v63 = vmul.f32 1.442695, %v5642_v8 }
 0x80d   : > { %v5614_v15 = vpop.xlane.xlu0 %5613 }
 0x80e   : > { %9596 = vpow2.f32 %v5659_v63  ;;  %v5643_v21 = vsub.f32 %v13817_v19, %v5614_v15 }
 0x810   : > { %v5661_v48 = vmul.f32 1.442695, %v5643_v21  ;;  %v9925_v21 = vld [vmem:[%s11678_s25 + $0x10] sm:$0xff] }
 0x811   : > { %v5616_v55 = vpop.xlane.xlu1 %5615 }
 0x812   : > { %9598 = vpow2.f32 %v5661_v48  ;;  %v5644_v43 = vsub.f32 %v13822_v40, %v5616_v55  ;;  %v9924_v40 = vld [vmem:[%s11678_s25 + $0x8] sm:$0xff] }
 0x814   : > { %v5663_v47 = vmul.f32 1.442695, %v5644_v43 }
 0x815   : > { %v5618_v29 = vpop.xlane.xlu0 %5617 }
 0x816   : > { %9600 = vpow2.f32 %v5663_v47  ;;  %v5645_v42 = vsub.f32 %v13827_v6, %v5618_v29 }
 0x817   : > { %v9595_v22 = vpop.eup %9594 }
 0x818   : > { %v5665_v39 = vmul.f32 1.442695, %v5645_v42  ;;  %v13891_v41 = vmul.f32 %v9923_v45, %v9595_v22 }
 0x819   : > { %v5620_v63 = vpop.xlane.xlu1 %5619 }
 0x81a   : > { %9602 = vpow2.f32 %v5665_v39  ;;  %v5646_v15 = vsub.f32 %v13832_v1, %v5620_v63  ;;  %5705 = vadd.xlane.f32.xlu0 %v13891_v41  ;;  %v9926_v39 = vld [vmem:[%s11678_s25 + $0x18] sm:$0xff] }
 0x81b   : > { %v9597_v19 = vpop.eup %9596 }
 0x81c   : > { %v5667_v26 = vmul.f32 1.442695, %v5646_v15  ;;  %v13896_v55 = vmul.f32 %v9924_v40, %v9597_v19 }
 0x81d   : > { %v5622_v47 = vpop.xlane.xlu0 %5621 }
 0x81e   : > { %9604 = vpow2.f32 %v5667_v26  ;;  %v5647_v29 = vsub.f32 %v13837_v38, %v5622_v47  ;;  %5707 = vadd.xlane.f32.xlu1 %v13896_v55  ;;  %v9927_v26 = vld [vmem:[%s11678_s25 + $0x20] sm:$0xff] }
 0x81f   : > { %v9599_v6 = vpop.eup %9598 }
 0x820   : > { %v5669_v8 = vmul.f32 1.442695, %v5647_v29  ;;  %v13901_v48 = vmul.f32 %v9925_v21, %v9599_v6 }
 0x821   : > { %v5624_v1 = vpop.xlane.xlu1 %5623 }
 0x822   : > { %9606 = vpow2.f32 %v5669_v8  ;;  %v5648_v43 = vsub.f32 %v13842_v60, %v5624_v1  ;;  %5709 = vadd.xlane.f32.xlu0 %v13901_v48  ;;  %v9928_v8 = vld [vmem:[%s11678_s25 + $0x28] sm:$0xff] }
 0x823   : > { %v9601_v42 = vpop.eup %9600 }
 0x824   : > { %v5671_v22 = vmul.f32 1.442695, %v5648_v43  ;;  %v13906_v45 = vmul.f32 %v9926_v39, %v9601_v42 }
 0x825   : > { %v5626_v38 = vpop.xlane.xlu0 %5625 }
 0x826   : > { %9608 = vpow2.f32 %v5671_v22  ;;  %v5649_v63 = vsub.f32 %v13847_v56, %v5626_v38  ;;  %5711 = vadd.xlane.f32.xlu1 %v13906_v45  ;;  %v9929_v22 = vld [vmem:[%s11678_s25 + $0x30] sm:$0xff] }
 0x827   : > { %v9603_v15 = vpop.eup %9602 }
 0x828   : > { %v5673_v19 = vmul.f32 1.442695, %v5649_v63  ;;  %v13911_v40 = vmul.f32 %v9927_v26, %v9603_v15 }
 0x829   : > { %v5628_v60 = vpop.xlane.xlu1 %5627 }
 0x82a   : > { %9610 = vpow2.f32 %v5673_v19  ;;  %v5650_v47 = vsub.f32 %v13852_v57, %v5628_v60  ;;  %5713 = vadd.xlane.f32.xlu0 %v13911_v40  ;;  %v9930_v19 = vld [vmem:[%s11678_s25 + $0x38] sm:$0xff] }
 0x82b   : > { %v9605_v29 = vpop.eup %9604 }
 0x82c   : > { %v5675_v6 = vmul.f32 1.442695, %v5650_v47  ;;  %v13916_v21 = vmul.f32 %v9928_v8, %v9605_v29 }
 0x82d   : > { %v5630_v56 = vpop.xlane.xlu0 %5629 }
 0x82e   : > { %9612 = vpow2.f32 %v5675_v6  ;;  %v5651_v1 = vsub.f32 %v13857_v33, %v5630_v56  ;;  %5715 = vadd.xlane.f32.xlu1 %v13916_v21  ;;  %v9931_v6 = vld [vmem:[%s11678_s25 + $0x40] sm:$0xff] }
 0x82f   : > { %v9607_v43 = vpop.eup %9606 }
 0x830   : > { %v5677_v42 = vmul.f32 1.442695, %v5651_v1  ;;  %v13921_v39 = vmul.f32 %v9929_v22, %v9607_v43 }
 0x831   : > { %v5632_v57 = vpop.xlane.xlu1 %5631 }
 0x832   : > { %9614 = vpow2.f32 %v5677_v42  ;;  %v5652_v38 = vsub.f32 %v13862_v28, %v5632_v57  ;;  %5717 = vadd.xlane.f32.xlu0 %v13921_v39  ;;  %v9932_v42 = vld [vmem:[%s11678_s25 + $0x48] sm:$0xff] }
 0x833   : > { %v9609_v63 = vpop.eup %9608 }
 0x834   : > { %v5679_v15 = vmul.f32 1.442695, %v5652_v38  ;;  %v13926_v26 = vmul.f32 %v9930_v19, %v9609_v63 }
 0x835   : > { %v5634_v33 = vpop.xlane.xlu0 %5633 }
 0x836   : > { %9616 = vpow2.f32 %v5679_v15  ;;  %v5653_v60 = vsub.f32 %v13867_v50, %v5634_v33  ;;  %5719 = vadd.xlane.f32.xlu1 %v13926_v26  ;;  %v9933_v15 = vld [vmem:[%s11678_s25 + $0x50] sm:$0xff] }
 0x837   : > { %v9611_v47 = vpop.eup %9610 }
 0x838   : > { %v5681_v29 = vmul.f32 1.442695, %v5653_v60  ;;  %v13931_v8 = vmul.f32 %v9931_v6, %v9611_v47 }
 0x839   : > { %v5636_v28 = vpop.xlane.xlu1 %5635 }
 0x83a   : > { %9618 = vpow2.f32 %v5681_v29  ;;  %v5654_v56 = vsub.f32 %v13872_v5, %v5636_v28  ;;  %5721 = vadd.xlane.f32.xlu0 %v13931_v8  ;;  %v9934_v29 = vld [vmem:[%s11678_s25 + $0x58] sm:$0xff]  ;;  %v9935_v28 = vld [vmem:[%s11678_s25 + $0x60] sm:$0xff] }
 0x83b   : > { %v9613_v1 = vpop.eup %9612 }
 0x83c   : > { %v5683_v43 = vmul.f32 1.442695, %v5654_v56  ;;  %v13936_v22 = vmul.f32 %v9932_v42, %v9613_v1 }
 0x83d   : > { %v5638_v50 = vpop.xlane.xlu0 %5637 }
 0x83e   : > { %9620 = vpow2.f32 %v5683_v43  ;;  %v5655_v57 = vsub.f32 %v13877_v9, %v5638_v50  ;;  %5723 = vadd.xlane.f32.xlu1 %v13936_v22  ;;  %v9937_v50 = vld [vmem:[%s11678_s25 + $0x70] sm:$0xff] }
 0x83f   : > { %v9615_v38 = vpop.eup %9614 }
 0x840   : > { %v5685_v63 = vmul.f32 1.442695, %v5655_v57  ;;  %v13941_v19 = vmul.f32 %v9933_v15, %v9615_v38 }
 0x841   : > { %v5640_v5 = vpop.xlane.xlu1 %5639 }
 0x842   : > { %9622 = vpow2.f32 %v5685_v63  ;;  %v5656_v33 = vsub.f32 %v13882_v52, %v5640_v5  ;;  %5725 = vadd.xlane.f32.xlu0 %v13941_v19  ;;  %v9936_v52 = vld [vmem:[%s11678_s25 + $0x68] sm:$0xff]  ;;  %v9938_v63 = vld [vmem:[%s11678_s25 + $0x78] sm:$0xff] }
 0x843   : > { %v9617_v60 = vpop.eup %9616  ;;  %v9348_v5 = vld [vmem:[#allocation10 + $0x70] ss:$8 sps:$4 sm:$0xff]  }
 0x844   : > { %v5687_v47 = vmul.f32 1.442695, %v5656_v33  ;;  %v13946_v9 = vmul.f32 %v9934_v29, %v9617_v60  ;;  %v9350_v33 = vld [vmem:[#allocation10 + $0x74] ss:$8 sps:$4 sm:$0xff]   ;;  %v9353_v60 = vld [vmem:[#allocation10 + $0x64] ss:$8 sps:$4 sm:$0xff]  }
 0x845   : > { %6350 = vmatprep.subr.bf16.mxu0 %v9350_v33  ;;  %v9356_v29 = vld [vmem:[#allocation10 + $0x54] ss:$8 sps:$4 sm:$0xff]   ;;  %v9371_v33 = vld [vmem:[#allocation10 + $0x4] ss:$8 sps:$4 sm:$0xff]  }
 0x846   : > { %9624 = vpow2.f32 %v5687_v47  ;;  %5727 = vadd.xlane.f32.xlu1 %v13946_v9  ;;  %6351 = vmatpush1.bf16.msra.mxu0 %v9348_v5  ;;  %v9351_v47 = vld [vmem:[#allocation10 + $0x60] ss:$8 sps:$4 sm:$0xff]   ;;  %v9366_v5 = vld [vmem:[#allocation10 + $0x10] ss:$8 sps:$4 sm:$0xff]  }
 0x847   : > { %v9619_v6 = vpop.eup %9618  ;;  %6352 = vmatprep.subr.bf16.mxu0 %v9353_v60  ;;  %v9369_v60 = vld [vmem:[#allocation10] ss:$8 sps:$4 sm:$0xff]  }
 0x848   : > { %v13950_v56 = vmul.f32 %v9935_v28, %v9619_v6  ;;  %v9354_v6 = vld [vmem:[#allocation10 + $0x50] ss:$8 sps:$4 sm:$0xff]   ;;  %v9359_v28 = vld [vmem:[#allocation10 + $0x44] ss:$8 sps:$4 sm:$0xff]  }
 0x84a   : > { %5729 = vadd.xlane.f32.xlu0 %v13950_v56  ;;  %6353 = vmatpush1.bf16.msra.mxu0 %v9351_v47 }
 0x84b   : > { %v9621_v1 = vpop.eup %9620  ;;  %6354 = vmatprep.subr.bf16.mxu0 %v9356_v29 }
 0x84c   : > { %v13954_v43 = vmul.f32 %v9936_v52, %v9621_v1  ;;  %v9357_v1 = vld [vmem:[#allocation10 + $0x40] ss:$8 sps:$4 sm:$0xff]   ;;  %v9362_v52 = vld [vmem:[#allocation10 + $0x34] ss:$8 sps:$4 sm:$0xff]  }
 0x84e   : > { %5731 = vadd.xlane.f32.xlu1 %v13954_v43  ;;  %6355 = vmatpush1.bf16.msra.mxu0 %v9354_v6 }
 0x84f   : > { %v9623_v42 = vpop.eup %9622  ;;  %6356 = vmatprep.subr.bf16.mxu0 %v9359_v28 }
 0x850   : > { %v13958_v57 = vmul.f32 %v9937_v50, %v9623_v42  ;;  %v9360_v42 = vld [vmem:[#allocation10 + $0x30] ss:$8 sps:$4 sm:$0xff]   ;;  %v9365_v50 = vld [vmem:[#allocation10 + $0x24] ss:$8 sps:$4 sm:$0xff]  }
 0x852   : > { %5733 = vadd.xlane.f32.xlu0 %v13958_v57  ;;  %6357 = vmatpush1.bf16.msra.mxu0 %v9357_v1 }
 0x853   : > { %v9625_v38 = vpop.eup %9624  ;;  %6358 = vmatprep.subr.bf16.mxu0 %v9362_v52 }
 0x854   : > { %v13962_v15 = vmul.f32 %v9938_v63, %v9625_v38  ;;  %v9363_v38 = vld [vmem:[#allocation10 + $0x20] ss:$8 sps:$4 sm:$0xff]   ;;  %v9368_v63 = vld [vmem:[#allocation10 + $0x14] ss:$8 sps:$4 sm:$0xff]  }
 0x856   : > { %5735 = vadd.xlane.f32.xlu1 %v13962_v15  ;;  %6359 = vmatpush1.bf16.msra.mxu0 %v9360_v42 }
 0x857   : > { %6360 = vmatprep.subr.bf16.mxu0 %v9365_v50 }
 0x85a   : > { %6361 = vmatpush1.bf16.msra.mxu0 %v9363_v38 }
 0x85b   : > { %6362 = vmatprep.subr.bf16.mxu0 %v9368_v63 }
 0x85e   : > { %6363 = vmatpush1.bf16.msra.mxu0 %v9366_v5 }
 0x85f   : > { %6364 = vmatprep.subr.bf16.mxu0 %v9371_v33 }
 0x862   : > { %6365 = vmatpush1.bf16.msra.mxu0 %v9369_v60 }
 0x8a3   : > { %v5706_v47 = vpop.xlane.xlu0 %5705 }
 0x8a4   : > { %vm5737_vm13 = vcmp.gt.f32.partialorder %v5706_v47, 0.0 }
 0x8a5   : > { %v5753_v29 = vsel %vm5737_vm13, %v5706_v47, 1.0 }
 0x8a6   : > { %9626 = vrcp.f32 %v5753_v29 }
 0x8a7   : > { %v5708_v6 = vpop.xlane.xlu1 %5707 }
 0x8a8   : > { %vm5738_vm11 = vcmp.gt.f32.partialorder %v5708_v6, 0.0 }
 0x8a9   : > { %v5754_v28 = vsel %vm5738_vm11, %v5708_v6, 1.0 }
 0x8aa   : > { %9628 = vrcp.f32 %v5754_v28 }
 0x8ab   : > { %v5710_v1 = vpop.xlane.xlu0 %5709 }
 0x8ac   : > { %vm5739_vm10 = vcmp.gt.f32.partialorder %v5710_v1, 0.0 }
 0x8ad   : > { %v5755_v52 = vsel %vm5739_vm10, %v5710_v1, 1.0 }
 0x8ae   : > { %9630 = vrcp.f32 %v5755_v52 }
 0x8af   : > { %v5712_v42 = vpop.xlane.xlu1 %5711 }
 0x8b0   : > { %vm5740_vm14 = vcmp.gt.f32.partialorder %v5712_v42, 0.0 }
 0x8b1   : > { %v5756_v50 = vsel %vm5740_vm14, %v5712_v42, 1.0 }
 0x8b2   : > { %9632 = vrcp.f32 %v5756_v50  ;;  %v16015_v50 = vmov 0  }
 0x8b3   : > { %v5714_v38 = vpop.xlane.xlu0 %5713  ;;  %v9627_v63 = vpop.eup %9626 }
 0x8b4   : > { %vm5741_vm0 = vcmp.gt.f32.partialorder %v5714_v38, 0.0  ;;  %v5785_v47 = vmul.f32 %v9627_v63, %v13891_v41 }
 0x8b5   : > { %v5757_v5 = vsel %vm5741_vm0, %v5714_v38, 1.0 }
 0x8b6   : > { %9634 = vrcp.f32 %v5757_v5 }
 0x8b7   : > { %v9629_v33 = vpop.eup %9628  ;;  %v5716_v60 = vpop.xlane.xlu1 %5715 }
 0x8b8   : > { %v5786_v29 = vmul.f32 %v9629_v33, %v13896_v55  ;;  %vm5742_vm15 = vcmp.gt.f32.partialorder %v5716_v60, 0.0 }
 0x8b9   : > { %v5758_v6 = vsel %vm5742_vm15, %v5716_v60, 1.0 }
 0x8ba   : > { %9636 = vrcp.f32 %v5758_v6  ;;  %v5801_v28 = vpack.c.bf16 %v5786_v29, %v5785_v47 }
 0x8bb   : > { %v5718_v1 = vpop.xlane.xlu0 %5717  ;;  %v9631_v52 = vpop.eup %9630 }
 0x8bc   : > { %vm5743_vm8 = vcmp.gt.f32.partialorder %v5718_v1, 0.0  ;;  %5858 = vmatmul.mubr.bf16.vlgmr.msra.gmra.mxu1 %v5801_v28  ;;  %v5787_v41 = vmul.f32 %v9631_v52, %v13901_v48 }
 0x8bd   : > { %v5759_v42 = vsel %vm5743_vm8, %v5718_v1, 1.0  ;;  %5867 = vmatprep.mubr.bf16.mxu1 %v16015_v50 }
 0x8be   : > { %9638 = vrcp.f32 %v5759_v42 }
 0x8bf   : > { %v9633_v20 = vpop.eup %9632  ;;  %v5720_v38 = vpop.xlane.xlu1 %5719 }
 0x8c0   : > { %vm5744_vm9 = vcmp.gt.f32.partialorder %v5720_v38, 0.0  ;;  %v5788_v55 = vmul.f32 %v9633_v20, %v13906_v45 }
 0x8c1   : > { %v5760_v63 = vsel %vm5744_vm9, %v5720_v38, 1.0 }
 0x8c2   : > { %9640 = vrcp.f32 %v5760_v63  ;;  %v5802_v5 = vpack.c.bf16 %v5788_v55, %v5787_v41 }
 0x8c3   : > { %v5722_v33 = vpop.xlane.xlu0 %5721  ;;  %v9635_v60 = vpop.eup %9634 }
 0x8c4   : > { %vm5745_vm12 = vcmp.gt.f32.partialorder %v5722_v33, 0.0  ;;  %5868 = vmatmul.mubr.bf16.gmra.mxu1 %v5802_v5  ;;  %v5789_v28 = vmul.f32 %v9635_v60, %v13911_v40 }
 0x8c5   : > { %v5761_v47 = vsel %vm5745_vm12, %v5722_v33, 1.0  ;;  %5877 = vmatprep.mubr.bf16.mxu1 %v16015_v50 }
 0x8c6   : > { %9642 = vrcp.f32 %v5761_v47 }
 0x8c7   : > { %v9637_v29 = vpop.eup %9636  ;;  %v5724_v6 = vpop.xlane.xlu1 %5723 }
 0x8c8   : > { %vm5746_vm13 = vcmp.gt.f32.partialorder %v5724_v6, 0.0  ;;  %v5790_v48 = vmul.f32 %v9637_v29, %v13916_v21 }
 0x8c9   : > { %v5762_v1 = vsel %vm5746_vm13, %v5724_v6, 1.0 }
 0x8ca   : > { %9644 = vrcp.f32 %v5762_v1  ;;  %v5803_v20 = vpack.c.bf16 %v5790_v48, %v5789_v28 }
 0x8cb   : > { %v5726_v45 = vpop.xlane.xlu0 %5725  ;;  %v9639_v52 = vpop.eup %9638 }
 0x8cc   : > { %vm5747_vm11 = vcmp.gt.f32.partialorder %v5726_v45, 0.0  ;;  %5878 = vmatmul.mubr.bf16.gmra.mxu1 %v5803_v20  ;;  %v5791_v55 = vmul.f32 %v9639_v52, %v13921_v39 }
 0x8cd   : > { %v5763_v42 = vsel %vm5747_vm11, %v5726_v45, 1.0  ;;  %5887 = vmatprep.mubr.bf16.mxu1 %v16015_v50 }
 0x8ce   : > { %9646 = vrcp.f32 %v5763_v42 }
 0x8cf   : > { %v9641_v38 = vpop.eup %9640  ;;  %v5728_v41 = vpop.xlane.xlu1 %5727 }
 0x8d0   : > { %vm5748_vm10 = vcmp.gt.f32.partialorder %v5728_v41, 0.0  ;;  %v5792_v40 = vmul.f32 %v9641_v38, %v13926_v26 }
 0x8d1   : > { %v5764_v63 = vsel %vm5748_vm10, %v5728_v41, 1.0 }
 0x8d2   : > { %9648 = vrcp.f32 %v5764_v63  ;;  %v5804_v21 = vpack.c.bf16 %v5792_v40, %v5791_v55 }
 0x8d3   : > { %v5730_v5 = vpop.xlane.xlu0 %5729  ;;  %v9643_v33 = vpop.eup %9642 }
 0x8d4   : > { %vm5749_vm14 = vcmp.gt.f32.partialorder %v5730_v5, 0.0  ;;  %5888 = vmatmul.mubr.bf16.gmra.mxu1 %v5804_v21  ;;  %v5793_v6 = vmul.f32 %v9643_v33, %v13931_v8 }
 0x8d5   : > { %v5765_v60 = vsel %vm5749_vm14, %v5730_v5, 1.0  ;;  %5897 = vmatprep.mubr.bf16.mxu1 %v16015_v50 }
 0x8d6   : > { %9650 = vrcp.f32 %v5765_v60 }
 0x8d7   : > { %v9645_v47 = vpop.eup %9644  ;;  %v5732_v29 = vpop.xlane.xlu1 %5731 }
 0x8d8   : > { %vm5750_vm0 = vcmp.gt.f32.partialorder %v5732_v29, 0.0  ;;  %v5794_v39 = vmul.f32 %v9645_v47, %v13936_v22  ;;  %v9374_v47 = vld [vmem:[#allocation10 + $0xf4] ss:$8 sps:$4 sm:$0xff]  }
 0x8d9   : > { %v5766_v28 = vsel %vm5750_vm0, %v5732_v29, 1.0  ;;  %v9372_v29 = vld [vmem:[#allocation10 + $0xf0] ss:$8 sps:$4 sm:$0xff]   ;;  %6366 = vmatprep.subr.bf16.mxu0 %v9374_v47 }
 0x8da   : > { %9652 = vrcp.f32 %v5766_v28  ;;  %v5805_v26 = vpack.c.bf16 %v5794_v39, %v5793_v6  ;;  %6367 = vmatpush2.bf16.msra.mxu0 %v9372_v29  ;;  %v9377_v6 = vld [vmem:[#allocation10 + $0xe4] ss:$8 sps:$4 sm:$0xff]   ;;  %v9378_v39 = vld [vmem:[#allocation10 + $0xd0] ss:$8 sps:$4 sm:$0xff]   ;;  %v9381_v28 = vld [vmem:[#allocation10 + $0xc0] ss:$8 sps:$4 sm:$0xff]  }
 0x8db   : > { %v5734_v48 = vpop.xlane.xlu0 %5733  ;;  %v9647_v1 = vpop.eup %9646  ;;  %6368 = vmatprep.subr.bf16.mxu0 %v9377_v6  ;;  %v5273_v6 = vadd.f32 %v13664_v34, %v13597_v25 }
 0x8dc   : > { %vm5751_vm15 = vcmp.gt.f32.partialorder %v5734_v48, 0.0  ;;  %5898 = vmatmul.mubr.bf16.gmra.mxu1 %v5805_v26  ;;  %v5795_v42 = vmul.f32 %v9647_v1, %v13941_v19  ;;  %v9389_v26 = vld [vmem:[#allocation10 + $0xa4] ss:$8 sps:$4 sm:$0xff]   ;;  %v9392_v1 = vld [vmem:[#allocation10 + $0x94] ss:$8 sps:$4 sm:$0xff]  }
 0x8dd   : > { %v5767_v20 = vsel %vm5751_vm15, %v5734_v48, 1.0  ;;  %5907 = vmatprep.mubr.bf16.mxu1 %v16015_v50  ;;  %v9387_v48 = vld [vmem:[#allocation10 + $0xa0] ss:$8 sps:$4 sm:$0xff]   ;;  %v5386_v34 = vadd.f32 %v13671_v11, %v5273_v6 }
 0x8de   : > { %9654 = vrcp.f32 %v5767_v20  ;;  %v9390_v20 = vld [vmem:[#allocation10 + $0x90] ss:$8 sps:$4 sm:$0xff]  }
 0x8df   : > { %v9649_v45 = vpop.eup %9648  ;;  %v5736_v52 = vpop.xlane.xlu1 %5735 }
 0x8e0   : > { %vm5752_vm8 = vcmp.gt.f32.partialorder %v5736_v52, 0.0  ;;  %v5796_v8 = vmul.f32 %v9649_v45, %v13946_v9  ;;  %v9395_v45 = vld [vmem:[#allocation10 + $0x84] ss:$8 sps:$4 sm:$0xff]  }
 0x8e1   : > { %v5768_v38 = vsel %vm5752_vm8, %v5736_v52, 1.0  ;;  %v9393_v52 = vld [vmem:[#allocation10 + $0x80] ss:$8 sps:$4 sm:$0xff]  }
 0x8e2   : > { %9656 = vrcp.f32 %v5768_v38  ;;  %v5806_v22 = vpack.c.bf16 %v5796_v8, %v5795_v42  ;;  %v13988_v42 = vpop.f32.mrf.mxu1 }
 0x8e3   : > { %v9651_v41 = vpop.eup %9650 }
 0x8e4   : > { %5908 = vmatmul.mubr.bf16.gmra.mxu1 %v5806_v22  ;;  %v5797_v40 = vmul.f32 %v9651_v41, %v13950_v56  ;;  %v9375_v56 = vld [vmem:[#allocation10 + $0xe0] ss:$8 sps:$4 sm:$0xff]   ;;  %v5263_v22 = vadd.f32 %v13621_v12, %v13597_v25 }
 0x8e5   : > { %5917 = vmatprep.mubr.bf16.mxu1 %v16015_v50  ;;  %6369 = vmatpush2.bf16.msra.mxu0 %v9375_v56 }
 0x8e7   : > { %v9653_v55 = vpop.eup %9652 }
 0x8e8   : > { %v5798_v63 = vmul.f32 %v9653_v55, %v13954_v43  ;;  %v9380_v43 = vld [vmem:[#allocation10 + $0xd4] ss:$8 sps:$4 sm:$0xff]  }
 0x8e9   : > { %6370 = vmatprep.subr.bf16.mxu0 %v9380_v43 }
 0x8ea   : > { %v5807_v21 = vpack.c.bf16 %v5798_v63, %v5797_v40  ;;  %6371 = vmatpush2.bf16.msra.mxu0 %v9378_v39 }
 0x8eb   : > { %v9655_v5 = vpop.eup %9654 }
 0x8ec   : > { %5918 = vmatmul.mubr.bf16.gmra.mxu1 %v5807_v21  ;;  %v5799_v9 = vmul.f32 %v9655_v5, %v13958_v57  ;;  %v9386_v57 = vld [vmem:[#allocation10 + $0xb4] ss:$8 sps:$4 sm:$0xff]  }
 0x8ed   : > { %5927 = vmatprep.mubr.bf16.mxu1 %v16015_v50  ;;  %v9383_v50 = vld [vmem:[#allocation10 + $0xc4] ss:$8 sps:$4 sm:$0xff]  }
 0x8ee   : > { %6372 = vmatprep.subr.bf16.mxu0 %v9383_v50 }
 0x8ef   : > { %v9657_v19 = vpop.eup %9656  ;;  %6373 = vmatpush2.bf16.msra.mxu0 %v9381_v28 }
 0x8f0   : > { %v5800_v33 = vmul.f32 %v9657_v19, %v13962_v15  ;;  %v9384_v15 = vld [vmem:[#allocation10 + $0xb0] ss:$8 sps:$4 sm:$0xff]   ;;  %6374 = vmatprep.subr.bf16.mxu0 %v9386_v57 }
 0x8f2   : > { %v5808_v60 = vpack.c.bf16 %v5800_v33, %v5799_v9  ;;  %v5376_v9 = vadd.f32 %v13628_v14, %v5263_v22 }
 0x8f3   : > { %6375 = vmatpush2.bf16.msra.mxu0 %v9384_v15 }
 0x8f4   : > { %5928 = vmatmul.mubr.bf16.gmra.mxu1 %v5808_v60  ;;  %6376 = vmatprep.subr.bf16.mxu0 %v9389_v26 }
 0x8f7   : > { %6377 = vmatpush2.bf16.msra.mxu0 %v9387_v48 }
 0x8f8   : > { %6378 = vmatprep.subr.bf16.mxu0 %v9392_v1  ;;  %v5283_v1 = vadd.f32 %v13698_v13, %v13597_v25 }
 0x8fb   : > { %6379 = vmatpush2.bf16.msra.mxu0 %v9390_v20 }
 0x8fc   : > { %6380 = vmatprep.subr.bf16.mxu0 %v9395_v45 }
 0x8ff   : > { %6381 = vmatpush2.bf16.msra.mxu0 %v9393_v52 }
 0x97c   : > { %v5859_v8 = vpop.f32.mrf.mxu1 }
 0x97d   : > { %v13991_v38 = vadd.f32 %v5859_v8, %v13605_v51 }
 0x97e   : > { %v5861_v41 = vpop.f32.mrf.mxu1 }
 0x97f   : > { %v5970_v55 = vmin.f32 %v13991_v38, 0.0  ;;  %v13997_v40 = vadd.f32 %v5861_v41, %v13615_v10  ;;  %vm5938_vm9 = vcmp.gt.f32.partialorder %v13991_v38, 0.0 }
 0x980   : > { %v5863_v63 = vpop.f32.mrf.mxu1 }
 0x981   : > { %v6002_v21 = vmul.f32 1.442695, %v5970_v55  ;;  %v5971_v5 = vmin.f32 %v13997_v40, 0.0  ;;  %v14001_v19 = vadd.f32 %v5863_v63, %v13626_v23  ;;  %v5293_v55 = vadd.f32 %v13725_v36, %v13597_v25 }
 0x982   : > { %v5865_v51 = vpop.f32.mrf.mxu1  ;;  %vm5939_vm13 = vcmp.gt.f32.partialorder %v13997_v40, 0.0 }
 0x983   : > { %9658 = vpow2.f32 %v6002_v21  ;;  %v5972_v33 = vmin.f32 %v14001_v19, 0.0  ;;  %v14005_v12 = vadd.f32 %v5865_v51, %v5376_v9  ;;  %v6004_v47 = vmul.f32 1.442695, %v5971_v5 }
 0x984   : > { %v5869_v60 = vpop.f32.mrf.mxu1  ;;  %v5396_v21 = vadd.f32 %v13703_v0, %v5283_v1  ;;  %v5406_v36 = vadd.f32 %v13729_v37, %v5293_v55  ;;  %vm5940_vm12 = vcmp.gt.f32.partialorder %v14001_v19, 0.0 }
 0x985   : > { %v6006_v29 = vmul.f32 1.442695, %v5972_v33  ;;  %v14008_v10 = vadd.f32 %v5869_v60, %v13643_v4  ;;  %v5973_v23 = vmin.f32 %v14005_v12, 0.0  ;;  %vm5941_vm11 = vcmp.gt.f32.partialorder %v14005_v12, 0.0 }
 0x986   : > { %v5871_v56 = vpop.f32.mrf.mxu1 }
 0x987   : > { %9660 = vpow2.f32 %v6006_v29  ;;  %v5974_v14 = vmin.f32 %v14008_v10, 0.0  ;;  %v14015_v43 = vadd.f32 %v5871_v56, %v13658_v35  ;;  %v6008_v39 = vmul.f32 1.442695, %v5973_v23 }
 0x988   : > { %v5873_v50 = vpop.f32.mrf.mxu1  ;;  %9662 = vpow2.f32 %v6004_v47  ;;  %v5303_v29 = vadd.f32 %v13748_v17, %v13597_v25  ;;  %v5313_v23 = vadd.f32 %v13768_v2, %v13597_v25  ;;  %vm5942_vm10 = vcmp.gt.f32.partialorder %v14008_v10, 0.0 }
 0x989   : > { %v6010_v28 = vmul.f32 1.442695, %v5974_v14  ;;  %v5975_v57 = vmin.f32 %v14015_v43, 0.0  ;;  %v14019_v4 = vadd.f32 %v5873_v50, %v13669_v31  ;;  %9664 = vpow2.f32 %v6008_v39 }
 0x98a   : > { %v5875_v15 = vpop.f32.mrf.mxu1  ;;  %vm5943_vm0 = vcmp.gt.f32.partialorder %v14015_v43, 0.0 }
 0x98b   : > { %9666 = vpow2.f32 %v6010_v28  ;;  %v5976_v26 = vmin.f32 %v14019_v4, 0.0  ;;  %v14023_v48 = vadd.f32 %v5875_v15, %v5386_v34  ;;  %v6012_v20 = vmul.f32 1.442695, %v5975_v57 }
 0x98c   : > { %v5879_v35 = vpop.f32.mrf.mxu1  ;;  %vm5944_vm14 = vcmp.gt.f32.partialorder %v14019_v4, 0.0 }
 0x98d   : > { %v6014_v45 = vmul.f32 1.442695, %v5976_v26  ;;  %v14028_v52 = vadd.f32 %v5879_v35, %v13682_v62  ;;  %v5977_v31 = vmin.f32 %v14023_v48, 0.0  ;;  %v5416_v26 = vadd.f32 %v13752_v46, %v5303_v29 }
 0x98e   : > { %v5881_v8 = vpop.f32.mrf.mxu1  ;;  %vm5945_vm15 = vcmp.gt.f32.partialorder %v14023_v48, 0.0 }
 0x98f   : > { %9668 = vpow2.f32 %v6014_v45  ;;  %v5978_v11 = vmin.f32 %v14028_v52, 0.0  ;;  %v14033_v22 = vadd.f32 %v5881_v8, %v13694_v7  ;;  %v6016_v63 = vmul.f32 1.442695, %v5977_v31 }
 0x990   : > { %v9659_v41 = vpop.eup %9658  ;;  %v5883_v13 = vpop.f32.mrf.mxu1  ;;  %9670 = vpow2.f32 %v6012_v20  ;;  %vm5946_vm8 = vcmp.gt.f32.partialorder %v14028_v52, 0.0 }
 0x991   : > { %v6018_v62 = vmul.f32 1.442695, %v5978_v11  ;;  %v5979_v5 = vmin.f32 %v14033_v22, 0.0  ;;  %9672 = vpow2.f32 %v6016_v63  ;;  %v14040_v9 = vadd.f32 %v5883_v13, %v13701_v32 }
 0x992   : > { %v5885_v51 = vpop.f32.mrf.mxu1  ;;  %v8805_v33 = vadd.f32 -1.0, %v9659_v41 }
 0x993   : > { %v6020_v7 = vmul.f32 1.442695, %v5979_v5  ;;  %v14042_v60 = vadd.f32 %v5885_v51, %v5396_v21  ;;  %9674 = vpow2.f32 %v6018_v62  ;;  %v5980_v0 = vmin.f32 %v14040_v9, 0.0 }
 0x994   : > { %v9661_v47 = vpop.eup %9660  ;;  %v5889_v6 = vpop.f32.mrf.mxu1  ;;  %v6098_v28 = vsel %vm5938_vm9, %v13991_v38, %v8805_v33  ;;  %vm5947_vm9 = vcmp.gt.f32.partialorder %v14033_v22, 0.0 }
 0x995   : > { %v8807_v32 = vadd.f32 -1.0, %v9661_v47  ;;  %9676 = vpow2.f32 %v6020_v7  ;;  %v5981_v56 = vmin.f32 %v14042_v60, 0.0  ;;  %v9663_v14 = vpop.eup %9662  ;;  %v6022_v37 = vmul.f32 1.442695, %v5980_v0 }
 0x996   : > { %v14054_v39 = vadd.f32 %v5889_v6, %v13711_v44  ;;  %v5891_v17 = vpop.f32.mrf.mxu1  ;;  %v9665_v50 = vpop.eup %9664  ;;  %v14064_v44 = vadd.f32 %v13772_v30, %v5313_v23  ;;  %v8806_v45 = vadd.f32 -1.0, %v9663_v14 }
 0x997   : > { %v6100_v57 = vsel %vm5940_vm12, %v14001_v19, %v8807_v32  ;;  %v6024_v2 = vmul.f32 1.442695, %v5981_v56  ;;  %v14059_v34 = vadd.f32 %v5891_v17, %v13718_v61  ;;  %9678 = vpow2.f32 %v6022_v37 }
 0x998   : > { %v9667_v15 = vpop.eup %9666  ;;  %v6130_v35 = vpack.c.bf16 %v6100_v57, %v6098_v28  ;;  %v5982_v1 = vmin.f32 %v14054_v39, 0.0  ;;  %v5893_v20 = vpop.f32.mrf.mxu1  ;;  %v8808_v46 = vadd.f32 -1.0, %v9665_v50  ;;  %v6099_v62 = vsel %vm5939_vm13, %v13997_v40, %v8806_v45 }
 0x999   : > { %9680 = vpow2.f32 %v6024_v2  ;;  %v5983_v38 = vmin.f32 %v14059_v34, 0.0  ;;  %v14069_v61 = vadd.f32 %v5893_v20, %v13727_v16  ;;  %v8809_v8 = vadd.f32 -1.0, %v9667_v15 }
 0x99a   : > { %v6026_v19 = vmul.f32 1.442695, %v5982_v1  ;;  %v5895_v31 = vpop.f32.mrf.mxu1  ;;  %v6101_v13 = vsel %vm5941_vm11, %v14005_v12, %v8808_v46  ;;  %v5323_v40 = vadd.f32 %v13785_v24, %v13597_v25  ;;  %vm5948_vm12 = vcmp.gt.f32.partialorder %v14040_v9, 0.0 }
 0x99b   : > { %v6028_v11 = vmul.f32 1.442695, %v5983_v38  ;;  %v14072_v41 = vadd.f32 %v5895_v31, %v5406_v36  ;;  %v5984_v55 = vmin.f32 %v14069_v61, 0.0  ;;  %v6131_v7 = vpack.c.bf16 %v6101_v13, %v6099_v62 }
 0x99c   : > { %v9669_v30 = vpop.eup %9668  ;;  %9682 = vpow2.f32 %v6026_v19  ;;  %v5899_v63 = vpop.f32.mrf.mxu1  ;;  %v6102_v12 = vsel %vm5942_vm10, %v14008_v10, %v8809_v8  ;;  %vm5949_vm13 = vcmp.gt.f32.partialorder %v14042_v60, 0.0  ;;  %vm5950_vm11 = vcmp.gt.f32.partialorder %v14054_v39, 0.0 }
 0x99d   : > { %v8811_v16 = vadd.f32 -1.0, %v9669_v30  ;;  %v5985_v21 = vmin.f32 %v14072_v41, 0.0  ;;  %v9671_v5 = vpop.eup %9670  ;;  %9684 = vpow2.f32 %v6028_v11  ;;  %v6030_v51 = vmul.f32 1.442695, %v5984_v55  ;;  %6382 = vmatprep.mubr.bf16.mxu0 %v6131_v7 }
 0x99e   : > { %v14083_v33 = vadd.f32 %v5899_v63, %v13738_v49  ;;  %v5901_v47 = vpop.f32.mrf.mxu1  ;;  %v9673_v36 = vpop.eup %9672  ;;  %6383 = vmatmul.mubr.bf16.vlgmr.msra.gmra.mxu0 %v6130_v35  ;;  %v5436_v7 = vadd.f32 %v13789_v53, %v5323_v40  ;;  %vm5951_vm10 = vcmp.gt.f32.partialorder %v14059_v34, 0.0 }
 0x99f   : > { %v6104_v29 = vsel %vm5944_vm14, %v14019_v4, %v8811_v16  ;;  %v6032_v0 = vmul.f32 1.442695, %v5985_v21  ;;  %v14090_v6 = vadd.f32 %v5901_v47, %v13744_v3  ;;  %9686 = vpow2.f32 %v6030_v51 }
 0x9a0   : > { %v6132_v23 = vpack.c.bf16 %v6104_v29, %v6102_v12  ;;  %v5986_v49 = vmin.f32 %v14083_v33, 0.0  ;;  %v5903_v32 = vpop.f32.mrf.mxu1  ;;  %v9675_v56 = vpop.eup %9674  ;;  %v8810_v4 = vadd.f32 -1.0, %v9671_v5  ;;  %v8812_v17 = vadd.f32 -1.0, %v9673_v36 }
 0x9a1   : > { %9688 = vpow2.f32 %v6032_v0  ;;  %v5987_v10 = vmin.f32 %v14090_v6, 0.0  ;;  %v14099_v24 = vadd.f32 %v5903_v32, %v13750_v58  ;;  %v8813_v57 = vadd.f32 -1.0, %v9675_v56 }
 0x9a2   : > { %v9677_v14 = vpop.eup %9676  ;;  %v6034_v3 = vmul.f32 1.442695, %v5986_v49  ;;  %v5905_v37 = vpop.f32.mrf.mxu1  ;;  %v6105_v35 = vsel %vm5945_vm15, %v14023_v48, %v8812_v17  ;;  %v6103_v38 = vsel %vm5943_vm0, %v14015_v43, %v8810_v4  ;;  %v5333_v47 = vadd.f32 %v13803_v18, %v13597_v25  ;;  %v16017_v4 = vld [vmem:[#allocation90_spill] sm:$0xff] }
 0x9a3   : > { %v6036_v50 = vmul.f32 1.442695, %v5987_v10  ;;  %v14103_v28 = vadd.f32 %v5905_v37, %v5416_v26  ;;  %v5988_v2 = vmin.f32 %v14099_v24, 0.0  ;;  %v8814_v45 = vadd.f32 -1.0, %v9677_v14 }
 0x9a4   : > { %9690 = vpow2.f32 %v6034_v3  ;;  %v5909_v15 = vpop.f32.mrf.mxu1  ;;  %v9679_v1 = vpop.eup %9678  ;;  %v6133_v46 = vpack.c.bf16 %v6105_v35, %v6103_v38  ;;  %vm5952_vm14 = vcmp.gt.f32.partialorder %v14069_v61, 0.0  ;;  %vm5953_vm0 = vcmp.gt.f32.partialorder %v14072_v41, 0.0 }
 0x9a5   : > { %v5989_v58 = vmin.f32 %v14103_v28, 0.0  ;;  %v14109_v20 = vadd.f32 %v5909_v15, %v13758_v59  ;;  %v8815_v19 = vadd.f32 -1.0, %v9679_v1  ;;  %9692 = vpow2.f32 %v6036_v50  ;;  %v16018_v1 = vld [vmem:[#allocation56_spill] sm:$0xff] }
 0x9a6   : > { %v9681_v26 = vpop.eup %9680  ;;  %v6038_v31 = vmul.f32 1.442695, %v5988_v2  ;;  %v5911_v8 = vpop.f32.mrf.mxu1  ;;  %v6106_v59 = vsel %vm5946_vm8, %v14028_v52, %v8813_v57  ;;  %6392 = vmatprep.mubr.bf16.mxu0 %v6133_v46  ;;  %v6107_v52 = vsel %vm5947_vm9, %v14033_v22, %v8814_v45  ;;  %v16016_v22 = vld [vmem:[#allocation77_spill] sm:$0xff]  ;;  %vm5954_vm15 = vcmp.gt.f32.partialorder %v14083_v33, 0.0 }
 0x9a7   : > { %v6040_v48 = vmul.f32 1.442695, %v5989_v58  ;;  %v5990_v11 = vmin.f32 %v14109_v20, 0.0  ;;  %v14117_v30 = vadd.f32 %v5911_v8, %v13764_v27  ;;  %v6108_v43 = vsel %vm5948_vm12, %v14040_v9, %v8815_v19  ;;  %6393 = vmatmul.mubr.bf16.gmra.mxu0 %v6132_v23 }
 0x9a8   : > { %9694 = vpow2.f32 %v6038_v31  ;;  %v5913_v55 = vpop.f32.mrf.mxu1  ;;  %v8816_v63 = vadd.f32 -1.0, %v9681_v26  ;;  %v6134_v16 = vpack.c.bf16 %v6108_v43, %v6106_v59  ;;  %v5446_v26 = vadd.f32 %v13988_v42, %v5333_v47 }
 0x9a9   : > { %v9683_v13 = vpop.eup %9682  ;;  %9696 = vpow2.f32 %v6040_v48  ;;  %v6042_v21 = vmul.f32 1.442695, %v5990_v11  ;;  %v5991_v27 = vmin.f32 %v14117_v30, 0.0  ;;  %v14126_v62 = vadd.f32 %v5913_v55, %v13770_v54 }
 0x9aa   : > { %v5915_v5 = vpop.f32.mrf.mxu1  ;;  %v6109_v9 = vsel %vm5949_vm13, %v14042_v60, %v8816_v63  ;;  %v9685_v51 = vpop.eup %9684  ;;  %v8817_v29 = vadd.f32 -1.0, %v9683_v13  ;;  %vm5955_vm8 = vcmp.gt.f32.partialorder %v14090_v6, 0.0  ;;  %vm5956_vm9 = vcmp.gt.f32.partialorder %v14099_v24, 0.0 }
 0x9ab   : > { %v14136_v36 = vadd.f32 %v5915_v5, %v14064_v44  ;;  %v6135_v12 = vpack.c.bf16 %v6109_v9, %v6107_v52  ;;  %9698 = vpow2.f32 %v6042_v21  ;;  %v6044_v54 = vmul.f32 1.442695, %v5991_v27  ;;  %v16020_v5 = vld [vmem:[#allocation49_spill] sm:$0xff] }
 0x9ac   : > { %v5992_v0 = vmin.f32 %v14126_v62, 0.0  ;;  %v5919_v23 = vpop.f32.mrf.mxu1  ;;  %v9687_v49 = vpop.eup %9686  ;;  %v8818_v32 = vadd.f32 -1.0, %v9685_v51  ;;  %v6110_v3 = vsel %vm5950_vm11, %v14054_v39, %v8817_v29  ;;  %vm5957_vm12 = vcmp.gt.f32.partialorder %v14103_v28, 0.0 }
 0x9ad   : > { %v5993_v53 = vmin.f32 %v14136_v36, 0.0  ;;  %v14143_v60 = vadd.f32 %v5919_v23, %v16016_v22  ;;  %6402 = vmatprep.mubr.bf16.mxu0 %v6135_v12  ;;  %v8819_v18 = vadd.f32 -1.0, %v9687_v49  ;;  %9700 = vpow2.f32 %v6044_v54  ;;  %v16021_v23 = vld [vmem:[#allocation59_spill] sm:$0xff] }
 0x9ae   : > { %v9689_v25 = vpop.eup %9688  ;;  %v6046_v44 = vmul.f32 1.442695, %v5992_v0  ;;  %v5921_v40 = vpop.f32.mrf.mxu1  ;;  %v6111_v39 = vsel %vm5951_vm10, %v14059_v34, %v8818_v32  ;;  %vm5958_vm13 = vcmp.gt.f32.partialorder %v14109_v20, 0.0  ;;  %vm5959_vm11 = vcmp.gt.f32.partialorder %v14117_v30, 0.0 }
 0x9af   : > { %v6048_v56 = vmul.f32 1.442695, %v5993_v53  ;;  %v5994_v10 = vmin.f32 %v14143_v60, 0.0  ;;  %v14148_v14 = vadd.f32 %v5921_v40, %v16017_v4  ;;  %v6112_v37 = vsel %vm5952_vm14, %v14069_v61, %v8819_v18  ;;  %6403 = vmatmul.mubr.bf16.gmra.mxu0 %v6134_v16 }
 0x9b0   : > { %9702 = vpow2.f32 %v6046_v44  ;;  %v5923_v17 = vpop.f32.mrf.mxu1  ;;  %v8820_v50 = vadd.f32 -1.0, %v9689_v25  ;;  %v6136_v2 = vpack.c.bf16 %v6112_v37, %v6110_v3  ;;  %vm5960_vm10 = vcmp.gt.f32.partialorder %v14126_v62, 0.0 }
 0x9b1   : > { %v9691_v57 = vpop.eup %9690  ;;  %9704 = vpow2.f32 %v6048_v56  ;;  %v6050_v15 = vmul.f32 1.442695, %v5994_v10  ;;  %v5995_v35 = vmin.f32 %v14148_v14, 0.0  ;;  %v14155_v58 = vadd.f32 %v5923_v17, %v16018_v1 }
 0x9b2   : > { %v5925_v38 = vpop.f32.mrf.mxu1  ;;  %v6113_v61 = vsel %vm5953_vm0, %v14072_v41, %v8820_v50  ;;  %v9693_v45 = vpop.eup %9692  ;;  %v8821_v46 = vadd.f32 -1.0, %v9691_v57  ;;  %v16019_v41 = vld [vmem:[#allocation64_spill] sm:$0xff]  ;;  %vm5961_vm14 = vcmp.gt.f32.partialorder %v14136_v36, 0.0  ;;  %vm5962_vm0 = vcmp.gt.f32.partialorder %v14143_v60, 0.0 }
 0x9b3   : > { %v14162_v19 = vadd.f32 %v5925_v38, %v5436_v7  ;;  %v6137_v31 = vpack.c.bf16 %v6113_v61, %v6111_v39  ;;  %9706 = vpow2.f32 %v6050_v15  ;;  %v6052_v8 = vmul.f32 1.442695, %v5995_v35 }
 0x9b4   : > { %v5996_v48 = vmin.f32 %v14155_v58, 0.0  ;;  %v5929_v11 = vpop.f32.mrf.mxu1  ;;  %v8822_v16 = vadd.f32 -1.0, %v9693_v45  ;;  %v6114_v9 = vsel %vm5954_vm15, %v14083_v33, %v8821_v46  ;;  %vm5964_vm15 = vcmp.gt.f32.partialorder %v14155_v58, 0.0 }
 0x9b5   : > { %v9695_v59 = vpop.eup %9694  ;;  %v5997_v34 = vmin.f32 %v14162_v19, 0.0  ;;  %v14169_v43 = vadd.f32 %v5929_v11, %v16019_v41  ;;  %6412 = vmatprep.mubr.bf16.mxu0 %v6137_v31  ;;  %9708 = vpow2.f32 %v6052_v8 }
 0x9b6   : > { %v9697_v42 = vpop.eup %9696  ;;  %v8823_v55 = vadd.f32 -1.0, %v9695_v59  ;;  %v6054_v63 = vmul.f32 1.442695, %v5996_v48  ;;  %v5931_v13 = vpop.f32.mrf.mxu1  ;;  %v6115_v33 = vsel %vm5955_vm8, %v14090_v6, %v8822_v16  ;;  %vm5963_vm8 = vcmp.gt.f32.partialorder %v14148_v14, 0.0 }
 0x9b7   : > { %v6056_v21 = vmul.f32 1.442695, %v5997_v34  ;;  %v5998_v27 = vmin.f32 %v14169_v43, 0.0  ;;  %v14174_v52 = vadd.f32 %v5931_v13, %v16020_v5  ;;  %v8824_v47 = vadd.f32 -1.0, %v9697_v42  ;;  %6413 = vmatmul.mubr.bf16.gmra.mxu0 %v6136_v2  ;;  %v14218_v5 = vld [vmem:[%s15085_s8] sm:$0x3] }
 0x9b8   : > { %v6116_v51 = vsel %vm5956_vm9, %v14099_v24, %v8823_v55  ;;  %9710 = vpow2.f32 %v6054_v63  ;;  %v5933_v7 = vpop.f32.mrf.mxu1  ;;  %v9699_v12 = vpop.eup %9698  ;;  %vm5965_vm9 = vcmp.gt.f32.partialorder %v14162_v19, 0.0 }
 0x9b9   : > { %v6138_v29 = vpack.c.bf16 %v6116_v51, %v6114_v9  ;;  %9712 = vpow2.f32 %v6056_v21  ;;  %v6058_v54 = vmul.f32 1.442695, %v5998_v27  ;;  %v5999_v0 = vmin.f32 %v14174_v52, 0.0  ;;  %v16022_v9 = vld [vmem:[#allocation19_spill] sm:$0xff] }
 0x9ba   : > { %v14181_v49 = vadd.f32 %v5933_v7, %v16021_v23  ;;  %v5935_v53 = vpop.f32.mrf.mxu1  ;;  %v6117_v24 = vsel %vm5957_vm12, %v14103_v28, %v8824_v47  ;;  %v9701_v22 = vpop.eup %9700  ;;  %v8825_v44 = vadd.f32 -1.0, %v9699_v12  ;;  %vm5966_vm12 = vcmp.gt.f32.partialorder %v14169_v43, 0.0 }
 0x9bb   : > { %v14187_v25 = vadd.f32 %v5935_v53, %v5446_v26  ;;  %v6139_v18 = vpack.c.bf16 %v6117_v24, %v6115_v33  ;;  %9714 = vpow2.f32 %v6058_v54  ;;  %v6060_v40 = vmul.f32 1.442695, %v5999_v0 }
 0x9bc   : > { %v6000_v32 = vmin.f32 %v14181_v49, 0.0  ;;  %v8826_v4 = vadd.f32 -1.0, %v9701_v22  ;;  %v6118_v50 = vsel %vm5958_vm13, %v14109_v20, %v8825_v44  ;;  %vm5968_vm13 = vcmp.gt.f32.partialorder %v14181_v49, 0.0 }
 0x9bd   : > { %v9703_v56 = vpop.eup %9702  ;;  %v6001_v10 = vmin.f32 %v14187_v25, 0.0  ;;  %6422 = vmatprep.mubr.bf16.mxu0 %v6139_v18  ;;  %9716 = vpow2.f32 %v6060_v40  ;;  %v6183_v51 = vrot.slane %v14218_v5, %v16022_v9 }
 0x9be   : > { %v9705_v3 = vpop.eup %9704  ;;  %v8827_v6 = vadd.f32 -1.0, %v9703_v56  ;;  %v6062_v28 = vmul.f32 1.442695, %v6000_v32  ;;  %v6119_v35 = vsel %vm5959_vm11, %v14117_v30, %v8826_v4  ;;  %vm5967_vm11 = vcmp.gt.f32.partialorder %v14174_v52, 0.0 }
 0x9bf   : > { %v6064_v37 = vmul.f32 1.442695, %v6001_v10  ;;  %v8828_v17 = vadd.f32 -1.0, %v9705_v3  ;;  %6423 = vmatmul.mubr.bf16.gmra.mxu0 %v6138_v29 }
 0x9c0   : > { %v6120_v57 = vsel %vm5960_vm10, %v14126_v62, %v8827_v6  ;;  %9718 = vpow2.f32 %v6062_v28  ;;  %v9707_v2 = vpop.eup %9706  ;;  %vm5969_vm10 = vcmp.gt.f32.partialorder %v14187_v25, 0.0 }
 0x9c1   : > { %v6140_v15 = vpack.c.bf16 %v6120_v57, %v6118_v50  ;;  %9720 = vpow2.f32 %v6064_v37  ;;  %v6121_v1 = vsel %vm5961_vm14, %v14136_v36, %v8828_v17  ;;  %v8829_v61 = vadd.f32 -1.0, %v9707_v2 }
 0x9c2   : > { %v6141_v38 = vpack.c.bf16 %v6121_v1, %v6119_v35  ;;  %v9709_v39 = vpop.eup %9708  ;;  %vm6495_vm14 = vcmask 523264  }
 0x9c3   : > { %v8830_v26 = vadd.f32 -1.0, %v9709_v39  ;;  %v6122_v46 = vsel %vm5962_vm0, %v14143_v60, %v8829_v61 }
 0x9c4   : > { %6432 = vmatprep.mubr.bf16.mxu0 %v6141_v38 }
 0x9c5   : > { %v9711_v45 = vpop.eup %9710  ;;  %v6123_v48 = vsel %vm5963_vm8, %v14148_v14, %v8830_v26 }
 0x9c6   : > { %v9713_v20 = vpop.eup %9712  ;;  %v8831_v31 = vadd.f32 -1.0, %v9711_v45 }
 0x9c7   : > { %v8832_v62 = vadd.f32 -1.0, %v9713_v20  ;;  %6433 = vmatmul.mubr.bf16.gmra.mxu0 %v6140_v15 }
 0x9c8   : > { %v6124_v30 = vsel %vm5964_vm15, %v14155_v58, %v8831_v31  ;;  %v9715_v36 = vpop.eup %9714 }
 0x9c9   : > { %v6142_v8 = vpack.c.bf16 %v6124_v30, %v6122_v46  ;;  %v6125_v11 = vsel %vm5965_vm9, %v14162_v19, %v8832_v62  ;;  %v8833_v41 = vadd.f32 -1.0, %v9715_v36 }
 0x9ca   : > { %v6143_v59 = vpack.c.bf16 %v6125_v11, %v6123_v48  ;;  %v9717_v34 = vpop.eup %9716 }
 0x9cb   : > { %v8834_v55 = vadd.f32 -1.0, %v9717_v34  ;;  %v6126_v13 = vsel %vm5966_vm12, %v14169_v43, %v8833_v41 }
 0x9cc   : > { %6442 = vmatprep.mubr.bf16.mxu0 %v6143_v59 }
 0x9cd   : > { %v9719_v42 = vpop.eup %9718  ;;  %v6127_v16 = vsel %vm5967_vm11, %v14174_v52, %v8834_v55 }
 0x9ce   : > { %v9721_v60 = vpop.eup %9720  ;;  %v8835_v63 = vadd.f32 -1.0, %v9719_v42 }
 0x9cf   : > { %v8836_v58 = vadd.f32 -1.0, %v9721_v60  ;;  %6443 = vmatmul.mubr.bf16.gmra.mxu0 %v6142_v8 }
 0x9d0   : > { %v6128_v14 = vsel %vm5968_vm13, %v14181_v49, %v8835_v63 }
 0x9d1   : > { %v6144_v19 = vpack.c.bf16 %v6128_v14, %v6126_v13  ;;  %v6129_v21 = vsel %vm5969_vm10, %v14187_v25, %v8836_v58 }
 0x9d2   : > { %v6145_v27 = vpack.c.bf16 %v6129_v21, %v6127_v16 }
 0x9d4   : > { %6452 = vmatprep.mubr.bf16.mxu0 %v6145_v27 }
 0x9d7   : > { %6453 = vmatmul.mubr.bf16.gmra.mxu0 %v6144_v19 }
 0xa5e   : > { %v6384_v43 = vpop.f32.mrf.mxu0 }
 0xa5f   : > { %v6385_v12 = vadd.f32 %v6384_v43, %v6183_v51 }
 0xa60   : > { %v14222_v7 = vpop.f32.mrf.mxu0 }
 0xa62   : > { %v6388_v47 = vpop.f32.mrf.mxu0 }
 0xa63   : > { %v6389_v29 = vadd.f32 %v6388_v47, %v6183_v51 }
 0xa64   : > { %v14224_v52 = vpop.f32.mrf.mxu0 }
 0xa65   : > { %v6463_v54 = vpack.c.bf16 %v6389_v29, %v6385_v12 }
 0xa67   : > { %v6394_v0 = vpop.f32.mrf.mxu0  ;;  %9053 = vmatprep.mubr.msk.bf16.mxu1 %vm6495_vm14, %v6463_v54 }
 0xa68   : > { %v6395_v63 = vadd.f32 %v6394_v0, %v6183_v51 }
 0xa69   : > { %v14227_v23 = vpop.f32.mrf.mxu0 }
 0xa6b   : > { %v6398_v49 = vpop.f32.mrf.mxu0 }
 0xa6c   : > { %v6399_v42 = vadd.f32 %v6398_v49, %v6183_v51 }
 0xa6d   : > { %v14229_v53 = vpop.f32.mrf.mxu0 }
 0xa6e   : > { %v6464_v58 = vpack.c.bf16 %v6399_v42, %v6395_v63 }
 0xa6f   : > { %v6404_v33 = vpop.f32.mrf.mxu0 }
 0xa70   : > { %v6405_v34 = vadd.f32 %v6404_v33, %v6183_v51 }
 0xa71   : > { %v14231_v24 = vpop.f32.mrf.mxu0 }
 0xa73   : > { %v6408_v22 = vpop.f32.mrf.mxu0 }
 0xa74   : > { %v6409_v8 = vadd.f32 %v6408_v22, %v6183_v51 }
 0xa75   : > { %v14233_v25 = vpop.f32.mrf.mxu0 }
 0xa76   : > { %v6465_v55 = vpack.c.bf16 %v6409_v8, %v6405_v34 }
 0xa77   : > { %v6414_v18 = vpop.f32.mrf.mxu0 }
 0xa78   : > { %v6415_v41 = vadd.f32 %v6414_v18, %v6183_v51  ;;  %v16023_v18 = vld [vmem:[#allocation18_spill] sm:$0xff] }
 0xa79   : > { %v14235_v44 = vpop.f32.mrf.mxu0 }
 0xa7b   : > { %v6418_v40 = vpop.f32.mrf.mxu0 }
 0xa7c   : > { %v6419_v48 = vadd.f32 %v6418_v40, %v6183_v51  ;;  %v6187_v40 = vrot.slane %v14218_v5, %v16023_v18 }
 0xa7d   : > { %v14237_v32 = vpop.f32.mrf.mxu0 }
 0xa7e   : > { %v6466_v60 = vpack.c.bf16 %v6419_v48, %v6415_v41 }
 0xa7f   : > { %v6424_v56 = vpop.f32.mrf.mxu0 }
 0xa80   : > { %v6425_v46 = vadd.f32 %v6424_v56, %v6183_v51 }
 0xa81   : > { %v14239_v10 = vpop.f32.mrf.mxu0 }
 0xa83   : > { %v6428_v4 = vpop.f32.mrf.mxu0 }
 0xa84   : > { %v6429_v20 = vadd.f32 %v6428_v4, %v6183_v51 }
 0xa85   : > { %v14241_v3 = vpop.f32.mrf.mxu0 }
 0xa86   : > { %v14259_v11 = vpack.c.bf16 %v6429_v20, %v6425_v46 }
 0xa87   : > { %v6434_v6 = vpop.f32.mrf.mxu0 }
 0xa88   : > { %v6435_v45 = vadd.f32 %v6434_v6, %v6183_v51 }
 0xa89   : > { %v14243_v28 = vpop.f32.mrf.mxu0 }
 0xa8b   : > { %v6438_v37 = vpop.f32.mrf.mxu0 }
 0xa8c   : > { %v6439_v38 = vadd.f32 %v6438_v37, %v6183_v51 }
 0xa8d   : > { %v14245_v17 = vpop.f32.mrf.mxu0 }
 0xa8e   : > { %v14255_v31 = vpack.c.bf16 %v6439_v38, %v6435_v45  ;;  %v14302_v5 = vadd.f32 %v14245_v17, %v6187_v40  ;;  %v14317_v17 = vadd.f32 %v14239_v10, %v6187_v40  ;;  %v14320_v38 = vadd.f32 %v14237_v32, %v6187_v40 }
 0xa8f   : > { %v6444_v50 = vpop.f32.mrf.mxu0  ;;  %v14331_v10 = vadd.f32 %v14233_v25, %v6187_v40  ;;  %v14339_v45 = vadd.f32 %v14229_v53, %v6187_v40  ;;  %v14348_v25 = vadd.f32 %v14227_v23, %v6187_v40 }
 0xa90   : > { %v6445_v15 = vadd.f32 %v6444_v50, %v6183_v51 }
 0xa91   : > { %v14247_v57 = vpop.f32.mrf.mxu0  ;;  %v6874_v53 = vpack.c.bf16 %v14339_v45, %v14348_v25 }
 0xa93   : > { %v6448_v2 = vpop.f32.mrf.mxu0 }
 0xa94   : > { %v6449_v35 = vadd.f32 %v6448_v2, %v6183_v51  ;;  %v14299_v2 = vadd.f32 %v14247_v57, %v6187_v40 }
 0xa95   : > { %v14249_v1 = vpop.f32.mrf.mxu0 }
 0xa96   : > { %v14251_v39 = vpack.c.bf16 %v6449_v35, %v6445_v15  ;;  %v14296_v50 = vadd.f32 %v14249_v1, %v6187_v40  ;;  %v14309_v35 = vadd.f32 %v14243_v28, %v6187_v40  ;;  %v14312_v1 = vadd.f32 %v14241_v3, %v6187_v40 }
 0xa97   : > { %v6454_v61 = vpop.f32.mrf.mxu0  ;;  %v14328_v3 = vadd.f32 %v14235_v44, %v6187_v40  ;;  %v14336_v28 = vadd.f32 %v14231_v24, %v6187_v40  ;;  %v14351_v24 = vadd.f32 %v14224_v52, %v6187_v40  ;;  %v14356_v44 = vadd.f32 %v14222_v7, %v6187_v40 }
 0xa98   : > { %6491 = vrot.lane.b32.xlu1 %v14251_v39, %s10192_s29  ;;  %v6455_v30 = vadd.f32 %v6454_v61, %v6183_v51  ;;  %v6879_v15 = vpack.c.bf16 %v14296_v50, %v14299_v2  ;;  %v6878_v57 = vpack.c.bf16 %v14302_v5, %v14309_v35  ;;  %v6877_v61 = vpack.c.bf16 %v14312_v1, %v14317_v17 }
 0xa99   : > { %v6456_v26 = vpop.f32.mrf.mxu0  ;;  %v6876_v32 = vpack.c.bf16 %v14320_v38, %v14328_v3  ;;  %v6873_v20 = vpack.c.bf16 %v14351_v24, %v14356_v44 }
 0xa9a   : > { %v14290_v4 = vadd.f32 %v6456_v26, %v6187_v40  ;;  %v6875_v26 = vpack.c.bf16 %v14331_v10, %v14336_v28 }
 0xa9b   : > { %v6458_v62 = vpop.f32.mrf.mxu0 }
 0xa9c   : > { %v6459_v36 = vadd.f32 %v6458_v62, %v6183_v51  ;;  %6489 = vrot.lane.b32.xlu1 %v14255_v31, %s10192_s29 }
 0xa9d   : > { %v6460_v33 = vpop.f32.mrf.mxu0 }
 0xa9e   : > { %v14261_v59 = vpack.c.bf16 %v6459_v36, %v6455_v30  ;;  %v14288_v56 = vadd.f32 %v6460_v33, %v6187_v40  ;;  %v16031_v33 = vld [vmem:[#allocation73_spill] sm:$0xff] }
 0xa9f   : > { %vm16032_vm0 = vcmp.gt.f32.partialorder %v16031_v33, 0.0 }
 0xaa0   : > { %6493 = vrot.lane.b32.xlu0 %v14261_v59, %s10192_s29  ;;  %6487 = vrot.lane.b32.xlu1 %v14259_v11, %s10192_s29  ;;  %v6880_v6 = vpack.c.bf16 %v14288_v56, %v14290_v4 }
 0xaa4   : > { %6485 = vrot.lane.b32.xlu0 %v6466_v60, %s10192_s29  ;;  %6483 = vrot.lane.b32.xlu1 %v6465_v55, %s10192_s29 }
 0xaa8   : > { %6481 = vrot.lane.b32.xlu0 %v6464_v58, %s10192_s29  ;;  %6479 = vrot.lane.b32.xlu1 %v6463_v54, %s10192_s29 }
 0xb0a   : > { %v6492_v19 = vpop.permute.xlu1 %6491 }
 0xb0b   : > { %v6539_v16 = vsel %vm6495_vm14, %v6492_v19, 0 }
 0xb0e   : > { %v6490_v21 = vpop.permute.xlu1 %6489 }
 0xb0f   : > { %v6536_v27 = vsel %vm6495_vm14, %v6490_v21, 0 }
 0xb12   : > { %v6494_v13 = vpop.permute.xlu0 %6493  ;;  %v6488_v43 = vpop.permute.xlu1 %6487 }
 0xb13   : > { %9239 = vmatprep.subr.msk.bf16.mxu1 %vm6495_vm14, %v6494_v13  ;;  %v6542_v14 = vsel %vm6495_vm14, %v6494_v13, 0  ;;  %v6533_v51 = vsel %vm6495_vm14, %v6488_v43, 0 }
 0xb14   : > { %9038 = vmatpush3.bf16.xpose.msra.mxu1 %v6542_v14 }
 0xb15   : > { %9240 = vmatprep.subr.msk.bf16.mxu1 %vm6495_vm14, %v6492_v19 }
 0xb16   : > { %v6486_v47 = vpop.permute.xlu0 %6485  ;;  %v6484_v29 = vpop.permute.xlu1 %6483 }
 0xb17   : > { %v6530_v12 = vsel %vm6495_vm14, %v6486_v47, 0  ;;  %v6527_v54 = vsel %vm6495_vm14, %v6484_v29, 0 }
 0xb1a   : > { %v6482_v0 = vpop.permute.xlu0 %6481  ;;  %v6480_v22 = vpop.permute.xlu1 %6479 }
 0xb1b   : > { %v6524_v49 = vsel %vm6495_vm14, %v6482_v0, 0  ;;  %v6521_v37 = vsel %vm6495_vm14, %v6480_v22, 0 }
 0xb1c   : > { %9040 = vmatpush3.bf16.xpose.msra.mxu1 %v6539_v16 }
 0xb1d   : > { %9241 = vmatprep.subr.msk.bf16.mxu1 %vm6495_vm14, %v6490_v21 }
 0xb24   : > { %9042 = vmatpush3.bf16.xpose.msra.mxu1 %v6536_v27 }
 0xb25   : > { %9242 = vmatprep.subr.msk.bf16.mxu1 %vm6495_vm14, %v6488_v43 }
 0xb2c   : > { %9044 = vmatpush3.bf16.xpose.msra.mxu1 %v6533_v51 }
 0xb2d   : > { %9243 = vmatprep.subr.msk.bf16.mxu1 %vm6495_vm14, %v6486_v47 }
 0xb34   : > { %9046 = vmatpush3.bf16.xpose.msra.mxu1 %v6530_v12 }
 0xb35   : > { %9244 = vmatprep.subr.msk.bf16.mxu1 %vm6495_vm14, %v6484_v29 }
 0xb3c   : > { %9048 = vmatpush3.bf16.xpose.msra.mxu1 %v6527_v54 }
 0xb3d   : > { %9245 = vmatprep.subr.msk.bf16.mxu1 %vm6495_vm14, %v6482_v0 }
 0xb44   : > { %9050 = vmatpush3.bf16.xpose.msra.mxu1 %v6524_v49 }
 0xb45   : > { %9246 = vmatprep.subr.msk.bf16.mxu1 %vm6495_vm14, %v6480_v22 }
 0xb4c   : > { %9052 = vmatpush3.bf16.xpose.msra.mxu1 %v6521_v37 }
 0xb4d   : > { %9069 = vmatprep.subr.bf16.mxu1 %v6880_v6 }
 0xb53   : > { %9054 = vmatmul.mubr.msk.bf16.vlgmr.msra.gmra.mxu1 %vm6495_vm14, %v6464_v58 }
 0xb54   : > { %9057 = vmatprep.mubr.msk.bf16.mxu1 %vm6495_vm14, %v6465_v55  ;;  %9070 = vmatpush3.bf16.msra.mxu1 %v6880_v6 }
 0xb55   : > { %9071 = vmatprep.subr.bf16.mxu1 %v6879_v15 }
 0xb58   : > { %9072 = vmatpush3.bf16.msra.mxu1 %v6879_v15 }
 0xb59   : > { %9073 = vmatprep.subr.bf16.mxu1 %v6878_v57 }
 0xb5b   : > { %9058 = vmatmul.mubr.msk.bf16.gmra.mxu1 %vm6495_vm14, %v6466_v60 }
 0xb5c   : > { %9061 = vmatprep.mubr.msk.bf16.mxu1 %vm6495_vm14, %v14259_v11  ;;  %9074 = vmatpush3.bf16.msra.mxu1 %v6878_v57  ;;  %v16033_v57 = vld [vmem:[#allocation68_spill] sm:$0xff] }
 0xb5d   : > { %9075 = vmatprep.subr.bf16.mxu1 %v6877_v61  ;;  %vm16034_vm15 = vcmp.gt.f32.partialorder %v16033_v57, 0.0 }
 0xb60   : > { %9076 = vmatpush3.bf16.msra.mxu1 %v6877_v61 }
 0xb61   : > { %9077 = vmatprep.subr.bf16.mxu1 %v6876_v32 }
 0xb63   : > { %9062 = vmatmul.mubr.msk.bf16.gmra.mxu1 %vm6495_vm14, %v14255_v31 }
 0xb64   : > { %9065 = vmatprep.mubr.msk.bf16.mxu1 %vm6495_vm14, %v14251_v39  ;;  %9078 = vmatpush3.bf16.msra.mxu1 %v6876_v32  ;;  %v16035_v32 = vld [vmem:[#allocation65_spill] sm:$0xff] }
 0xb65   : > { %9079 = vmatprep.subr.bf16.mxu1 %v6875_v26  ;;  %vm16036_vm8 = vcmp.gt.f32.partialorder %v16035_v32, 0.0 }
 0xb68   : > { %9080 = vmatpush3.bf16.msra.mxu1 %v6875_v26 }
 0xb69   : > { %9081 = vmatprep.subr.bf16.mxu1 %v6874_v53 }
 0xb6b   : > { %9066 = vmatmul.mubr.msk.bf16.gmra.mxu1 %vm6495_vm14, %v14261_v59 }
 0xb6c   : > { %9082 = vmatpush3.bf16.msra.mxu1 %v6874_v53 }
 0xb6d   : > { %9083 = vmatprep.subr.bf16.mxu1 %v6873_v20 }
 0xb70   : > { %9084 = vmatpush3.bf16.msra.mxu1 %v6873_v20 }
 0xc13   : > { %v9055_v23 = vpop.f32.mrf.mxu1 }
 0xc14   : > { %v6643_v62 = vmul.f32 0.125, %v9055_v23 }
 0xc15   : > { %v6578_v52 = vpop.f32.mrf.mxu1 }
 0xc16   : > { %v6641_v39 = vmul.f32 0.125, %v6578_v52  ;;  %v6659_v34 = vsel %vm2062_vm3, %v6643_v62, -1e+30  ;;  %v16037_v52 = vld [vmem:[#allocation60_spill] sm:$0xff] }
 0xc17   : > { %v9056_v31 = vpop.f32.mrf.mxu1  ;;  %vm16038_vm9 = vcmp.gt.f32.partialorder %v16037_v52, 0.0 }
 0xc18   : > { %v6657_v30 = vsel %vm2060_vm1, %v6641_v39, -1e+30  ;;  %v6644_v48 = vmul.f32 0.125, %v9056_v31  ;;  %v16039_v31 = vld [vmem:[#allocation110_spill] sm:$0xff] }
 0xc19   : > { %6673 = vmax.xlane.f32.xlu0 %v6657_v30  ;;  %v6581_v7 = vpop.f32.mrf.mxu1  ;;  %vm16040_vm12 = vcmp.gt.f32.partialorder %v16039_v31, 0.0 }
 0xc1a   : > { %v6642_v36 = vmul.f32 0.125, %v6581_v7  ;;  %v6660_v58 = vsel %vm2063_vm4, %v6644_v48, -1e+30 }
 0xc1b   : > { %v9059_v8 = vpop.f32.mrf.mxu1 }
 0xc1c   : > { %v6658_v41 = vsel %vm2061_vm2, %v6642_v36, -1e+30  ;;  %v6647_v16 = vmul.f32 0.125, %v9059_v8 }
 0xc1d   : > { %6677 = vmax.xlane.f32.xlu0 %v6659_v34  ;;  %6675 = vmax.xlane.f32.xlu1 %v6658_v41  ;;  %v6594_v42 = vpop.f32.mrf.mxu1 }
 0xc1e   : > { %v6645_v60 = vmul.f32 0.125, %v6594_v42  ;;  %v6663_v49 = vsel %vm2066_vm7, %v6647_v16, -1e+30  ;;  %v16041_v42 = vld [vmem:[#allocation109_spill] sm:$0xff]  ;;  %v16047_v16 = vld [vmem:[#allocation71_spill] sm:$0xff] }
 0xc1f   : > { %v9060_v55 = vpop.f32.mrf.mxu1  ;;  %vm16042_vm13 = vcmp.gt.f32.partialorder %v16041_v42, 0.0 }
 0xc20   : > { %v6648_v21 = vmul.f32 0.125, %v9060_v55  ;;  %v6661_v43 = vsel %vm2064_vm5, %v6645_v60, -1e+30  ;;  %v16043_v60 = vld [vmem:[#allocation106_spill] sm:$0xff] }
 0xc21   : > { %6679 = vmax.xlane.f32.xlu0 %v6660_v58  ;;  %v6597_v13 = vpop.f32.mrf.mxu1  ;;  %vm16044_vm11 = vcmp.gt.f32.partialorder %v16043_v60, 0.0 }
 0xc22   : > { %v6646_v14 = vmul.f32 0.125, %v6597_v13  ;;  %v6664_v22 = vsel %vm16032_vm0, %v6648_v21, -1e+30  ;;  %vm16048_vm0 = vcmp.gt.f32.partialorder %v16047_v16, 0.0 }
 0xc23   : > { %v9063_v19 = vpop.f32.mrf.mxu1 }
 0xc24   : > { %v6662_v47 = vsel %vm2065_vm6, %v6646_v14, -1e+30  ;;  %v6651_v37 = vmul.f32 0.125, %v9063_v19  ;;  %v16045_v14 = vld [vmem:[#allocation105_spill] sm:$0xff] }
 0xc25   : > { %6681 = vmax.xlane.f32.xlu0 %v6661_v43  ;;  %6683 = vmax.xlane.f32.xlu1 %v6662_v47  ;;  %v6610_v12 = vpop.f32.mrf.mxu1  ;;  %vm16046_vm10 = vcmp.gt.f32.partialorder %v16045_v14, 0.0 }
 0xc26   : > { %v6649_v54 = vmul.f32 0.125, %v6610_v12  ;;  %v14390_v39 = vsel %vm16038_vm9, %v6651_v37, -1e+30 }
 0xc27   : > { %v9064_v29 = vpop.f32.mrf.mxu1 }
 0xc28   : > { %v6652_v15 = vmul.f32 0.125, %v9064_v29  ;;  %v14380_v61 = vsel %vm16034_vm15, %v6649_v54, -1e+30 }
 0xc29   : > { %6685 = vmax.xlane.f32.xlu0 %v6663_v49  ;;  %6687 = vmax.xlane.f32.xlu1 %v6664_v22  ;;  %v6613_v18 = vpop.f32.mrf.mxu1 }
 0xc2a   : > { %v6650_v40 = vmul.f32 0.125, %v6613_v18  ;;  %v14394_v62 = vsel %vm16040_vm12, %v6652_v15, -1e+30 }
 0xc2b   : > { %v9067_v6 = vpop.f32.mrf.mxu1 }
 0xc2c   : > { %v14384_v26 = vsel %vm16036_vm8, %v6650_v40, -1e+30  ;;  %v6655_v8 = vmul.f32 0.125, %v9067_v6 }
 0xc2d   : > { %6689 = vmax.xlane.f32.xlu0 %v14380_v61  ;;  %6691 = vmax.xlane.f32.xlu1 %v14384_v26  ;;  %v6626_v53 = vpop.f32.mrf.mxu1 }
 0xc2e   : > { %v6653_v23 = vmul.f32 0.125, %v6626_v53  ;;  %v14410_v19 = vsel %vm16046_vm10, %v6655_v8, -1e+30 }
 0xc2f   : > { %v9068_v20 = vpop.f32.mrf.mxu1 }
 0xc30   : > { %v6656_v48 = vmul.f32 0.125, %v9068_v20  ;;  %v14400_v55 = vsel %vm16042_vm13, %v6653_v23, -1e+30 }
 0xc31   : > { %6693 = vmax.xlane.f32.xlu0 %v14390_v39  ;;  %6695 = vmax.xlane.f32.xlu1 %v14394_v62  ;;  %v6629_v7 = vpop.f32.mrf.mxu1 }
 0xc32   : > { %v6654_v36 = vmul.f32 0.125, %v6629_v7  ;;  %v14414_v21 = vsel %vm16048_vm0, %v6656_v48, -1e+30 }
 0xc34   : > { %v14404_v13 = vsel %vm16044_vm11, %v6654_v36, -1e+30 }
 0xc35   : > { %6697 = vmax.xlane.f32.xlu0 %v14400_v55  ;;  %6699 = vmax.xlane.f32.xlu1 %v14404_v13 }
 0xc39   : > { %6701 = vmax.xlane.f32.xlu0 %v14410_v19  ;;  %6703 = vmax.xlane.f32.xlu1 %v14414_v21 }
 0xca2   : > { %v6674_v12 = vpop.xlane.xlu0 %6673 }
 0xca3   : > { %v6705_v29 = vsub.f32 %v6657_v30, %v6674_v12 }
 0xca5   : > { %v6721_v54 = vmul.f32 1.442695, %v6705_v29 }
 0xca6   : > { %v6678_v18 = vpop.xlane.xlu0 %6677  ;;  %v6676_v40 = vpop.xlane.xlu1 %6675 }
 0xca7   : > { %9722 = vpow2.f32 %v6721_v54  ;;  %v6707_v6 = vsub.f32 %v6659_v34, %v6678_v18  ;;  %v6706_v37 = vsub.f32 %v6658_v41, %v6676_v40  ;;  %v9939_v40 = vld [vmem:[%s11678_s25] sm:$0xff] }
 0xca9   : > { %v6725_v15 = vmul.f32 1.442695, %v6707_v6  ;;  %v6723_v53 = vmul.f32 1.442695, %v6706_v37 }
 0xcaa   : > { %v6680_v20 = vpop.xlane.xlu0 %6679 }
 0xcab   : > { %9724 = vpow2.f32 %v6725_v15  ;;  %v6708_v23 = vsub.f32 %v6660_v58, %v6680_v20 }
 0xcac   : > { %9726 = vpow2.f32 %v6723_v53  ;;  %v9940_v53 = vld [vmem:[%s11678_s25 + $0x10] sm:$0xff] }
 0xcad   : > { %v6727_v7 = vmul.f32 1.442695, %v6708_v23 }
 0xcae   : > { %v6682_v36 = vpop.xlane.xlu0 %6681  ;;  %v6684_v8 = vpop.xlane.xlu1 %6683 }
 0xcaf   : > { %9728 = vpow2.f32 %v6727_v7  ;;  %v6709_v48 = vsub.f32 %v6661_v43, %v6682_v36  ;;  %v6710_v9 = vsub.f32 %v6662_v47, %v6684_v8  ;;  %v9941_v36 = vld [vmem:[%s11678_s25 + $0x8] sm:$0xff] }
 0xcb1   : > { %v6729_v30 = vmul.f32 1.442695, %v6709_v48  ;;  %v6731_v12 = vmul.f32 1.442695, %v6710_v9 }
 0xcb2   : > { %v6686_v29 = vpop.xlane.xlu0 %6685  ;;  %v6688_v60 = vpop.xlane.xlu1 %6687 }
 0xcb3   : > { %9730 = vpow2.f32 %v6729_v30  ;;  %v6711_v34 = vsub.f32 %v6663_v49, %v6686_v29  ;;  %v6712_v41 = vsub.f32 %v6664_v22, %v6688_v60  ;;  %v9942_v29 = vld [vmem:[%s11678_s25 + $0x18] sm:$0xff] }
 0xcb4   : > { %v9723_v54 = vpop.eup %9722  ;;  %9732 = vpow2.f32 %v6731_v12 }
 0xcb5   : > { %v6733_v18 = vmul.f32 1.442695, %v6711_v34  ;;  %v6735_v58 = vmul.f32 1.442695, %v6712_v41  ;;  %v14419_v6 = vmul.f32 %v9939_v40, %v9723_v54 }
 0xcb6   : > { %v6690_v37 = vpop.xlane.xlu0 %6689  ;;  %v6692_v15 = vpop.xlane.xlu1 %6691 }
 0xcb7   : > { %9734 = vpow2.f32 %v6733_v18  ;;  %v6713_v43 = vsub.f32 %v14380_v61, %v6690_v37  ;;  %v6714_v9 = vsub.f32 %v14384_v26, %v6692_v15  ;;  %6769 = vadd.xlane.f32.xlu0 %v14419_v6  ;;  %v9943_v15 = vld [vmem:[%s11678_s25 + $0x20] sm:$0xff] }
 0xcb8   : > { %v9725_v47 = vpop.eup %9724  ;;  %9736 = vpow2.f32 %v6735_v58 }
 0xcb9   : > { %v9727_v49 = vpop.eup %9726  ;;  %v6737_v22 = vmul.f32 1.442695, %v6713_v43  ;;  %v6739_v60 = vmul.f32 1.442695, %v6714_v9  ;;  %v14425_v20 = vmul.f32 %v9940_v53, %v9725_v47 }
 0xcba   : > { %v6694_v23 = vpop.xlane.xlu0 %6693  ;;  %v6696_v7 = vpop.xlane.xlu1 %6695  ;;  %v14428_v8 = vmul.f32 %v9941_v36, %v9727_v49  ;;  %v9944_v49 = vld [vmem:[%s11678_s25 + $0x28] sm:$0xff]  ;;  %v9945_v36 = vld [vmem:[%s11678_s25 + $0x30] sm:$0xff] }
 0xcbb   : > { %9738 = vpow2.f32 %v6737_v22  ;;  %v6715_v61 = vsub.f32 %v14390_v39, %v6694_v23  ;;  %v6716_v26 = vsub.f32 %v14394_v62, %v6696_v7  ;;  %6773 = vadd.xlane.f32.xlu0 %v14425_v20 }
 0xcbc   : > { %v9729_v48 = vpop.eup %9728  ;;  %9740 = vpow2.f32 %v6739_v60  ;;  %6771 = vadd.xlane.f32.xlu1 %v14428_v8 }
 0xcbd   : > { %v6741_v30 = vmul.f32 1.442695, %v6715_v61  ;;  %v6743_v12 = vmul.f32 1.442695, %v6716_v26  ;;  %v14435_v34 = vmul.f32 %v9942_v29, %v9729_v48  ;;  %v9946_v26 = vld [vmem:[%s11678_s25 + $0x38] sm:$0xff]  ;;  %v9948_v29 = vld [vmem:[%s11678_s25 + $0x48] sm:$0xff] }
 0xcbe   : > { %v6698_v41 = vpop.xlane.xlu0 %6697  ;;  %v6700_v54 = vpop.xlane.xlu1 %6699 }
 0xcbf   : > { %9742 = vpow2.f32 %v6741_v30  ;;  %v6717_v39 = vsub.f32 %v14400_v55, %v6698_v41  ;;  %v6718_v62 = vsub.f32 %v14404_v13, %v6700_v54  ;;  %v9947_v30 = vld [vmem:[%s11678_s25 + $0x40] sm:$0xff] }
 0xcc0   : > { %v9731_v18 = vpop.eup %9730  ;;  %9744 = vpow2.f32 %v6743_v12  ;;  %6775 = vadd.xlane.f32.xlu1 %v14435_v34 }
 0xcc1   : > { %v9733_v58 = vpop.eup %9732  ;;  %v6745_v40 = vmul.f32 1.442695, %v6717_v39  ;;  %v6747_v37 = vmul.f32 1.442695, %v6718_v62  ;;  %v14441_v43 = vmul.f32 %v9943_v15, %v9731_v18  ;;  %v9949_v62 = vld [vmem:[%s11678_s25 + $0x50] sm:$0xff] }
 0xcc2   : > { %v6702_v9 = vpop.xlane.xlu0 %6701  ;;  %v6704_v47 = vpop.xlane.xlu1 %6703  ;;  %v14444_v22 = vmul.f32 %v9944_v49, %v9733_v58  ;;  %v9950_v58 = vld [vmem:[%s11678_s25 + $0x58] sm:$0xff]  ;;  %v9952_v49 = vld [vmem:[%s11678_s25 + $0x68] sm:$0xff] }
 0xcc3   : > { %9746 = vpow2.f32 %v6745_v40  ;;  %v6719_v55 = vsub.f32 %v14410_v19, %v6702_v9  ;;  %v6720_v13 = vsub.f32 %v14414_v21, %v6704_v47  ;;  %6777 = vadd.xlane.f32.xlu0 %v14441_v43  ;;  %v9951_v9 = vld [vmem:[%s11678_s25 + $0x60] sm:$0xff] }
 0xcc4   : > { %v9735_v60 = vpop.eup %9734  ;;  %9748 = vpow2.f32 %v6747_v37  ;;  %6779 = vadd.xlane.f32.xlu1 %v14444_v22 }
 0xcc5   : > { %v9737_v53 = vpop.eup %9736  ;;  %v6749_v23 = vmul.f32 1.442695, %v6719_v55  ;;  %v6751_v7 = vmul.f32 1.442695, %v6720_v13  ;;  %v14451_v61 = vmul.f32 %v9945_v36, %v9735_v60 }
 0xcc6   : > { %v14454_v48 = vmul.f32 %v9946_v26, %v9737_v53  ;;  %v9953_v53 = vld [vmem:[%s11678_s25 + $0x70] sm:$0xff] }
 0xcc7   : > { %9750 = vpow2.f32 %v6749_v23  ;;  %6781 = vadd.xlane.f32.xlu0 %v14451_v61 }
 0xcc8   : > { %v9739_v19 = vpop.eup %9738  ;;  %9752 = vpow2.f32 %v6751_v7  ;;  %6783 = vadd.xlane.f32.xlu1 %v14454_v48  ;;  %v9954_v7 = vld [vmem:[%s11678_s25 + $0x78] sm:$0xff] }
 0xcc9   : > { %v9741_v21 = vpop.eup %9740  ;;  %v14459_v12 = vmul.f32 %v9947_v30, %v9739_v19 }
 0xcca   : > { %v14462_v41 = vmul.f32 %v9948_v29, %v9741_v21 }
 0xccb   : > { %6785 = vadd.xlane.f32.xlu0 %v14459_v12 }
 0xccc   : > { %v9743_v54 = vpop.eup %9742  ;;  %6787 = vadd.xlane.f32.xlu1 %v14462_v41 }
 0xccd   : > { %v9745_v39 = vpop.eup %9744  ;;  %v14467_v18 = vmul.f32 %v9949_v62, %v9743_v54 }
 0xcce   : > { %v14470_v40 = vmul.f32 %v9950_v58, %v9745_v39 }
 0xccf   : > { %6789 = vadd.xlane.f32.xlu0 %v14467_v18 }
 0xcd0   : > { %v9747_v37 = vpop.eup %9746  ;;  %6791 = vadd.xlane.f32.xlu1 %v14470_v40 }
 0xcd1   : > { %v9749_v15 = vpop.eup %9748  ;;  %v14475_v47 = vmul.f32 %v9951_v9, %v9747_v37 }
 0xcd2   : > { %v14478_v55 = vmul.f32 %v9952_v49, %v9749_v15 }
 0xcd3   : > { %6793 = vadd.xlane.f32.xlu0 %v14475_v47 }
 0xcd4   : > { %v9751_v13 = vpop.eup %9750  ;;  %6795 = vadd.xlane.f32.xlu1 %v14478_v55 }
 0xcd5   : > { %v9753_v60 = vpop.eup %9752  ;;  %v14483_v23 = vmul.f32 %v9953_v53, %v9751_v13 }
 0xcd6   : > { %v14486_v36 = vmul.f32 %v9954_v7, %v9753_v60 }
 0xcd7   : > { %6797 = vadd.xlane.f32.xlu0 %v14483_v23 }
 0xcd8   : > { %6799 = vadd.xlane.f32.xlu1 %v14486_v36 }
 0xce9   : > { %6899 = vrot.lane.b32.xlu1 %v14351_v24, %s10192_s29 }
 0xced   : > { %6901 = vrot.lane.b32.xlu1 %v14348_v25, %s10192_s29  ;;  %6897 = vrot.lane.b32.xlu0 %v14356_v44, %s10192_s29 }
 0xcf1   : > { %6903 = vrot.lane.b32.xlu1 %v14339_v45, %s10192_s29  ;;  %6905 = vrot.lane.b32.xlu0 %v14336_v28, %s10192_s29 }
 0xcf5   : > { %6907 = vrot.lane.b32.xlu1 %v14331_v10, %s10192_s29  ;;  %6909 = vrot.lane.b32.xlu0 %v14328_v3, %s10192_s29 }
 0xcf9   : > { %6911 = vrot.lane.b32.xlu1 %v14320_v38, %s10192_s29  ;;  %6913 = vrot.lane.b32.xlu0 %v14317_v17, %s10192_s29  ;;  %v9396_v38 = vld [vmem:[#allocation11 + $0x18] sm:$0xff]   ;;  %v9397_v17 = vld [vmem:[#allocation11 + $0x10] sm:$0xff]  }
 0xcfa   : > { %9101 = vmatprep.subr.bf16.mxu0 %v9396_v38 }
 0xcfb   : > { %9102 = vmatpush3.bf16.msra.mxu0 %v9396_v38 }
 0xcfc   : > { %9103 = vmatprep.subr.bf16.mxu0 %v9397_v17 }
 0xcfd   : > { %6915 = vrot.lane.b32.xlu1 %v14312_v1, %s10192_s29  ;;  %6917 = vrot.lane.b32.xlu0 %v14309_v35, %s10192_s29 }
 0xcff   : > { %9104 = vmatpush3.bf16.msra.mxu0 %v9397_v17 }
 0xd01   : > { %6919 = vrot.lane.b32.xlu1 %v14302_v5, %s10192_s29  ;;  %6921 = vrot.lane.b32.xlu0 %v14299_v2, %s10192_s29 }
 0xd05   : > { %6923 = vrot.lane.b32.xlu1 %v14296_v50, %s10192_s29  ;;  %6925 = vrot.lane.b32.xlu0 %v14290_v4, %s10192_s29 }
 0xd09   : > { %6927 = vrot.lane.b32.xlu1 %v14288_v56, %s10192_s29 }
 0xd40   : > { %v6770_v35 = vpop.xlane.xlu0 %6769 }
 0xd41   : > { %vm6801_vm15 = vcmp.gt.f32.partialorder %v6770_v35, 0.0 }
 0xd42   : > { %v6817_v5 = vsel %vm6801_vm15, %v6770_v35, 1.0 }
 0xd43   : > { %9754 = vrcp.f32 %v6817_v5 }
 0xd44   : > { %v6774_v1 = vpop.xlane.xlu0 %6773 }
 0xd45   : > { %vm6803_vm8 = vcmp.gt.f32.partialorder %v6774_v1, 0.0  ;;  %v6772_v2 = vpop.xlane.xlu1 %6771 }
 0xd46   : > { %vm6802_vm9 = vcmp.gt.f32.partialorder %v6772_v2, 0.0  ;;  %v6819_v50 = vsel %vm6803_vm8, %v6774_v1, 1.0 }
 0xd47   : > { %v6818_v3 = vsel %vm6802_vm9, %v6772_v2, 1.0 }
 0xd48   : > { %9756 = vrcp.f32 %v6818_v3 }
 0xd49   : > { %v6776_v4 = vpop.xlane.xlu1 %6775  ;;  %9758 = vrcp.f32 %v6819_v50 }
 0xd4a   : > { %vm6804_vm12 = vcmp.gt.f32.partialorder %v6776_v4, 0.0 }
 0xd4b   : > { %v6820_v10 = vsel %vm6804_vm12, %v6776_v4, 1.0 }
 0xd4c   : > { %9760 = vrcp.f32 %v6820_v10  ;;  %v6778_v28 = vpop.xlane.xlu0 %6777 }
 0xd4d   : > { %vm6805_vm13 = vcmp.gt.f32.partialorder %v6778_v28, 0.0  ;;  %v6780_v56 = vpop.xlane.xlu1 %6779 }
 0xd4e   : > { %v6821_v45 = vsel %vm6805_vm13, %v6778_v28, 1.0  ;;  %vm6806_vm11 = vcmp.gt.f32.partialorder %v6780_v56, 0.0 }
 0xd4f   : > { %9762 = vrcp.f32 %v6821_v45  ;;  %v6822_v25 = vsel %vm6806_vm11, %v6780_v56, 1.0 }
 0xd50   : > { %9764 = vrcp.f32 %v6822_v25  ;;  %v6782_v24 = vpop.xlane.xlu0 %6781  ;;  %v9755_v19 = vpop.eup %9754 }
 0xd51   : > { %vm6807_vm10 = vcmp.gt.f32.partialorder %v6782_v24, 0.0  ;;  %v6784_v44 = vpop.xlane.xlu1 %6783  ;;  %v6849_v62 = vmul.f32 %v9755_v19, %v14419_v6 }
 0xd52   : > { %v6823_v26 = vsel %vm6807_vm10, %v6782_v24, 1.0  ;;  %vm6808_vm0 = vcmp.gt.f32.partialorder %v6784_v44, 0.0 }
 0xd53   : > { %9766 = vrcp.f32 %v6823_v26  ;;  %v6824_v21 = vsel %vm6808_vm0, %v6784_v44, 1.0 }
 0xd54   : > { %9768 = vrcp.f32 %v6824_v21  ;;  %v6786_v30 = vpop.xlane.xlu0 %6785 }
 0xd55   : > { %v9757_v29 = vpop.eup %9756  ;;  %vm6809_vm15 = vcmp.gt.f32.partialorder %v6786_v30, 0.0  ;;  %v6788_v54 = vpop.xlane.xlu1 %6787 }
 0xd56   : > { %v6825_v39 = vsel %vm6809_vm15, %v6786_v30, 1.0  ;;  %vm6810_vm8 = vcmp.gt.f32.partialorder %v6788_v54, 0.0  ;;  %v6850_v58 = vmul.f32 %v9757_v29, %v14428_v8  ;;  %v9759_v37 = vpop.eup %9758 }
 0xd57   : > { %9770 = vrcp.f32 %v6825_v39  ;;  %v6826_v15 = vsel %vm6810_vm8, %v6788_v54, 1.0  ;;  %v6851_v53 = vmul.f32 %v9759_v37, %v14425_v20 }
 0xd58   : > { %9772 = vrcp.f32 %v6826_v15  ;;  %v6790_v9 = vpop.xlane.xlu0 %6789  ;;  %v6865_v49 = vpack.c.bf16 %v6850_v58, %v6849_v62 }
 0xd59   : > { %v9761_v13 = vpop.eup %9760  ;;  %vm6811_vm9 = vcmp.gt.f32.partialorder %v6790_v9, 0.0  ;;  %v6792_v60 = vpop.xlane.xlu1 %6791 }
 0xd5a   : > { %v6852_v7 = vmul.f32 %v9761_v13, %v14435_v34  ;;  %v6827_v38 = vsel %vm6811_vm9, %v6790_v9, 1.0  ;;  %vm6812_vm12 = vcmp.gt.f32.partialorder %v6792_v60, 0.0  ;;  %9085 = vmatprep.mubr.bf16.mxu1 %v6865_v49 }
 0xd5b   : > { %9774 = vrcp.f32 %v6827_v38  ;;  %v6828_v6 = vsel %vm6812_vm12, %v6792_v60, 1.0  ;;  %v9398_v60 = vld [vmem:[#allocation11 + $0x8] sm:$0xff]  }
 0xd5c   : > { %v9763_v17 = vpop.eup %9762  ;;  %9776 = vrcp.f32 %v6828_v6  ;;  %v6794_v8 = vpop.xlane.xlu0 %6793  ;;  %v6866_v35 = vpack.c.bf16 %v6852_v7, %v6851_v53  ;;  %9105 = vmatprep.subr.bf16.mxu0 %v9398_v60 }
 0xd5d   : > { %v9765_v5 = vpop.eup %9764  ;;  %vm6813_vm13 = vcmp.gt.f32.partialorder %v6794_v8, 0.0  ;;  %v6796_v1 = vpop.xlane.xlu1 %6795  ;;  %v6853_v2 = vmul.f32 %v9763_v17, %v14441_v43  ;;  %9106 = vmatpush3.bf16.msra.mxu0 %v9398_v60 }
 0xd5e   : > { %v6829_v50 = vsel %vm6813_vm13, %v6794_v8, 1.0  ;;  %vm6814_vm11 = vcmp.gt.f32.partialorder %v6796_v1, 0.0  ;;  %9086 = vmatmul.mubr.bf16.vlgmr.msra.gmra.mxu1 %v6866_v35  ;;  %v6854_v20 = vmul.f32 %v9765_v5, %v14444_v22 }
 0xd5f   : > { %9778 = vrcp.f32 %v6829_v50  ;;  %v6830_v34 = vsel %vm6814_vm11, %v6796_v1, 1.0 }
 0xd60   : > { %v9767_v3 = vpop.eup %9766  ;;  %9780 = vrcp.f32 %v6830_v34  ;;  %v6798_v4 = vpop.xlane.xlu0 %6797  ;;  %v6867_v10 = vpack.c.bf16 %v6854_v20, %v6853_v2 }
 0xd61   : > { %v9769_v28 = vpop.eup %9768  ;;  %vm6815_vm10 = vcmp.gt.f32.partialorder %v6798_v4, 0.0  ;;  %v6800_v56 = vpop.xlane.xlu1 %6799  ;;  %v6855_v45 = vmul.f32 %v9767_v3, %v14451_v61 }
 0xd62   : > { %v6831_v25 = vsel %vm6815_vm10, %v6798_v4, 1.0  ;;  %vm6816_vm0 = vcmp.gt.f32.partialorder %v6800_v56, 0.0  ;;  %9089 = vmatprep.mubr.bf16.mxu1 %v6867_v10  ;;  %v6856_v43 = vmul.f32 %v9769_v28, %v14454_v48 }
 0xd63   : > { %9782 = vrcp.f32 %v6831_v25  ;;  %v6832_v24 = vsel %vm6816_vm0, %v6800_v56, 1.0 }
 0xd64   : > { %v9771_v44 = vpop.eup %9770  ;;  %9784 = vrcp.f32 %v6832_v24  ;;  %v6868_v22 = vpack.c.bf16 %v6856_v43, %v6855_v45  ;;  %v6898_v7 = vpop.permute.xlu0 %6897 }
 0xd65   : > { %v9773_v26 = vpop.eup %9772  ;;  %v6857_v19 = vmul.f32 %v9771_v44, %v14459_v12 }
 0xd66   : > { %9090 = vmatmul.mubr.bf16.gmra.mxu1 %v6868_v22  ;;  %v6858_v21 = vmul.f32 %v9773_v26, %v14462_v41 }
 0xd68   : > { %v9775_v30 = vpop.eup %9774  ;;  %v6869_v29 = vpack.c.bf16 %v6858_v21, %v6857_v19  ;;  %v6906_v38 = vpop.permute.xlu0 %6905 }
 0xd69   : > { %v9777_v54 = vpop.eup %9776  ;;  %v6859_v61 = vmul.f32 %v9775_v30, %v14467_v18 }
 0xd6a   : > { %9093 = vmatprep.mubr.bf16.mxu1 %v6869_v29  ;;  %v6860_v39 = vmul.f32 %v9777_v54, %v14470_v40  ;;  %v9399_v40 = vld [vmem:[#allocation11] sm:$0xff]  }
 0xd6b   : > { %9107 = vmatprep.subr.bf16.mxu0 %v9399_v40 }
 0xd6c   : > { %v9779_v48 = vpop.eup %9778  ;;  %v6870_v62 = vpack.c.bf16 %v6860_v39, %v6859_v61  ;;  %9108 = vmatpush3.bf16.msra.mxu0 %v9399_v40  ;;  %v6910_v17 = vpop.permute.xlu0 %6909 }
 0xd6d   : > { %v9781_v58 = vpop.eup %9780  ;;  %v6861_v37 = vmul.f32 %v9779_v48, %v14475_v47  ;;  %v6900_v47 = vpop.permute.xlu1 %6899 }
 0xd6e   : > { %9094 = vmatmul.mubr.bf16.gmra.mxu1 %v6870_v62  ;;  %v6862_v15 = vmul.f32 %v9781_v58, %v14478_v55 }
 0xd70   : > { %v9783_v12 = vpop.eup %9782  ;;  %v6871_v9 = vpack.c.bf16 %v6862_v15, %v6861_v37  ;;  %v6914_v3 = vpop.permute.xlu0 %6913 }
 0xd71   : > { %v9785_v49 = vpop.eup %9784  ;;  %v6863_v41 = vmul.f32 %v9783_v12, %v14483_v23  ;;  %v6902_v53 = vpop.permute.xlu1 %6901 }
 0xd72   : > { %9097 = vmatprep.mubr.bf16.mxu1 %v6871_v9  ;;  %v6864_v13 = vmul.f32 %v9785_v49, %v14486_v36 }
 0xd74   : > { %v6872_v18 = vpack.c.bf16 %v6864_v13, %v6863_v41  ;;  %v6918_v21 = vpop.permute.xlu0 %6917 }
 0xd75   : > { %v6904_v55 = vpop.permute.xlu1 %6903 }
 0xd76   : > { %9098 = vmatmul.mubr.bf16.gmra.mxu1 %v6872_v18 }
 0xd78   : > { %v6922_v41 = vpop.permute.xlu0 %6921 }
 0xd79   : > { %v6908_v6 = vpop.permute.xlu1 %6907 }
 0xd7d   : > { %v6912_v2 = vpop.permute.xlu1 %6911 }
 0xd81   : > { %v6916_v22 = vpop.permute.xlu1 %6915 }
 0xd85   : > { %v6920_v12 = vpop.permute.xlu1 %6919 }
 0xe1e   : > { %v9087_v8 = vpop.f32.mrf.mxu1 }
 0xe1f   : > { %v14538_v23 = vadd.f32 %v9087_v8, %v6902_v53  ;;  %v6924_v8 = vpop.permute.xlu1 %6923 }
 0xe20   : > { %v6979_v35 = vpop.f32.mrf.mxu1 }
 0xe21   : > { %v7060_v36 = vmin.f32 %v14538_v23, 0.0  ;;  %v14541_v5 = vadd.f32 %v6979_v35, %v6898_v7  ;;  %vm7044_vm15 = vcmp.gt.f32.partialorder %v14538_v23, 0.0 }
 0xe22   : > { %v9088_v1 = vpop.f32.mrf.mxu1 }
 0xe23   : > { %v7078_v50 = vmul.f32 1.442695, %v7060_v36  ;;  %v7058_v20 = vmin.f32 %v14541_v5, 0.0  ;;  %v14544_v34 = vadd.f32 %v9088_v1, %v6904_v55  ;;  %vm7042_vm9 = vcmp.gt.f32.partialorder %v14541_v5, 0.0 }
 0xe24   : > { %v6982_v4 = vpop.f32.mrf.mxu1 }
 0xe25   : > { %v7074_v10 = vmul.f32 1.442695, %v7058_v20  ;;  %v7061_v28 = vmin.f32 %v14544_v34, 0.0  ;;  %v14547_v56 = vadd.f32 %v6982_v4, %v6900_v47  ;;  %9786 = vpow2.f32 %v7078_v50 }
 0xe26   : > { %v9091_v45 = vpop.f32.mrf.mxu1  ;;  %vm7045_vm8 = vcmp.gt.f32.partialorder %v14544_v34, 0.0 }
 0xe27   : > { %v7080_v25 = vmul.f32 1.442695, %v7061_v28  ;;  %v14549_v43 = vadd.f32 %v9091_v45, %v6910_v17  ;;  %9788 = vpow2.f32 %v7074_v10  ;;  %v7059_v24 = vmin.f32 %v14547_v56, 0.0 }
 0xe28   : > { %v6995_v44 = vpop.f32.mrf.mxu1  ;;  %vm7043_vm12 = vcmp.gt.f32.partialorder %v14547_v56, 0.0 }
 0xe29   : > { %9790 = vpow2.f32 %v7080_v25  ;;  %v7064_v26 = vmin.f32 %v14549_v43, 0.0  ;;  %v14553_v19 = vadd.f32 %v6995_v44, %v6906_v38  ;;  %v7076_v30 = vmul.f32 1.442695, %v7059_v24 }
 0xe2a   : > { %v9092_v29 = vpop.f32.mrf.mxu1  ;;  %vm7048_vm0 = vcmp.gt.f32.partialorder %v14549_v43, 0.0 }
 0xe2b   : > { %v7086_v54 = vmul.f32 1.442695, %v7064_v26  ;;  %v7062_v61 = vmin.f32 %v14553_v19, 0.0  ;;  %v14556_v39 = vadd.f32 %v9092_v29, %v6912_v2  ;;  %9792 = vpow2.f32 %v7076_v30  ;;  %v6926_v2 = vpop.permute.xlu0 %6925 }
 0xe2c   : > { %v6998_v48 = vpop.f32.mrf.mxu1  ;;  %vm7046_vm11 = vcmp.gt.f32.partialorder %v14553_v19, 0.0 }
 0xe2d   : > { %v7082_v62 = vmul.f32 1.442695, %v7062_v61  ;;  %v7065_v58 = vmin.f32 %v14556_v39, 0.0  ;;  %v14559_v37 = vadd.f32 %v6998_v48, %v6908_v6  ;;  %9794 = vpow2.f32 %v7086_v54  ;;  %v6928_v61 = vpop.permute.xlu1 %6927 }
 0xe2e   : > { %v9095_v15 = vpop.f32.mrf.mxu1  ;;  %vm7049_vm13 = vcmp.gt.f32.partialorder %v14556_v39, 0.0 }
 0xe2f   : > { %v7088_v9 = vmul.f32 1.442695, %v7065_v58  ;;  %v14561_v49 = vadd.f32 %v9095_v15, %v6918_v21  ;;  %9796 = vpow2.f32 %v7082_v62  ;;  %v7063_v13 = vmin.f32 %v14559_v37, 0.0 }
 0xe30   : > { %v7011_v18 = vpop.f32.mrf.mxu1  ;;  %vm7047_vm10 = vcmp.gt.f32.partialorder %v14559_v37, 0.0 }
 0xe31   : > { %9798 = vpow2.f32 %v7088_v9  ;;  %v7068_v60 = vmin.f32 %v14561_v49, 0.0  ;;  %v14565_v40 = vadd.f32 %v7011_v18, %v6914_v3  ;;  %v7084_v47 = vmul.f32 1.442695, %v7063_v13 }
 0xe32   : > { %v9096_v53 = vpop.f32.mrf.mxu1  ;;  %v9787_v55 = vpop.eup %9786 }
 0xe33   : > { %v7066_v7 = vmin.f32 %v14565_v40, 0.0  ;;  %9800 = vpow2.f32 %v7084_v47  ;;  %v14568_v38 = vadd.f32 %v9096_v53, %v6920_v12  ;;  %v7094_v35 = vmul.f32 1.442695, %v7068_v60 }
 0xe34   : > { %v7014_v6 = vpop.f32.mrf.mxu1  ;;  %v9789_v17 = vpop.eup %9788  ;;  %v8879_v26 = vadd.f32 -1.0, %v9787_v55 }
 0xe35   : > { %v7090_v36 = vmul.f32 1.442695, %v7066_v7  ;;  %v7069_v50 = vmin.f32 %v14568_v38, 0.0  ;;  %v14571_v20 = vadd.f32 %v7014_v6, %v6916_v22  ;;  %v8877_v28 = vadd.f32 -1.0, %v9789_v17 }
 0xe36   : > { %v9791_v1 = vpop.eup %9790  ;;  %v9099_v3 = vpop.f32.mrf.mxu1  ;;  %v7124_v18 = vsel %vm7044_vm15, %v14538_v23, %v8879_v26  ;;  %vm7053_vm15 = vcmp.gt.f32.partialorder %v14568_v38, 0.0 }
 0xe37   : > { %v8880_v4 = vadd.f32 -1.0, %v9791_v1  ;;  %v14574_v10 = vadd.f32 %v9099_v3, %v6926_v2  ;;  %9802 = vpow2.f32 %v7090_v36  ;;  %v7096_v45 = vmul.f32 1.442695, %v7069_v50 }
 0xe38   : > { %v7067_v25 = vmin.f32 %v14571_v20, 0.0  ;;  %v7027_v24 = vpop.f32.mrf.mxu1  ;;  %v9793_v44 = vpop.eup %9792  ;;  %9804 = vpow2.f32 %v7094_v35  ;;  %v7122_v15 = vsel %vm7042_vm9, %v14541_v5, %v8877_v28  ;;  %vm7051_vm9 = vcmp.gt.f32.partialorder %v14571_v20, 0.0 }
 0xe39   : > { %v7072_v21 = vmin.f32 %v14574_v10, 0.0  ;;  %v14578_v30 = vadd.f32 %v7027_v24, %v6922_v41  ;;  %v8878_v22 = vadd.f32 -1.0, %v9793_v44  ;;  %9806 = vpow2.f32 %v7096_v45 }
 0xe3a   : > { %v7092_v29 = vmul.f32 1.442695, %v7067_v25  ;;  %v9100_v54 = vpop.f32.mrf.mxu1  ;;  %v7125_v48 = vsel %vm7045_vm8, %v14544_v34, %v8880_v4  ;;  %v9795_v58 = vpop.eup %9794  ;;  %vm7050_vm8 = vcmp.gt.f32.partialorder %v14565_v40, 0.0 }
 0xe3b   : > { %v7070_v62 = vmin.f32 %v14578_v30, 0.0  ;;  %v7123_v12 = vsel %vm7043_vm12, %v14547_v56, %v8878_v22  ;;  %v14587_v9 = vadd.f32 %v9100_v54, %v6928_v61  ;;  %v7102_v34 = vmul.f32 1.442695, %v7072_v21 }
 0xe3c   : > { %9808 = vpow2.f32 %v7092_v29  ;;  %v7030_v41 = vpop.f32.mrf.mxu1  ;;  %v9797_v13 = vpop.eup %9796  ;;  %v7138_v60 = vpack.c.bf16 %v7123_v12, %v7122_v15  ;;  %v7139_v53 = vpack.c.bf16 %v7125_v48, %v7124_v18  ;;  %v8883_v1 = vadd.f32 -1.0, %v9795_v58 }
 0xe3d   : > { %v7098_v7 = vmul.f32 1.442695, %v7070_v62  ;;  %v7073_v55 = vmin.f32 %v14587_v9, 0.0  ;;  %v7031_v6 = vadd.f32 %v7030_v41, %v6924_v8  ;;  %v8881_v56 = vadd.f32 -1.0, %v9797_v13 }
 0xe3e   : > { %v9799_v47 = vpop.eup %9798  ;;  %9109 = vmatprep.mubr.msk.bf16.mxu0 %vm6495_vm14, %v7138_v60  ;;  %v7128_v28 = vsel %vm7048_vm0, %v14549_v43, %v8883_v1  ;;  %vm7052_vm12 = vcmp.gt.f32.partialorder %v14561_v49, 0.0  ;;  %vm7056_vm0 = vcmp.gt.f32.partialorder %v14574_v10, 0.0 }
 0xe3f   : > { %v8884_v5 = vadd.f32 -1.0, %v9799_v47  ;;  %9810 = vpow2.f32 %v7098_v7  ;;  %v7104_v17 = vmul.f32 1.442695, %v7073_v55  ;;  %v7071_v35 = vmin.f32 %v7031_v6, 0.0  ;;  %9110 = vmatmul.mubr.msk.bf16.vlgmr.msra.gmra.mxu0 %vm6495_vm14, %v7139_v53 }
 0xe40   : > { %v9801_v36 = vpop.eup %9800  ;;  %9812 = vpow2.f32 %v7102_v34  ;;  %v7126_v50 = vsel %vm7046_vm11, %v14553_v19, %v8881_v56  ;;  %vm7054_vm11 = vcmp.gt.f32.partialorder %v14578_v30, 0.0 }
 0xe41   : > { %v8882_v23 = vadd.f32 -1.0, %v9801_v36  ;;  %9814 = vpow2.f32 %v7104_v17  ;;  %v7100_v2 = vmul.f32 1.442695, %v7071_v35  ;;  %v7129_v8 = vsel %vm7049_vm13, %v14556_v39, %v8884_v5  ;;  %v8893_v5 = vld [vmem:[#allocation13] ss:$0 sm:$0xff] }
 0xe42   : > { %v7141_v24 = vpack.c.bf16 %v7129_v8, %v7128_v28  ;;  %vm7057_vm13 = vcmp.gt.f32.partialorder %v14587_v9, 0.0 }
 0xe43   : > { %v7127_v3 = vsel %vm7047_vm10, %v14559_v37, %v8882_v23  ;;  %9816 = vpow2.f32 %v7100_v2  ;;  %vm7055_vm10 = vcmp.gt.f32.partialorder %v7031_v6, 0.0 }
 0xe44   : > { %v9803_v4 = vpop.eup %9802  ;;  %v7140_v45 = vpack.c.bf16 %v7127_v3, %v7126_v50 }
 0xe45   : > { %v9805_v25 = vpop.eup %9804  ;;  %v8885_v26 = vadd.f32 -1.0, %v9803_v4 }
 0xe46   : > { %v9807_v44 = vpop.eup %9806  ;;  %9113 = vmatprep.mubr.msk.bf16.mxu0 %vm6495_vm14, %v7140_v45  ;;  %v8887_v22 = vadd.f32 -1.0, %v9805_v25 }
 0xe47   : > { %v8888_v39 = vadd.f32 -1.0, %v9807_v44  ;;  %9114 = vmatmul.mubr.msk.bf16.gmra.mxu0 %vm6495_vm14, %v7141_v24  ;;  %v7130_v43 = vsel %vm7050_vm8, %v14565_v40, %v8885_v26 }
 0xe48   : > { %v7132_v61 = vsel %vm7052_vm12, %v14561_v49, %v8887_v22 }
 0xe49   : > { %v9809_v21 = vpop.eup %9808  ;;  %v7133_v37 = vsel %vm7053_vm15, %v14568_v38, %v8888_v39  ;;  %vm7338_vm15 = vcmask 261120  }
 0xe4a   : > { %v8886_v19 = vadd.f32 -1.0, %v9809_v21  ;;  %v7143_v58 = vpack.c.bf16 %v7133_v37, %v7132_v61 }
 0xe4c   : > { %v7131_v29 = vsel %vm7051_vm9, %v14571_v20, %v8886_v19  ;;  %v9811_v54 = vpop.eup %9810 }
 0xe4d   : > { %v7142_v48 = vpack.c.bf16 %v7131_v29, %v7130_v43  ;;  %v9813_v62 = vpop.eup %9812  ;;  %v8889_v12 = vadd.f32 -1.0, %v9811_v54 }
 0xe4e   : > { %v9815_v15 = vpop.eup %9814  ;;  %v8891_v13 = vadd.f32 -1.0, %v9813_v62 }
 0xe4f   : > { %9117 = vmatprep.mubr.msk.bf16.mxu0 %vm6495_vm14, %v7142_v48  ;;  %v8892_v41 = vadd.f32 -1.0, %v9815_v15  ;;  %v7134_v49 = vsel %vm7054_vm11, %v14578_v30, %v8889_v12 }
 0xe50   : > { %9118 = vmatmul.mubr.msk.bf16.gmra.mxu0 %vm6495_vm14, %v7143_v58  ;;  %v9817_v38 = vpop.eup %9816  ;;  %v7136_v60 = vsel %vm7056_vm0, %v14574_v10, %v8891_v13 }
 0xe51   : > { %v8890_v40 = vadd.f32 -1.0, %v9817_v38  ;;  %v7137_v20 = vsel %vm7057_vm13, %v14587_v9, %v8892_v41 }
 0xe52   : > { %v7145_v47 = vpack.c.bf16 %v7137_v20, %v7136_v60 }
 0xe53   : > { %v7135_v18 = vsel %vm7055_vm10, %v7031_v6, %v8890_v40 }
 0xe54   : > { %v7144_v34 = vpack.c.bf16 %v7135_v18, %v7134_v49 }
 0xe56   : > { %9121 = vmatprep.mubr.msk.bf16.mxu0 %vm6495_vm14, %v7144_v34 }
 0xe58   : > { %9122 = vmatmul.mubr.msk.bf16.gmra.mxu0 %vm6495_vm14, %v7145_v47  ;;  %vm16056_vm14 = vcmp.gt.f32.partialorder %v16041_v42, 0.0 }
 0xeff   : > { %v9111_v53 = vpop.f32.mrf.mxu0 }
 0xf00   : > { %v14683_v12 = vadd.f32 %v9111_v53, %v8893_v5 }
 0xf01   : > { %v7243_v7 = vpop.f32.mrf.mxu0 }
 0xf02   : > { %v14623_v9 = vadd.f32 %v8893_v5, %v7243_v7 }
 0xf03   : > { %v9112_v55 = vpop.f32.mrf.mxu0 }
 0xf04   : > { %v14674_v62 = vadd.f32 %v9112_v55, %v8893_v5 }
 0xf05   : > { %v7246_v56 = vpop.f32.mrf.mxu0 }
 0xf06   : > { %v14625_v17 = vadd.f32 %v8893_v5, %v7246_v56  ;;  %v14692_v38 = vpack.c.bf16 %v14674_v62, %v14683_v12 }
 0xf07   : > { %v9115_v35 = vpop.f32.mrf.mxu0 }
 0xf08   : > { %v14629_v10 = vpack.c.bf16 %v14625_v17, %v14623_v9  ;;  %v14665_v54 = vadd.f32 %v9115_v35, %v8893_v5 }
 0xf09   : > { %v7259_v30 = vpop.f32.mrf.mxu0 }
 0xf0a   : > { %9141 = vmatprep.mubr.msk.bf16.mxu1 %vm7338_vm15, %v14629_v10  ;;  %v14676_v58 = vadd.f32 %v8893_v5, %v7259_v30 }
 0xf0b   : > { %v9116_v6 = vpop.f32.mrf.mxu0 }
 0xf0c   : > { %v14656_v37 = vadd.f32 %v9116_v6, %v8893_v5 }
 0xf0d   : > { %v7262_v36 = vpop.f32.mrf.mxu0 }
 0xf0e   : > { %v14667_v61 = vadd.f32 %v8893_v5, %v7262_v36  ;;  %v14680_v15 = vpack.c.bf16 %v14656_v37, %v14665_v54 }
 0xf10   : > { %v9119_v1 = vpop.f32.mrf.mxu0  ;;  %v14687_v41 = vpack.c.bf16 %v14667_v61, %v14676_v58 }
 0xf11   : > { %v14647_v21 = vadd.f32 %v9119_v1, %v8893_v5 }
 0xf12   : > { %v7275_v23 = vpop.f32.mrf.mxu0 }
 0xf13   : > { %v14658_v43 = vadd.f32 %v8893_v5, %v7275_v23 }
 0xf14   : > { %v9120_v2 = vpop.f32.mrf.mxu0 }
 0xf15   : > { %v14637_v24 = vadd.f32 %v9120_v2, %v8893_v5 }
 0xf16   : > { %v7278_v8 = vpop.f32.mrf.mxu0 }
 0xf17   : > { %v14649_v22 = vadd.f32 %v8893_v5, %v7278_v8  ;;  %v14662_v29 = vpack.c.bf16 %v14637_v24, %v14647_v21 }
 0xf18   : > { %v9123_v50 = vpop.f32.mrf.mxu0 }
 0xf19   : > { %v14633_v28 = vadd.f32 %v9123_v50, %v8893_v5  ;;  %v14671_v48 = vpack.c.bf16 %v14649_v22, %v14658_v43 }
 0xf1a   : > { %v7291_v3 = vpop.f32.mrf.mxu0 }
 0xf1b   : > { %v14639_v44 = vadd.f32 %v8893_v5, %v7291_v3 }
 0xf1c   : > { %v9124_v4 = vpop.f32.mrf.mxu0 }
 0xf1d   : > { %v14635_v45 = vadd.f32 %v9124_v4, %v8893_v5 }
 0xf1e   : > { %v7294_v25 = vpop.f32.mrf.mxu0 }
 0xf1f   : > { %v14643_v26 = vpack.c.bf16 %v14635_v45, %v14633_v28  ;;  %v14645_v39 = vadd.f32 %v8893_v5, %v7294_v25 }
 0xf21   : > { %v14653_v19 = vpack.c.bf16 %v14645_v39, %v14639_v44  ;;  %7336 = vrot.lane.b32.xlu0 %v14643_v26, %s10193_s24 }
 0xf23   : > { %7334 = vrot.lane.b32.xlu1 %v14653_v19, %s10193_s24 }
 0xf25   : > { %7332 = vrot.lane.b32.xlu0 %v14662_v29, %s10193_s24 }
 0xf27   : > { %7330 = vrot.lane.b32.xlu1 %v14671_v48, %s10193_s24 }
 0xf29   : > { %7328 = vrot.lane.b32.xlu0 %v14680_v15, %s10193_s24 }
 0xf2b   : > { %7326 = vrot.lane.b32.xlu1 %v14687_v41, %s10193_s24 }
 0xf2d   : > { %7324 = vrot.lane.b32.xlu0 %v14692_v38, %s10193_s24 }
 0xf2f   : > { %7322 = vrot.lane.b32.xlu1 %v14629_v10, %s10193_s24 }
 0xf31   : > { %7730 = vrot.lane.b32.xlu0 %v14643_v26, %s10192_s29 }
 0xf33   : > { %7724 = vrot.lane.b32.xlu1 %v14671_v48, %s10192_s29 }
 0xf35   : > { %7726 = vrot.lane.b32.xlu0 %v14662_v29, %s10192_s29 }
 0xf37   : > { %7728 = vrot.lane.b32.xlu1 %v14653_v19, %s10192_s29 }
 0xf93   : > { %v7337_v13 = vpop.permute.xlu0 %7336 }
 0xf94   : > { %v7385_v40 = vsel %vm7338_vm15, %v7337_v13, 0  ;;  %9247 = vmatprep.subr.msk.bf16.mxu1 %vm7338_vm15, %v7337_v13 }
 0xf95   : > { %9126 = vmatpush3.bf16.xpose.msra.mxu1 %v7385_v40  ;;  %v7335_v20 = vpop.permute.xlu1 %7334 }
 0xf96   : > { %9248 = vmatprep.subr.msk.bf16.mxu1 %vm7338_vm15, %v7335_v20  ;;  %v7382_v34 = vsel %vm7338_vm15, %v7335_v20, 0 }
 0xf97   : > { %v7333_v49 = vpop.permute.xlu0 %7332 }
 0xf98   : > { %v7379_v5 = vsel %vm7338_vm15, %v7333_v49, 0 }
 0xf99   : > { %v7331_v18 = vpop.permute.xlu1 %7330 }
 0xf9a   : > { %v7376_v6 = vsel %vm7338_vm15, %v7331_v18, 0 }
 0xf9b   : > { %v7329_v60 = vpop.permute.xlu0 %7328 }
 0xf9c   : > { %v7373_v36 = vsel %vm7338_vm15, %v7329_v60, 0 }
 0xf9d   : > { %9128 = vmatpush3.bf16.xpose.msra.mxu1 %v7382_v34  ;;  %v7327_v47 = vpop.permute.xlu1 %7326 }
 0xf9e   : > { %9249 = vmatprep.subr.msk.bf16.mxu1 %vm7338_vm15, %v7333_v49  ;;  %v7370_v1 = vsel %vm7338_vm15, %v7327_v47, 0 }
 0xf9f   : > { %v7325_v53 = vpop.permute.xlu0 %7324 }
 0xfa0   : > { %v7367_v23 = vsel %vm7338_vm15, %v7325_v53, 0 }
 0xfa1   : > { %v7323_v7 = vpop.permute.xlu1 %7322 }
 0xfa2   : > { %v7364_v2 = vsel %vm7338_vm15, %v7323_v7, 0 }
 0xfa3   : > { %v7731_v55 = vpop.permute.xlu0 %7730 }
 0xfa4   : > { %9157 = vmatprep.subr.bf16.mxu0 %v7731_v55 }
 0xfa5   : > { %9130 = vmatpush3.bf16.xpose.msra.mxu1 %v7379_v5  ;;  %9158 = vmatpush3.bf16.msra.mxu0 %v7731_v55  ;;  %v7725_v56 = vpop.permute.xlu1 %7724 }
 0xfa6   : > { %9250 = vmatprep.subr.msk.bf16.mxu1 %vm7338_vm15, %v7331_v18 }
 0xfa7   : > { %v7727_v30 = vpop.permute.xlu0 %7726 }
 0xfa9   : > { %v7729_v35 = vpop.permute.xlu1 %7728 }
 0xfaa   : > { %9159 = vmatprep.subr.bf16.mxu0 %v7729_v35 }
 0xfab   : > { %9160 = vmatpush3.bf16.msra.mxu0 %v7729_v35 }
 0xfac   : > { %9161 = vmatprep.subr.bf16.mxu0 %v7727_v30 }
 0xfad   : > { %9132 = vmatpush3.bf16.xpose.msra.mxu1 %v7376_v6 }
 0xfae   : > { %9251 = vmatprep.subr.msk.bf16.mxu1 %vm7338_vm15, %v7329_v60 }
 0xfaf   : > { %9162 = vmatpush3.bf16.msra.mxu0 %v7727_v30 }
 0xfb0   : > { %9163 = vmatprep.subr.bf16.mxu0 %v7725_v56 }
 0xfb3   : > { %9164 = vmatpush3.bf16.msra.mxu0 %v7725_v56 }
 0xfb5   : > { %9134 = vmatpush3.bf16.xpose.msra.mxu1 %v7373_v36 }
 0xfb6   : > { %9252 = vmatprep.subr.msk.bf16.mxu1 %vm7338_vm15, %v7327_v47 }
 0xfbd   : > { %9136 = vmatpush3.bf16.xpose.msra.mxu1 %v7370_v1 }
 0xfbe   : > { %9253 = vmatprep.subr.msk.bf16.mxu1 %vm7338_vm15, %v7325_v53 }
 0xfc5   : > { %9138 = vmatpush3.bf16.xpose.msra.mxu1 %v7367_v23 }
 0xfc6   : > { %9254 = vmatprep.subr.msk.bf16.mxu1 %vm7338_vm15, %v7323_v7 }
 0xfcd   : > { %9140 = vmatpush3.bf16.xpose.msra.mxu1 %v7364_v2 }
 0xfd4   : > { %9142 = vmatmul.mubr.msk.bf16.vlgmr.msra.gmra.mxu1 %vm7338_vm15, %v14692_v38 }
 0xfd5   : > { %9145 = vmatprep.mubr.msk.bf16.mxu1 %vm7338_vm15, %v14687_v41 }
 0xfdc   : > { %9146 = vmatmul.mubr.msk.bf16.gmra.mxu1 %vm7338_vm15, %v14680_v15 }
 0xfdd   : > { %9149 = vmatprep.mubr.msk.bf16.mxu1 %vm7338_vm15, %v14671_v48 }
 0xfe4   : > { %9150 = vmatmul.mubr.msk.bf16.gmra.mxu1 %vm7338_vm15, %v14662_v29 }
 0xfe5   : > { %9153 = vmatprep.mubr.msk.bf16.mxu1 %vm7338_vm15, %v14653_v19 }
 0xfec   : > { %9154 = vmatmul.mubr.msk.bf16.gmra.mxu1 %vm7338_vm15, %v14643_v26 }
0x1094   : > { %v9143_v8 = vpop.f32.mrf.mxu1 }
0x1095   : > { %v7486_v50 = vmul.f32 0.17677669, %v9143_v8 }
0x1096   : > { %v7421_v3 = vpop.f32.mrf.mxu1 }
0x1097   : > { %v7484_v4 = vmul.f32 0.17677669, %v7421_v3  ;;  %v14737_v25 = vsel %vm2062_vm3, %v7486_v50, -1e+30  ;;  %vm16051_vm3 = vcmp.gt.f32.partialorder %v16039_v31, 0.0 }
0x1098   : > { %7520 = vmax.xlane.f32.xlu0 %v14737_v25  ;;  %v9144_v48 = vpop.f32.mrf.mxu1 }
0x1099   : > { %v7487_v40 = vmul.f32 0.17677669, %v9144_v48  ;;  %v14742_v19 = vsel %vm2060_vm1, %v7484_v4, -1e+30  ;;  %vm16049_vm1 = vcmp.gt.f32.partialorder %v16031_v33, 0.0 }
0x109a   : > { %v7424_v13 = vpop.f32.mrf.mxu1 }
0x109b   : > { %v7485_v29 = vmul.f32 0.17677669, %v7424_v13  ;;  %v7503_v18 = vsel %vm2063_vm4, %v7487_v40, -1e+30  ;;  %vm16052_vm4 = vcmp.gt.f32.partialorder %v16033_v57, 0.0  ;;  %v16057_v40 = vld [vmem:[#allocation106_spill] sm:$0xff] }
0x109c   : > { %7516 = vmax.xlane.f32.xlu0 %v14742_v19  ;;  %v9147_v26 = vpop.f32.mrf.mxu1  ;;  %vm16058_vm8 = vcmp.gt.f32.partialorder %v16057_v40, 0.0 }
0x109d   : > { %v14747_v20 = vsel %vm2061_vm2, %v7485_v29, -1e+30  ;;  %v7490_v49 = vmul.f32 0.17677669, %v9147_v26  ;;  %vm16050_vm2 = vcmp.gt.f32.partialorder %v16037_v52, 0.0 }
0x109e   : > { %7518 = vmax.xlane.f32.xlu1 %v14747_v20  ;;  %v7437_v11 = vpop.f32.mrf.mxu1 }
0x109f   : > { %v7488_v46 = vmul.f32 0.17677669, %v7437_v11  ;;  %v7506_v7 = vsel %vm2066_vm7, %v7490_v49, -1e+30  ;;  %vm16055_vm7 = vcmp.gt.f32.partialorder %v16047_v16, 0.0 }
0x10a0   : > { %7522 = vmax.xlane.f32.xlu0 %v7503_v18  ;;  %v9148_v60 = vpop.f32.mrf.mxu1 }
0x10a1   : > { %v7491_v34 = vmul.f32 0.17677669, %v9148_v60  ;;  %v14761_v56 = vsel %vm2064_vm5, %v7488_v46, -1e+30  ;;  %vm16053_vm5 = vcmp.gt.f32.partialorder %v16035_v32, 0.0 }
0x10a2   : > { %v7440_v47 = vpop.f32.mrf.mxu1 }
0x10a3   : > { %v7489_v53 = vmul.f32 0.17677669, %v7440_v47  ;;  %v14756_v59 = vsel %vm16049_vm1, %v7491_v34, -1e+30 }
0x10a4   : > { %7528 = vmax.xlane.f32.xlu0 %v7506_v7  ;;  %7530 = vmax.xlane.f32.xlu1 %v14756_v59  ;;  %v9151_v55 = vpop.f32.mrf.mxu1 }
0x10a5   : > { %v7494_v63 = vmul.f32 0.17677669, %v9151_v55  ;;  %v14765_v35 = vsel %vm2065_vm6, %v7489_v53, -1e+30  ;;  %vm16054_vm6 = vcmp.gt.f32.partialorder %v16045_v14, 0.0 }
0x10a6   : > { %v7453_v5 = vpop.f32.mrf.mxu1 }
0x10a7   : > { %v7492_v30 = vmul.f32 0.17677669, %v7453_v5  ;;  %v14771_v1 = vsel %vm16050_vm2, %v7494_v63, -1e+30 }
0x10a8   : > { %7524 = vmax.xlane.f32.xlu0 %v14761_v56  ;;  %7526 = vmax.xlane.f32.xlu1 %v14765_v35  ;;  %v9152_v0 = vpop.f32.mrf.mxu1 }
0x10a9   : > { %v7495_v33 = vmul.f32 0.17677669, %v9152_v0  ;;  %v14781_v8 = vsel %vm16052_vm4, %v7492_v30, -1e+30 }
0x10aa   : > { %v7456_v6 = vpop.f32.mrf.mxu1 }
0x10ab   : > { %v7493_v36 = vmul.f32 0.17677669, %v7456_v6  ;;  %v14775_v27 = vsel %vm16051_vm3, %v7495_v33, -1e+30 }
0x10ac   : > { %7536 = vmax.xlane.f32.xlu0 %v14771_v1  ;;  %7538 = vmax.xlane.f32.xlu1 %v14775_v27  ;;  %v9155_v51 = vpop.f32.mrf.mxu1 }
0x10ad   : > { %v7498_v2 = vmul.f32 0.17677669, %v9155_v51  ;;  %v14785_v52 = vsel %vm16053_vm5, %v7493_v36, -1e+30  ;;  %v9955_v51 = vld [vmem:[%s11678_s25 + $0x10] sm:$0xff] }
0x10ae   : > { %v7469_v23 = vpop.f32.mrf.mxu1 }
0x10af   : > { %v7496_v3 = vmul.f32 0.17677669, %v7469_v23  ;;  %v14791_v13 = vsel %vm16054_vm6, %v7498_v2, -1e+30 }
0x10b0   : > { %7532 = vmax.xlane.f32.xlu0 %v14781_v8  ;;  %7534 = vmax.xlane.f32.xlu1 %v14785_v52  ;;  %v9156_v31 = vpop.f32.mrf.mxu1 }
0x10b1   : > { %v7499_v50 = vmul.f32 0.17677669, %v9156_v31  ;;  %v14801_v32 = vsel %vm16056_vm14, %v7496_v3, -1e+30 }
0x10b2   : > { %v7472_v4 = vpop.f32.mrf.mxu1 }
0x10b3   : > { %v7497_v48 = vmul.f32 0.17677669, %v7472_v4  ;;  %v14795_v57 = vsel %vm16055_vm7, %v7499_v50, -1e+30  ;;  %v9956_v50 = vld [vmem:[%s11678_s25] sm:$0xff] }
0x10b4   : > { %7544 = vmax.xlane.f32.xlu0 %v14791_v13  ;;  %7546 = vmax.xlane.f32.xlu1 %v14795_v57 }
0x10b5   : > { %v14805_v29 = vsel %vm16058_vm8, %v7497_v48, -1e+30 }
0x10b8   : > { %7540 = vmax.xlane.f32.xlu0 %v14801_v32  ;;  %7542 = vmax.xlane.f32.xlu1 %v14805_v29 }
0x10c9   : > { %7720 = vrot.lane.b32.xlu1 %v14687_v41, %s10192_s29 }
0x10ce   : > { %7722 = vrot.lane.b32.xlu0 %v14680_v15, %s10192_s29 }
0x1121   : > { %v7521_v14 = vpop.xlane.xlu0 %7520 }
0x1122   : > { %v7550_v16 = vsub.f32 %v14737_v25, %v7521_v14 }
0x1124   : > { %v7568_v42 = vmul.f32 1.442695, %v7550_v16 }
0x1125   : > { %v7517_v26 = vpop.xlane.xlu0 %7516 }
0x1126   : > { %9818 = vpow2.f32 %v7568_v42  ;;  %v7548_v11 = vsub.f32 %v14742_v19, %v7517_v26 }
0x1127   : > { %v7519_v49 = vpop.xlane.xlu1 %7518 }
0x1128   : > { %v7564_v60 = vmul.f32 1.442695, %v7548_v11  ;;  %v7549_v34 = vsub.f32 %v14747_v20, %v7519_v49 }
0x1129   : > { %v7523_v46 = vpop.xlane.xlu0 %7522 }
0x112a   : > { %9820 = vpow2.f32 %v7564_v60  ;;  %v7551_v47 = vsub.f32 %v7503_v18, %v7523_v46  ;;  %v7566_v53 = vmul.f32 1.442695, %v7549_v34 }
0x112c   : > { %v7570_v41 = vmul.f32 1.442695, %v7551_v47 }
0x112d   : > { %v7529_v55 = vpop.xlane.xlu0 %7528  ;;  %v7531_v15 = vpop.xlane.xlu1 %7530 }
0x112e   : > { %9822 = vpow2.f32 %v7570_v41  ;;  %v7554_v5 = vsub.f32 %v7506_v7, %v7529_v55  ;;  %v7555_v63 = vsub.f32 %v14756_v59, %v7531_v15  ;;  %v9959_v55 = vld [vmem:[%s11678_s25 + $0x30] sm:$0xff] }
0x112f   : > { %9824 = vpow2.f32 %v7566_v53 }
0x1130   : > { %v7576_v25 = vmul.f32 1.442695, %v7554_v5  ;;  %v7578_v18 = vmul.f32 1.442695, %v7555_v63 }
0x1131   : > { %v7525_v0 = vpop.xlane.xlu0 %7524  ;;  %v7527_v19 = vpop.xlane.xlu1 %7526 }
0x1132   : > { %9826 = vpow2.f32 %v7576_v25  ;;  %v7552_v33 = vsub.f32 %v14761_v56, %v7525_v0  ;;  %v7553_v20 = vsub.f32 %v14765_v35, %v7527_v19 }
0x1133   : > { %v9819_v30 = vpop.eup %9818 }
0x1134   : > { %v7572_v6 = vmul.f32 1.442695, %v7552_v33  ;;  %v7574_v36 = vmul.f32 1.442695, %v7553_v20  ;;  %v14820_v23 = vmul.f32 %v9955_v51, %v9819_v30  ;;  %v9960_v30 = vld [vmem:[%s11678_s25 + $0x20] sm:$0xff]  ;;  %v9961_v51 = vld [vmem:[%s11678_s25 + $0x28] sm:$0xff] }
0x1135   : > { %v7537_v7 = vpop.xlane.xlu0 %7536  ;;  %v7539_v2 = vpop.xlane.xlu1 %7538 }
0x1136   : > { %9828 = vpow2.f32 %v7572_v6  ;;  %v7558_v59 = vsub.f32 %v14771_v1, %v7537_v7  ;;  %7616 = vadd.xlane.f32.xlu0 %v14820_v23  ;;  %v7559_v35 = vsub.f32 %v14775_v27, %v7539_v2  ;;  %v9957_v27 = vld [vmem:[%s11678_s25 + $0x18] sm:$0xff] }
0x1137   : > { %v9821_v31 = vpop.eup %9820  ;;  %9830 = vpow2.f32 %v7574_v36  ;;  %v9962_v2 = vld [vmem:[%s11678_s25 + $0x38] sm:$0xff] }
0x1138   : > { %9832 = vpow2.f32 %v7578_v18  ;;  %v7584_v56 = vmul.f32 1.442695, %v7558_v59  ;;  %v14826_v3 = vmul.f32 %v9956_v50, %v9821_v31  ;;  %v7586_v42 = vmul.f32 1.442695, %v7559_v35  ;;  %v9963_v31 = vld [vmem:[%s11678_s25 + $0x50] sm:$0xff] }
0x1139   : > { %v7533_v4 = vpop.xlane.xlu0 %7532  ;;  %v7535_v48 = vpop.xlane.xlu1 %7534 }
0x113a   : > { %9834 = vpow2.f32 %v7584_v56  ;;  %v7556_v40 = vsub.f32 %v14781_v8, %v7533_v4  ;;  %v7557_v14 = vsub.f32 %v14785_v52, %v7535_v48  ;;  %7612 = vadd.xlane.f32.xlu0 %v14826_v3  ;;  %v9958_v52 = vld [vmem:[%s11678_s25 + $0x8] sm:$0xff]  ;;  %v9964_v4 = vld [vmem:[%s11678_s25 + $0x40] sm:$0xff] }
0x113b   : > { %v9823_v1 = vpop.eup %9822 }
0x113c   : > { %v9825_v16 = vpop.eup %9824  ;;  %v7580_v26 = vmul.f32 1.442695, %v7556_v40  ;;  %v7582_v11 = vmul.f32 1.442695, %v7557_v14  ;;  %v14832_v49 = vmul.f32 %v9957_v27, %v9823_v1  ;;  %v9965_v14 = vld [vmem:[%s11678_s25 + $0x48] sm:$0xff] }
0x113d   : > { %v7545_v60 = vpop.xlane.xlu0 %7544  ;;  %v7547_v34 = vpop.xlane.xlu1 %7546  ;;  %v14837_v47 = vmul.f32 %v9958_v52, %v9825_v16 }
0x113e   : > { %9836 = vpow2.f32 %v7580_v26  ;;  %v7562_v46 = vsub.f32 %v14791_v13, %v7545_v60  ;;  %7618 = vadd.xlane.f32.xlu1 %v14832_v49  ;;  %v7563_v41 = vsub.f32 %v14795_v57, %v7547_v34 }
0x113f   : > { %v9827_v8 = vpop.eup %9826  ;;  %9838 = vpow2.f32 %v7582_v11  ;;  %v9967_v11 = vld [vmem:[%s11678_s25 + $0x70] sm:$0xff] }
0x1140   : > { %9840 = vpow2.f32 %v7586_v42  ;;  %v7592_v53 = vmul.f32 1.442695, %v7562_v46  ;;  %v14841_v15 = vmul.f32 %v9959_v55, %v9827_v8  ;;  %v7594_v33 = vmul.f32 1.442695, %v7563_v41  ;;  %v9966_v42 = vld [vmem:[%s11678_s25 + $0x58] sm:$0xff]  ;;  %v9968_v46 = vld [vmem:[%s11678_s25 + $0x60] sm:$0xff] }
0x1141   : > { %v7541_v5 = vpop.xlane.xlu0 %7540  ;;  %v7543_v25 = vpop.xlane.xlu1 %7542  ;;  %v9970_v55 = vld [vmem:[%s11678_s25 + $0x78] sm:$0xff] }
0x1142   : > { %9842 = vpow2.f32 %v7592_v53  ;;  %v7560_v13 = vsub.f32 %v14801_v32, %v7541_v5  ;;  %v7561_v63 = vsub.f32 %v14805_v29, %v7543_v25  ;;  %7624 = vadd.xlane.f32.xlu0 %v14841_v15  ;;  %7614 = vadd.xlane.f32.xlu1 %v14837_v47  ;;  %v9969_v53 = vld [vmem:[%s11678_s25 + $0x68] sm:$0xff] }
0x1143   : > { %v9829_v0 = vpop.eup %9828 }
0x1144   : > { %v9831_v19 = vpop.eup %9830  ;;  %v7588_v20 = vmul.f32 1.442695, %v7560_v13  ;;  %v7590_v57 = vmul.f32 1.442695, %v7561_v63  ;;  %v14848_v18 = vmul.f32 %v9960_v30, %v9829_v0 }
0x1145   : > { %v9833_v6 = vpop.eup %9832  ;;  %v7723_v36 = vpop.permute.xlu0 %7722  ;;  %v14851_v32 = vmul.f32 %v9961_v51, %v9831_v19 }
0x1146   : > { %9844 = vpow2.f32 %v7588_v20  ;;  %9165 = vmatprep.subr.bf16.mxu0 %v7723_v36  ;;  %7620 = vadd.xlane.f32.xlu1 %v14848_v18  ;;  %v7721_v7 = vpop.permute.xlu1 %7720  ;;  %v14856_v59 = vmul.f32 %v9962_v2, %v9833_v6 }
0x1147   : > { %v9835_v29 = vpop.eup %9834  ;;  %9846 = vpow2.f32 %v7590_v57  ;;  %7622 = vadd.xlane.f32.xlu0 %v14851_v32  ;;  %9166 = vmatpush3.bf16.msra.mxu0 %v7723_v36 }
0x1148   : > { %9848 = vpow2.f32 %v7594_v33  ;;  %9167 = vmatprep.subr.bf16.mxu0 %v7721_v7  ;;  %v14859_v56 = vmul.f32 %v9963_v31, %v9835_v29 }
0x114a   : > { %7626 = vadd.xlane.f32.xlu1 %v14856_v59 }
0x114b   : > { %v9837_v35 = vpop.eup %9836  ;;  %7632 = vadd.xlane.f32.xlu0 %v14859_v56  ;;  %9168 = vmatpush3.bf16.msra.mxu0 %v7721_v7 }
0x114c   : > { %v9839_v50 = vpop.eup %9838  ;;  %v14864_v48 = vmul.f32 %v9964_v4, %v9837_v35 }
0x114d   : > { %v9841_v40 = vpop.eup %9840  ;;  %v14867_v1 = vmul.f32 %v9965_v14, %v9839_v50 }
0x114e   : > { %7628 = vadd.xlane.f32.xlu1 %v14864_v48  ;;  %v14872_v26 = vmul.f32 %v9966_v42, %v9841_v40 }
0x114f   : > { %v9843_v16 = vpop.eup %9842  ;;  %7630 = vadd.xlane.f32.xlu0 %v14867_v1 }
0x1150   : > { %v14875_v27 = vmul.f32 %v9967_v11, %v9843_v16 }
0x1152   : > { %7634 = vadd.xlane.f32.xlu1 %v14872_v26 }
0x1153   : > { %v9845_v60 = vpop.eup %9844  ;;  %7640 = vadd.xlane.f32.xlu0 %v14875_v27 }
0x1154   : > { %v9847_v34 = vpop.eup %9846  ;;  %v14880_v8 = vmul.f32 %v9968_v46, %v9845_v60 }
0x1155   : > { %v9849_v52 = vpop.eup %9848  ;;  %v14883_v41 = vmul.f32 %v9969_v53, %v9847_v34 }
0x1156   : > { %7636 = vadd.xlane.f32.xlu1 %v14880_v8  ;;  %v14888_v5 = vmul.f32 %v9970_v55, %v9849_v52 }
0x1157   : > { %7638 = vadd.xlane.f32.xlu0 %v14883_v41 }
0x115a   : > { %7642 = vadd.xlane.f32.xlu1 %v14888_v5 }
0x116b   : > { %7716 = vrot.lane.b32.xlu1 %v14629_v10, %s10192_s29 }
0x116d   : > { %7718 = vrot.lane.b32.xlu0 %v14692_v38, %s10192_s29  ;;  %s8404_s29 = sshll.u32 %s16063_s30, 3 }
0x116e   : > { %s634_s21 = scalar_lea.vmem %s15092_s15, %s8404_s29 }
0x116f   : > { %7784 = vrot.lane.b32.xlu1 %v14633_v28, %s10194_s12 }
0x1171   : > { %7780 = vrot.lane.b32.xlu0 %v14639_v44, %s10194_s12 }
0x1173   : > { %7786 = vrot.lane.b32.xlu1 %v14635_v45, %s10194_s12 }
0x1175   : > { %7776 = vrot.lane.b32.xlu0 %v14647_v21, %s10194_s12 }
0x1177   : > { %7782 = vrot.lane.b32.xlu1 %v14645_v39, %s10194_s12 }
0x1179   : > { %7772 = vrot.lane.b32.xlu0 %v14658_v43, %s10194_s12 }
0x117b   : > { %7778 = vrot.lane.b32.xlu1 %v14637_v24, %s10194_s12 }
0x117d   : > { %7768 = vrot.lane.b32.xlu0 %v14665_v54, %s10194_s12 }
0x117f   : > { %7774 = vrot.lane.b32.xlu1 %v14649_v22, %s10194_s12 }
0x1181   : > { %7764 = vrot.lane.b32.xlu0 %v14676_v58, %s10194_s12 }
0x1183   : > { %7770 = vrot.lane.b32.xlu1 %v14656_v37, %s10194_s12 }
0x1185   : > { %7760 = vrot.lane.b32.xlu0 %v14683_v12, %s10194_s12 }
0x1187   : > { %7766 = vrot.lane.b32.xlu1 %v14667_v61, %s10194_s12 }
0x1189   : > { %7756 = vrot.lane.b32.xlu0 %v14623_v9, %s10194_s12 }
0x118b   : > { %7762 = vrot.lane.b32.xlu1 %v14674_v62, %s10194_s12 }
0x118f   : > { %7758 = vrot.lane.b32.xlu1 %v14625_v17, %s10194_s12 }
0x11bf   : > { %v7617_v10 = vpop.xlane.xlu0 %7616 }
0x11c0   : > { %vm7646_vm0 = vcmp.gt.f32.partialorder %v7617_v10, 0.0 }
0x11c1   : > { %v7662_v62 = vsel %vm7646_vm0, %v7617_v10, 1.0 }
0x11c3   : > { %v7613_v28 = vpop.xlane.xlu0 %7612 }
0x11c4   : > { %vm7644_vm9 = vcmp.gt.f32.partialorder %v7613_v28, 0.0 }
0x11c5   : > { %v7660_v24 = vsel %vm7644_vm9, %v7613_v28, 1.0 }
0x11c6   : > { %9850 = vrcp.f32 %v7660_v24 }
0x11c7   : > { %v7619_v45 = vpop.xlane.xlu1 %7618 }
0x11c8   : > { %vm7647_vm13 = vcmp.gt.f32.partialorder %v7619_v45, 0.0 }
0x11c9   : > { %v7663_v9 = vsel %vm7647_vm13, %v7619_v45, 1.0 }
0x11cb   : > { %v7625_v44 = vpop.xlane.xlu0 %7624  ;;  %v7615_v39 = vpop.xlane.xlu1 %7614 }
0x11cc   : > { %vm7645_vm12 = vcmp.gt.f32.partialorder %v7615_v39, 0.0  ;;  %vm7650_vm4 = vcmp.gt.f32.partialorder %v7625_v44, 0.0 }
0x11cd   : > { %v7661_v21 = vsel %vm7645_vm12, %v7615_v39, 1.0  ;;  %v7666_v30 = vsel %vm7650_vm4, %v7625_v44, 1.0  ;;  %vm10196_vm12 = vmmov 0  }
0x11ce   : > { %9852 = vrcp.f32 %v7661_v21 }
0x11cf   : > { %v7621_v22 = vpop.xlane.xlu1 %7620  ;;  %9854 = vrcp.f32 %v7663_v9 }
0x11d0   : > { %v7623_v37 = vpop.xlane.xlu0 %7622  ;;  %vm7648_vm11 = vcmp.gt.f32.partialorder %v7621_v22, 0.0 }
0x11d1   : > { %vm7649_vm10 = vcmp.gt.f32.partialorder %v7623_v37, 0.0  ;;  %v7664_v17 = vsel %vm7648_vm11, %v7621_v22, 1.0 }
0x11d2   : > { %v7665_v61 = vsel %vm7649_vm10, %v7623_v37, 1.0  ;;  %9856 = vrcp.f32 %v7664_v17 }
0x11d3   : > { %v7627_v43 = vpop.xlane.xlu1 %7626  ;;  %9858 = vrcp.f32 %v7665_v61  ;;  %v9851_v38 = vpop.eup %9850 }
0x11d4   : > { %v7633_v54 = vpop.xlane.xlu0 %7632  ;;  %vm7651_vm1 = vcmp.gt.f32.partialorder %v7627_v43, 0.0  ;;  %9860 = vrcp.f32 %v7662_v62  ;;  %v7692_v20 = vmul.f32 %v9851_v38, %v14826_v3 }
0x11d5   : > { %v7667_v25 = vsel %vm7651_vm1, %v7627_v43, 1.0  ;;  %vm7654_vm14 = vcmp.gt.f32.partialorder %v7633_v54, 0.0 }
0x11d6   : > { %9862 = vrcp.f32 %v7667_v25  ;;  %v7670_v40 = vsel %vm7654_vm14, %v7633_v54, 1.0 }
0x11d7   : > { %v7629_v58 = vpop.xlane.xlu1 %7628 }
0x11d8   : > { %v7631_v12 = vpop.xlane.xlu0 %7630  ;;  %vm7652_vm2 = vcmp.gt.f32.partialorder %v7629_v58, 0.0 }
0x11d9   : > { %vm7653_vm3 = vcmp.gt.f32.partialorder %v7631_v12, 0.0  ;;  %v7668_v0 = vsel %vm7652_vm2, %v7629_v58, 1.0 }
0x11da   : > { %v7669_v33 = vsel %vm7653_vm3, %v7631_v12, 1.0  ;;  %9864 = vrcp.f32 %v7668_v0  ;;  %v10195_v12 = vmov 0.0  }
0x11db   : > { %v7635_v13 = vpop.xlane.xlu1 %7634  ;;  %v9853_v63 = vpop.eup %9852  ;;  %9866 = vrcp.f32 %v7669_v33  ;;  %9209 = vmatprep.subr.bf16.mxu1 %v10195_v12  ;;  %9225 = vmatprep.mubr.msk.bf16.mxu1 %vm10196_vm12, %v10195_v12 }
0x11dc   : > { %v7641_v19 = vpop.xlane.xlu0 %7640  ;;  %v7693_v57 = vmul.f32 %v9853_v63, %v14837_v47  ;;  %vm7655_vm5 = vcmp.gt.f32.partialorder %v7635_v13, 0.0  ;;  %9868 = vrcp.f32 %v7666_v30  ;;  %v9855_v29 = vpop.eup %9854 }
0x11dd   : > { %v7671_v7 = vsel %vm7655_vm5, %v7635_v13, 1.0  ;;  %v7695_v14 = vmul.f32 %v9855_v29, %v14832_v49  ;;  %vm7658_vm9 = vcmp.gt.f32.partialorder %v7641_v19, 0.0 }
0x11de   : > { %v7708_v36 = vpack.c.bf16 %v7693_v57, %v7692_v20  ;;  %9870 = vrcp.f32 %v7671_v7  ;;  %v7674_v28 = vsel %vm7658_vm9, %v7641_v19, 1.0 }
0x11df   : > { %v7637_v6 = vpop.xlane.xlu1 %7636  ;;  %v9857_v31 = vpop.eup %9856 }
0x11e0   : > { %v7639_v51 = vpop.xlane.xlu0 %7638  ;;  %vm7656_vm6 = vcmp.gt.f32.partialorder %v7637_v6, 0.0  ;;  %9173 = vmatprep.mubr.bf16.mxu0 %v7708_v36  ;;  %v9859_v47 = vpop.eup %9858  ;;  %v7696_v42 = vmul.f32 %v9857_v31, %v14848_v18 }
0x11e1   : > { %vm7657_vm7 = vcmp.gt.f32.partialorder %v7639_v51, 0.0  ;;  %v7672_v3 = vsel %vm7656_vm6, %v7637_v6, 1.0  ;;  %v9861_v4 = vpop.eup %9860  ;;  %v7697_v11 = vmul.f32 %v9859_v47, %v14851_v32 }
0x11e2   : > { %v7673_v50 = vsel %vm7657_vm7, %v7639_v51, 1.0  ;;  %9872 = vrcp.f32 %v7672_v3  ;;  %v7694_v60 = vmul.f32 %v9861_v4, %v14820_v23 }
0x11e3   : > { %v7643_v2 = vpop.xlane.xlu1 %7642  ;;  %9874 = vrcp.f32 %v7673_v50  ;;  %v9863_v34 = vpop.eup %9862  ;;  %v7710_v55 = vpack.c.bf16 %v7697_v11, %v7696_v42 }
0x11e4   : > { %v7719_v35 = vpop.permute.xlu0 %7718  ;;  %9876 = vrcp.f32 %v7670_v40  ;;  %vm7659_vm8 = vcmp.gt.f32.partialorder %v7643_v2, 0.0  ;;  %v7709_v46 = vpack.c.bf16 %v7695_v14, %v7694_v60  ;;  %v7699_v18 = vmul.f32 %v9863_v34, %v14856_v59 }
0x11e5   : > { %9169 = vmatprep.subr.bf16.mxu0 %v7719_v35  ;;  %v7675_v53 = vsel %vm7659_vm8, %v7643_v2, 1.0 }
0x11e6   : > { %9170 = vmatpush3.bf16.msra.mxu0 %v7719_v35  ;;  %9878 = vrcp.f32 %v7675_v53 }
0x11e7   : > { %v7717_v16 = vpop.permute.xlu1 %7716  ;;  %v9865_v52 = vpop.eup %9864  ;;  %9880 = vrcp.f32 %v7674_v28 }
0x11e8   : > { %9171 = vmatprep.subr.bf16.mxu0 %v7717_v16  ;;  %v9867_v49 = vpop.eup %9866  ;;  %v7700_v32 = vmul.f32 %v9865_v52, %v14864_v48  ;;  %v7781_v63 = vpop.permute.xlu0 %7780 }
0x11e9   : > { %v9869_v10 = vpop.eup %9868  ;;  %v7701_v23 = vmul.f32 %v9867_v49, %v14867_v1 }
0x11ea   : > { %9172 = vmatpush3.bf16.msra.mxu0 %v7717_v16  ;;  %v7698_v45 = vmul.f32 %v9869_v10, %v14841_v15 }
0x11eb   : > { %v9871_v24 = vpop.eup %9870  ;;  %v7712_v21 = vpack.c.bf16 %v7701_v23, %v7700_v32  ;;  %9189 = vmatprep.subr.bf16.mxu0 %v10195_v12 }
0x11ec   : > { %v7711_v44 = vpack.c.bf16 %v7699_v18, %v7698_v45  ;;  %v7703_v9 = vmul.f32 %v9871_v24, %v14872_v26  ;;  %v7785_v26 = vpop.permute.xlu1 %7784  ;;  %v7777_v57 = vpop.permute.xlu0 %7776 }
0x11ed   : > { %9174 = vmatmul.mubr.bf16.vlgmr.msra.gmra.mxu0 %v7709_v46 }
0x11ee   : > { %9177 = vmatprep.mubr.bf16.mxu0 %v7710_v55 }
0x11ef   : > { %v9873_v39 = vpop.eup %9872 }
0x11f0   : > { %v9875_v22 = vpop.eup %9874  ;;  %v7704_v43 = vmul.f32 %v9873_v39, %v14880_v8  ;;  %v7773_v29 = vpop.permute.xlu0 %7772 }
0x11f1   : > { %v9877_v37 = vpop.eup %9876  ;;  %v7705_v59 = vmul.f32 %v9875_v22, %v14883_v41  ;;  %v7787_v41 = vpop.permute.xlu1 %7786 }
0x11f2   : > { %v7702_v48 = vmul.f32 %v9877_v37, %v14859_v56  ;;  %v8930_v56 = vld [vmem:[#allocation2] ss:$0 sm:$0xff] }
0x11f3   : > { %v9879_v17 = vpop.eup %9878  ;;  %v7714_v54 = vpack.c.bf16 %v7705_v59, %v7704_v43  ;;  %8015 = vperm.xlu0 %9347, %v8930_v56  }
0x11f4   : > { %v7713_v1 = vpack.c.bf16 %v7703_v9, %v7702_v48  ;;  %v9881_v15 = vpop.eup %9880  ;;  %v7707_v61 = vmul.f32 %v9879_v17, %v14888_v5  ;;  %v7769_v14 = vpop.permute.xlu0 %7768 }
0x11f5   : > { %9178 = vmatmul.mubr.bf16.gmra.mxu0 %v7711_v44  ;;  %v7706_v62 = vmul.f32 %v9881_v15, %v14875_v27  ;;  %v7783_v13 = vpop.permute.xlu1 %7782 }
0x11f6   : > { %9181 = vmatprep.mubr.bf16.mxu0 %v7712_v21 }
0x11f7   : > { %v7715_v58 = vpack.c.bf16 %v7707_v61, %v7706_v62 }
0x11f8   : > { %v7765_v23 = vpop.permute.xlu0 %7764 }
0x11f9   : > { %v7779_v20 = vpop.permute.xlu1 %7778 }
0x11fd   : > { %9182 = vmatmul.mubr.bf16.gmra.mxu0 %v7713_v1  ;;  %v7775_v51 = vpop.permute.xlu1 %7774 }
0x11fe   : > { %9185 = vmatprep.mubr.bf16.mxu0 %v7714_v54  ;;  %v7761_v54 = vpop.permute.xlu0 %7760 }
0x1201   : > { %v7771_v47 = vpop.permute.xlu1 %7770 }
0x1205   : > { %9186 = vmatmul.mubr.bf16.gmra.mxu0 %v7715_v58  ;;  %v7767_v18 = vpop.permute.xlu1 %7766 }
0x1206   : > { %9205 = vmatprep.mubr.msk.bf16.mxu0 %vm10196_vm12, %v10195_v12 }
0x1209   : > { %v7763_v1 = vpop.permute.xlu1 %7762 }
0x12ad   : > { %v14933_v8 = vpop.f32.mrf.mxu0 }
0x12ae   : > { %v14976_v62 = vadd.f32 %v14933_v8, %v7761_v54 }
0x12af   : > { %v14935_v27 = vpop.f32.mrf.mxu0 }
0x12b0   : > { %vm7903_vm9 = vcmp.gt.f32.partialorder %v14976_v62, 0.0 }
0x12b1   : > { %v14937_v5 = vpop.f32.mrf.mxu0 }
0x12b2   : > { %v14979_v58 = vadd.f32 %v14937_v5, %v7763_v1 }
0x12b3   : > { %v14939_v38 = vpop.f32.mrf.mxu0 }
0x12b4   : > { %vm7904_vm8 = vcmp.gt.f32.partialorder %v14979_v58, 0.0 }
0x12b5   : > { %v9179_v25 = vpop.f32.mrf.mxu0 }
0x12b6   : > { %v14966_v21 = vadd.f32 %v9179_v25, %v7769_v14 }
0x12b7   : > { %v7854_v0 = vpop.f32.mrf.mxu0 }
0x12b8   : > { %v14972_v17 = vadd.f32 %v7854_v0, %v7765_v23  ;;  %v7923_v15 = vmin.f32 %v14966_v21, 0.0  ;;  %v7919_v0 = vmin.f32 %v14976_v62, 0.0  ;;  %vm7907_vm6 = vcmp.gt.f32.partialorder %v14966_v21, 0.0 }
0x12b9   : > { %v9180_v19 = vpop.f32.mrf.mxu0 }
0x12ba   : > { %v14962_v45 = vadd.f32 %v9180_v19, %v7771_v47  ;;  %v7945_v25 = vmul.f32 1.442695, %v7923_v15  ;;  %v7757_v19 = vpop.permute.xlu0 %7756  ;;  %vm7905_vm14 = vcmp.gt.f32.partialorder %v14972_v17, 0.0 }
0x12bb   : > { %v7857_v33 = vpop.f32.mrf.mxu0 }
0x12bc   : > { %v7924_v43 = vmin.f32 %v14962_v45, 0.0  ;;  %v14970_v59 = vadd.f32 %v7857_v33, %v7767_v18  ;;  %v7920_v33 = vmin.f32 %v14979_v58, 0.0  ;;  %vm7908_vm5 = vcmp.gt.f32.partialorder %v14962_v45, 0.0 }
0x12bd   : > { %v9183_v30 = vpop.f32.mrf.mxu0 }
0x12be   : > { %v14945_v50 = vadd.f32 %v9183_v30, %v7777_v57  ;;  %v7947_v56 = vmul.f32 1.442695, %v7924_v43  ;;  %vm7906_vm7 = vcmp.gt.f32.partialorder %v14970_v59, 0.0 }
0x12bf   : > { %v7870_v6 = vpop.f32.mrf.mxu0 }
0x12c0   : > { %v7927_v53 = vmin.f32 %v14945_v50, 0.0  ;;  %v14957_v55 = vadd.f32 %v7870_v6, %v7773_v29  ;;  %vm7911_vm2 = vcmp.gt.f32.partialorder %v14945_v50, 0.0 }
0x12c1   : > { %v9184_v36 = vpop.f32.mrf.mxu0 }
0x12c2   : > { %v14941_v31 = vadd.f32 %v9184_v36, %v7779_v20  ;;  %v7953_v22 = vmul.f32 1.442695, %v7927_v53  ;;  %v7925_v37 = vmin.f32 %v14957_v55, 0.0  ;;  %v14989_v20 = vadd.f32 %v14935_v27, %v7757_v19 }
0x12c3   : > { %v7873_v7 = vpop.f32.mrf.mxu0  ;;  %vm7909_vm4 = vcmp.gt.f32.partialorder %v14957_v55, 0.0 }
0x12c4   : > { %v7928_v42 = vmin.f32 %v14941_v31, 0.0  ;;  %v14952_v34 = vadd.f32 %v7873_v7, %v7775_v51  ;;  %v7949_v61 = vmul.f32 1.442695, %v7925_v37  ;;  %v7937_v51 = vmul.f32 1.442695, %v7919_v0 }
0x12c5   : > { %v9187_v2 = vpop.f32.mrf.mxu0  ;;  %v7939_v7 = vmul.f32 1.442695, %v7920_v33  ;;  %vm7912_vm1 = vcmp.gt.f32.partialorder %v14941_v31, 0.0 }
0x12c6   : > { %v14943_v3 = vadd.f32 %v9187_v2, %v7785_v26  ;;  %v7955_v32 = vmul.f32 1.442695, %v7928_v42  ;;  %v7926_v24 = vmin.f32 %v14952_v34, 0.0  ;;  %v7922_v26 = vmin.f32 %v14970_v59, 0.0 }
0x12c7   : > { %v7886_v35 = vpop.f32.mrf.mxu0  ;;  %vm7910_vm3 = vcmp.gt.f32.partialorder %v14952_v34, 0.0 }
0x12c8   : > { %v7931_v4 = vmin.f32 %v14943_v3, 0.0  ;;  %v14948_v40 = vadd.f32 %v7886_v35, %v7781_v63  ;;  %v7951_v48 = vmul.f32 1.442695, %v7926_v24  ;;  %v7759_v63 = vpop.permute.xlu1 %7758  ;;  %v7943_v5 = vmul.f32 1.442695, %v7922_v26 }
0x12c9   : > { %v9188_v16 = vpop.f32.mrf.mxu0  ;;  %v14986_v8 = vadd.f32 %v14939_v38, %v7759_v63  ;;  %v7917_v38 = vmin.f32 %v14989_v20, 0.0  ;;  %vm7915_vm13 = vcmp.gt.f32.partialorder %v14943_v3, 0.0 }
0x12ca   : > { %v7961_v11 = vmul.f32 1.442695, %v7931_v4  ;;  %v7929_v60 = vmin.f32 %v14948_v40, 0.0  ;;  %v14954_v46 = vadd.f32 %v9188_v16, %v7787_v41  ;;  %v7921_v41 = vmin.f32 %v14972_v17, 0.0 }
0x12cb   : > { %v7889_v52 = vpop.f32.mrf.mxu0  ;;  %v7918_v2 = vmin.f32 %v14986_v8, 0.0  ;;  %vm7913_vm0 = vcmp.gt.f32.partialorder %v14948_v40, 0.0 }
0x12cc   : > { %9882 = vpow2.f32 %v7961_v11  ;;  %v7957_v49 = vmul.f32 1.442695, %v7929_v60  ;;  %v7932_v10 = vmin.f32 %v14954_v46, 0.0  ;;  %v14960_v28 = vadd.f32 %v7889_v52, %v7783_v13 }
0x12cd   : > { %v7941_v57 = vmul.f32 1.442695, %v7921_v41  ;;  %vm7916_vm11 = vcmp.gt.f32.partialorder %v14954_v46, 0.0  ;;  %v7935_v60 = vmul.f32 1.442695, %v7918_v2 }
0x12ce   : > { %v7963_v44 = vmul.f32 1.442695, %v7932_v10  ;;  %v7930_v39 = vmin.f32 %v14960_v28, 0.0  ;;  %9884 = vpow2.f32 %v7957_v49  ;;  %vm7914_vm10 = vcmp.gt.f32.partialorder %v14960_v28, 0.0  ;;  %v8007_v2 = vld [vmem:[%s15088_s11] sm:$0xf] }
0x12d0   : > { %9886 = vpow2.f32 %v7963_v44  ;;  %v7959_v9 = vmul.f32 1.442695, %v7930_v39 }
0x12d1   : > { %9888 = vpow2.f32 %v7955_v32 }
0x12d2   : > { %9890 = vpow2.f32 %v7959_v9 }
0x12d3   : > { %9892 = vpow2.f32 %v7953_v22 }
0x12d4   : > { %9894 = vpow2.f32 %v7951_v48 }
0x12d5   : > { %9896 = vpow2.f32 %v7949_v61 }
0x12d6   : > { %9898 = vpow2.f32 %v7947_v56 }
0x12d7   : > { %9900 = vpow2.f32 %v7945_v25 }
0x12d8   : > { %9902 = vpow2.f32 %v7943_v5 }
0x12d9   : > { %v9883_v13 = vpop.eup %9882  ;;  %9904 = vpow2.f32 %v7941_v57 }
0x12da   : > { %v8928_v6 = vadd.f32 -1.0, %v9883_v13  ;;  %9906 = vpow2.f32 %v7939_v7 }
0x12db   : > { %v9885_v30 = vpop.eup %9884  ;;  %9908 = vpow2.f32 %v7937_v51 }
0x12dc   : > { %v7995_v27 = vsel %vm7915_vm13, %v14943_v3, %v8928_v6  ;;  %v8926_v4 = vadd.f32 -1.0, %v9885_v30  ;;  %v7933_v3 = vmul.f32 1.442695, %v7917_v38  ;;  %9910 = vpow2.f32 %v7935_v60  ;;  %v7997_v38 = vld [vmem:[%s629_s22] sm:$0xff] }
0x12dd   : > { %v9887_v36 = vpop.eup %9886  ;;  %vm7902_vm13 = vcmp.gt.f32.partialorder %v14986_v8, 0.0 }
0x12de   : > { %v9889_v29 = vpop.eup %9888  ;;  %v8929_v35 = vadd.f32 -1.0, %v9887_v36  ;;  %9912 = vpow2.f32 %v7933_v3 }
0x12df   : > { %v9891_v47 = vpop.eup %9890  ;;  %v8925_v52 = vadd.f32 -1.0, %v9889_v29 }
0x12e0   : > { %v7996_v14 = vsel %vm7916_vm11, %v14954_v46, %v8929_v35  ;;  %v8927_v16 = vadd.f32 -1.0, %v9891_v47  ;;  %v9893_v42 = vpop.eup %9892  ;;  %v7993_v46 = vsel %vm7913_vm0, %v14948_v40, %v8926_v4  ;;  %vm7901_vm11 = vcmp.gt.f32.partialorder %v14989_v20, 0.0  ;;  %v8016_v35 = vpop.permute.xlu0 %8015  ;;  %v7998_v47 = vld [vmem:[%s629_s22 + $0x8] sm:$0xff] }
0x12e1   : > { %v8006_v11 = vpack.c.bf16 %v7996_v14, %v7995_v27  ;;  %v9895_v49 = vpop.eup %9894  ;;  %v8924_v18 = vadd.f32 -1.0, %v9893_v42  ;;  %vm8085_vm0 = vcmp.gt.f32.partialorder %v7997_v38, 0.0 }
0x12e2   : > { %v7994_v53 = vsel %vm7914_vm10, %v14960_v28, %v8927_v16  ;;  %v9897_v32 = vpop.eup %9896  ;;  %v7992_v28 = vsel %vm7912_vm1, %v14941_v31, %v8925_v52  ;;  %v8923_v24 = vadd.f32 -1.0, %v9895_v49  ;;  %vm8086_vm10 = vcmp.gt.f32.partialorder %v7998_v47, 0.0  ;;  %v16059_v16 = vld [vmem:[#allocation19_spill] sm:$0xff] }
0x12e3   : > { %9210 = vmatpush3.bf16.msra.mxu1 %v8006_v11  ;;  %v8043_v10 = vsel %vm7338_vm15, %v8006_v11, 0  ;;  %v8005_v23 = vpack.c.bf16 %v7994_v53, %v7993_v46  ;;  %v9899_v44 = vpop.eup %9898  ;;  %v7991_v40 = vsel %vm7911_vm2, %v14945_v50, %v8924_v18  ;;  %v8922_v39 = vadd.f32 -1.0, %v9897_v32 }
0x12e4   : > { %9190 = vmatpush3.bf16.xpose.msra.mxu0 %v8043_v10  ;;  %9211 = vmatprep.subr.bf16.mxu1 %v10195_v12  ;;  %v9901_v22 = vpop.eup %9900  ;;  %v8004_v37 = vpack.c.bf16 %v7992_v28, %v7991_v40  ;;  %v8921_v9 = vadd.f32 -1.0, %v9899_v44  ;;  %v7990_v43 = vsel %vm7910_vm3, %v14952_v34, %v8923_v24 }
0x12e5   : > { %9191 = vmatprep.subr.bf16.mxu0 %v10195_v12  ;;  %v9903_v48 = vpop.eup %9902  ;;  %v8040_v31 = vsel %vm7338_vm15, %v8005_v23, 0  ;;  %v8920_v54 = vadd.f32 -1.0, %v9901_v22  ;;  %v7989_v50 = vsel %vm7909_vm4, %v14957_v55, %v8922_v39 }
0x12e6   : > { %v9905_v1 = vpop.eup %9904  ;;  %v8003_v15 = vpack.c.bf16 %v7990_v43, %v7989_v50  ;;  %v7988_v34 = vsel %vm7908_vm5, %v14962_v45, %v8921_v9  ;;  %v8919_v61 = vadd.f32 -1.0, %v9903_v48  ;;  %v8037_v45 = vsel %vm7338_vm15, %v8004_v37, 0  ;;  %v9401_v50 = vld [vmem:[%s15090_s13] sm:$0xff]  }
0x12e7   : > { %9212 = vmatpush3.bf16.msra.mxu1 %v8005_v23  ;;  %v9907_v56 = vpop.eup %9906  ;;  %v7987_v26 = vsel %vm7907_vm6, %v14966_v21, %v8920_v54  ;;  %v8918_v41 = vadd.f32 -1.0, %v9905_v1  ;;  %v9400_v54 = vld [vmem:[%s15090_s13 + $0x8] sm:$0xff]  }
0x12e8   : > { %9213 = vmatprep.subr.bf16.mxu1 %v10195_v12  ;;  %v9909_v55 = vpop.eup %9908  ;;  %v8002_v25 = vpack.c.bf16 %v7988_v34, %v7987_v26  ;;  %v8917_v13 = vadd.f32 -1.0, %v9907_v56  ;;  %v7986_v63 = vsel %vm7906_vm7, %v14970_v59, %v8919_v61  ;;  %v8034_v51 = vsel %vm7338_vm15, %v8003_v15, 0 }
0x12e9   : > { %v9911_v0 = vpop.eup %9910  ;;  %v8916_v19 = vadd.f32 -1.0, %v9909_v55  ;;  %v7985_v33 = vsel %vm7905_vm14, %v14972_v17, %v8918_v41 }
0x12ea   : > { %v8001_v5 = vpack.c.bf16 %v7986_v63, %v7985_v33  ;;  %v7984_v59 = vsel %vm7904_vm8, %v14979_v58, %v8917_v13  ;;  %v8915_v57 = vadd.f32 -1.0, %v9911_v0 }
0x12eb   : > { %9214 = vmatpush3.bf16.msra.mxu1 %v8004_v37  ;;  %v9913_v21 = vpop.eup %9912  ;;  %v7983_v30 = vsel %vm7903_vm9, %v14976_v62, %v8916_v19  ;;  %v8031_v62 = vsel %vm7338_vm15, %v8002_v25, 0 }
0x12ec   : > { %9192 = vmatpush3.bf16.xpose.msra.mxu0 %v8040_v31  ;;  %9215 = vmatprep.subr.bf16.mxu1 %v10195_v12  ;;  %v8914_v6 = vadd.f32 -1.0, %v9913_v21  ;;  %v8000_v17 = vpack.c.bf16 %v7984_v59, %v7983_v30  ;;  %v7982_v36 = vsel %vm7902_vm13, %v14986_v8, %v8915_v57  ;;  %v8028_v8 = vsel %vm7338_vm15, %v8001_v5, 0 }
0x12ed   : > { %9193 = vmatprep.subr.bf16.mxu0 %v10195_v12 }
0x12ee   : > { %v7981_v58 = vsel %vm7901_vm11, %v14989_v20, %v8914_v6  ;;  %v8025_v20 = vsel %vm7338_vm15, %v8000_v17, 0 }
0x12ef   : > { %9216 = vmatpush3.bf16.msra.mxu1 %v8003_v15  ;;  %v7999_v29 = vpack.c.bf16 %v7982_v36, %v7981_v58 }
0x12f0   : > { %9217 = vmatprep.subr.bf16.mxu1 %v10195_v12 }
0x12f1   : > { %v8022_v7 = vsel %vm7338_vm15, %v7999_v29, 0 }
0x12f3   : > { %9218 = vmatpush3.bf16.msra.mxu1 %v8002_v25 }
0x12f4   : > { %9194 = vmatpush3.bf16.xpose.msra.mxu0 %v8037_v45  ;;  %9219 = vmatprep.subr.bf16.mxu1 %v10195_v12 }
0x12f5   : > { %9195 = vmatprep.subr.bf16.mxu0 %v10195_v12 }
0x12f7   : > { %9220 = vmatpush3.bf16.msra.mxu1 %v8001_v5 }
0x12f8   : > { %9221 = vmatprep.subr.bf16.mxu1 %v10195_v12 }
0x12fb   : > { %9222 = vmatpush3.bf16.msra.mxu1 %v8000_v17 }
0x12fc   : > { %9196 = vmatpush3.bf16.xpose.msra.mxu0 %v8034_v51  ;;  %9223 = vmatprep.subr.bf16.mxu1 %v10195_v12 }
0x12fd   : > { %9197 = vmatprep.subr.bf16.mxu0 %v10195_v12 }
0x12ff   : > { %9224 = vmatpush3.bf16.msra.mxu1 %v7999_v29 }
0x1300   : > { %9229 = vmatprep.subr.bf16.mxu1 %v10195_v12 }
0x1304   : > { %9198 = vmatpush3.bf16.xpose.msra.mxu0 %v8031_v62 }
0x1305   : > { %9199 = vmatprep.subr.bf16.mxu0 %v10195_v12 }
0x130c   : > { %9200 = vmatpush3.bf16.xpose.msra.mxu0 %v8028_v8 }
0x130d   : > { %9201 = vmatprep.subr.bf16.mxu0 %v10195_v12 }
0x1314   : > { %9202 = vmatpush3.bf16.xpose.msra.mxu0 %v8025_v20 }
0x1315   : > { %9203 = vmatprep.subr.bf16.mxu0 %v10195_v12 }
0x131c   : > { %9204 = vmatpush3.bf16.xpose.msra.mxu0 %v8022_v7 }
0x1323   : > { %9206 = vmatmul.mubr.msk.bf16.vlgmr.msra.gmra.mxu0 %vm7338_vm15, %v8007_v2 }
0x13e3   : > { %v8079_v27 = vpop.f32.mrf.mxu0 }
0x13e4   : > { %v8080_v4 = vadd.f32 %v8079_v27, %v8016_v35 }
0x13e5   : > { %v9207_v14 = vpop.f32.mrf.mxu0 }
0x13e6   : > { %v8090_v42 = vrot.slane %v8080_v4, %v16059_v16 }
0x13e7   : > { %v8082_v11 = vpop.f32.mrf.mxu0 }
0x13e8   : > { %v8092_v60 = vsel %vm8086_vm10, %v8090_v42, -1e+30  ;;  %v8091_v52 = vsel %vm8085_vm0, %v8090_v42, -1e+30 }
0x13e9   : > { %8095 = vmax.xlane.f32.xlu0 %v8092_v60  ;;  %8093 = vmax.xlane.f32.xlu1 %v8091_v52  ;;  %v9208_v53 = vpop.f32.mrf.mxu0 }
0x1472   : > { %v8096_v49 = vpop.xlane.xlu0 %8095  ;;  %v8094_v10 = vpop.xlane.xlu1 %8093 }
0x1473   : > { %v8098_v3 = vsub.f32 %v8092_v60, %v8096_v49  ;;  %v8097_v18 = vsub.f32 %v8091_v52, %v8094_v10 }
0x1475   : > { %v8101_v46 = vmul.f32 1.442695, %v8098_v3  ;;  %v8099_v32 = vmul.f32 1.442695, %v8097_v18 }
0x1477   : > { %9914 = vpow2.f32 %v8101_v46 }
0x1478   : > { %9916 = vpow2.f32 %v8099_v32 }
0x1484   : > { %v9915_v23 = vpop.eup %9914 }
0x1485   : > { %v9917_v28 = vpop.eup %9916  ;;  %v8104_v24 = vmul.f32 %v9915_v23, %v7998_v47 }
0x1486   : > { %v8103_v44 = vmul.f32 %v9917_v28, %v7997_v38 }
0x1487   : > { %8107 = vadd.xlane.f32.xlu1 %v8104_v24 }
0x1488   : > { %8105 = vadd.xlane.f32.xlu0 %v8103_v44 }
0x1510   : > { %v8108_v40 = vpop.xlane.xlu1 %8107 }
0x1511   : > { %v8106_v39 = vpop.xlane.xlu0 %8105  ;;  %vm8110_vm1 = vcmp.gt.f32.partialorder %v8108_v40, 0.0 }
0x1512   : > { %vm8109_vm2 = vcmp.gt.f32.partialorder %v8106_v39, 0.0  ;;  %v8112_v22 = vsel %vm8110_vm1, %v8108_v40, 1.0 }
0x1513   : > { %v8111_v37 = vsel %vm8109_vm2, %v8106_v39, 1.0  ;;  %9918 = vrcp.f32 %v8112_v22 }
0x1514   : > { %9920 = vrcp.f32 %v8111_v37 }
0x1520   : > { %v9919_v9 = vpop.eup %9918 }
0x1521   : > { %v9921_v43 = vpop.eup %9920  ;;  %v8116_v48 = vmul.f32 %v9919_v9, %v8104_v24 }
0x1522   : > { %v8115_v31 = vmul.f32 %v9921_v43, %v8103_v44 }
0x1524   : > { %v8117_v1 = vpack.c.bf16 %v8116_v48, %v8115_v31 }
0x1526   : > { %9226 = vmatmul.mubr.bf16.vlgmr.msra.gmra.mxu1 %v8117_v1 }
0x1527   : > { %9233 = vmatprep.mubr.msk.bf16.mxu1 %vm10196_vm12, %v10195_v12  ;;  %9230 = vmatpush3.bf16.msra.mxu1 %v9400_v54 }
0x1528   : > { %9231 = vmatprep.subr.bf16.mxu1 %v10195_v12  ;;  %v8932_v12 = vld [vmem:[%s15091_s14] ss:$0 sm:$0xff] }
0x152b   : > { %9232 = vmatpush3.bf16.msra.mxu1 %v9401_v50 }
0x15e6   : > { %v8152_v15 = vpop.f32.mrf.mxu1 }
0x15e8   : > { %v9227_v34 = vpop.f32.mrf.mxu1 }
0x15ea   : > { %v8155_v61 = vpop.f32.mrf.mxu1 }
0x15eb   : > { %v8159_v56 = vpack.c.bf16 %v8155_v61, %v8152_v15 }
0x15ec   : > { %v9228_v26 = vpop.f32.mrf.mxu1 }
0x15ed   : > { %9234 = vmatmul.mubr.msk.bf16.vlgmr.msra.gmra.mxu1 %vm7338_vm15, %v8159_v56 }
0x16ad   : > { %v8220_v41 = vpop.f32.mrf.mxu1 }
0x16ae   : > { %v8221_v55 = vadd.f32 %v8932_v12, %v8220_v41 }
0x16af   : > { %v9235_v25 = vpop.f32.mrf.mxu1 }
0x16b0   : > { %8227 = vst [vmem:[%s634_s21] sm:$0xff] %v8221_v55 }
0x16b1   : > { %v8223_v13 = vpop.f32.mrf.mxu1 }
0x16b2   : > { %v8224_v63 = vadd.f32 %v8932_v12, %v8223_v13 }
0x16b3   : > { %v9236_v0 = vpop.f32.mrf.mxu1 }
0x16b4   : > { %8228 = vst [vmem:[%s634_s21 + $0x8] sm:$0xff] %v8224_v63 }
0x16b5 PF: > { %s31_s20 = sadd.s32 1, %s10175_s20  }
0x16b6   : > { %p28_p4 = scmp.ge.s32.totalorder %s31_s20, 4  }
0x16b8   :  { %30 = sbr.rel (!%p28_p4) target bundleno = 7 (0x7), region = 145 }
0x16bd   :  { %8251 = vsyncpa [#allocation4], 1 }
0x16be   :  { %8253 = vsyncpa [#allocation4 + $0x1], 1 }
0x16bf   :  { %8254 = vsyncpa [#allocation6], 1 }
0x16c0   :  { %8255 = vsyncpa [#allocation9], 1 }
0x16c1   :  { %8256 = vsyncpa [#allocation12], 1 }

</bundles_post_ra>
